<compile_context>
chip_gen: v7x
topology: tpu7x:2x2x1
jax: 0.10.0
libtpu: 0.0.40
codegen_flags: <defaults>
</compile_context>

<pallas_src>
import numpy as np
import jax
import jax.numpy as jnp
from jax import lax
from jax.experimental import pallas as pl
from jax.experimental.pallas import tpu as pltpu

_TAPS = tuple((ky - 1, kx - 1) for ky in range(3) for kx in range(3))   # t = ky*3 + kx


# ----------------------------------------------------------------------------
# Host-side geometry constants
# ----------------------------------------------------------------------------

def _boundary_masks(H, W, bt):
    """(9, bt*H*W) 0/1 masks; mask[t, b*HW+h*W+w]=1 iff tap source (h+dy, w+dx) is inside
    the image.  Encodes the zero padding AND prevents the cyclic shift from leaking
    pixels across row / image boundaries."""
    m = np.zeros((9, H, W), np.float32)
    for t, (dy, dx) in enumerate(_TAPS):
        m[t, max(0, -dy):min(H, H - dy), max(0, -dx):min(W, W - dx)] = 1.0
    return np.tile(m.reshape(9, H * W), (1, bt))


def _downsample_matrix(H, W, bt):
    """(bt*H*W, bt*Ho*Wo) 0/1 matrix: column b*HoWo+ho*Wo+wo selects row b*HW+2ho*W+2wo,
    i.e. exact 2x spatial subsampling per image (== stride-2 conv after a stride-1 conv)."""
    Ho, Wo = H // 2, W // 2
    S = np.zeros((bt * H * W, bt * Ho * Wo), np.float32)
    for b in range(bt):
        for ho in range(Ho):
            for wo in range(Wo):
                S[b * H * W + 2 * ho * W + 2 * wo, b * Ho * Wo + ho * Wo + wo] = 1.0
    return S


def _pool_matrix(hw, bt):
    """(bt*hw, bt): global average pool per image."""
    P = np.zeros((bt * hw, bt), np.float32)
    for b in range(bt):
        P[b * hw:(b + 1) * hw, b] = 1.0 / hw
    return P


# ----------------------------------------------------------------------------
# Parameter / plan construction (deterministic synthetic weights)
# ----------------------------------------------------------------------------

def build_wide_resnet(key, depth=10, widen_factor=1, num_classes=10, in_ch=3, in_dim=16):
    assert (depth - 4) % 6 == 0, 'Wide-resnet depth should be 6n+4'
    assert num_classes <= 128
    n = (depth - 4) // 6
    k = widen_factor
    stages = [16, 16 * 2 * k, 16 * 4 * k, 16 * 8 * k]
    # pad input channels so the 9-tap sublane concat stays (16,128)-tile aligned in bf16
    cin_pad0 = max(16, ((in_ch + 15) // 16) * 16)

    keys = iter(jax.random.split(key, 8 * depth + 16))
    consts, refp, biases = {}, {}, []

    def add_bias(cout, kb):
        b = jax.random.normal(kb, (cout,), jnp.float32) * 0.01
        biases.append(b)
        return len(biases) - 1, b

    def add_conv3(name, cin, cout, cin_pad=None):
        cp = cin if cin_pad is None else cin_pad
        kw, kb = jax.random.split(next(keys))
        w = (jax.random.normal(kw, (9, cin, cout), jnp.float32)
             / np.sqrt(9.0 * cin)).astype(jnp.bfloat16)
        if cp > cin:
            w = jnp.concatenate([w, jnp.zeros((9, cp - cin, cout), jnp.bfloat16)], axis=1)
        # fold taps: patches rows are ordered t*cp + c  ->  kernel weight is (cout, 9*cp)
        consts[name] = jnp.transpose(w.reshape(9 * cp, cout))
        bidx, b = add_bias(cout, kb)
        # f32 reference weight in OIHW (real input channels only)
        w_oihw = jnp.transpose(
            w.astype(jnp.float32).reshape(3, 3, cp, cout)[:, :, :cin, :], (3, 2, 0, 1))
        refp[name] = (w_oihw, b)
        return name, bidx

    def add_conv1(name, cin, cout):
        kw, kb = jax.random.split(next(keys))
        w = (jax.random.normal(kw, (cin, cout), jnp.float32)
             / np.sqrt(float(cin))).astype(jnp.bfloat16)
        consts[name] = jnp.transpose(w)                               # (cout, cin)
        bidx, b = add_bias(cout, kb)
        refp[name] = (jnp.transpose(w.astype(jnp.float32)).reshape(cout, cin, 1, 1), b)
        return name, bidx

    plan = []
    H = in_dim
    wn, bidx = add_conv3('stem', in_ch, stages[0], cin_pad0)
    plan.append(dict(kind='conv', H=H, w=wn, b=bidx, cin=cin_pad0, cout=stages[0]))

    in_planes = stages[0]
    for li, (planes, stride0) in enumerate(zip(stages[1:], (1, 2, 2))):
        for blk_i in range(n):
            s = stride0 if blk_i == 0 else 1
            p = f'l{li}b{blk_i}'
            c1, c1b = add_conv3(p + '_c1', in_planes, planes)
            c2, c2b = add_conv3(p + '_c2', planes, planes)
            blk = dict(kind='block', H=H, stride=s,
                       c1=c1, c1b=c1b, c2=c2, c2b=c2b,
                       cin=in_planes, cmid=planes, cout=planes, sc=None, scb=None)
            if s != 1 or in_planes != planes:
                blk['sc'], blk['scb'] = add_conv1(p + '_sc', in_planes, planes)
            plan.append(blk)
            in_planes = planes
            H = H // s

    lane = 128
    nc_pad = ((num_classes + lane - 1) // lane) * lane
    kw, kb = jax.random.split(next(keys))
    lw = (jax.random.normal(kw, (stages[3], num_classes), jnp.float32)
          / np.sqrt(float(stages[3]))).astype(jnp.bfloat16)
    consts['lin'] = (jnp.zeros((nc_pad, stages[3]), jnp.bfloat16)
                     .at[:num_classes, :].set(jnp.transpose(lw)))
    lb = jax.random.normal(kb, (num_classes,), jnp.float32) * 0.01
    lb_idx = len(biases)
    biases.append(jnp.zeros((nc_pad,), jnp.float32).at[:num_classes].set(lb))
    refp['lin'] = (lw.astype(jnp.float32), lb)

    # pack all biases into one (n_bias, 128, 1) f32 array (one kernel input)
    bias_pack = np.zeros((len(biases), 128, 1), np.float32)
    for i, b in enumerate(biases):
        bias_pack[i, :b.shape[0], 0] = np.asarray(b)
    consts['bias'] = jnp.asarray(bias_pack)

    meta = dict(in_dim=in_dim, in_ch=in_ch, cin_pad=cin_pad0,
                num_classes=num_classes, nc_pad=nc_pad,
                feat=stages[3], final_H=H, lin_b=lb_idx)
    return consts, plan, refp, meta


# ----------------------------------------------------------------------------
# Cost estimate (only real MXU work -- no selection matmuls anymore)
# ----------------------------------------------------------------------------

def _estimate_cost(plan, meta, bt, n_tiles, arrays):
    f = 0
    for op in plan:
        P = bt * op['H'] ** 2
        if op['kind'] == 'conv':
            f += 2 * P * 9 * op['cin'] * op['cout']
        else:
            f += 2 * P * 9 * op['cin'] * op['cmid']
            f += 2 * P * 9 * op['cmid'] * op['cout']
            Pd = P // (op['stride'] ** 2)
            if op['stride'] == 2:
                f += 2 * op['cout'] * P * Pd                      # main-path subsample
                if op['sc'] is not None:
                    f += 2 * op['cin'] * P * Pd                   # shortcut subsample
            if op['sc'] is not None:
                f += 2 * Pd * op['cin'] * op['cout']              # 1x1 shortcut
    f += 2 * meta['feat'] * bt * meta['final_H'] ** 2             # global avg pool
    f += 2 * meta['feat'] * meta['nc_pad'] * bt                   # linear2
    f *= n_tiles
    const_bytes = sum(int(np.prod(a.shape)) * a.dtype.itemsize for a in arrays)
    by = const_bytes + n_tiles * (meta['cin_pad'] * bt * meta['in_dim'] ** 2 * 2
                                  + meta['nc_pad'] * bt * 4)
    return int(f), int(by)


# ----------------------------------------------------------------------------
# Fused forward kernel
# ----------------------------------------------------------------------------

def _const_map(nd):
    return lambda i: (0,) * nd


def make_forward(consts, plan, meta, batch, bt=None):
    bt = min(batch, 4) if bt is None else bt          # batch tile per grid step
    n_tiles = -(-batch // bt)
    batch_pad = n_tiles * bt

    in_dim, cin_pad, nc_pad = meta['in_dim'], meta['cin_pad'], meta['nc_pad']
    hw0 = in_dim * in_dim

    # geometry constants (depend on the batch tile)
    geo = dict(consts)
    for H in sorted({op['H'] for op in plan}):
        geo[f'mask{H}'] = jnp.asarray(_boundary_masks(H, H, bt), jnp.bfloat16)
    for H in sorted({op['H'] for op in plan if op.get('stride', 1) == 2}):
        geo[f'ds{H}'] = jnp.asarray(_downsample_matrix(H, H, bt), jnp.bfloat16)
    geo['pool'] = jnp.asarray(_pool_matrix(meta['final_H'] ** 2, bt), jnp.bfloat16)

    names = sorted(geo.keys())
    arrays = [geo[nm] for nm in names]
    idx = {nm: i for i, nm in enumerate(names)}

    def kernel(*refs):
        x_ref = refs[0]
        cr = refs[1:1 + len(names)]
        o_ref = refs[-1]
        r = lambda nm: cr[idx[nm]]
        bias_ref = r('bias')

        def bias_col(j, cout):                         # (cout, 1) f32
            return bias_ref[j, 0:cout, :]

        def conv3x3(a_bf, H, wT_ref, bvec, mask_ref):
            """pad-1 / stride-1 3x3 conv on a (Cin, bt*H*H) bf16 activation -> (Cout, P) f32.
            Spatial taps = lane shifts + boundary masks (no MXU selection work); the 9 tap
            matmuls are folded into one (Cout, 9*Cin) @ (9*Cin, P) MXU matmul."""
            W = H
            taps = []
            for t, (dy, dx) in enumerate(_TAPS):
                d = dy * W + dx
                if d == 0:
                    taps.append(a_bf)                  # centre tap: identity, no mask
                else:
                    # sel[:, p] = a[:, p + d]  (cyclic; wrap/out-of-image killed by mask)
                    shifted = jnp.roll(a_bf, -d, axis=1)
                    taps.append(shifted * mask_ref[t:t + 1, :])
            patches = jnp.concatenate(taps, axis=0)    # (9*Cin, P) bf16, sublane-aligned
            out = jnp.dot(wT_ref[...], patches, preferred_element_type=jnp.float32)
            return out + bvec

        h = None
        for op in plan:
            if op['kind'] == 'conv':                   # stem conv on the raw input
                H = op['H']
                h = conv3x3(x_ref[...], H, r(op['w']),
                            bias_col(op['b'], op['cout']), r(f'mask{H}'))
            else:
                H, s = op['H'], op['stride']
                mask = r(f'mask{H}')
                x_in = h                                              # (Cin, P) f32
                a1 = jnp.maximum(x_in, 0.0).astype(jnp.bfloat16)      # conv1(relu(x))
                o1 = conv3x3(a1, H, r(op['c1']), bias_col(op['c1b'], op['cmid']), mask)
                a2 = jnp.maximum(o1, 0.0).astype(jnp.bfloat16)        # conv2(relu(out))
                o2 = conv3x3(a2, H, r(op['c2']), bias_col(op['c2b'], op['cout']), mask)
                if s == 2:
                    # stride-2 conv == stride-1 conv followed by exact 2x2 subsampling
                    o2 = jnp.dot(o2.astype(jnp.bfloat16), r(f'ds{H}')[...],
                                 preferred_element_type=jnp.float32)
                if op['sc'] is not None:                              # 1x1 conv shortcut
                    xs = x_in.astype(jnp.bfloat16)
                    if s == 2:
                        xs = jnp.dot(xs, r(f'ds{H}')[...],
                                     preferred_element_type=jnp.float32).astype(jnp.bfloat16)
                    sc = (jnp.dot(r(op['sc'])[...], xs, preferred_element_type=jnp.float32)
                          + bias_col(op['scb'], op['cout']))
                else:                                                 # identity shortcut
                    sc = x_in
                h = o2 + sc

        # head: F.relu -> global avg-pool -> linear2, all in the (C, P) layout
        hr = jnp.maximum(h, 0.0).astype(jnp.bfloat16)                 # (feat, bt*final_hw)
        pooled = jnp.dot(hr, r('pool')[...], preferred_element_type=jnp.float32)   # (feat, bt)
        logits = (jnp.dot(r('lin')[...], pooled.astype(jnp.bfloat16),
                          preferred_element_type=jnp.float32)
                  + bias_col(meta['lin_b'], nc_pad))                  # (nc_pad, bt)
        o_ref[0] = logits

    in_specs = [pl.BlockSpec((cin_pad, bt * hw0), lambda i: (0, i))]
    in_specs += [pl.BlockSpec(a.shape, _const_map(a.ndim)) for a in arrays]
    out_specs = pl.BlockSpec((1, nc_pad, bt), lambda i: (i, 0, 0))

    flops, bytes_accessed = _estimate_cost(plan, meta, bt, n_tiles, arrays)

    fused = pl.pallas_call(
        kernel,
        out_shape=jax.ShapeDtypeStruct((n_tiles, nc_pad, bt), jnp.float32),
        grid=(n_tiles,),
        in_specs=in_specs,
        out_specs=out_specs,
        compiler_params=pltpu.CompilerParams(
            dimension_semantics=("parallel",),
            vmem_limit_bytes=32 * 1024 * 1024,
        ),
        cost_estimate=pl.CostEstimate(flops=flops, transcendentals=0,
                                      bytes_accessed=bytes_accessed),
    )

    def forward(x_nchw):
        b, c, hh, ww = x_nchw.shape
        assert b == batch and c == meta['in_ch'] and hh == in_dim and ww == in_dim
        # NCHW -> (C, B*H*W) lane-dense layout; pad channels (sublanes) and batch (lanes)
        x = jnp.transpose(x_nchw, (1, 0, 2, 3)).reshape(c, b * hh * ww)
        x = jnp.pad(x, ((0, cin_pad - c), (0, (batch_pad - b) * hh * ww)))
        x = x.astype(jnp.bfloat16)
        out = fused(x, *arrays)                                       # (n_tiles, nc_pad, bt)
        logits = jnp.transpose(out, (0, 2, 1)).reshape(batch_pad, nc_pad)
        return logits[:b, :meta['num_classes']]

    return forward


# ----------------------------------------------------------------------------
# Plain-JAX f32 reference (same bf16-rounded weights) for a numerics check
# ----------------------------------------------------------------------------

def reference_forward(x, refp, plan):
    def conv(x, w, b, stride, pad):
        y = lax.conv_general_dilated(x, w, (stride, stride), ((pad, pad), (pad, pad)),
                                     dimension_numbers=('NCHW', 'OIHW', 'NCHW'))
        return y + b.reshape(1, -1, 1, 1)

    h = None
    for op in plan:
        if op['kind'] == 'conv':
            w, b = refp[op['w']]
            h = conv(x, w, b, 1, 1)
        else:
            w1, b1 = refp[op['c1']]
            w2, b2 = refp[op['c2']]
            o = conv(jax.nn.relu(h), w1, b1, 1, 1)
            o = conv(jax.nn.relu(o), w2, b2, op['stride'], 1)
            if op['sc'] is not None:
                ws, bs = refp[op['sc']]
                sc = conv(h, ws, bs, op['stride'], 0)
            else:
                sc = h
            h = o + sc
    h = jax.nn.relu(h)
    pooled = jnp.mean(h, axis=(2, 3))
    lw, lb = refp['lin']
    return pooled @ lw + lb


# ----------------------------------------------------------------------------
# Demo
# ----------------------------------------------------------------------------

if __name__ == "__main__":
    key = jax.random.PRNGKey(0)
    pkey, xkey = jax.random.split(key)

    # Wide-ResNet 10x1, 10 classes, 3-channel 16x16 inputs, batch 2 (NCHW like PyTorch).
    consts, plan, refp, meta = build_wide_resnet(pkey, depth=10, widen_factor=1,
                                                 num_classes=10, in_ch=3, in_dim=16)
    batch = 2
    forward = jax.jit(make_forward(consts, plan, meta, batch))

    x = jax.random.normal(xkey, (batch, 3, 16, 16), jnp.float32)
    logits = forward(x)
    jax.block_until_ready(logits)
    assert logits.shape == (batch, 10), logits.shape
    assert bool(jnp.all(jnp.isfinite(logits)))

    # numerics check against a plain-JAX f32 reference using the same bf16-rounded weights
    ref = reference_forward(x, refp, plan)
    err = float(jnp.max(jnp.abs(logits - ref)) / (jnp.max(jnp.abs(ref)) + 1e-6))
    assert err < 0.1, f"kernel/reference mismatch: relative-to-peak error {err:.4f}"

    print("KERNEL_OK")
</pallas_src>

<mosaic_0001>
module attributes {stable_mosaic.version = 11 : i64} {
  func.func @kernel(%arg0: i32, %arg1: memref<16x512xbf16, #tpu.memory_space<vmem>>, %arg2: memref<11x128x1xf32, #tpu.memory_space<vmem>>, %arg3: memref<512x128xbf16, #tpu.memory_space<vmem>>, %arg4: memref<128x32xbf16, #tpu.memory_space<vmem>>, %arg5: memref<32x144xbf16, #tpu.memory_space<vmem>>, %arg6: memref<32x288xbf16, #tpu.memory_space<vmem>>, %arg7: memref<32x16xbf16, #tpu.memory_space<vmem>>, %arg8: memref<64x288xbf16, #tpu.memory_space<vmem>>, %arg9: memref<64x576xbf16, #tpu.memory_space<vmem>>, %arg10: memref<64x32xbf16, #tpu.memory_space<vmem>>, %arg11: memref<128x576xbf16, #tpu.memory_space<vmem>>, %arg12: memref<128x1152xbf16, #tpu.memory_space<vmem>>, %arg13: memref<128x64xbf16, #tpu.memory_space<vmem>>, %arg14: memref<128x128xbf16, #tpu.memory_space<vmem>>, %arg15: memref<9x512xbf16, #tpu.memory_space<vmem>>, %arg16: memref<9x128xbf16, #tpu.memory_space<vmem>>, %arg17: memref<32x2xbf16, #tpu.memory_space<vmem>>, %arg18: memref<16x144xbf16, #tpu.memory_space<vmem>>, %arg19: memref<1x128x2xf32, #tpu.memory_space<vmem>>) attributes {dimension_semantics = [#tpu.dimension_semantics<parallel>], iteration_bounds = array<i64: 1>, scalar_prefetch = 0 : i64, scratch_operands = 0 : i64, tpu.core_type = #tpu.core_type<tc>, window_params = [{transform_indices = @transform_0, window_bounds = array<i64: 16, 512>}, {pipeline_mode = #tpu.pipeline_mode<synchronous>, transform_indices = @transform_1, window_bounds = array<i64: 11, 128, 1>}, {pipeline_mode = #tpu.pipeline_mode<synchronous>, transform_indices = @transform_2, window_bounds = array<i64: 512, 128>}, {pipeline_mode = #tpu.pipeline_mode<synchronous>, transform_indices = @transform_3, window_bounds = array<i64: 128, 32>}, {pipeline_mode = #tpu.pipeline_mode<synchronous>, transform_indices = @transform_4, window_bounds = array<i64: 32, 144>}, {pipeline_mode = #tpu.pipeline_mode<synchronous>, transform_indices = @transform_5, window_bounds = array<i64: 32, 288>}, {pipeline_mode = #tpu.pipeline_mode<synchronous>, transform_indices = @transform_6, window_bounds = array<i64: 32, 16>}, {pipeline_mode = #tpu.pipeline_mode<synchronous>, transform_indices = @transform_7, window_bounds = array<i64: 64, 288>}, {pipeline_mode = #tpu.pipeline_mode<synchronous>, transform_indices = @transform_8, window_bounds = array<i64: 64, 576>}, {pipeline_mode = #tpu.pipeline_mode<synchronous>, transform_indices = @transform_9, window_bounds = array<i64: 64, 32>}, {pipeline_mode = #tpu.pipeline_mode<synchronous>, transform_indices = @transform_10, window_bounds = array<i64: 128, 576>}, {pipeline_mode = #tpu.pipeline_mode<synchronous>, transform_indices = @transform_11, window_bounds = array<i64: 128, 1152>}, {pipeline_mode = #tpu.pipeline_mode<synchronous>, transform_indices = @transform_12, window_bounds = array<i64: 128, 64>}, {pipeline_mode = #tpu.pipeline_mode<synchronous>, transform_indices = @transform_13, window_bounds = array<i64: 128, 128>}, {pipeline_mode = #tpu.pipeline_mode<synchronous>, transform_indices = @transform_14, window_bounds = array<i64: 9, 512>}, {pipeline_mode = #tpu.pipeline_mode<synchronous>, transform_indices = @transform_15, window_bounds = array<i64: 9, 128>}, {pipeline_mode = #tpu.pipeline_mode<synchronous>, transform_indices = @transform_16, window_bounds = array<i64: 32, 2>}, {pipeline_mode = #tpu.pipeline_mode<synchronous>, transform_indices = @transform_17, window_bounds = array<i64: 16, 144>}, {transform_indices = @transform_18, window_bounds = array<i64: 1, 128, 2>}]} {
    %c0 = arith.constant 0 : index
    %c0_0 = arith.constant 0 : index
    %0 = vector.load %arg1[%c0, %c0_0] : memref<16x512xbf16, #tpu.memory_space<vmem>>, vector<16x512xbf16>
    %c0_1 = arith.constant 0 : index
    %c0_2 = arith.constant 0 : index
    %c0_3 = arith.constant 0 : index
    %1 = vector.load %arg2[%c0_1, %c0_2, %c0_3] : memref<11x128x1xf32, #tpu.memory_space<vmem>>, vector<1x16x1xf32>
    %2 = vector.shape_cast %1 : vector<1x16x1xf32> to vector<16x1xf32>
    %3 = vector.extract_strided_slice %0 {offsets = [0, 495], sizes = [16, 17], strides = [1, 1]} : vector<16x512xbf16> to vector<16x17xbf16>
    %4 = vector.extract_strided_slice %0 {offsets = [0, 0], sizes = [16, 495], strides = [1, 1]} : vector<16x512xbf16> to vector<16x495xbf16>
    %5 = tpu.concatenate %3, %4 in 1 : vector<16x17xbf16>, vector<16x495xbf16> -> vector<16x512xbf16>
    %c0_4 = arith.constant 0 : index
    %c0_5 = arith.constant 0 : index
    %6 = vector.load %arg15[%c0_4, %c0_5] : memref<9x512xbf16, #tpu.memory_space<vmem>>, vector<1x512xbf16>
    %7 = vector.broadcast %6 : vector<1x512xbf16> to vector<16x512xbf16>
    %8 = arith.mulf %5, %7 : vector<16x512xbf16>
    %9 = vector.extract_strided_slice %0 {offsets = [0, 496], sizes = [16, 16], strides = [1, 1]} : vector<16x512xbf16> to vector<16x16xbf16>
    %10 = vector.extract_strided_slice %0 {offsets = [0, 0], sizes = [16, 496], strides = [1, 1]} : vector<16x512xbf16> to vector<16x496xbf16>
    %11 = tpu.concatenate %9, %10 in 1 : vector<16x16xbf16>, vector<16x496xbf16> -> vector<16x512xbf16>
    %c1 = arith.constant 1 : index
    %c0_6 = arith.constant 0 : index
    %12 = vector.load %arg15[%c1, %c0_6] : memref<9x512xbf16, #tpu.memory_space<vmem>>, vector<1x512xbf16>
    %13 = vector.broadcast %12 : vector<1x512xbf16> to vector<16x512xbf16>
    %14 = arith.mulf %11, %13 : vector<16x512xbf16>
    %15 = vector.extract_strided_slice %0 {offsets = [0, 497], sizes = [16, 15], strides = [1, 1]} : vector<16x512xbf16> to vector<16x15xbf16>
    %16 = vector.extract_strided_slice %0 {offsets = [0, 0], sizes = [16, 497], strides = [1, 1]} : vector<16x512xbf16> to vector<16x497xbf16>
    %17 = tpu.concatenate %15, %16 in 1 : vector<16x15xbf16>, vector<16x497xbf16> -> vector<16x512xbf16>
    %c2 = arith.constant 2 : index
    %c0_7 = arith.constant 0 : index
    %18 = vector.load %arg15[%c2, %c0_7] : memref<9x512xbf16, #tpu.memory_space<vmem>>, vector<1x512xbf16>
    %19 = vector.broadcast %18 : vector<1x512xbf16> to vector<16x512xbf16>
    %20 = arith.mulf %17, %19 : vector<16x512xbf16>
    %21 = vector.extract_strided_slice %0 {offsets = [0, 511], sizes = [16, 1], strides = [1, 1]} : vector<16x512xbf16> to vector<16x1xbf16>
    %22 = vector.extract_strided_slice %0 {offsets = [0, 0], sizes = [16, 511], strides = [1, 1]} : vector<16x512xbf16> to vector<16x511xbf16>
    %23 = tpu.concatenate %21, %22 in 1 : vector<16x1xbf16>, vector<16x511xbf16> -> vector<16x512xbf16>
    %c3 = arith.constant 3 : index
    %c0_8 = arith.constant 0 : index
    %24 = vector.load %arg15[%c3, %c0_8] : memref<9x512xbf16, #tpu.memory_space<vmem>>, vector<1x512xbf16>
    %25 = vector.broadcast %24 : vector<1x512xbf16> to vector<16x512xbf16>
    %26 = arith.mulf %23, %25 : vector<16x512xbf16>
    %27 = vector.extract_strided_slice %0 {offsets = [0, 1], sizes = [16, 511], strides = [1, 1]} : vector<16x512xbf16> to vector<16x511xbf16>
    %28 = vector.extract_strided_slice %0 {offsets = [0, 0], sizes = [16, 1], strides = [1, 1]} : vector<16x512xbf16> to vector<16x1xbf16>
    %29 = tpu.concatenate %27, %28 in 1 : vector<16x511xbf16>, vector<16x1xbf16> -> vector<16x512xbf16>
    %c5 = arith.constant 5 : index
    %c0_9 = arith.constant 0 : index
    %30 = vector.load %arg15[%c5, %c0_9] : memref<9x512xbf16, #tpu.memory_space<vmem>>, vector<1x512xbf16>
    %31 = vector.broadcast %30 : vector<1x512xbf16> to vector<16x512xbf16>
    %32 = arith.mulf %29, %31 : vector<16x512xbf16>
    %33 = vector.extract_strided_slice %0 {offsets = [0, 15], sizes = [16, 497], strides = [1, 1]} : vector<16x512xbf16> to vector<16x497xbf16>
    %34 = vector.extract_strided_slice %0 {offsets = [0, 0], sizes = [16, 15], strides = [1, 1]} : vector<16x512xbf16> to vector<16x15xbf16>
    %35 = tpu.concatenate %33, %34 in 1 : vector<16x497xbf16>, vector<16x15xbf16> -> vector<16x512xbf16>
    %c6 = arith.constant 6 : index
    %c0_10 = arith.constant 0 : index
    %36 = vector.load %arg15[%c6, %c0_10] : memref<9x512xbf16, #tpu.memory_space<vmem>>, vector<1x512xbf16>
    %37 = vector.broadcast %36 : vector<1x512xbf16> to vector<16x512xbf16>
    %38 = arith.mulf %35, %37 : vector<16x512xbf16>
    %39 = vector.extract_strided_slice %0 {offsets = [0, 16], sizes = [16, 496], strides = [1, 1]} : vector<16x512xbf16> to vector<16x496xbf16>
    %40 = vector.extract_strided_slice %0 {offsets = [0, 0], sizes = [16, 16], strides = [1, 1]} : vector<16x512xbf16> to vector<16x16xbf16>
    %41 = tpu.concatenate %39, %40 in 1 : vector<16x496xbf16>, vector<16x16xbf16> -> vector<16x512xbf16>
    %c7 = arith.constant 7 : index
    %c0_11 = arith.constant 0 : index
    %42 = vector.load %arg15[%c7, %c0_11] : memref<9x512xbf16, #tpu.memory_space<vmem>>, vector<1x512xbf16>
    %43 = vector.broadcast %42 : vector<1x512xbf16> to vector<16x512xbf16>
    %44 = arith.mulf %41, %43 : vector<16x512xbf16>
    %45 = vector.extract_strided_slice %0 {offsets = [0, 17], sizes = [16, 495], strides = [1, 1]} : vector<16x512xbf16> to vector<16x495xbf16>
    %46 = vector.extract_strided_slice %0 {offsets = [0, 0], sizes = [16, 17], strides = [1, 1]} : vector<16x512xbf16> to vector<16x17xbf16>
    %47 = tpu.concatenate %45, %46 in 1 : vector<16x495xbf16>, vector<16x17xbf16> -> vector<16x512xbf16>
    %c8 = arith.constant 8 : index
    %c0_12 = arith.constant 0 : index
    %48 = vector.load %arg15[%c8, %c0_12] : memref<9x512xbf16, #tpu.memory_space<vmem>>, vector<1x512xbf16>
    %49 = vector.broadcast %48 : vector<1x512xbf16> to vector<16x512xbf16>
    %50 = arith.mulf %47, %49 : vector<16x512xbf16>
    %51 = tpu.concatenate %8, %14, %20, %26, %0, %32, %38, %44, %50 in 0 : vector<16x512xbf16>, vector<16x512xbf16>, vector<16x512xbf16>, vector<16x512xbf16>, vector<16x512xbf16>, vector<16x512xbf16>, vector<16x512xbf16>, vector<16x512xbf16>, vector<16x512xbf16> -> vector<144x512xbf16>
    %c0_13 = arith.constant 0 : index
    %c0_14 = arith.constant 0 : index
    %52 = vector.load %arg18[%c0_13, %c0_14] : memref<16x144xbf16, #tpu.memory_space<vmem>>, vector<16x144xbf16>
    %cst = arith.constant dense<0.000000e+00> : vector<16x512xf32>
    %53 = tpu.matmul %52, %51, %cst {dimension_numbers = #tpu.dot_dimension_numbers<[1], [0], [0], [1], [0, 0, 1, 1], [], []>} : vector<16x144xbf16>, vector<144x512xbf16>, vector<16x512xf32> -> vector<16x512xf32>
    %54 = vector.broadcast %2 : vector<16x1xf32> to vector<16x512xf32>
    %55 = arith.addf %53, %54 : vector<16x512xf32>
    %cst_15 = arith.constant 0.000000e+00 : f32
    %56 = vector.broadcast %cst_15 : f32 to vector<16x512xf32>
    %57 = arith.maximumf %55, %56 : vector<16x512xf32>
    %58 = arith.truncf %57 : vector<16x512xf32> to vector<16x512xbf16>
    %c1_16 = arith.constant 1 : index
    %c0_17 = arith.constant 0 : index
    %c0_18 = arith.constant 0 : index
    %59 = vector.load %arg2[%c1_16, %c0_17, %c0_18] : memref<11x128x1xf32, #tpu.memory_space<vmem>>, vector<1x32x1xf32>
    %60 = vector.shape_cast %59 : vector<1x32x1xf32> to vector<32x1xf32>
    %61 = vector.extract_strided_slice %58 {offsets = [0, 495], sizes = [16, 17], strides = [1, 1]} : vector<16x512xbf16> to vector<16x17xbf16>
    %62 = vector.extract_strided_slice %58 {offsets = [0, 0], sizes = [16, 495], strides = [1, 1]} : vector<16x512xbf16> to vector<16x495xbf16>
    %63 = tpu.concatenate %61, %62 in 1 : vector<16x17xbf16>, vector<16x495xbf16> -> vector<16x512xbf16>
    %c0_19 = arith.constant 0 : index
    %c0_20 = arith.constant 0 : index
    %64 = vector.load %arg15[%c0_19, %c0_20] : memref<9x512xbf16, #tpu.memory_space<vmem>>, vector<1x512xbf16>
    %65 = vector.broadcast %64 : vector<1x512xbf16> to vector<16x512xbf16>
    %66 = arith.mulf %63, %65 : vector<16x512xbf16>
    %67 = vector.extract_strided_slice %58 {offsets = [0, 496], sizes = [16, 16], strides = [1, 1]} : vector<16x512xbf16> to vector<16x16xbf16>
    %68 = vector.extract_strided_slice %58 {offsets = [0, 0], sizes = [16, 496], strides = [1, 1]} : vector<16x512xbf16> to vector<16x496xbf16>
    %69 = tpu.concatenate %67, %68 in 1 : vector<16x16xbf16>, vector<16x496xbf16> -> vector<16x512xbf16>
    %c1_21 = arith.constant 1 : index
    %c0_22 = arith.constant 0 : index
    %70 = vector.load %arg15[%c1_21, %c0_22] : memref<9x512xbf16, #tpu.memory_space<vmem>>, vector<1x512xbf16>
    %71 = vector.broadcast %70 : vector<1x512xbf16> to vector<16x512xbf16>
    %72 = arith.mulf %69, %71 : vector<16x512xbf16>
    %73 = vector.extract_strided_slice %58 {offsets = [0, 497], sizes = [16, 15], strides = [1, 1]} : vector<16x512xbf16> to vector<16x15xbf16>
    %74 = vector.extract_strided_slice %58 {offsets = [0, 0], sizes = [16, 497], strides = [1, 1]} : vector<16x512xbf16> to vector<16x497xbf16>
    %75 = tpu.concatenate %73, %74 in 1 : vector<16x15xbf16>, vector<16x497xbf16> -> vector<16x512xbf16>
    %c2_23 = arith.constant 2 : index
    %c0_24 = arith.constant 0 : index
    %76 = vector.load %arg15[%c2_23, %c0_24] : memref<9x512xbf16, #tpu.memory_space<vmem>>, vector<1x512xbf16>
    %77 = vector.broadcast %76 : vector<1x512xbf16> to vector<16x512xbf16>
    %78 = arith.mulf %75, %77 : vector<16x512xbf16>
    %79 = vector.extract_strided_slice %58 {offsets = [0, 511], sizes = [16, 1], strides = [1, 1]} : vector<16x512xbf16> to vector<16x1xbf16>
    %80 = vector.extract_strided_slice %58 {offsets = [0, 0], sizes = [16, 511], strides = [1, 1]} : vector<16x512xbf16> to vector<16x511xbf16>
    %81 = tpu.concatenate %79, %80 in 1 : vector<16x1xbf16>, vector<16x511xbf16> -> vector<16x512xbf16>
    %c3_25 = arith.constant 3 : index
    %c0_26 = arith.constant 0 : index
    %82 = vector.load %arg15[%c3_25, %c0_26] : memref<9x512xbf16, #tpu.memory_space<vmem>>, vector<1x512xbf16>
    %83 = vector.broadcast %82 : vector<1x512xbf16> to vector<16x512xbf16>
    %84 = arith.mulf %81, %83 : vector<16x512xbf16>
    %85 = vector.extract_strided_slice %58 {offsets = [0, 1], sizes = [16, 511], strides = [1, 1]} : vector<16x512xbf16> to vector<16x511xbf16>
    %86 = vector.extract_strided_slice %58 {offsets = [0, 0], sizes = [16, 1], strides = [1, 1]} : vector<16x512xbf16> to vector<16x1xbf16>
    %87 = tpu.concatenate %85, %86 in 1 : vector<16x511xbf16>, vector<16x1xbf16> -> vector<16x512xbf16>
    %c5_27 = arith.constant 5 : index
    %c0_28 = arith.constant 0 : index
    %88 = vector.load %arg15[%c5_27, %c0_28] : memref<9x512xbf16, #tpu.memory_space<vmem>>, vector<1x512xbf16>
    %89 = vector.broadcast %88 : vector<1x512xbf16> to vector<16x512xbf16>
    %90 = arith.mulf %87, %89 : vector<16x512xbf16>
    %91 = vector.extract_strided_slice %58 {offsets = [0, 15], sizes = [16, 497], strides = [1, 1]} : vector<16x512xbf16> to vector<16x497xbf16>
    %92 = vector.extract_strided_slice %58 {offsets = [0, 0], sizes = [16, 15], strides = [1, 1]} : vector<16x512xbf16> to vector<16x15xbf16>
    %93 = tpu.concatenate %91, %92 in 1 : vector<16x497xbf16>, vector<16x15xbf16> -> vector<16x512xbf16>
    %c6_29 = arith.constant 6 : index
    %c0_30 = arith.constant 0 : index
    %94 = vector.load %arg15[%c6_29, %c0_30] : memref<9x512xbf16, #tpu.memory_space<vmem>>, vector<1x512xbf16>
    %95 = vector.broadcast %94 : vector<1x512xbf16> to vector<16x512xbf16>
    %96 = arith.mulf %93, %95 : vector<16x512xbf16>
    %97 = vector.extract_strided_slice %58 {offsets = [0, 16], sizes = [16, 496], strides = [1, 1]} : vector<16x512xbf16> to vector<16x496xbf16>
    %98 = vector.extract_strided_slice %58 {offsets = [0, 0], sizes = [16, 16], strides = [1, 1]} : vector<16x512xbf16> to vector<16x16xbf16>
    %99 = tpu.concatenate %97, %98 in 1 : vector<16x496xbf16>, vector<16x16xbf16> -> vector<16x512xbf16>
    %c7_31 = arith.constant 7 : index
    %c0_32 = arith.constant 0 : index
    %100 = vector.load %arg15[%c7_31, %c0_32] : memref<9x512xbf16, #tpu.memory_space<vmem>>, vector<1x512xbf16>
    %101 = vector.broadcast %100 : vector<1x512xbf16> to vector<16x512xbf16>
    %102 = arith.mulf %99, %101 : vector<16x512xbf16>
    %103 = vector.extract_strided_slice %58 {offsets = [0, 17], sizes = [16, 495], strides = [1, 1]} : vector<16x512xbf16> to vector<16x495xbf16>
    %104 = vector.extract_strided_slice %58 {offsets = [0, 0], sizes = [16, 17], strides = [1, 1]} : vector<16x512xbf16> to vector<16x17xbf16>
    %105 = tpu.concatenate %103, %104 in 1 : vector<16x495xbf16>, vector<16x17xbf16> -> vector<16x512xbf16>
    %c8_33 = arith.constant 8 : index
    %c0_34 = arith.constant 0 : index
    %106 = vector.load %arg15[%c8_33, %c0_34] : memref<9x512xbf16, #tpu.memory_space<vmem>>, vector<1x512xbf16>
    %107 = vector.broadcast %106 : vector<1x512xbf16> to vector<16x512xbf16>
    %108 = arith.mulf %105, %107 : vector<16x512xbf16>
    %109 = tpu.concatenate %66, %72, %78, %84, %58, %90, %96, %102, %108 in 0 : vector<16x512xbf16>, vector<16x512xbf16>, vector<16x512xbf16>, vector<16x512xbf16>, vector<16x512xbf16>, vector<16x512xbf16>, vector<16x512xbf16>, vector<16x512xbf16>, vector<16x512xbf16> -> vector<144x512xbf16>
    %c0_35 = arith.constant 0 : index
    %c0_36 = arith.constant 0 : index
    %110 = vector.load %arg5[%c0_35, %c0_36] : memref<32x144xbf16, #tpu.memory_space<vmem>>, vector<32x144xbf16>
    %cst_37 = arith.constant dense<0.000000e+00> : vector<32x512xf32>
    %111 = tpu.matmul %110, %109, %cst_37 {dimension_numbers = #tpu.dot_dimension_numbers<[1], [0], [0], [1], [0, 0, 1, 1], [], []>} : vector<32x144xbf16>, vector<144x512xbf16>, vector<32x512xf32> -> vector<32x512xf32>
    %112 = vector.broadcast %60 : vector<32x1xf32> to vector<32x512xf32>
    %113 = arith.addf %111, %112 : vector<32x512xf32>
    %cst_38 = arith.constant 0.000000e+00 : f32
    %114 = vector.broadcast %cst_38 : f32 to vector<32x512xf32>
    %115 = arith.maximumf %113, %114 : vector<32x512xf32>
    %116 = arith.truncf %115 : vector<32x512xf32> to vector<32x512xbf16>
    %c2_39 = arith.constant 2 : index
    %c0_40 = arith.constant 0 : index
    %c0_41 = arith.constant 0 : index
    %117 = vector.load %arg2[%c2_39, %c0_40, %c0_41] : memref<11x128x1xf32, #tpu.memory_space<vmem>>, vector<1x32x1xf32>
    %118 = vector.shape_cast %117 : vector<1x32x1xf32> to vector<32x1xf32>
    %119 = vector.extract_strided_slice %116 {offsets = [0, 495], sizes = [32, 17], strides = [1, 1]} : vector<32x512xbf16> to vector<32x17xbf16>
    %120 = vector.extract_strided_slice %116 {offsets = [0, 0], sizes = [32, 495], strides = [1, 1]} : vector<32x512xbf16> to vector<32x495xbf16>
    %121 = tpu.concatenate %119, %120 in 1 : vector<32x17xbf16>, vector<32x495xbf16> -> vector<32x512xbf16>
    %c0_42 = arith.constant 0 : index
    %c0_43 = arith.constant 0 : index
    %122 = vector.load %arg15[%c0_42, %c0_43] : memref<9x512xbf16, #tpu.memory_space<vmem>>, vector<1x512xbf16>
    %123 = vector.broadcast %122 : vector<1x512xbf16> to vector<32x512xbf16>
    %124 = arith.mulf %121, %123 : vector<32x512xbf16>
    %125 = vector.extract_strided_slice %116 {offsets = [0, 496], sizes = [32, 16], strides = [1, 1]} : vector<32x512xbf16> to vector<32x16xbf16>
    %126 = vector.extract_strided_slice %116 {offsets = [0, 0], sizes = [32, 496], strides = [1, 1]} : vector<32x512xbf16> to vector<32x496xbf16>
    %127 = tpu.concatenate %125, %126 in 1 : vector<32x16xbf16>, vector<32x496xbf16> -> vector<32x512xbf16>
    %c1_44 = arith.constant 1 : index
    %c0_45 = arith.constant 0 : index
    %128 = vector.load %arg15[%c1_44, %c0_45] : memref<9x512xbf16, #tpu.memory_space<vmem>>, vector<1x512xbf16>
    %129 = vector.broadcast %128 : vector<1x512xbf16> to vector<32x512xbf16>
    %130 = arith.mulf %127, %129 : vector<32x512xbf16>
    %131 = vector.extract_strided_slice %116 {offsets = [0, 497], sizes = [32, 15], strides = [1, 1]} : vector<32x512xbf16> to vector<32x15xbf16>
    %132 = vector.extract_strided_slice %116 {offsets = [0, 0], sizes = [32, 497], strides = [1, 1]} : vector<32x512xbf16> to vector<32x497xbf16>
    %133 = tpu.concatenate %131, %132 in 1 : vector<32x15xbf16>, vector<32x497xbf16> -> vector<32x512xbf16>
    %c2_46 = arith.constant 2 : index
    %c0_47 = arith.constant 0 : index
    %134 = vector.load %arg15[%c2_46, %c0_47] : memref<9x512xbf16, #tpu.memory_space<vmem>>, vector<1x512xbf16>
    %135 = vector.broadcast %134 : vector<1x512xbf16> to vector<32x512xbf16>
    %136 = arith.mulf %133, %135 : vector<32x512xbf16>
    %137 = vector.extract_strided_slice %116 {offsets = [0, 511], sizes = [32, 1], strides = [1, 1]} : vector<32x512xbf16> to vector<32x1xbf16>
    %138 = vector.extract_strided_slice %116 {offsets = [0, 0], sizes = [32, 511], strides = [1, 1]} : vector<32x512xbf16> to vector<32x511xbf16>
    %139 = tpu.concatenate %137, %138 in 1 : vector<32x1xbf16>, vector<32x511xbf16> -> vector<32x512xbf16>
    %c3_48 = arith.constant 3 : index
    %c0_49 = arith.constant 0 : index
    %140 = vector.load %arg15[%c3_48, %c0_49] : memref<9x512xbf16, #tpu.memory_space<vmem>>, vector<1x512xbf16>
    %141 = vector.broadcast %140 : vector<1x512xbf16> to vector<32x512xbf16>
    %142 = arith.mulf %139, %141 : vector<32x512xbf16>
    %143 = vector.extract_strided_slice %116 {offsets = [0, 1], sizes = [32, 511], strides = [1, 1]} : vector<32x512xbf16> to vector<32x511xbf16>
    %144 = vector.extract_strided_slice %116 {offsets = [0, 0], sizes = [32, 1], strides = [1, 1]} : vector<32x512xbf16> to vector<32x1xbf16>
    %145 = tpu.concatenate %143, %144 in 1 : vector<32x511xbf16>, vector<32x1xbf16> -> vector<32x512xbf16>
    %c5_50 = arith.constant 5 : index
    %c0_51 = arith.constant 0 : index
    %146 = vector.load %arg15[%c5_50, %c0_51] : memref<9x512xbf16, #tpu.memory_space<vmem>>, vector<1x512xbf16>
    %147 = vector.broadcast %146 : vector<1x512xbf16> to vector<32x512xbf16>
    %148 = arith.mulf %145, %147 : vector<32x512xbf16>
    %149 = vector.extract_strided_slice %116 {offsets = [0, 15], sizes = [32, 497], strides = [1, 1]} : vector<32x512xbf16> to vector<32x497xbf16>
    %150 = vector.extract_strided_slice %116 {offsets = [0, 0], sizes = [32, 15], strides = [1, 1]} : vector<32x512xbf16> to vector<32x15xbf16>
    %151 = tpu.concatenate %149, %150 in 1 : vector<32x497xbf16>, vector<32x15xbf16> -> vector<32x512xbf16>
    %c6_52 = arith.constant 6 : index
    %c0_53 = arith.constant 0 : index
    %152 = vector.load %arg15[%c6_52, %c0_53] : memref<9x512xbf16, #tpu.memory_space<vmem>>, vector<1x512xbf16>
    %153 = vector.broadcast %152 : vector<1x512xbf16> to vector<32x512xbf16>
    %154 = arith.mulf %151, %153 : vector<32x512xbf16>
    %155 = vector.extract_strided_slice %116 {offsets = [0, 16], sizes = [32, 496], strides = [1, 1]} : vector<32x512xbf16> to vector<32x496xbf16>
    %156 = vector.extract_strided_slice %116 {offsets = [0, 0], sizes = [32, 16], strides = [1, 1]} : vector<32x512xbf16> to vector<32x16xbf16>
    %157 = tpu.concatenate %155, %156 in 1 : vector<32x496xbf16>, vector<32x16xbf16> -> vector<32x512xbf16>
    %c7_54 = arith.constant 7 : index
    %c0_55 = arith.constant 0 : index
    %158 = vector.load %arg15[%c7_54, %c0_55] : memref<9x512xbf16, #tpu.memory_space<vmem>>, vector<1x512xbf16>
    %159 = vector.broadcast %158 : vector<1x512xbf16> to vector<32x512xbf16>
    %160 = arith.mulf %157, %159 : vector<32x512xbf16>
    %161 = vector.extract_strided_slice %116 {offsets = [0, 17], sizes = [32, 495], strides = [1, 1]} : vector<32x512xbf16> to vector<32x495xbf16>
    %162 = vector.extract_strided_slice %116 {offsets = [0, 0], sizes = [32, 17], strides = [1, 1]} : vector<32x512xbf16> to vector<32x17xbf16>
    %163 = tpu.concatenate %161, %162 in 1 : vector<32x495xbf16>, vector<32x17xbf16> -> vector<32x512xbf16>
    %c8_56 = arith.constant 8 : index
    %c0_57 = arith.constant 0 : index
    %164 = vector.load %arg15[%c8_56, %c0_57] : memref<9x512xbf16, #tpu.memory_space<vmem>>, vector<1x512xbf16>
    %165 = vector.broadcast %164 : vector<1x512xbf16> to vector<32x512xbf16>
    %166 = arith.mulf %163, %165 : vector<32x512xbf16>
    %167 = tpu.concatenate %124, %130, %136, %142, %116, %148, %154, %160, %166 in 0 : vector<32x512xbf16>, vector<32x512xbf16>, vector<32x512xbf16>, vector<32x512xbf16>, vector<32x512xbf16>, vector<32x512xbf16>, vector<32x512xbf16>, vector<32x512xbf16>, vector<32x512xbf16> -> vector<288x512xbf16>
    %c0_58 = arith.constant 0 : index
    %c0_59 = arith.constant 0 : index
    %168 = vector.load %arg6[%c0_58, %c0_59] : memref<32x288xbf16, #tpu.memory_space<vmem>>, vector<32x288xbf16>
    %cst_60 = arith.constant dense<0.000000e+00> : vector<32x512xf32>
    %169 = tpu.matmul %168, %167, %cst_60 {dimension_numbers = #tpu.dot_dimension_numbers<[1], [0], [0], [1], [0, 0, 1, 1], [], []>} : vector<32x288xbf16>, vector<288x512xbf16>, vector<32x512xf32> -> vector<32x512xf32>
    %170 = vector.broadcast %118 : vector<32x1xf32> to vector<32x512xf32>
    %171 = arith.addf %169, %170 : vector<32x512xf32>
    %172 = arith.truncf %55 : vector<16x512xf32> to vector<16x512xbf16>
    %c0_61 = arith.constant 0 : index
    %c0_62 = arith.constant 0 : index
    %173 = vector.load %arg7[%c0_61, %c0_62] : memref<32x16xbf16, #tpu.memory_space<vmem>>, vector<32x16xbf16>
    %cst_63 = arith.constant dense<0.000000e+00> : vector<32x512xf32>
    %174 = tpu.matmul %173, %172, %cst_63 {dimension_numbers = #tpu.dot_dimension_numbers<[1], [0], [0], [1], [0, 0, 1, 1], [], []>} : vector<32x16xbf16>, vector<16x512xbf16>, vector<32x512xf32> -> vector<32x512xf32>
    %c3_64 = arith.constant 3 : index
    %c0_65 = arith.constant 0 : index
    %c0_66 = arith.constant 0 : index
    %175 = vector.load %arg2[%c3_64, %c0_65, %c0_66] : memref<11x128x1xf32, #tpu.memory_space<vmem>>, vector<1x32x1xf32>
    %176 = vector.shape_cast %175 : vector<1x32x1xf32> to vector<32x1xf32>
    %177 = vector.broadcast %176 : vector<32x1xf32> to vector<32x512xf32>
    %178 = arith.addf %174, %177 : vector<32x512xf32>
    %179 = arith.addf %171, %178 : vector<32x512xf32>
    %cst_67 = arith.constant 0.000000e+00 : f32
    %180 = vector.broadcast %cst_67 : f32 to vector<32x512xf32>
    %181 = arith.maximumf %179, %180 : vector<32x512xf32>
    %182 = arith.truncf %181 : vector<32x512xf32> to vector<32x512xbf16>
    %c4 = arith.constant 4 : index
    %c0_68 = arith.constant 0 : index
    %c0_69 = arith.constant 0 : index
    %183 = vector.load %arg2[%c4, %c0_68, %c0_69] : memref<11x128x1xf32, #tpu.memory_space<vmem>>, vector<1x64x1xf32>
    %184 = vector.shape_cast %183 : vector<1x64x1xf32> to vector<64x1xf32>
    %185 = vector.extract_strided_slice %182 {offsets = [0, 495], sizes = [32, 17], strides = [1, 1]} : vector<32x512xbf16> to vector<32x17xbf16>
    %186 = vector.extract_strided_slice %182 {offsets = [0, 0], sizes = [32, 495], strides = [1, 1]} : vector<32x512xbf16> to vector<32x495xbf16>
    %187 = tpu.concatenate %185, %186 in 1 : vector<32x17xbf16>, vector<32x495xbf16> -> vector<32x512xbf16>
    %c0_70 = arith.constant 0 : index
    %c0_71 = arith.constant 0 : index
    %188 = vector.load %arg15[%c0_70, %c0_71] : memref<9x512xbf16, #tpu.memory_space<vmem>>, vector<1x512xbf16>
    %189 = vector.broadcast %188 : vector<1x512xbf16> to vector<32x512xbf16>
    %190 = arith.mulf %187, %189 : vector<32x512xbf16>
    %191 = vector.extract_strided_slice %182 {offsets = [0, 496], sizes = [32, 16], strides = [1, 1]} : vector<32x512xbf16> to vector<32x16xbf16>
    %192 = vector.extract_strided_slice %182 {offsets = [0, 0], sizes = [32, 496], strides = [1, 1]} : vector<32x512xbf16> to vector<32x496xbf16>
    %193 = tpu.concatenate %191, %192 in 1 : vector<32x16xbf16>, vector<32x496xbf16> -> vector<32x512xbf16>
    %c1_72 = arith.constant 1 : index
    %c0_73 = arith.constant 0 : index
    %194 = vector.load %arg15[%c1_72, %c0_73] : memref<9x512xbf16, #tpu.memory_space<vmem>>, vector<1x512xbf16>
    %195 = vector.broadcast %194 : vector<1x512xbf16> to vector<32x512xbf16>
    %196 = arith.mulf %193, %195 : vector<32x512xbf16>
    %197 = vector.extract_strided_slice %182 {offsets = [0, 497], sizes = [32, 15], strides = [1, 1]} : vector<32x512xbf16> to vector<32x15xbf16>
    %198 = vector.extract_strided_slice %182 {offsets = [0, 0], sizes = [32, 497], strides = [1, 1]} : vector<32x512xbf16> to vector<32x497xbf16>
    %199 = tpu.concatenate %197, %198 in 1 : vector<32x15xbf16>, vector<32x497xbf16> -> vector<32x512xbf16>
    %c2_74 = arith.constant 2 : index
    %c0_75 = arith.constant 0 : index
    %200 = vector.load %arg15[%c2_74, %c0_75] : memref<9x512xbf16, #tpu.memory_space<vmem>>, vector<1x512xbf16>
    %201 = vector.broadcast %200 : vector<1x512xbf16> to vector<32x512xbf16>
    %202 = arith.mulf %199, %201 : vector<32x512xbf16>
    %203 = vector.extract_strided_slice %182 {offsets = [0, 511], sizes = [32, 1], strides = [1, 1]} : vector<32x512xbf16> to vector<32x1xbf16>
    %204 = vector.extract_strided_slice %182 {offsets = [0, 0], sizes = [32, 511], strides = [1, 1]} : vector<32x512xbf16> to vector<32x511xbf16>
    %205 = tpu.concatenate %203, %204 in 1 : vector<32x1xbf16>, vector<32x511xbf16> -> vector<32x512xbf16>
    %c3_76 = arith.constant 3 : index
    %c0_77 = arith.constant 0 : index
    %206 = vector.load %arg15[%c3_76, %c0_77] : memref<9x512xbf16, #tpu.memory_space<vmem>>, vector<1x512xbf16>
    %207 = vector.broadcast %206 : vector<1x512xbf16> to vector<32x512xbf16>
    %208 = arith.mulf %205, %207 : vector<32x512xbf16>
    %209 = vector.extract_strided_slice %182 {offsets = [0, 1], sizes = [32, 511], strides = [1, 1]} : vector<32x512xbf16> to vector<32x511xbf16>
    %210 = vector.extract_strided_slice %182 {offsets = [0, 0], sizes = [32, 1], strides = [1, 1]} : vector<32x512xbf16> to vector<32x1xbf16>
    %211 = tpu.concatenate %209, %210 in 1 : vector<32x511xbf16>, vector<32x1xbf16> -> vector<32x512xbf16>
    %c5_78 = arith.constant 5 : index
    %c0_79 = arith.constant 0 : index
    %212 = vector.load %arg15[%c5_78, %c0_79] : memref<9x512xbf16, #tpu.memory_space<vmem>>, vector<1x512xbf16>
    %213 = vector.broadcast %212 : vector<1x512xbf16> to vector<32x512xbf16>
    %214 = arith.mulf %211, %213 : vector<32x512xbf16>
    %215 = vector.extract_strided_slice %182 {offsets = [0, 15], sizes = [32, 497], strides = [1, 1]} : vector<32x512xbf16> to vector<32x497xbf16>
    %216 = vector.extract_strided_slice %182 {offsets = [0, 0], sizes = [32, 15], strides = [1, 1]} : vector<32x512xbf16> to vector<32x15xbf16>
    %217 = tpu.concatenate %215, %216 in 1 : vector<32x497xbf16>, vector<32x15xbf16> -> vector<32x512xbf16>
    %c6_80 = arith.constant 6 : index
    %c0_81 = arith.constant 0 : index
    %218 = vector.load %arg15[%c6_80, %c0_81] : memref<9x512xbf16, #tpu.memory_space<vmem>>, vector<1x512xbf16>
    %219 = vector.broadcast %218 : vector<1x512xbf16> to vector<32x512xbf16>
    %220 = arith.mulf %217, %219 : vector<32x512xbf16>
    %221 = vector.extract_strided_slice %182 {offsets = [0, 16], sizes = [32, 496], strides = [1, 1]} : vector<32x512xbf16> to vector<32x496xbf16>
    %222 = vector.extract_strided_slice %182 {offsets = [0, 0], sizes = [32, 16], strides = [1, 1]} : vector<32x512xbf16> to vector<32x16xbf16>
    %223 = tpu.concatenate %221, %222 in 1 : vector<32x496xbf16>, vector<32x16xbf16> -> vector<32x512xbf16>
    %c7_82 = arith.constant 7 : index
    %c0_83 = arith.constant 0 : index
    %224 = vector.load %arg15[%c7_82, %c0_83] : memref<9x512xbf16, #tpu.memory_space<vmem>>, vector<1x512xbf16>
    %225 = vector.broadcast %224 : vector<1x512xbf16> to vector<32x512xbf16>
    %226 = arith.mulf %223, %225 : vector<32x512xbf16>
    %227 = vector.extract_strided_slice %182 {offsets = [0, 17], sizes = [32, 495], strides = [1, 1]} : vector<32x512xbf16> to vector<32x495xbf16>
    %228 = vector.extract_strided_slice %182 {offsets = [0, 0], sizes = [32, 17], strides = [1, 1]} : vector<32x512xbf16> to vector<32x17xbf16>
    %229 = tpu.concatenate %227, %228 in 1 : vector<32x495xbf16>, vector<32x17xbf16> -> vector<32x512xbf16>
    %c8_84 = arith.constant 8 : index
    %c0_85 = arith.constant 0 : index
    %230 = vector.load %arg15[%c8_84, %c0_85] : memref<9x512xbf16, #tpu.memory_space<vmem>>, vector<1x512xbf16>
    %231 = vector.broadcast %230 : vector<1x512xbf16> to vector<32x512xbf16>
    %232 = arith.mulf %229, %231 : vector<32x512xbf16>
    %233 = tpu.concatenate %190, %196, %202, %208, %182, %214, %220, %226, %232 in 0 : vector<32x512xbf16>, vector<32x512xbf16>, vector<32x512xbf16>, vector<32x512xbf16>, vector<32x512xbf16>, vector<32x512xbf16>, vector<32x512xbf16>, vector<32x512xbf16>, vector<32x512xbf16> -> vector<288x512xbf16>
    %c0_86 = arith.constant 0 : index
    %c0_87 = arith.constant 0 : index
    %234 = vector.load %arg8[%c0_86, %c0_87] : memref<64x288xbf16, #tpu.memory_space<vmem>>, vector<64x288xbf16>
    %cst_88 = arith.constant dense<0.000000e+00> : vector<64x512xf32>
    %235 = tpu.matmul %234, %233, %cst_88 {dimension_numbers = #tpu.dot_dimension_numbers<[1], [0], [0], [1], [0, 0, 1, 1], [], []>} : vector<64x288xbf16>, vector<288x512xbf16>, vector<64x512xf32> -> vector<64x512xf32>
    %236 = vector.broadcast %184 : vector<64x1xf32> to vector<64x512xf32>
    %237 = arith.addf %235, %236 : vector<64x512xf32>
    %cst_89 = arith.constant 0.000000e+00 : f32
    %238 = vector.broadcast %cst_89 : f32 to vector<64x512xf32>
    %239 = arith.maximumf %237, %238 : vector<64x512xf32>
    %240 = arith.truncf %239 : vector<64x512xf32> to vector<64x512xbf16>
    %c5_90 = arith.constant 5 : index
    %c0_91 = arith.constant 0 : index
    %c0_92 = arith.constant 0 : index
    %241 = vector.load %arg2[%c5_90, %c0_91, %c0_92] : memref<11x128x1xf32, #tpu.memory_space<vmem>>, vector<1x64x1xf32>
    %242 = vector.shape_cast %241 : vector<1x64x1xf32> to vector<64x1xf32>
    %243 = vector.extract_strided_slice %240 {offsets = [0, 495], sizes = [64, 17], strides = [1, 1]} : vector<64x512xbf16> to vector<64x17xbf16>
    %244 = vector.extract_strided_slice %240 {offsets = [0, 0], sizes = [64, 495], strides = [1, 1]} : vector<64x512xbf16> to vector<64x495xbf16>
    %245 = tpu.concatenate %243, %244 in 1 : vector<64x17xbf16>, vector<64x495xbf16> -> vector<64x512xbf16>
    %c0_93 = arith.constant 0 : index
    %c0_94 = arith.constant 0 : index
    %246 = vector.load %arg15[%c0_93, %c0_94] : memref<9x512xbf16, #tpu.memory_space<vmem>>, vector<1x512xbf16>
    %247 = vector.broadcast %246 : vector<1x512xbf16> to vector<64x512xbf16>
    %248 = arith.mulf %245, %247 : vector<64x512xbf16>
    %249 = vector.extract_strided_slice %240 {offsets = [0, 496], sizes = [64, 16], strides = [1, 1]} : vector<64x512xbf16> to vector<64x16xbf16>
    %250 = vector.extract_strided_slice %240 {offsets = [0, 0], sizes = [64, 496], strides = [1, 1]} : vector<64x512xbf16> to vector<64x496xbf16>
    %251 = tpu.concatenate %249, %250 in 1 : vector<64x16xbf16>, vector<64x496xbf16> -> vector<64x512xbf16>
    %c1_95 = arith.constant 1 : index
    %c0_96 = arith.constant 0 : index
    %252 = vector.load %arg15[%c1_95, %c0_96] : memref<9x512xbf16, #tpu.memory_space<vmem>>, vector<1x512xbf16>
    %253 = vector.broadcast %252 : vector<1x512xbf16> to vector<64x512xbf16>
    %254 = arith.mulf %251, %253 : vector<64x512xbf16>
    %255 = vector.extract_strided_slice %240 {offsets = [0, 497], sizes = [64, 15], strides = [1, 1]} : vector<64x512xbf16> to vector<64x15xbf16>
    %256 = vector.extract_strided_slice %240 {offsets = [0, 0], sizes = [64, 497], strides = [1, 1]} : vector<64x512xbf16> to vector<64x497xbf16>
    %257 = tpu.concatenate %255, %256 in 1 : vector<64x15xbf16>, vector<64x497xbf16> -> vector<64x512xbf16>
    %c2_97 = arith.constant 2 : index
    %c0_98 = arith.constant 0 : index
    %258 = vector.load %arg15[%c2_97, %c0_98] : memref<9x512xbf16, #tpu.memory_space<vmem>>, vector<1x512xbf16>
    %259 = vector.broadcast %258 : vector<1x512xbf16> to vector<64x512xbf16>
    %260 = arith.mulf %257, %259 : vector<64x512xbf16>
    %261 = vector.extract_strided_slice %240 {offsets = [0, 511], sizes = [64, 1], strides = [1, 1]} : vector<64x512xbf16> to vector<64x1xbf16>
    %262 = vector.extract_strided_slice %240 {offsets = [0, 0], sizes = [64, 511], strides = [1, 1]} : vector<64x512xbf16> to vector<64x511xbf16>
    %263 = tpu.concatenate %261, %262 in 1 : vector<64x1xbf16>, vector<64x511xbf16> -> vector<64x512xbf16>
    %c3_99 = arith.constant 3 : index
    %c0_100 = arith.constant 0 : index
    %264 = vector.load %arg15[%c3_99, %c0_100] : memref<9x512xbf16, #tpu.memory_space<vmem>>, vector<1x512xbf16>
    %265 = vector.broadcast %264 : vector<1x512xbf16> to vector<64x512xbf16>
    %266 = arith.mulf %263, %265 : vector<64x512xbf16>
    %267 = vector.extract_strided_slice %240 {offsets = [0, 1], sizes = [64, 511], strides = [1, 1]} : vector<64x512xbf16> to vector<64x511xbf16>
    %268 = vector.extract_strided_slice %240 {offsets = [0, 0], sizes = [64, 1], strides = [1, 1]} : vector<64x512xbf16> to vector<64x1xbf16>
    %269 = tpu.concatenate %267, %268 in 1 : vector<64x511xbf16>, vector<64x1xbf16> -> vector<64x512xbf16>
    %c5_101 = arith.constant 5 : index
    %c0_102 = arith.constant 0 : index
    %270 = vector.load %arg15[%c5_101, %c0_102] : memref<9x512xbf16, #tpu.memory_space<vmem>>, vector<1x512xbf16>
    %271 = vector.broadcast %270 : vector<1x512xbf16> to vector<64x512xbf16>
    %272 = arith.mulf %269, %271 : vector<64x512xbf16>
    %273 = vector.extract_strided_slice %240 {offsets = [0, 15], sizes = [64, 497], strides = [1, 1]} : vector<64x512xbf16> to vector<64x497xbf16>
    %274 = vector.extract_strided_slice %240 {offsets = [0, 0], sizes = [64, 15], strides = [1, 1]} : vector<64x512xbf16> to vector<64x15xbf16>
    %275 = tpu.concatenate %273, %274 in 1 : vector<64x497xbf16>, vector<64x15xbf16> -> vector<64x512xbf16>
    %c6_103 = arith.constant 6 : index
    %c0_104 = arith.constant 0 : index
    %276 = vector.load %arg15[%c6_103, %c0_104] : memref<9x512xbf16, #tpu.memory_space<vmem>>, vector<1x512xbf16>
    %277 = vector.broadcast %276 : vector<1x512xbf16> to vector<64x512xbf16>
    %278 = arith.mulf %275, %277 : vector<64x512xbf16>
    %279 = vector.extract_strided_slice %240 {offsets = [0, 16], sizes = [64, 496], strides = [1, 1]} : vector<64x512xbf16> to vector<64x496xbf16>
    %280 = vector.extract_strided_slice %240 {offsets = [0, 0], sizes = [64, 16], strides = [1, 1]} : vector<64x512xbf16> to vector<64x16xbf16>
    %281 = tpu.concatenate %279, %280 in 1 : vector<64x496xbf16>, vector<64x16xbf16> -> vector<64x512xbf16>
    %c7_105 = arith.constant 7 : index
    %c0_106 = arith.constant 0 : index
    %282 = vector.load %arg15[%c7_105, %c0_106] : memref<9x512xbf16, #tpu.memory_space<vmem>>, vector<1x512xbf16>
    %283 = vector.broadcast %282 : vector<1x512xbf16> to vector<64x512xbf16>
    %284 = arith.mulf %281, %283 : vector<64x512xbf16>
    %285 = vector.extract_strided_slice %240 {offsets = [0, 17], sizes = [64, 495], strides = [1, 1]} : vector<64x512xbf16> to vector<64x495xbf16>
    %286 = vector.extract_strided_slice %240 {offsets = [0, 0], sizes = [64, 17], strides = [1, 1]} : vector<64x512xbf16> to vector<64x17xbf16>
    %287 = tpu.concatenate %285, %286 in 1 : vector<64x495xbf16>, vector<64x17xbf16> -> vector<64x512xbf16>
    %c8_107 = arith.constant 8 : index
    %c0_108 = arith.constant 0 : index
    %288 = vector.load %arg15[%c8_107, %c0_108] : memref<9x512xbf16, #tpu.memory_space<vmem>>, vector<1x512xbf16>
    %289 = vector.broadcast %288 : vector<1x512xbf16> to vector<64x512xbf16>
    %290 = arith.mulf %287, %289 : vector<64x512xbf16>
    %291 = tpu.concatenate %248, %254, %260, %266, %240, %272, %278, %284, %290 in 0 : vector<64x512xbf16>, vector<64x512xbf16>, vector<64x512xbf16>, vector<64x512xbf16>, vector<64x512xbf16>, vector<64x512xbf16>, vector<64x512xbf16>, vector<64x512xbf16>, vector<64x512xbf16> -> vector<576x512xbf16>
    %c0_109 = arith.constant 0 : index
    %c0_110 = arith.constant 0 : index
    %292 = vector.load %arg9[%c0_109, %c0_110] : memref<64x576xbf16, #tpu.memory_space<vmem>>, vector<64x576xbf16>
    %cst_111 = arith.constant dense<0.000000e+00> : vector<64x512xf32>
    %293 = tpu.matmul %292, %291, %cst_111 {dimension_numbers = #tpu.dot_dimension_numbers<[1], [0], [0], [1], [0, 0, 1, 1], [], []>} : vector<64x576xbf16>, vector<576x512xbf16>, vector<64x512xf32> -> vector<64x512xf32>
    %294 = vector.broadcast %242 : vector<64x1xf32> to vector<64x512xf32>
    %295 = arith.addf %293, %294 : vector<64x512xf32>
    %296 = arith.truncf %295 : vector<64x512xf32> to vector<64x512xbf16>
    %c0_112 = arith.constant 0 : index
    %c0_113 = arith.constant 0 : index
    %297 = vector.load %arg3[%c0_112, %c0_113] : memref<512x128xbf16, #tpu.memory_space<vmem>>, vector<512x128xbf16>
    %cst_114 = arith.constant dense<0.000000e+00> : vector<64x128xf32>
    %298 = tpu.matmul %296, %297, %cst_114 {dimension_numbers = #tpu.dot_dimension_numbers<[1], [0], [0], [1], [0, 0, 1, 1], [], []>} : vector<64x512xbf16>, vector<512x128xbf16>, vector<64x128xf32> -> vector<64x128xf32>
    %299 = arith.truncf %179 : vector<32x512xf32> to vector<32x512xbf16>
    %c0_115 = arith.constant 0 : index
    %c0_116 = arith.constant 0 : index
    %300 = vector.load %arg3[%c0_115, %c0_116] : memref<512x128xbf16, #tpu.memory_space<vmem>>, vector<512x128xbf16>
    %cst_117 = arith.constant dense<0.000000e+00> : vector<32x128xf32>
    %301 = tpu.matmul %299, %300, %cst_117 {dimension_numbers = #tpu.dot_dimension_numbers<[1], [0], [0], [1], [0, 0, 1, 1], [], []>} : vector<32x512xbf16>, vector<512x128xbf16>, vector<32x128xf32> -> vector<32x128xf32>
    %302 = arith.truncf %301 : vector<32x128xf32> to vector<32x128xbf16>
    %c0_118 = arith.constant 0 : index
    %c0_119 = arith.constant 0 : index
    %303 = vector.load %arg10[%c0_118, %c0_119] : memref<64x32xbf16, #tpu.memory_space<vmem>>, vector<64x32xbf16>
    %cst_120 = arith.constant dense<0.000000e+00> : vector<64x128xf32>
    %304 = tpu.matmul %303, %302, %cst_120 {dimension_numbers = #tpu.dot_dimension_numbers<[1], [0], [0], [1], [0, 0, 1, 1], [], []>} : vector<64x32xbf16>, vector<32x128xbf16>, vector<64x128xf32> -> vector<64x128xf32>
    %c6_121 = arith.constant 6 : index
    %c0_122 = arith.constant 0 : index
    %c0_123 = arith.constant 0 : index
    %305 = vector.load %arg2[%c6_121, %c0_122, %c0_123] : memref<11x128x1xf32, #tpu.memory_space<vmem>>, vector<1x64x1xf32>
    %306 = vector.shape_cast %305 : vector<1x64x1xf32> to vector<64x1xf32>
    %307 = vector.broadcast %306 : vector<64x1xf32> to vector<64x128xf32>
    %308 = arith.addf %304, %307 : vector<64x128xf32>
    %309 = arith.addf %298, %308 : vector<64x128xf32>
    %cst_124 = arith.constant 0.000000e+00 : f32
    %310 = vector.broadcast %cst_124 : f32 to vector<64x128xf32>
    %311 = arith.maximumf %309, %310 : vector<64x128xf32>
    %312 = arith.truncf %311 : vector<64x128xf32> to vector<64x128xbf16>
    %c7_125 = arith.constant 7 : index
    %c0_126 = arith.constant 0 : index
    %c0_127 = arith.constant 0 : index
    %313 = vector.load %arg2[%c7_125, %c0_126, %c0_127] : memref<11x128x1xf32, #tpu.memory_space<vmem>>, vector<1x128x1xf32>
    %314 = vector.shape_cast %313 : vector<1x128x1xf32> to vector<128x1xf32>
    %315 = vector.extract_strided_slice %312 {offsets = [0, 119], sizes = [64, 9], strides = [1, 1]} : vector<64x128xbf16> to vector<64x9xbf16>
    %316 = vector.extract_strided_slice %312 {offsets = [0, 0], sizes = [64, 119], strides = [1, 1]} : vector<64x128xbf16> to vector<64x119xbf16>
    %317 = tpu.concatenate %315, %316 in 1 : vector<64x9xbf16>, vector<64x119xbf16> -> vector<64x128xbf16>
    %c0_128 = arith.constant 0 : index
    %c0_129 = arith.constant 0 : index
    %318 = vector.load %arg16[%c0_128, %c0_129] : memref<9x128xbf16, #tpu.memory_space<vmem>>, vector<1x128xbf16>
    %319 = vector.broadcast %318 : vector<1x128xbf16> to vector<64x128xbf16>
    %320 = arith.mulf %317, %319 : vector<64x128xbf16>
    %321 = vector.extract_strided_slice %312 {offsets = [0, 120], sizes = [64, 8], strides = [1, 1]} : vector<64x128xbf16> to vector<64x8xbf16>
    %322 = vector.extract_strided_slice %312 {offsets = [0, 0], sizes = [64, 120], strides = [1, 1]} : vector<64x128xbf16> to vector<64x120xbf16>
    %323 = tpu.concatenate %321, %322 in 1 : vector<64x8xbf16>, vector<64x120xbf16> -> vector<64x128xbf16>
    %c1_130 = arith.constant 1 : index
    %c0_131 = arith.constant 0 : index
    %324 = vector.load %arg16[%c1_130, %c0_131] : memref<9x128xbf16, #tpu.memory_space<vmem>>, vector<1x128xbf16>
    %325 = vector.broadcast %324 : vector<1x128xbf16> to vector<64x128xbf16>
    %326 = arith.mulf %323, %325 : vector<64x128xbf16>
    %327 = vector.extract_strided_slice %312 {offsets = [0, 121], sizes = [64, 7], strides = [1, 1]} : vector<64x128xbf16> to vector<64x7xbf16>
    %328 = vector.extract_strided_slice %312 {offsets = [0, 0], sizes = [64, 121], strides = [1, 1]} : vector<64x128xbf16> to vector<64x121xbf16>
    %329 = tpu.concatenate %327, %328 in 1 : vector<64x7xbf16>, vector<64x121xbf16> -> vector<64x128xbf16>
    %c2_132 = arith.constant 2 : index
    %c0_133 = arith.constant 0 : index
    %330 = vector.load %arg16[%c2_132, %c0_133] : memref<9x128xbf16, #tpu.memory_space<vmem>>, vector<1x128xbf16>
    %331 = vector.broadcast %330 : vector<1x128xbf16> to vector<64x128xbf16>
    %332 = arith.mulf %329, %331 : vector<64x128xbf16>
    %333 = vector.extract_strided_slice %312 {offsets = [0, 127], sizes = [64, 1], strides = [1, 1]} : vector<64x128xbf16> to vector<64x1xbf16>
    %334 = vector.extract_strided_slice %312 {offsets = [0, 0], sizes = [64, 127], strides = [1, 1]} : vector<64x128xbf16> to vector<64x127xbf16>
    %335 = tpu.concatenate %333, %334 in 1 : vector<64x1xbf16>, vector<64x127xbf16> -> vector<64x128xbf16>
    %c3_134 = arith.constant 3 : index
    %c0_135 = arith.constant 0 : index
    %336 = vector.load %arg16[%c3_134, %c0_135] : memref<9x128xbf16, #tpu.memory_space<vmem>>, vector<1x128xbf16>
    %337 = vector.broadcast %336 : vector<1x128xbf16> to vector<64x128xbf16>
    %338 = arith.mulf %335, %337 : vector<64x128xbf16>
    %339 = vector.extract_strided_slice %312 {offsets = [0, 1], sizes = [64, 127], strides = [1, 1]} : vector<64x128xbf16> to vector<64x127xbf16>
    %340 = vector.extract_strided_slice %312 {offsets = [0, 0], sizes = [64, 1], strides = [1, 1]} : vector<64x128xbf16> to vector<64x1xbf16>
    %341 = tpu.concatenate %339, %340 in 1 : vector<64x127xbf16>, vector<64x1xbf16> -> vector<64x128xbf16>
    %c5_136 = arith.constant 5 : index
    %c0_137 = arith.constant 0 : index
    %342 = vector.load %arg16[%c5_136, %c0_137] : memref<9x128xbf16, #tpu.memory_space<vmem>>, vector<1x128xbf16>
    %343 = vector.broadcast %342 : vector<1x128xbf16> to vector<64x128xbf16>
    %344 = arith.mulf %341, %343 : vector<64x128xbf16>
    %345 = vector.extract_strided_slice %312 {offsets = [0, 7], sizes = [64, 121], strides = [1, 1]} : vector<64x128xbf16> to vector<64x121xbf16>
    %346 = vector.extract_strided_slice %312 {offsets = [0, 0], sizes = [64, 7], strides = [1, 1]} : vector<64x128xbf16> to vector<64x7xbf16>
    %347 = tpu.concatenate %345, %346 in 1 : vector<64x121xbf16>, vector<64x7xbf16> -> vector<64x128xbf16>
    %c6_138 = arith.constant 6 : index
    %c0_139 = arith.constant 0 : index
    %348 = vector.load %arg16[%c6_138, %c0_139] : memref<9x128xbf16, #tpu.memory_space<vmem>>, vector<1x128xbf16>
    %349 = vector.broadcast %348 : vector<1x128xbf16> to vector<64x128xbf16>
    %350 = arith.mulf %347, %349 : vector<64x128xbf16>
    %351 = vector.extract_strided_slice %312 {offsets = [0, 8], sizes = [64, 120], strides = [1, 1]} : vector<64x128xbf16> to vector<64x120xbf16>
    %352 = vector.extract_strided_slice %312 {offsets = [0, 0], sizes = [64, 8], strides = [1, 1]} : vector<64x128xbf16> to vector<64x8xbf16>
    %353 = tpu.concatenate %351, %352 in 1 : vector<64x120xbf16>, vector<64x8xbf16> -> vector<64x128xbf16>
    %c7_140 = arith.constant 7 : index
    %c0_141 = arith.constant 0 : index
    %354 = vector.load %arg16[%c7_140, %c0_141] : memref<9x128xbf16, #tpu.memory_space<vmem>>, vector<1x128xbf16>
    %355 = vector.broadcast %354 : vector<1x128xbf16> to vector<64x128xbf16>
    %356 = arith.mulf %353, %355 : vector<64x128xbf16>
    %357 = vector.extract_strided_slice %312 {offsets = [0, 9], sizes = [64, 119], strides = [1, 1]} : vector<64x128xbf16> to vector<64x119xbf16>
    %358 = vector.extract_strided_slice %312 {offsets = [0, 0], sizes = [64, 9], strides = [1, 1]} : vector<64x128xbf16> to vector<64x9xbf16>
    %359 = tpu.concatenate %357, %358 in 1 : vector<64x119xbf16>, vector<64x9xbf16> -> vector<64x128xbf16>
    %c8_142 = arith.constant 8 : index
    %c0_143 = arith.constant 0 : index
    %360 = vector.load %arg16[%c8_142, %c0_143] : memref<9x128xbf16, #tpu.memory_space<vmem>>, vector<1x128xbf16>
    %361 = vector.broadcast %360 : vector<1x128xbf16> to vector<64x128xbf16>
    %362 = arith.mulf %359, %361 : vector<64x128xbf16>
    %363 = tpu.concatenate %320, %326, %332, %338, %312, %344, %350, %356, %362 in 0 : vector<64x128xbf16>, vector<64x128xbf16>, vector<64x128xbf16>, vector<64x128xbf16>, vector<64x128xbf16>, vector<64x128xbf16>, vector<64x128xbf16>, vector<64x128xbf16>, vector<64x128xbf16> -> vector<576x128xbf16>
    %c0_144 = arith.constant 0 : index
    %c0_145 = arith.constant 0 : index
    %364 = vector.load %arg11[%c0_144, %c0_145] : memref<128x576xbf16, #tpu.memory_space<vmem>>, vector<128x576xbf16>
    %cst_146 = arith.constant dense<0.000000e+00> : vector<128x128xf32>
    %365 = tpu.matmul %364, %363, %cst_146 {dimension_numbers = #tpu.dot_dimension_numbers<[1], [0], [0], [1], [0, 0, 1, 1], [], []>} : vector<128x576xbf16>, vector<576x128xbf16>, vector<128x128xf32> -> vector<128x128xf32>
    %366 = vector.broadcast %314 : vector<128x1xf32> to vector<128x128xf32>
    %367 = arith.addf %365, %366 : vector<128x128xf32>
    %cst_147 = arith.constant 0.000000e+00 : f32
    %368 = vector.broadcast %cst_147 : f32 to vector<128x128xf32>
    %369 = arith.maximumf %367, %368 : vector<128x128xf32>
    %370 = arith.truncf %369 : vector<128x128xf32> to vector<128x128xbf16>
    %c8_148 = arith.constant 8 : index
    %c0_149 = arith.constant 0 : index
    %c0_150 = arith.constant 0 : index
    %371 = vector.load %arg2[%c8_148, %c0_149, %c0_150] : memref<11x128x1xf32, #tpu.memory_space<vmem>>, vector<1x128x1xf32>
    %372 = vector.shape_cast %371 : vector<1x128x1xf32> to vector<128x1xf32>
    %373 = vector.extract_strided_slice %370 {offsets = [0, 119], sizes = [128, 9], strides = [1, 1]} : vector<128x128xbf16> to vector<128x9xbf16>
    %374 = vector.extract_strided_slice %370 {offsets = [0, 0], sizes = [128, 119], strides = [1, 1]} : vector<128x128xbf16> to vector<128x119xbf16>
    %375 = tpu.concatenate %373, %374 in 1 : vector<128x9xbf16>, vector<128x119xbf16> -> vector<128x128xbf16>
    %c0_151 = arith.constant 0 : index
    %c0_152 = arith.constant 0 : index
    %376 = vector.load %arg16[%c0_151, %c0_152] : memref<9x128xbf16, #tpu.memory_space<vmem>>, vector<1x128xbf16>
    %377 = vector.broadcast %376 : vector<1x128xbf16> to vector<128x128xbf16>
    %378 = arith.mulf %375, %377 : vector<128x128xbf16>
    %379 = vector.extract_strided_slice %370 {offsets = [0, 120], sizes = [128, 8], strides = [1, 1]} : vector<128x128xbf16> to vector<128x8xbf16>
    %380 = vector.extract_strided_slice %370 {offsets = [0, 0], sizes = [128, 120], strides = [1, 1]} : vector<128x128xbf16> to vector<128x120xbf16>
    %381 = tpu.concatenate %379, %380 in 1 : vector<128x8xbf16>, vector<128x120xbf16> -> vector<128x128xbf16>
    %c1_153 = arith.constant 1 : index
    %c0_154 = arith.constant 0 : index
    %382 = vector.load %arg16[%c1_153, %c0_154] : memref<9x128xbf16, #tpu.memory_space<vmem>>, vector<1x128xbf16>
    %383 = vector.broadcast %382 : vector<1x128xbf16> to vector<128x128xbf16>
    %384 = arith.mulf %381, %383 : vector<128x128xbf16>
    %385 = vector.extract_strided_slice %370 {offsets = [0, 121], sizes = [128, 7], strides = [1, 1]} : vector<128x128xbf16> to vector<128x7xbf16>
    %386 = vector.extract_strided_slice %370 {offsets = [0, 0], sizes = [128, 121], strides = [1, 1]} : vector<128x128xbf16> to vector<128x121xbf16>
    %387 = tpu.concatenate %385, %386 in 1 : vector<128x7xbf16>, vector<128x121xbf16> -> vector<128x128xbf16>
    %c2_155 = arith.constant 2 : index
    %c0_156 = arith.constant 0 : index
    %388 = vector.load %arg16[%c2_155, %c0_156] : memref<9x128xbf16, #tpu.memory_space<vmem>>, vector<1x128xbf16>
    %389 = vector.broadcast %388 : vector<1x128xbf16> to vector<128x128xbf16>
    %390 = arith.mulf %387, %389 : vector<128x128xbf16>
    %391 = vector.extract_strided_slice %370 {offsets = [0, 127], sizes = [128, 1], strides = [1, 1]} : vector<128x128xbf16> to vector<128x1xbf16>
    %392 = vector.extract_strided_slice %370 {offsets = [0, 0], sizes = [128, 127], strides = [1, 1]} : vector<128x128xbf16> to vector<128x127xbf16>
    %393 = tpu.concatenate %391, %392 in 1 : vector<128x1xbf16>, vector<128x127xbf16> -> vector<128x128xbf16>
    %c3_157 = arith.constant 3 : index
    %c0_158 = arith.constant 0 : index
    %394 = vector.load %arg16[%c3_157, %c0_158] : memref<9x128xbf16, #tpu.memory_space<vmem>>, vector<1x128xbf16>
    %395 = vector.broadcast %394 : vector<1x128xbf16> to vector<128x128xbf16>
    %396 = arith.mulf %393, %395 : vector<128x128xbf16>
    %397 = vector.extract_strided_slice %370 {offsets = [0, 1], sizes = [128, 127], strides = [1, 1]} : vector<128x128xbf16> to vector<128x127xbf16>
    %398 = vector.extract_strided_slice %370 {offsets = [0, 0], sizes = [128, 1], strides = [1, 1]} : vector<128x128xbf16> to vector<128x1xbf16>
    %399 = tpu.concatenate %397, %398 in 1 : vector<128x127xbf16>, vector<128x1xbf16> -> vector<128x128xbf16>
    %c5_159 = arith.constant 5 : index
    %c0_160 = arith.constant 0 : index
    %400 = vector.load %arg16[%c5_159, %c0_160] : memref<9x128xbf16, #tpu.memory_space<vmem>>, vector<1x128xbf16>
    %401 = vector.broadcast %400 : vector<1x128xbf16> to vector<128x128xbf16>
    %402 = arith.mulf %399, %401 : vector<128x128xbf16>
    %403 = vector.extract_strided_slice %370 {offsets = [0, 7], sizes = [128, 121], strides = [1, 1]} : vector<128x128xbf16> to vector<128x121xbf16>
    %404 = vector.extract_strided_slice %370 {offsets = [0, 0], sizes = [128, 7], strides = [1, 1]} : vector<128x128xbf16> to vector<128x7xbf16>
    %405 = tpu.concatenate %403, %404 in 1 : vector<128x121xbf16>, vector<128x7xbf16> -> vector<128x128xbf16>
    %c6_161 = arith.constant 6 : index
    %c0_162 = arith.constant 0 : index
    %406 = vector.load %arg16[%c6_161, %c0_162] : memref<9x128xbf16, #tpu.memory_space<vmem>>, vector<1x128xbf16>
    %407 = vector.broadcast %406 : vector<1x128xbf16> to vector<128x128xbf16>
    %408 = arith.mulf %405, %407 : vector<128x128xbf16>
    %409 = vector.extract_strided_slice %370 {offsets = [0, 8], sizes = [128, 120], strides = [1, 1]} : vector<128x128xbf16> to vector<128x120xbf16>
    %410 = vector.extract_strided_slice %370 {offsets = [0, 0], sizes = [128, 8], strides = [1, 1]} : vector<128x128xbf16> to vector<128x8xbf16>
    %411 = tpu.concatenate %409, %410 in 1 : vector<128x120xbf16>, vector<128x8xbf16> -> vector<128x128xbf16>
    %c7_163 = arith.constant 7 : index
    %c0_164 = arith.constant 0 : index
    %412 = vector.load %arg16[%c7_163, %c0_164] : memref<9x128xbf16, #tpu.memory_space<vmem>>, vector<1x128xbf16>
    %413 = vector.broadcast %412 : vector<1x128xbf16> to vector<128x128xbf16>
    %414 = arith.mulf %411, %413 : vector<128x128xbf16>
    %415 = vector.extract_strided_slice %370 {offsets = [0, 9], sizes = [128, 119], strides = [1, 1]} : vector<128x128xbf16> to vector<128x119xbf16>
    %416 = vector.extract_strided_slice %370 {offsets = [0, 0], sizes = [128, 9], strides = [1, 1]} : vector<128x128xbf16> to vector<128x9xbf16>
    %417 = tpu.concatenate %415, %416 in 1 : vector<128x119xbf16>, vector<128x9xbf16> -> vector<128x128xbf16>
    %c8_165 = arith.constant 8 : index
    %c0_166 = arith.constant 0 : index
    %418 = vector.load %arg16[%c8_165, %c0_166] : memref<9x128xbf16, #tpu.memory_space<vmem>>, vector<1x128xbf16>
    %419 = vector.broadcast %418 : vector<1x128xbf16> to vector<128x128xbf16>
    %420 = arith.mulf %417, %419 : vector<128x128xbf16>
    %421 = tpu.concatenate %378, %384, %390, %396, %370, %402, %408, %414, %420 in 0 : vector<128x128xbf16>, vector<128x128xbf16>, vector<128x128xbf16>, vector<128x128xbf16>, vector<128x128xbf16>, vector<128x128xbf16>, vector<128x128xbf16>, vector<128x128xbf16>, vector<128x128xbf16> -> vector<1152x128xbf16>
    %c0_167 = arith.constant 0 : index
    %c0_168 = arith.constant 0 : index
    %422 = vector.load %arg12[%c0_167, %c0_168] : memref<128x1152xbf16, #tpu.memory_space<vmem>>, vector<128x1152xbf16>
    %cst_169 = arith.constant dense<0.000000e+00> : vector<128x128xf32>
    %423 = tpu.matmul %422, %421, %cst_169 {dimension_numbers = #tpu.dot_dimension_numbers<[1], [0], [0], [1], [0, 0, 1, 1], [], []>} : vector<128x1152xbf16>, vector<1152x128xbf16>, vector<128x128xf32> -> vector<128x128xf32>
    %424 = vector.broadcast %372 : vector<128x1xf32> to vector<128x128xf32>
    %425 = arith.addf %423, %424 : vector<128x128xf32>
    %426 = arith.truncf %425 : vector<128x128xf32> to vector<128x128xbf16>
    %c0_170 = arith.constant 0 : index
    %c0_171 = arith.constant 0 : index
    %427 = vector.load %arg4[%c0_170, %c0_171] : memref<128x32xbf16, #tpu.memory_space<vmem>>, vector<128x32xbf16>
    %cst_172 = arith.constant dense<0.000000e+00> : vector<128x32xf32>
    %428 = tpu.matmul %426, %427, %cst_172 {dimension_numbers = #tpu.dot_dimension_numbers<[1], [0], [0], [1], [0, 0, 1, 1], [], []>} : vector<128x128xbf16>, vector<128x32xbf16>, vector<128x32xf32> -> vector<128x32xf32>
    %429 = arith.truncf %309 : vector<64x128xf32> to vector<64x128xbf16>
    %c0_173 = arith.constant 0 : index
    %c0_174 = arith.constant 0 : index
    %430 = vector.load %arg4[%c0_173, %c0_174] : memref<128x32xbf16, #tpu.memory_space<vmem>>, vector<128x32xbf16>
    %cst_175 = arith.constant dense<0.000000e+00> : vector<64x32xf32>
    %431 = tpu.matmul %429, %430, %cst_175 {dimension_numbers = #tpu.dot_dimension_numbers<[1], [0], [0], [1], [0, 0, 1, 1], [], []>} : vector<64x128xbf16>, vector<128x32xbf16>, vector<64x32xf32> -> vector<64x32xf32>
    %432 = arith.truncf %431 : vector<64x32xf32> to vector<64x32xbf16>
    %c0_176 = arith.constant 0 : index
    %c0_177 = arith.constant 0 : index
    %433 = vector.load %arg13[%c0_176, %c0_177] : memref<128x64xbf16, #tpu.memory_space<vmem>>, vector<128x64xbf16>
    %cst_178 = arith.constant dense<0.000000e+00> : vector<128x32xf32>
    %434 = tpu.matmul %433, %432, %cst_178 {dimension_numbers = #tpu.dot_dimension_numbers<[1], [0], [0], [1], [0, 0, 1, 1], [], []>} : vector<128x64xbf16>, vector<64x32xbf16>, vector<128x32xf32> -> vector<128x32xf32>
    %c9 = arith.constant 9 : index
    %c0_179 = arith.constant 0 : index
    %c0_180 = arith.constant 0 : index
    %435 = vector.load %arg2[%c9, %c0_179, %c0_180] : memref<11x128x1xf32, #tpu.memory_space<vmem>>, vector<1x128x1xf32>
    %436 = vector.shape_cast %435 : vector<1x128x1xf32> to vector<128x1xf32>
    %437 = vector.broadcast %436 : vector<128x1xf32> to vector<128x32xf32>
    %438 = arith.addf %434, %437 : vector<128x32xf32>
    %439 = arith.addf %428, %438 : vector<128x32xf32>
    %cst_181 = arith.constant 0.000000e+00 : f32
    %440 = vector.broadcast %cst_181 : f32 to vector<128x32xf32>
    %441 = arith.maximumf %439, %440 : vector<128x32xf32>
    %442 = arith.truncf %441 : vector<128x32xf32> to vector<128x32xbf16>
    %c0_182 = arith.constant 0 : index
    %c0_183 = arith.constant 0 : index
    %443 = vector.load %arg17[%c0_182, %c0_183] : memref<32x2xbf16, #tpu.memory_space<vmem>>, vector<32x2xbf16>
    %cst_184 = arith.constant dense<0.000000e+00> : vector<128x2xf32>
    %444 = tpu.matmul %442, %443, %cst_184 {dimension_numbers = #tpu.dot_dimension_numbers<[1], [0], [0], [1], [0, 0, 1, 1], [], []>} : vector<128x32xbf16>, vector<32x2xbf16>, vector<128x2xf32> -> vector<128x2xf32>
    %c0_185 = arith.constant 0 : index
    %c0_186 = arith.constant 0 : index
    %445 = vector.load %arg14[%c0_185, %c0_186] : memref<128x128xbf16, #tpu.memory_space<vmem>>, vector<128x128xbf16>
    %446 = arith.truncf %444 : vector<128x2xf32> to vector<128x2xbf16>
    %cst_187 = arith.constant dense<0.000000e+00> : vector<128x2xf32>
    %447 = tpu.matmul %445, %446, %cst_187 {dimension_numbers = #tpu.dot_dimension_numbers<[1], [0], [0], [1], [0, 0, 1, 1], [], []>} : vector<128x128xbf16>, vector<128x2xbf16>, vector<128x2xf32> -> vector<128x2xf32>
    %c10 = arith.constant 10 : index
    %c0_188 = arith.constant 0 : index
    %c0_189 = arith.constant 0 : index
    %448 = vector.load %arg2[%c10, %c0_188, %c0_189] : memref<11x128x1xf32, #tpu.memory_space<vmem>>, vector<1x128x1xf32>
    %449 = vector.shape_cast %448 : vector<1x128x1xf32> to vector<128x1xf32>
    %450 = vector.broadcast %449 : vector<128x1xf32> to vector<128x2xf32>
    %451 = arith.addf %447, %450 : vector<128x2xf32>
    %c0_190 = arith.constant 0 : index
    %c0_191 = arith.constant 0 : index
    %c0_192 = arith.constant 0 : index
    %452 = vector.load %arg19[%c0_190, %c0_191, %c0_192] : memref<1x128x2xf32, #tpu.memory_space<vmem>>, vector<1x128x2xf32>
    %453 = vector.shape_cast %452 : vector<1x128x2xf32> to vector<128x2xf32>
    %454 = vector.shape_cast %451 : vector<128x2xf32> to vector<1x128x2xf32>
    tpu.vector_store %arg19[%c0_190, %c0_191, %c0_192], %454 {strides = array<i32>} : memref<1x128x2xf32, #tpu.memory_space<vmem>>, vector<1x128x2xf32>,
    return
  }
  func.func @transform_0(%arg0: i32) -> (i32, i32) {
    %c0_i32 = arith.constant 0 : i32
    %c0_i32_0 = arith.constant 0 : i32
    return %c0_i32, %arg0 : i32, i32
  }
  func.func @transform_1(%arg0: i32) -> (i32, i32, i32) {
    %c0_i32 = arith.constant 0 : i32
    %c0_i32_0 = arith.constant 0 : i32
    %c0_i32_1 = arith.constant 0 : i32
    %c0_i32_2 = arith.constant 0 : i32
    return %c0_i32, %c0_i32_0, %c0_i32_1 : i32, i32, i32
  }
  func.func @transform_2(%arg0: i32) -> (i32, i32) {
    %c0_i32 = arith.constant 0 : i32
    %c0_i32_0 = arith.constant 0 : i32
    %c0_i32_1 = arith.constant 0 : i32
    return %c0_i32, %c0_i32_0 : i32, i32
  }
  func.func @transform_3(%arg0: i32) -> (i32, i32) {
    %c0_i32 = arith.constant 0 : i32
    %c0_i32_0 = arith.constant 0 : i32
    %c0_i32_1 = arith.constant 0 : i32
    return %c0_i32, %c0_i32_0 : i32, i32
  }
  func.func @transform_4(%arg0: i32) -> (i32, i32) {
    %c0_i32 = arith.constant 0 : i32
    %c0_i32_0 = arith.constant 0 : i32
    %c0_i32_1 = arith.constant 0 : i32
    return %c0_i32, %c0_i32_0 : i32, i32
  }
  func.func @transform_5(%arg0: i32) -> (i32, i32) {
    %c0_i32 = arith.constant 0 : i32
    %c0_i32_0 = arith.constant 0 : i32
    %c0_i32_1 = arith.constant 0 : i32
    return %c0_i32, %c0_i32_0 : i32, i32
  }
  func.func @transform_6(%arg0: i32) -> (i32, i32) {
    %c0_i32 = arith.constant 0 : i32
    %c0_i32_0 = arith.constant 0 : i32
    %c0_i32_1 = arith.constant 0 : i32
    return %c0_i32, %c0_i32_0 : i32, i32
  }
  func.func @transform_7(%arg0: i32) -> (i32, i32) {
    %c0_i32 = arith.constant 0 : i32
    %c0_i32_0 = arith.constant 0 : i32
    %c0_i32_1 = arith.constant 0 : i32
    return %c0_i32, %c0_i32_0 : i32, i32
  }
  func.func @transform_8(%arg0: i32) -> (i32, i32) {
    %c0_i32 = arith.constant 0 : i32
    %c0_i32_0 = arith.constant 0 : i32
    %c0_i32_1 = arith.constant 0 : i32
    return %c0_i32, %c0_i32_0 : i32, i32
  }
  func.func @transform_9(%arg0: i32) -> (i32, i32) {
    %c0_i32 = arith.constant 0 : i32
    %c0_i32_0 = arith.constant 0 : i32
    %c0_i32_1 = arith.constant 0 : i32
    return %c0_i32, %c0_i32_0 : i32, i32
  }
  func.func @transform_10(%arg0: i32) -> (i32, i32) {
    %c0_i32 = arith.constant 0 : i32
    %c0_i32_0 = arith.constant 0 : i32
    %c0_i32_1 = arith.constant 0 : i32
    return %c0_i32, %c0_i32_0 : i32, i32
  }
  func.func @transform_11(%arg0: i32) -> (i32, i32) {
    %c0_i32 = arith.constant 0 : i32
    %c0_i32_0 = arith.constant 0 : i32
    %c0_i32_1 = arith.constant 0 : i32
    return %c0_i32, %c0_i32_0 : i32, i32
  }
  func.func @transform_12(%arg0: i32) -> (i32, i32) {
    %c0_i32 = arith.constant 0 : i32
    %c0_i32_0 = arith.constant 0 : i32
    %c0_i32_1 = arith.constant 0 : i32
    return %c0_i32, %c0_i32_0 : i32, i32
  }
  func.func @transform_13(%arg0: i32) -> (i32, i32) {
    %c0_i32 = arith.constant 0 : i32
    %c0_i32_0 = arith.constant 0 : i32
    %c0_i32_1 = arith.constant 0 : i32
    return %c0_i32, %c0_i32_0 : i32, i32
  }
  func.func @transform_14(%arg0: i32) -> (i32, i32) {
    %c0_i32 = arith.constant 0 : i32
    %c0_i32_0 = arith.constant 0 : i32
    %c0_i32_1 = arith.constant 0 : i32
    return %c0_i32, %c0_i32_0 : i32, i32
  }
  func.func @transform_15(%arg0: i32) -> (i32, i32) {
    %c0_i32 = arith.constant 0 : i32
    %c0_i32_0 = arith.constant 0 : i32
    %c0_i32_1 = arith.constant 0 : i32
    return %c0_i32, %c0_i32_0 : i32, i32
  }
  func.func @transform_16(%arg0: i32) -> (i32, i32) {
    %c0_i32 = arith.constant 0 : i32
    %c0_i32_0 = arith.constant 0 : i32
    %c0_i32_1 = arith.constant 0 : i32
    return %c0_i32, %c0_i32_0 : i32, i32
  }
  func.func @transform_17(%arg0: i32) -> (i32, i32) {
    %c0_i32 = arith.constant 0 : i32
    %c0_i32_0 = arith.constant 0 : i32
    %c0_i32_1 = arith.constant 0 : i32
    return %c0_i32, %c0_i32_0 : i32, i32
  }
  func.func @transform_18(%arg0: i32) -> (i32, i32, i32) {
    %c0_i32 = arith.constant 0 : i32
    %c0_i32_0 = arith.constant 0 : i32
    %c0_i32_1 = arith.constant 0 : i32
    return %arg0, %c0_i32, %c0_i32_0 : i32, i32, i32
  }
}

</mosaic_0001>

<bundles_post_ra>
// kernel: forward.1
= control target key start
LH: loop header
LB: loop body
LE: loop exit
PB: predicated region body
PF: predicated region fallthrough
CT: control target
= control target key end

     0   :  { %s14081_s0 = inlined_call_operand.vmem [shape: bf16[16,512], index: 0, kind: input, shape index: {}]   ;;  %s14082_s1 = inlined_call_operand.vmem [shape: f32[11,128,1], index: 1, kind: input, shape index: {}]   ;;  %s14083_s2 = inlined_call_operand.vmem [shape: bf16[512,128], index: 2, kind: input, shape index: {}]   ;;  %s14084_s3 = inlined_call_operand.hbm [shape: bf16[128,32], index: 3, kind: input, shape index: {}]   ;;  %s14085_s4 = inlined_call_operand.vmem [shape: bf16[32,144], index: 4, kind: input, shape index: {}]   ;;  %s14086_s5 = inlined_call_operand.vmem [shape: bf16[32,288], index: 5, kind: input, shape index: {}]   ;;  %s14087_s6 = inlined_call_operand.hbm [shape: bf16[32,16], index: 6, kind: input, shape index: {}]   ;;  %s14088_s7 = inlined_call_operand.vmem [shape: bf16[64,288], index: 7, kind: input, shape index: {}]   ;;  %s14089_s8 = inlined_call_operand.vmem [shape: bf16[64,576], index: 8, kind: input, shape index: {}]   ;;  %s14090_s9 = inlined_call_operand.vmem [shape: bf16[64,32], index: 9, kind: input, shape index: {}]   ;;  %s14091_s10 = inlined_call_operand.vmem [shape: bf16[128,576], index: 10, kind: input, shape index: {}]   ;;  %s14092_s11 = inlined_call_operand.vmem [shape: bf16[128,1152], index: 11, kind: input, shape index: {}]   ;;  %s14093_s12 = inlined_call_operand.vmem [shape: bf16[128,64], index: 12, kind: input, shape index: {}]   ;;  %s14094_s13 = inlined_call_operand.vmem [shape: bf16[128,128], index: 13, kind: input, shape index: {}]   ;;  %s14095_s14 = inlined_call_operand.hbm [shape: bf16[9,512], index: 14, kind: input, shape index: {}]   ;;  %s14096_s15 = inlined_call_operand.hbm [shape: bf16[9,128], index: 15, kind: input, shape index: {}]   ;;  %s14097_s16 = inlined_call_operand.vmem [shape: bf16[32,2], index: 16, kind: input, shape index: {}]   ;;  %s14098_s17 = inlined_call_operand.vmem [shape: bf16[16,144], index: 17, kind: input, shape index: {}]   ;;  %s14099_s18 = inlined_call_operand.vmem [shape: f32[1,128,2], index: 18, kind: output, shape index: {}]  }
   0x1   :  { %14223 = sst [smem:[#allocation70_spill]] %s14081_s0 }
   0x2   :  { %14224 = sst [smem:[#allocation71_spill]] %s14082_s1 }
   0x3   :  { %14225 = sst [smem:[#allocation72_spill]] %s14083_s2 }
   0x4   :  { %23 = vsyncpa [#allocation3], 0 }
   0x5   :  { %24 = vsyncpa [#allocation5], 0 }
   0x6   :  { %25 = vsyncpa [#allocation8], 0  ;;  %s9945_s27 = smov [#allocation4]   ;;  %s9946_s29 = smov [#allocation2]  }
   0x7   :  { %s53_s28 = sshll.u32 %s9945_s27, 4  ;;  %s37_s30 = sshll.u32 %s9946_s29, 4  ;;  %s54_s28 = int_to_ptr.vmem [resolvable:$true] %s53_s28  ;;  %s10062_s30 = int_to_ptr.vmem [resolvable:$true] %s37_s30 }
   0x8   :  { %s9851_s1 = scalar_lea.hbm %s14087_s6, 256 }
   0x9   :  { %p9852_p0 = scmp.ne.s32.totalorder %s14087_s6, %s9851_s1  ;;  %p9855_p1 = scmp.lt.u32.totalorder %s9851_s1, %s14087_s6 }
   0xb   :  { %p9857_p2 = pnand %p9855_p1, %p9852_p0 }
   0xd   :  { %9860 = shalt.err (!%p9857_p2)
}
   0xe   :  { %s9861_s23 = scalar_lea.vmem %s54_s28, 256  ;;  %p9866_p4 = scmp.lt.s32.totalorder %s54_s28, %s54_s28 }
   0xf   :  { %p9862_p3 = scmp.ne.s32.totalorder %s54_s28, %s9861_s23  ;;  %p9867_p5 = scmp.lt.s32.totalorder %s9861_s23, %s9861_s23 }
  0x11   :  { %p9868_p6 = por %p9867_p5, %p9866_p4 }
  0x13   :  { %p9869_p7 = pnand %p9868_p6, %p9862_p3 }
  0x15   :  { %9872 = shalt.err (!%p9869_p7)
}
  0x16   :  { %s9947_s24 = smov 64   ;;  %s9948_s25 = smov 4  }
  0x17   :  { %59 = dma.hbm_to_vmem [thread:$0]  %s14087_s6, 256, %s54_s28, [#allocation5], %s9947_s24, %s9947_s24, %s9948_s25  }
  0x18   :  { %s9873_s19 = scalar_lea.hbm %s14084_s3, 1024 }
  0x19   :  { %p9874_p8 = scmp.ne.s32.totalorder %s14084_s3, %s9873_s19  ;;  %p9877_p9 = scmp.lt.u32.totalorder %s9873_s19, %s14084_s3 }
  0x1b   :  { %p9879_p10 = pnand %p9877_p9, %p9874_p8 }
  0x1d   :  { %9882 = shalt.err (!%p9879_p10)
}
  0x1e   :  { %s9883_s2 = scalar_lea.vmem %s10062_s30, 1024  ;;  %p9888_p12 = scmp.lt.s32.totalorder %s10062_s30, %s10062_s30 }
  0x1f   :  { %p9884_p11 = scmp.ne.s32.totalorder %s10062_s30, %s9883_s2  ;;  %p9889_p13 = scmp.lt.s32.totalorder %s9883_s2, %s9883_s2 }
  0x21   :  { %p9890_p0 = por %p9889_p13, %p9888_p12 }
  0x23   :  { %p9891_p1 = pnand %p9890_p0, %p9884_p11 }
  0x25   :  { %9894 = shalt.err (!%p9891_p1)
}
  0x26   :  { %43 = dma.hbm_to_vmem [thread:$0]  %s14084_s3, 1024, %s10062_s30, [#allocation3], %s9947_s24, %s9947_s24, %s9948_s25  }
  0x27   :  { %s9949_s23 = smov [#allocation6]   ;;  %s9895_s0 = scalar_lea.hbm %s14095_s14, 512 }
  0x28   :  { %s79_s26 = sshll.u32 %s9949_s23, 4  ;;  %p9896_p2 = scmp.ne.s32.totalorder %s14095_s14, %s9895_s0  ;;  %s80_s26 = int_to_ptr.vmem [resolvable:$true] %s79_s26 }
  0x29   :  { %p9899_p3 = scmp.lt.u32.totalorder %s9895_s0, %s14095_s14 }
  0x2b   :  { %p9901_p4 = pnand %p9899_p3, %p9896_p2 }
  0x2d   :  { %9904 = shalt.err (!%p9901_p4)
}
  0x2e   :  { %s9905_s22 = scalar_lea.vmem %s80_s26, 512  ;;  %p9910_p6 = scmp.lt.s32.totalorder %s80_s26, %s80_s26 }
  0x2f   :  { %p9906_p5 = scmp.ne.s32.totalorder %s80_s26, %s9905_s22  ;;  %p9911_p7 = scmp.lt.s32.totalorder %s9905_s22, %s9905_s22 }
  0x31   :  { %p9912_p8 = por %p9911_p7, %p9910_p6 }
  0x33   :  { %p9913_p9 = pnand %p9912_p8, %p9906_p5 }
  0x35   :  { %9916 = shalt.err (!%p9913_p9)
}
  0x36   :  { %s9950_s3 = smov 256   ;;  %s9951_s30 = smov 16  }
  0x37   :  { %85 = dma.hbm_to_vmem [thread:$0]  %s14095_s14, 512, %s80_s26, [#allocation5], %s9950_s3, %s9950_s3, %s9951_s30  }
  0x38   :  { %s9952_s28 = smov [#allocation7]   ;;  %s9917_s0 = scalar_lea.hbm %s14096_s15, 128 }
  0x39   :  { %s91_s23 = sshll.u32 %s9952_s28, 4  ;;  %p9918_p10 = scmp.ne.s32.totalorder %s14096_s15, %s9917_s0  ;;  %s92_s23 = int_to_ptr.vmem [resolvable:$true] %s91_s23 }
  0x3a   :  { %p9921_p11 = scmp.lt.u32.totalorder %s9917_s0, %s14096_s15 }
  0x3c   :  { %p9923_p12 = pnand %p9921_p11, %p9918_p10 }
  0x3e   :  { %9926 = shalt.err (!%p9923_p12)
}
  0x3f   :  { %s9927_s22 = scalar_lea.vmem %s92_s23, 128  ;;  %p9932_p0 = scmp.lt.s32.totalorder %s92_s23, %s92_s23 }
  0x40   :  { %p9928_p13 = scmp.ne.s32.totalorder %s92_s23, %s9927_s22  ;;  %p9933_p1 = scmp.lt.s32.totalorder %s9927_s22, %s9927_s22 }
  0x42   :  { %p9934_p2 = por %p9933_p1, %p9932_p0 }
  0x44   :  { %p9935_p3 = pnand %p9934_p2, %p9928_p13 }
  0x46   :  { %9938 = shalt.err (!%p9935_p3)
}
  0x47   :  { %97 = dma.hbm_to_vmem [thread:$0]  %s14096_s15, 128, %s92_s23, [#allocation8], %s9947_s24, %s9947_s24, %s9948_s25  }
  0x48   :  { %9939 = dma.done.wait [#allocation3], 1024  }
  0x49   :  { %9940 = vsyncadd [#allocation3], 4294966272 }
  0x4a   :  { %9941 = dma.done.wait [#allocation5], 768  }
  0x4b   :  { %9942 = vsyncadd [#allocation5], 4294966528 }
  0x4c   :  { %9943 = dma.done.wait [#allocation8], 128  }
  0x4d   :  { %9944 = vsyncadd [#allocation8], 4294967168  ;;  %s14226_s6 = sld [smem:[#allocation70_spill]]  ;;  %s9953_s29 = smov 17   ;;  %v9565_v4 = vld [vmem:[%s14098_s17 + $0x4] ss:$8 sps:$4 sm:$0xff]   ;;  %v172_v8 = vlaneseq }
  0x4e   :  { %s9954_s23 = smov 15   ;;  %s9955_s19 = smov 1   ;;  %vm209_vm0 = vcmask 130048   ;;  %v14103_v5 = vmov 0   ;;  %v157_v10 = vld [vmem:[#allocation6] sm:$0x11] }
  0x4f   :  { %s9956_s1 = smov 127   ;;  %s9957_s20 = smov 113   ;;  %8061 = vmatprep.mubr.msk.bf16.mxu0 %vm209_vm0, %v9565_v4  ;;  %8062 = vmatprep.mubr.msk.bf16.mxu1 %vm209_vm0, %v9565_v4  ;;  %v10194_v9 = vshrl.u32 %v172_v8, 7  ;;  %v158_v11 = vld [vmem:[#allocation6 + $0x8] sm:$0x11]  ;;  %v8040_v12 = vcombine.high %v157_v10, %v157_v10  ;;  %v8039_v13 = vcombine.low %v157_v10, %v157_v10  ;;  %vm145_vm1 = vcmask 138240  }
  0x50   :  { %s9958_s21 = smov 112   ;;  %s9959_s26 = smov 111   ;;  %9536 = vset.pattern.permute.xlu1 %v14103_v5  ;;  %9535 = vset.pattern.permute.xlu0 %v14103_v5  ;;  %v8042_v14 = vcombine.high %v158_v11, %v158_v11  ;;  %v8041_v15 = vcombine.low %v158_v11, %v158_v11  ;;  %v273_v41 = vld [vmem:[#allocation6] sm:$0x22]  ;;  %v274_v46 = vld [vmem:[#allocation6 + $0x8] sm:$0x22] }
  0x51   :  { %s14227_s28 = sld [smem:[#allocation71_spill]]  ;;  %v10197_v16 = vsub.s32 0, %v10194_v9  ;;  %v177_v17 = vpack.i.b16 %v8040_v12, %v8040_v12  ;;  %v170_v18 = vpack.i.b16 %v8039_v13, %v8039_v13  ;;  %v228_v24 = vshrl.u32 %v8040_v12, 16  ;;  %s9962_s3 = smov 7  }
  0x52   :  { %v191_v19 = vpack.i.b16 %v8042_v14, %v8042_v14  ;;  %v184_v20 = vpack.i.b16 %v8041_v15, %v8041_v15  ;;  %v242_v23 = vshrl.u32 %v8042_v14, 16  ;;  %v221_v29 = vshrl.u32 %v8039_v13, 16  ;;  %s9964_s27 = smov 121   ;;  %s9965_s0 = smov 120  }
  0x53   :  { %v9537_v0 = vld [vmem:[%s14226_s6 + $0xc] ss:$16 sps:$4 sm:$0xff]   ;;  %v10133_v1 = vld [vmem:[%s14226_s6 + $0x4] ss:$16 sps:$4 sm:$0xff]   ;;  %v9542_v2 = vld [vmem:[%s14226_s6] ss:$16 sps:$4 sm:$0xff]   ;;  %v10200_v25 = vrot.slane %v177_v17, %v10197_v16  ;;  %v10203_v26 = vrot.slane %v170_v18, %v10197_v16  ;;  %v229_v35 = vpack.i.b16 %v228_v24, %v228_v24  ;;  %v8044_v49 = vcombine.high %v273_v41, %v273_v41 }
  0x54   :  { %126 = vrot.lane.b32.xlu0 %v9537_v0, %s9953_s29  ;;  %141 = vrot.lane.b32.xlu1 %v10133_v1, %s9953_s29  ;;  %v9541_v3 = vld [vmem:[%s14226_s6 + $0x8] ss:$16 sps:$4 sm:$0xff]   ;;  %14228 = vst [vmem:[#allocation12_spill] sm:$0xff] %v10197_v16  ;;  %v10206_v27 = vrot.slane %v191_v19, %v10197_v16  ;;  %v10209_v28 = vrot.slane %v184_v20, %v10197_v16  ;;  %v235_v30 = vshrl.u32 %v8041_v15, 16  ;;  %v10234_v61 = vsub.s32 1, %v10194_v9  ;;  %s9966_s24 = smov 119  }
  0x55   :  { %v243_v36 = vpack.i.b16 %v242_v23, %v242_v23  ;;  %v222_v44 = vpack.i.b16 %v221_v29, %v221_v29  ;;  %v8043_v50 = vcombine.low %v273_v41, %v273_v41  ;;  %v10220_v51 = vrot.slane %v229_v35, %v10197_v16  ;;  %v389_v18 = vld [vmem:[#allocation6] sm:$0x44]  ;;  %v390_v23 = vld [vmem:[#allocation6 + $0x8] sm:$0x44] }
  0x56   :  { %14229 = vst [vmem:[#allocation13_spill] sm:$0xff] %v10206_v27  ;;  %v236_v45 = vpack.i.b16 %v235_v30, %v235_v30  ;;  %v8046_v52 = vcombine.high %v274_v46, %v274_v46  ;;  %v8045_v56 = vcombine.low %v274_v46, %v274_v46  ;;  %14230 = vst [vmem:[#allocation14_spill] sm:$0xff] %v10234_v61  ;;  %v344_v12 = vshrl.u32 %v8044_v49, 16 }
  0x57   :  { %v119_v6 = vld [vmem:[%s14227_s28] sm:$0xff]  ;;  %v120_v7 = vld [vmem:[%s14227_s28 + $0x8] sm:$0xff]  ;;  %v10223_v53 = vrot.slane %v243_v36, %v10197_v16  ;;  %v10226_v54 = vrot.slane %v222_v44, %v10197_v16  ;;  %v293_v62 = vpack.i.b16 %v8044_v49, %v8044_v49  ;;  %v286_v63 = vpack.i.b16 %v8043_v50, %v8043_v50 }
  0x58   :  { %139 = vrot.lane.b32.xlu0 %v9542_v2, %s9953_s29  ;;  %143 = vrot.lane.b32.xlu1 %v9541_v3, %s9953_s29  ;;  %v10229_v55 = vrot.slane %v236_v45, %v10197_v16  ;;  %v307_v4 = vpack.i.b16 %v8046_v52, %v8046_v52  ;;  %v300_v10 = vpack.i.b16 %v8045_v56, %v8045_v56  ;;  %v337_v13 = vshrl.u32 %v8043_v50, 16 }
  0x59   :  { %vm261_vm2 = vcmask 121856   ;;  %v358_v15 = vshrl.u32 %v8046_v52, 16  ;;  %v351_v17 = vshrl.u32 %v8045_v56, 16  ;;  %v10243_v19 = vrot.slane %v293_v62, %v10234_v61 }
  0x5a   :  { %v10246_v20 = vrot.slane %v307_v4, %v10234_v61  ;;  %v345_v30 = vpack.i.b16 %v344_v12, %v344_v12  ;;  %v8050_v41 = vcombine.high %v390_v23, %v390_v23  ;;  %v8049_v45 = vcombine.low %v390_v23, %v390_v23 }
  0x5b   :  { %v359_v35 = vpack.i.b16 %v358_v15, %v358_v15  ;;  %v352_v36 = vpack.i.b16 %v351_v17, %v351_v17  ;;  %vm325_vm3 = vcmask 7168   ;;  %v458_v17 = vld [vmem:[#allocation6 + $0x8] sm:$0x88]  ;;  %vm377_vm4 = vcmask 1039360  }
  0x5c   :  { %201 = vrot.lane.b32.xlu0 %v9537_v0, %s9951_s30  ;;  %203 = vrot.lane.b32.xlu1 %v9542_v2, %s9951_s30  ;;  %v10263_v50 = vrot.slane %v345_v30, %v10234_v61  ;;  %v426_v52 = vshrl.u32 %v8050_v41, 16  ;;  %v10307_v41 = vsub.s32 3, %v10194_v9  ;;  %vm445_vm5 = vcmask 924672  }
  0x5d   :  { %v10266_v56 = vrot.slane %v359_v35, %v10234_v61  ;;  %vm509_vm6 = vcmask 916480   ;;  %vm561_vm7 = vcmask 908288   ;;  %vm1529_vm8 = vcmask 261120  }
  0x5e   :  { %14231 = vst [vmem:[#allocation15_spill] sm:$0xff] %v10263_v50  ;;  %14240 = vst [vmem:[#allocation24_spill] sm:$0xff] %v10307_v41  ;;  %vm3673_vm9 = vcmask 523264   ;;  %vm8011_vm10 = vcmask 15360  }
  0x5f   :  { %14232 = vst [vmem:[#allocation16_spill] sm:$0xff] %v10266_v56 }
  0x60   :  { %205 = vrot.lane.b32.xlu0 %v10133_v1, %s9951_s30  ;;  %207 = vrot.lane.b32.xlu1 %v9541_v3, %s9951_s30 }
  0x64   :  { %253 = vrot.lane.b32.xlu0 %v9537_v0, %s9954_s23  ;;  %255 = vrot.lane.b32.xlu1 %v9542_v2, %s9954_s23 }
  0x68   :  { %257 = vrot.lane.b32.xlu0 %v10133_v1, %s9954_s23  ;;  %259 = vrot.lane.b32.xlu1 %v9541_v3, %s9954_s23 }
  0x6c   :  { %317 = vrot.lane.b32.xlu0 %v9537_v0, %s9955_s19  ;;  %319 = vrot.lane.b32.xlu1 %v9542_v2, %s9955_s19 }
  0x70   :  { %321 = vrot.lane.b32.xlu0 %v10133_v1, %s9955_s19  ;;  %323 = vrot.lane.b32.xlu1 %v9541_v3, %s9955_s19 }
  0x74   :  { %369 = vrot.lane.b32.xlu0 %v9542_v2, %s9956_s1  ;;  %371 = vrot.lane.b32.xlu1 %v10133_v1, %s9956_s1 }
  0x78   :  { %373 = vrot.lane.b32.xlu0 %v9541_v3, %s9956_s1  ;;  %375 = vrot.lane.b32.xlu1 %v9537_v0, %s9956_s1 }
  0x7c   :  { %437 = vrot.lane.b32.xlu0 %v9542_v2, %s9957_s20  ;;  %439 = vrot.lane.b32.xlu1 %v10133_v1, %s9957_s20 }
  0x80   :  { %441 = vrot.lane.b32.xlu0 %v9541_v3, %s9957_s20  ;;  %443 = vrot.lane.b32.xlu1 %v9537_v0, %s9957_s20 }
  0x84   :  { %501 = vrot.lane.b32.xlu0 %v9542_v2, %s9958_s21  ;;  %503 = vrot.lane.b32.xlu1 %v10133_v1, %s9958_s21 }
  0x88   :  { %505 = vrot.lane.b32.xlu0 %v9541_v3, %s9958_s21  ;;  %507 = vrot.lane.b32.xlu1 %v9537_v0, %s9958_s21 }
  0x8c   :  { %553 = vrot.lane.b32.xlu0 %v9542_v2, %s9959_s26  ;;  %555 = vrot.lane.b32.xlu1 %v10133_v1, %s9959_s26 }
  0x90   :  { %557 = vrot.lane.b32.xlu0 %v9541_v3, %s9959_s26  ;;  %559 = vrot.lane.b32.xlu1 %v9537_v0, %s9959_s26 }
  0x94   :  { %625 = vperm.xlu0 %9535, %v119_v6   ;;  %630 = vperm.xlu1 %9536, %v120_v7  }
  0xc6   :  { %v127_v21 = vpop.permute.xlu0 %126  ;;  %v142_v22 = vpop.permute.xlu1 %141 }
  0xca   :  { %v140_v31 = vpop.permute.xlu0 %139  ;;  %v144_v32 = vpop.permute.xlu1 %143 }
  0xcb   :  { %v146_v33 = vsel %vm145_vm1, %v140_v31, %v142_v22  ;;  %v155_v34 = vsel %vm145_vm1, %v127_v21, %v140_v31  ;;  %v148_v37 = vsel %vm145_vm1, %v144_v32, %v127_v21  ;;  %v147_v40 = vsel %vm145_vm1, %v142_v22, %v144_v32 }
  0xcc   :  { %v198_v38 = vmul.bf16 %v10200_v25, %v146_v33  ;;  %v197_v39 = vmul.bf16 %v10203_v26, %v155_v34  ;;  %v200_v42 = vmul.bf16 %v10206_v27, %v148_v37  ;;  %v199_v43 = vmul.bf16 %v10209_v28, %v147_v40 }
  0xcd   :  { %v10249_v21 = vrot.slane %v286_v63, %v10234_v61  ;;  %v10252_v22 = vrot.slane %v300_v10, %v10234_v61  ;;  %v338_v31 = vpack.i.b16 %v337_v13, %v337_v13  ;;  %v8047_v32 = vcombine.low %v389_v18, %v389_v18 }
  0xce   :  { %645 = vmatprep.subr.bf16.mxu0 %v198_v38  ;;  %v202_v47 = vpop.permute.xlu0 %201  ;;  %688 = vmatprep.subr.bf16.mxu1 %v200_v42  ;;  %v204_v48 = vpop.permute.xlu1 %203  ;;  %v8048_v37 = vcombine.high %v389_v18, %v389_v18  ;;  %v427_v10 = vpack.i.b16 %v426_v52, %v426_v52 }
  0xcf   :  { %646 = vmatpush1.bf16.msra.mxu0 %v197_v39  ;;  %689 = vmatpush1.bf16.msra.mxu1 %v199_v43  ;;  %v219_v57 = vsel %vm209_vm0, %v202_v47, %v204_v48  ;;  %v402_v49 = vshrl.u32 %v8047_v32, 16  ;;  %v9848_v32 = vld [vmem:[%s14226_s6 + $0xc] ss:$16 sps:$4 sm:$0xff]  }
  0xd0   :  { %v249_v7 = vmul.bf16 %v10226_v54, %v219_v57  ;;  %v10269_v57 = vrot.slane %v338_v31, %v10234_v61  ;;  %v8054_v31 = vcombine.high %v458_v17, %v458_v17 }
  0xd1   :  { %v403_v4 = vpack.i.b16 %v402_v49, %v402_v49 }
  0xd2   :  { %v206_v58 = vpop.permute.xlu0 %205  ;;  %v208_v59 = vpop.permute.xlu1 %207  ;;  %14233 = vst [vmem:[#allocation17_spill] sm:$0xff] %v10269_v57 }
  0xd3   :  { %v210_v60 = vsel %vm209_vm0, %v204_v48, %v206_v58  ;;  %v212_v0 = vsel %vm209_vm0, %v208_v59, %v202_v47  ;;  %v211_v2 = vsel %vm209_vm0, %v206_v58, %v208_v59  ;;  %v410_v48 = vshrl.u32 %v8048_v37, 16 }
  0xd4   :  { %v250_v3 = vmul.bf16 %v10220_v51, %v210_v60  ;;  %v252_v6 = vmul.bf16 %v10223_v53, %v212_v0  ;;  %v251_v8 = vmul.bf16 %v10229_v55, %v211_v2  ;;  %v10272_v58 = vrot.slane %v352_v36, %v10234_v61 }
  0xd5   :  { %v418_v59 = vshrl.u32 %v8049_v45, 16  ;;  %v10277_v2 = vsub.s32 2, %v10194_v9  ;;  %v8053_v36 = vcombine.low %v458_v17, %v458_v17 }
  0xd6   :  { %647 = vmatprep.subr.bf16.mxu0 %v250_v3  ;;  %v254_v11 = vpop.permute.xlu0 %253  ;;  %v256_v14 = vpop.permute.xlu1 %255  ;;  %690 = vmatprep.subr.bf16.mxu1 %v252_v6  ;;  %14234 = vst [vmem:[#allocation18_spill] sm:$0xff] %v10272_v58  ;;  %v411_v3 = vpack.i.b16 %v410_v48, %v410_v48  ;;  %v491_v48 = vpack.i.b16 %v8054_v31, %v8054_v31 }
  0xd7   :  { %648 = vmatpush1.bf16.msra.mxu0 %v249_v7  ;;  %691 = vmatpush1.bf16.msra.mxu1 %v251_v8  ;;  %v271_v24 = vsel %vm261_vm2, %v254_v11, %v256_v14  ;;  %14235 = vst [vmem:[#allocation19_spill] sm:$0xff] %v10277_v2  ;;  %v419_v15 = vpack.i.b16 %v418_v59, %v418_v59 }
  0xd8   :  { %v313_v43 = vmul.bf16 %v10249_v21, %v271_v24  ;;  %v10287_v30 = vrot.slane %v411_v3, %v10277_v2  ;;  %v484_v59 = vpack.i.b16 %v8053_v36, %v8053_v36 }
  0xd9   :  { %v10299_v35 = vrot.slane %v419_v15, %v10277_v2 }
  0xda   :  { %v258_v29 = vpop.permute.xlu0 %257  ;;  %v260_v33 = vpop.permute.xlu1 %259  ;;  %14236 = vst [vmem:[#allocation20_spill] sm:$0xff] %v10287_v30 }
  0xdb   :  { %v262_v34 = vsel %vm261_vm2, %v256_v14, %v258_v29  ;;  %v264_v38 = vsel %vm261_vm2, %v260_v33, %v254_v11  ;;  %v263_v39 = vsel %vm261_vm2, %v258_v29, %v260_v33  ;;  %v457_v11 = vld [vmem:[#allocation6] sm:$0x88]  ;;  %v10293_v33 = vrot.slane %v427_v10, %v10277_v2  ;;  %14239 = vst [vmem:[#allocation23_spill] sm:$0xff] %v10299_v35 }
  0xdc   :  { %v314_v40 = vmul.bf16 %v10243_v19, %v262_v34  ;;  %v316_v42 = vmul.bf16 %v10246_v20, %v264_v38  ;;  %v315_v44 = vmul.bf16 %v10252_v22, %v263_v39  ;;  %v8052_v24 = vcombine.high %v457_v11, %v457_v11 }
  0xdd   :  { %v8051_v29 = vcombine.low %v457_v11, %v457_v11  ;;  %14237 = vst [vmem:[#allocation21_spill] sm:$0xff] %v10293_v33  ;;  %v10296_v34 = vrot.slane %v403_v4, %v10277_v2  ;;  %v542_v4 = vshrl.u32 %v8054_v31, 16  ;;  %v535_v10 = vshrl.u32 %v8053_v36, 16  ;;  %v573_v31 = vld [vmem:[#allocation6 + $0x10] sm:$0x11] }
  0xde   :  { %649 = vmatprep.subr.bf16.mxu0 %v314_v40  ;;  %v318_v46 = vpop.permute.xlu0 %317  ;;  %v320_v47 = vpop.permute.xlu1 %319  ;;  %692 = vmatprep.subr.bf16.mxu1 %v316_v42  ;;  %v9849_v40 = vld [vmem:[%s14226_s6] ss:$16 sps:$4 sm:$0xff]   ;;  %v477_v42 = vpack.i.b16 %v8052_v24, %v8052_v24 }
  0xdf   :  { %650 = vmatpush1.bf16.msra.mxu0 %v313_v43  ;;  %693 = vmatpush1.bf16.msra.mxu1 %v315_v44  ;;  %v335_v60 = vsel %vm325_vm3, %v318_v46, %v320_v47  ;;  %14238 = vst [vmem:[#allocation22_spill] sm:$0xff] %v10296_v34  ;;  %v470_v43 = vpack.i.b16 %v8051_v29, %v8051_v29 }
  0xe0   :  { %v365_v13 = vmul.bf16 %v10269_v57, %v335_v60  ;;  %v10319_v3 = vrot.slane %v477_v42, %v10307_v41  ;;  %v8056_v42 = vcombine.high %v573_v31, %v573_v31 }
  0xe2   :  { %v322_v62 = vpop.permute.xlu0 %321  ;;  %v324_v63 = vpop.permute.xlu1 %323  ;;  %14241 = vst [vmem:[#allocation25_spill] sm:$0xff] %v10319_v3 }
  0xe3   :  { %v326_v0 = vsel %vm325_vm3, %v320_v47, %v322_v62  ;;  %v328_v6 = vsel %vm325_vm3, %v324_v63, %v318_v46  ;;  %v327_v7 = vsel %vm325_vm3, %v322_v62, %v324_v63  ;;  %v9850_v46 = vld [vmem:[%s14226_s6 + $0x8] ss:$16 sps:$4 sm:$0xff]   ;;  %v528_v63 = vshrl.u32 %v8052_v24, 16  ;;  %s9963_s6 = smov 8  }
  0xe4   :  { %v366_v8 = vmul.bf16 %v10263_v50, %v326_v0  ;;  %v368_v12 = vmul.bf16 %v10266_v56, %v328_v6  ;;  %v367_v14 = vmul.bf16 %v10272_v58, %v327_v7  ;;  %v521_v0 = vshrl.u32 %v8051_v29, 16 }
  0xe5   :  { %v10322_v6 = vrot.slane %v491_v48, %v10307_v41  ;;  %v10325_v7 = vrot.slane %v470_v43, %v10307_v41  ;;  %v529_v15 = vpack.i.b16 %v528_v63, %v528_v63  ;;  %v543_v29 = vpack.i.b16 %v542_v4, %v542_v4 }
  0xe6   :  { %651 = vmatprep.subr.bf16.mxu0 %v366_v8  ;;  %v370_v18 = vpop.permute.xlu0 %369  ;;  %v372_v23 = vpop.permute.xlu1 %371  ;;  %694 = vmatprep.subr.bf16.mxu1 %v368_v12  ;;  %v10328_v8 = vrot.slane %v484_v59, %v10307_v41  ;;  %v522_v17 = vpack.i.b16 %v521_v0, %v521_v0  ;;  %v8055_v43 = vcombine.low %v573_v31, %v573_v31 }
  0xe7   :  { %652 = vmatpush1.bf16.msra.mxu0 %v365_v13  ;;  %695 = vmatpush1.bf16.msra.mxu1 %v367_v14  ;;  %14242 = vst [vmem:[#allocation26_spill] sm:$0xff] %v10322_v6  ;;  %14243 = vst [vmem:[#allocation27_spill] sm:$0xff] %v10325_v7 }
  0xe8   :  { %653 = vmatprep.subr.bf16.mxu0 %v10133_v1  ;;  %696 = vmatprep.subr.bf16.mxu1 %v9848_v32  ;;  %v378_v1 = vsel %vm377_vm4, %v370_v18, %v372_v23  ;;  %14244 = vst [vmem:[#allocation28_spill] sm:$0xff] %v10328_v8  ;;  %v586_v63 = vpack.i.b16 %v8055_v43, %v8055_v43 }
  0xe9   :  { %v433_v52 = vmul.bf16 %v10296_v34, %v378_v1 }
  0xea   :  { %v374_v37 = vpop.permute.xlu0 %373  ;;  %v376_v38 = vpop.permute.xlu1 %375 }
  0xeb   :  { %v379_v39 = vsel %vm377_vm4, %v372_v23, %v374_v37  ;;  %654 = vmatpush1.bf16.msra.mxu0 %v9849_v40  ;;  %v387_v44 = vsel %vm377_vm4, %v376_v38, %v370_v18  ;;  %v380_v45 = vsel %vm377_vm4, %v374_v37, %v376_v38  ;;  %697 = vmatpush1.bf16.msra.mxu1 %v9850_v46  ;;  %v574_v38 = vld [vmem:[#allocation6 + $0x18] sm:$0x11] }
  0xec   :  { %v434_v47 = vmul.bf16 %v10287_v30, %v379_v39  ;;  %v436_v49 = vmul.bf16 %v10293_v33, %v387_v44  ;;  %v435_v9 = vmul.bf16 %v10299_v35, %v380_v45  ;;  %v536_v37 = vpack.i.b16 %v535_v10, %v535_v10 }
  0xed   :  { %v10339_v44 = vrot.slane %v529_v15, %v10307_v41  ;;  %v8058_v45 = vcombine.high %v574_v38, %v574_v38  ;;  %v10342_v46 = vrot.slane %v543_v29, %v10307_v41  ;;  %v10365_v29 = vrot.slane %v586_v63, %v10197_v16 }
  0xee   :  { %655 = vmatprep.subr.bf16.mxu0 %v434_v47  ;;  %v438_v60 = vpop.permute.xlu0 %437  ;;  %v440_v62 = vpop.permute.xlu1 %439  ;;  %698 = vmatprep.subr.bf16.mxu1 %v436_v49  ;;  %v10345_v47 = vrot.slane %v522_v17, %v10307_v41  ;;  %v10348_v48 = vrot.slane %v536_v37, %v10307_v41  ;;  %v8057_v49 = vcombine.low %v574_v38, %v574_v38 }
  0xef   :  { %656 = vmatpush1.bf16.msra.mxu0 %v433_v52  ;;  %699 = vmatpush1.bf16.msra.mxu1 %v435_v9  ;;  %v446_v11 = vsel %vm445_vm5, %v438_v60, %v440_v62  ;;  %14245 = vst [vmem:[#allocation29_spill] sm:$0xff] %v10339_v44  ;;  %14246 = vst [vmem:[#allocation30_spill] sm:$0xff] %v10342_v46 }
  0xf0   :  { %v497_v36 = vmul.bf16 %v10325_v7, %v446_v11  ;;  %14247 = vst [vmem:[#allocation31_spill] sm:$0xff] %v10345_v47  ;;  %14248 = vst [vmem:[#allocation32_spill] sm:$0xff] %v10348_v48  ;;  %v607_v11 = vpack.i.b16 %v8058_v45, %v8058_v45  ;;  %v600_v15 = vpack.i.b16 %v8057_v49, %v8057_v49  ;;  %v9563_v49 = vld [vmem:[%s14098_s17] ss:$8 sps:$4 sm:$0xff]  }
  0xf1   :  { %14251 = vst [vmem:[#allocation35_spill] sm:$0xff] %v10365_v29 }
  0xf2   :  { %v442_v12 = vpop.permute.xlu0 %441  ;;  %v444_v13 = vpop.permute.xlu1 %443  ;;  %v10368_v31 = vrot.slane %v600_v15, %v10197_v16 }
  0xf3   :  { %v447_v14 = vsel %vm445_vm5, %v440_v62, %v442_v12  ;;  %v455_v18 = vsel %vm445_vm5, %v444_v13, %v438_v60  ;;  %v448_v23 = vsel %vm445_vm5, %v442_v12, %v444_v13  ;;  %v593_v62 = vpack.i.b16 %v8056_v42, %v8056_v42 }
  0xf4   :  { %v498_v24 = vmul.bf16 %v10319_v3, %v447_v14  ;;  %v500_v32 = vmul.bf16 %v10322_v6, %v455_v18  ;;  %v499_v1 = vmul.bf16 %v10328_v8, %v448_v23  ;;  %14252 = vst [vmem:[#allocation36_spill] sm:$0xff] %v10368_v31 }
  0xf5   :  { %v10359_v23 = vrot.slane %v593_v62, %v10197_v16 }
  0xf6   :  { %657 = vmatprep.subr.bf16.mxu0 %v498_v24  ;;  %v502_v39 = vpop.permute.xlu0 %501  ;;  %v504_v40 = vpop.permute.xlu1 %503  ;;  %700 = vmatprep.subr.bf16.mxu1 %v500_v32  ;;  %v10362_v24 = vrot.slane %v607_v11, %v10197_v16 }
  0xf7   :  { %658 = vmatpush1.bf16.msra.mxu0 %v497_v36  ;;  %701 = vmatpush1.bf16.msra.mxu1 %v499_v1  ;;  %v510_v52 = vsel %vm509_vm6, %v502_v39, %v504_v40  ;;  %14249 = vst [vmem:[#allocation33_spill] sm:$0xff] %v10359_v23 }
  0xf8   :  { %v549_v13 = vmul.bf16 %v10345_v47, %v510_v52  ;;  %14250 = vst [vmem:[#allocation34_spill] sm:$0xff] %v10362_v24 }
  0xfa   :  { %v506_v9 = vpop.permute.xlu0 %505  ;;  %v508_v59 = vpop.permute.xlu1 %507 }
  0xfb   :  { %v511_v60 = vsel %vm509_vm6, %v504_v40, %v506_v9  ;;  %v519_v0 = vsel %vm509_vm6, %v508_v59, %v502_v39  ;;  %v512_v4 = vsel %vm509_vm6, %v506_v9, %v508_v59 }
  0xfc   :  { %v550_v10 = vmul.bf16 %v10339_v44, %v511_v60  ;;  %v552_v12 = vmul.bf16 %v10342_v46, %v519_v0  ;;  %v551_v14 = vmul.bf16 %v10348_v48, %v512_v4 }
  0xfe   :  { %659 = vmatprep.subr.bf16.mxu0 %v550_v10  ;;  %v554_v17 = vpop.permute.xlu0 %553  ;;  %v556_v18 = vpop.permute.xlu1 %555  ;;  %702 = vmatprep.subr.bf16.mxu1 %v552_v12 }
  0xff   :  { %660 = vmatpush1.bf16.msra.mxu0 %v549_v13  ;;  %703 = vmatpush1.bf16.msra.mxu1 %v551_v14  ;;  %v562_v32 = vsel %vm561_vm7, %v554_v17, %v556_v18 }
 0x100   :  { %v613_v43 = vmul.bf16 %v10365_v29, %v562_v32 }
 0x102   :  { %v558_v36 = vpop.permute.xlu0 %557  ;;  %v560_v1 = vpop.permute.xlu1 %559 }
 0x103   :  { %v563_v37 = vsel %vm561_vm7, %v556_v18, %v558_v36  ;;  %v571_v38 = vsel %vm561_vm7, %v560_v1, %v554_v17  ;;  %v564_v39 = vsel %vm561_vm7, %v558_v36, %v560_v1 }
 0x104   :  { %v614_v40 = vmul.bf16 %v10359_v23, %v563_v37  ;;  %v616_v42 = vmul.bf16 %v10362_v24, %v571_v38  ;;  %v615_v45 = vmul.bf16 %v10368_v31, %v564_v39 }
 0x106   :  { %661 = vmatprep.subr.bf16.mxu0 %v614_v40  ;;  %704 = vmatprep.subr.bf16.mxu1 %v616_v42 }
 0x107   :  { %662 = vmatpush1.bf16.msra.mxu0 %v613_v43  ;;  %705 = vmatpush1.bf16.msra.mxu1 %v615_v45 }
 0x10a   :  { %678 = vmatmul.mubr.bf16.vlgmr.msra.gmra.mrb[0].mxu0 %v9563_v49  ;;  %721 = vmatmul.mubr.bf16.vlgmr.msra.gmra.mrb[0].mxu1 %v9563_v49 }
 0x113   :  { %v626_v52 = vpop.permute.xlu0 %625  ;;  %v631_v59 = vpop.permute.xlu1 %630 }
 0x1dd   :  { %v679_v9 = vpop.f32.mrb[0].mxu0  ;;  %v722_v60 = vpop.f32.mrb[0].mxu1 }
 0x1de   :  { %v681_v62 = vpop.f32.mrb[1].mxu0  ;;  %v10381_v63 = vadd.f32 %v679_v9, %v626_v52  ;;  %v724_v4 = vpop.f32.mrb[1].mxu1  ;;  %v10385_v11 = vadd.f32 %v722_v60, %v626_v52 }
 0x1df   :  { %v10383_v0 = vadd.f32 %v681_v62, %v626_v52  ;;  %v683_v10 = vpop.f32.mrb[2].mxu0  ;;  %v10387_v12 = vadd.f32 %v724_v4, %v626_v52  ;;  %v726_v15 = vpop.f32.mrb[2].mxu1 }
 0x1e0   :  { %14253 = vst [vmem:[#allocation37_spill] sm:$0xff] %v10381_v63  ;;  %14255 = vst [vmem:[#allocation39_spill] sm:$0xff] %v10385_v11  ;;  %v10389_v13 = vadd.f32 %v683_v10, %v631_v59  ;;  %v731_v14 = vmax.f32 %v10381_v63, 0.0  ;;  %v685_v17 = vpop.f32.mrb[3].mxu0  ;;  %v10393_v32 = vadd.f32 %v726_v15, %v631_v59  ;;  %v733_v36 = vmax.f32 %v10385_v11, 0.0  ;;  %v728_v37 = vpop.f32.mrb[3].mxu1 }
 0x1e1   :  { %14254 = vst [vmem:[#allocation38_spill] sm:$0xff] %v10383_v0  ;;  %14256 = vst [vmem:[#allocation40_spill] sm:$0xff] %v10387_v12  ;;  %v732_v18 = vmax.f32 %v10383_v0, 0.0  ;;  %v10396_v1 = vadd.f32 %v685_v17, %v631_v59  ;;  %v734_v38 = vmax.f32 %v10387_v12, 0.0  ;;  %v10402_v42 = vadd.f32 %v728_v37, %v631_v59  ;;  %v8063_v15 = vld [vmem:[%s14227_s28 + $0x80] sm:$0xff]  ;;  %v8064_v17 = vld [vmem:[%s14227_s28 + $0x88] sm:$0xff] }
 0x1e2   :  { %14257 = vst [vmem:[#allocation41_spill] sm:$0xff] %v10389_v13  ;;  %14258 = vst [vmem:[#allocation42_spill] sm:$0xff] %v10393_v32  ;;  %v735_v39 = vmax.f32 %v10389_v13, 0.0  ;;  %v737_v43 = vmax.f32 %v10393_v32, 0.0 }
 0x1e3   :  { %14259 = vst [vmem:[#allocation43_spill] sm:$0xff] %v10396_v1  ;;  %14260 = vst [vmem:[#allocation44_spill] sm:$0xff] %v10402_v42  ;;  %v736_v49 = vmax.f32 %v10396_v1, 0.0  ;;  %v738_v60 = vmax.f32 %v10402_v42, 0.0 }
 0x1e4   :  { %v10410_v9 = vpack.c.bf16 %v735_v39, %v731_v14  ;;  %v10415_v4 = vpack.c.bf16 %v737_v43, %v733_v36  ;;  %v9566_v14 = vld [vmem:[%s14085_s4 + $0x4] ss:$8 sps:$4 sm:$0xff]   ;;  %v8066_v36 = vld [vmem:[%s14227_s28 + $0x98] sm:$0xff] }
 0x1e5   :  { %v10417_v59 = vpack.c.bf16 %v736_v49, %v732_v18  ;;  %v10419_v10 = vpack.c.bf16 %v738_v60, %v734_v38  ;;  %8071 = vmatprep.mubr.msk.bf16.mxu0 %vm209_vm0, %v9566_v14  ;;  %8073 = vmatprep.mubr.msk.bf16.mxu1 %vm209_vm0, %v9566_v14  ;;  %v8065_v18 = vld [vmem:[%s14227_s28 + $0x90] sm:$0xff] }
 0x1e6   :  { %840 = vrot.lane.b32.xlu1 %v10410_v9, %s9956_s1  ;;  %754 = vrot.lane.b32.xlu0 %v10410_v9, %s9953_s29 }
 0x1ea   :  { %844 = vrot.lane.b32.xlu1 %v10415_v4, %s9956_s1  ;;  %758 = vrot.lane.b32.xlu0 %v10415_v4, %s9953_s29 }
 0x1ee   :  { %862 = vrot.lane.b32.xlu1 %v10410_v9, %s9957_s20  ;;  %776 = vrot.lane.b32.xlu0 %v10410_v9, %s9951_s30 }
 0x1f2   :  { %749 = vrot.lane.b32.xlu1 %v10419_v10, %s9953_s29  ;;  %780 = vrot.lane.b32.xlu0 %v10415_v4, %s9951_s30 }
 0x1f6   :  { %756 = vrot.lane.b32.xlu1 %v10417_v59, %s9953_s29  ;;  %798 = vrot.lane.b32.xlu0 %v10410_v9, %s9954_s23 }
 0x1fa   :  { %774 = vrot.lane.b32.xlu1 %v10419_v10, %s9951_s30  ;;  %802 = vrot.lane.b32.xlu0 %v10415_v4, %s9954_s23 }
 0x1fe   :  { %778 = vrot.lane.b32.xlu1 %v10417_v59, %s9951_s30  ;;  %820 = vrot.lane.b32.xlu0 %v10410_v9, %s9955_s19 }
 0x202   :  { %796 = vrot.lane.b32.xlu1 %v10419_v10, %s9954_s23  ;;  %824 = vrot.lane.b32.xlu0 %v10415_v4, %s9955_s19 }
 0x206   :  { %800 = vrot.lane.b32.xlu1 %v10417_v59, %s9954_s23  ;;  %842 = vrot.lane.b32.xlu0 %v10417_v59, %s9956_s1 }
 0x20a   :  { %818 = vrot.lane.b32.xlu1 %v10419_v10, %s9955_s19  ;;  %846 = vrot.lane.b32.xlu0 %v10419_v10, %s9956_s1 }
 0x20e   :  { %822 = vrot.lane.b32.xlu1 %v10417_v59, %s9955_s19  ;;  %864 = vrot.lane.b32.xlu0 %v10417_v59, %s9957_s20 }
 0x212   :  { %866 = vrot.lane.b32.xlu1 %v10415_v4, %s9957_s20  ;;  %868 = vrot.lane.b32.xlu0 %v10419_v10, %s9957_s20 }
 0x216   :  { %884 = vrot.lane.b32.xlu1 %v10410_v9, %s9958_s21  ;;  %886 = vrot.lane.b32.xlu0 %v10417_v59, %s9958_s21 }
 0x21a   :  { %888 = vrot.lane.b32.xlu1 %v10415_v4, %s9958_s21  ;;  %890 = vrot.lane.b32.xlu0 %v10419_v10, %s9958_s21 }
 0x21e   :  { %906 = vrot.lane.b32.xlu1 %v10410_v9, %s9959_s26  ;;  %908 = vrot.lane.b32.xlu0 %v10417_v59, %s9959_s26 }
 0x222   :  { %910 = vrot.lane.b32.xlu1 %v10415_v4, %s9959_s26  ;;  %912 = vrot.lane.b32.xlu0 %v10419_v10, %s9959_s26 }
 0x226   :  { %934 = vperm.xlu1 %9536, %v8063_v15   ;;  %939 = vperm.xlu0 %9535, %v8064_v17  }
 0x22a   :  { %944 = vperm.xlu1 %9536, %v8065_v18   ;;  %949 = vperm.xlu0 %9535, %v8066_v36  }
 0x258   :  { %v10502_v37 = vpop.permute.xlu1 %840  ;;  %v755_v38 = vpop.permute.xlu0 %754 }
 0x25c   :  { %v10504_v39 = vpop.permute.xlu1 %844  ;;  %v759_v43 = vpop.permute.xlu0 %758 }
 0x260   :  { %v10506_v49 = vpop.permute.xlu1 %862  ;;  %v777_v60 = vpop.permute.xlu0 %776 }
 0x264   :  { %v750_v14 = vpop.permute.xlu1 %749  ;;  %v781_v15 = vpop.permute.xlu0 %780 }
 0x265   :  { %v762_v17 = vsel %vm145_vm1, %v759_v43, %v750_v14  ;;  %v768_v40 = vsel %vm145_vm1, %v750_v14, %v755_v38 }
 0x266   :  { %v773_v45 = vmul.bf16 %v762_v17, %v10206_v27  ;;  %v770_v41 = vmul.bf16 %v768_v40, %v10203_v26 }
 0x268   :  { %v757_v62 = vpop.permute.xlu1 %756  ;;  %1029 = vmatprep.subr.bf16.mxu1 %v773_v45  ;;  %v799_v18 = vpop.permute.xlu0 %798 }
 0x269   :  { %v760_v36 = vsel %vm145_vm1, %v755_v38, %v757_v62  ;;  %v761_v52 = vsel %vm145_vm1, %v757_v62, %v759_v43 }
 0x26a   :  { %v772_v5 = vmul.bf16 %v761_v52, %v10209_v28  ;;  %v771_v2 = vmul.bf16 %v760_v36, %v10200_v25 }
 0x26c   :  { %v775_v16 = vpop.permute.xlu1 %774  ;;  %976 = vmatprep.subr.bf16.mxu0 %v771_v2  ;;  %1030 = vmatpush1.bf16.msra.mxu1 %v772_v5  ;;  %v803_v61 = vpop.permute.xlu0 %802 }
 0x26d   :  { %v784_v17 = vsel %vm209_vm0, %v781_v15, %v775_v16  ;;  %977 = vmatpush1.bf16.msra.mxu0 %v770_v41  ;;  %v790_v14 = vsel %vm209_vm0, %v775_v16, %v777_v60 }
 0x26e   :  { %v795_v45 = vmul.bf16 %v784_v17, %v10223_v53  ;;  %v792_v5 = vmul.bf16 %v790_v14, %v10226_v54 }
 0x270   :  { %v779_v38 = vpop.permute.xlu1 %778  ;;  %1031 = vmatprep.subr.bf16.mxu1 %v795_v45  ;;  %v821_v62 = vpop.permute.xlu0 %820 }
 0x271   :  { %v782_v52 = vsel %vm209_vm0, %v777_v60, %v779_v38  ;;  %v783_v43 = vsel %vm209_vm0, %v779_v38, %v781_v15 }
 0x272   :  { %v794_v40 = vmul.bf16 %v783_v43, %v10229_v55  ;;  %v793_v2 = vmul.bf16 %v782_v52, %v10220_v51 }
 0x274   :  { %v797_v36 = vpop.permute.xlu1 %796  ;;  %978 = vmatprep.subr.bf16.mxu0 %v793_v2  ;;  %1032 = vmatpush1.bf16.msra.mxu1 %v794_v40  ;;  %v825_v41 = vpop.permute.xlu0 %824 }
 0x275   :  { %v806_v17 = vsel %vm261_vm2, %v803_v61, %v797_v36  ;;  %979 = vmatpush1.bf16.msra.mxu0 %v792_v5  ;;  %v812_v45 = vsel %vm261_vm2, %v797_v36, %v799_v18 }
 0x276   :  { %v817_v16 = vmul.bf16 %v806_v17, %v10246_v20  ;;  %v814_v40 = vmul.bf16 %v812_v45, %v10249_v21 }
 0x278   :  { %v801_v60 = vpop.permute.xlu1 %800  ;;  %1033 = vmatprep.subr.bf16.mxu1 %v817_v16  ;;  %v843_v15 = vpop.permute.xlu0 %842 }
 0x279   :  { %v804_v38 = vsel %vm261_vm2, %v799_v18, %v801_v60  ;;  %v805_v52 = vsel %vm261_vm2, %v801_v60, %v803_v61 }
 0x27a   :  { %v816_v14 = vmul.bf16 %v805_v52, %v10252_v22  ;;  %v815_v43 = vmul.bf16 %v804_v38, %v10243_v19 }
 0x27c   :  { %v819_v2 = vpop.permute.xlu1 %818  ;;  %980 = vmatprep.subr.bf16.mxu0 %v815_v43  ;;  %1034 = vmatpush1.bf16.msra.mxu1 %v816_v14  ;;  %v847_v5 = vpop.permute.xlu0 %846 }
 0x27d   :  { %v828_v17 = vsel %vm325_vm3, %v825_v41, %v819_v2  ;;  %981 = vmatpush1.bf16.msra.mxu0 %v814_v40  ;;  %v834_v16 = vsel %vm325_vm3, %v819_v2, %v821_v62  ;;  %v856_v43 = vsel %vm377_vm4, %v847_v5, %v10502_v37 }
 0x27e   :  { %v839_v36 = vmul.bf16 %v828_v17, %v10266_v56  ;;  %v836_v14 = vmul.bf16 %v834_v16, %v10269_v57  ;;  %v849_v17 = vsel %vm377_vm4, %v843_v15, %v10504_v39 }
 0x280   :  { %v823_v18 = vpop.permute.xlu1 %822  ;;  %1035 = vmatprep.subr.bf16.mxu1 %v839_v36  ;;  %v865_v61 = vpop.permute.xlu0 %864  ;;  %v848_v36 = vsel %vm377_vm4, %v10502_v37, %v843_v15 }
 0x281   :  { %v826_v60 = vsel %vm325_vm3, %v821_v62, %v823_v18  ;;  %v827_v38 = vsel %vm325_vm3, %v823_v18, %v825_v41  ;;  %v850_v62 = vsel %vm377_vm4, %v10504_v39, %v847_v5  ;;  %v861_v41 = vmul.bf16 %v856_v43, %v10293_v33 }
 0x282   :  { %v838_v45 = vmul.bf16 %v827_v38, %v10272_v58  ;;  %v837_v52 = vmul.bf16 %v826_v60, %v10263_v50  ;;  %v859_v38 = vmul.bf16 %v849_v17, %v10287_v30  ;;  %v858_v39 = vmul.bf16 %v848_v36, %v10296_v34 }
 0x284   :  { %v867_v40 = vpop.permute.xlu1 %866  ;;  %982 = vmatprep.subr.bf16.mxu0 %v837_v52  ;;  %1036 = vmatpush1.bf16.msra.mxu1 %v838_v45  ;;  %v869_v2 = vpop.permute.xlu0 %868 }
 0x285   :  { %983 = vmatpush1.bf16.msra.mxu0 %v836_v14  ;;  %1037 = vmatprep.subr.bf16.mxu1 %v10419_v10  ;;  %v878_v16 = vsel %vm445_vm5, %v869_v2, %v10506_v49  ;;  %v871_v10 = vsel %vm445_vm5, %v865_v61, %v867_v40  ;;  %v872_v37 = vsel %vm445_vm5, %v867_v40, %v869_v2 }
 0x286   :  { %984 = vmatprep.subr.bf16.mxu0 %v10417_v59  ;;  %v860_v59 = vmul.bf16 %v850_v62, %v10299_v35  ;;  %v883_v15 = vmul.bf16 %v878_v16, %v10322_v6  ;;  %v881_v52 = vmul.bf16 %v871_v10, %v10319_v3  ;;  %v882_v43 = vmul.bf16 %v872_v37, %v10328_v8 }
 0x288   :  { %v885_v18 = vpop.permute.xlu1 %884  ;;  %1038 = vmatpush1.bf16.msra.mxu1 %v10415_v4  ;;  %v887_v60 = vpop.permute.xlu0 %886  ;;  %v870_v4 = vsel %vm445_vm5, %v10506_v49, %v865_v61 }
 0x289   :  { %985 = vmatpush1.bf16.msra.mxu0 %v10410_v9  ;;  %1039 = vmatprep.subr.bf16.mxu1 %v861_v41  ;;  %v880_v2 = vmul.bf16 %v870_v4, %v10325_v7  ;;  %v892_v61 = vsel %vm509_vm6, %v885_v18, %v887_v60 }
 0x28a   :  { %986 = vmatprep.subr.bf16.mxu0 %v859_v38  ;;  %v902_v16 = vmul.bf16 %v892_v61, %v10345_v47 }
 0x28c   :  { %v889_v5 = vpop.permute.xlu1 %888  ;;  %1040 = vmatpush1.bf16.msra.mxu1 %v860_v59  ;;  %v891_v45 = vpop.permute.xlu0 %890 }
 0x28d   :  { %v893_v9 = vsel %vm509_vm6, %v887_v60, %v889_v5  ;;  %v900_v14 = vsel %vm509_vm6, %v891_v45, %v885_v18  ;;  %987 = vmatpush1.bf16.msra.mxu0 %v858_v39  ;;  %1041 = vmatprep.subr.bf16.mxu1 %v883_v15  ;;  %v894_v49 = vsel %vm509_vm6, %v889_v5, %v891_v45  ;;  %v9568_v45 = vld [vmem:[%s14085_s4] ss:$8 sps:$4 sm:$0xff]  }
 0x28e   :  { %988 = vmatprep.subr.bf16.mxu0 %v881_v52  ;;  %v905_v40 = vmul.bf16 %v900_v14, %v10342_v46  ;;  %v903_v41 = vmul.bf16 %v893_v9, %v10339_v44  ;;  %v904_v36 = vmul.bf16 %v894_v49, %v10348_v48  ;;  %v9569_v52 = vld [vmem:[%s14085_s4 + $0x14] ss:$8 sps:$4 sm:$0xff]   ;;  %v9571_v9 = vld [vmem:[%s14085_s4 + $0x10] ss:$8 sps:$4 sm:$0xff]  }
 0x290   :  { %v907_v17 = vpop.permute.xlu1 %906  ;;  %1042 = vmatpush1.bf16.msra.mxu1 %v882_v43  ;;  %v909_v62 = vpop.permute.xlu0 %908 }
 0x291   :  { %989 = vmatpush1.bf16.msra.mxu0 %v880_v2  ;;  %1043 = vmatprep.subr.bf16.mxu1 %v905_v40  ;;  %v914_v38 = vsel %vm561_vm7, %v907_v17, %v909_v62 }
 0x292   :  { %990 = vmatprep.subr.bf16.mxu0 %v903_v41  ;;  %v924_v5 = vmul.bf16 %v914_v38, %v10365_v29 }
 0x294   :  { %v911_v10 = vpop.permute.xlu1 %910  ;;  %1044 = vmatpush1.bf16.msra.mxu1 %v904_v36  ;;  %v913_v59 = vpop.permute.xlu0 %912 }
 0x295   :  { %v915_v39 = vsel %vm561_vm7, %v909_v62, %v911_v10  ;;  %v916_v18 = vsel %vm561_vm7, %v911_v10, %v913_v59  ;;  %v922_v60 = vsel %vm561_vm7, %v913_v59, %v907_v17  ;;  %991 = vmatpush1.bf16.msra.mxu0 %v902_v16 }
 0x296   :  { %v926_v37 = vmul.bf16 %v916_v18, %v10368_v31  ;;  %v925_v15 = vmul.bf16 %v915_v39, %v10359_v23  ;;  %v927_v4 = vmul.bf16 %v922_v60, %v10362_v24 }
 0x298   :  { %992 = vmatprep.subr.bf16.mxu0 %v925_v15  ;;  %1045 = vmatprep.subr.bf16.mxu1 %v927_v4 }
 0x299   :  { %993 = vmatpush1.bf16.msra.mxu0 %v924_v5  ;;  %1046 = vmatpush1.bf16.msra.mxu1 %v926_v37 }
 0x29c   :  { %1009 = vmatmul.mubr.bf16.vlgmr.msra.gmra.mrb[4].mxu0 %v9568_v45  ;;  %1062 = vmatmul.mubr.bf16.vlgmr.msra.gmra.mrb[4].mxu1 %v9568_v45 }
 0x29d   :  { %8072 = vmatprep.mubr.msk.bf16.mxu0 %vm209_vm0, %v9569_v52  ;;  %8074 = vmatprep.mubr.msk.bf16.mxu1 %vm209_vm0, %v9569_v52 }
 0x2a4   :  { %1019 = vmatmul.mubr.bf16.gmra.mrb[8].mxu0 %v9571_v9  ;;  %1072 = vmatmul.mubr.bf16.gmra.mrb[8].mxu1 %v9571_v9 }
 0x2a5   :  { %v935_v14 = vpop.permute.xlu1 %934  ;;  %v940_v43 = vpop.permute.xlu0 %939 }
 0x2a9   :  { %v945_v11 = vpop.permute.xlu1 %944  ;;  %v950_v32 = vpop.permute.xlu0 %949 }
 0x36f   :  { %v1010_v40 = vpop.f32.mrb[4].mxu0  ;;  %v1063_v2 = vpop.f32.mrb[4].mxu1 }
 0x370   :  { %v1011_v49 = vadd.f32 %v1010_v40, %v935_v14  ;;  %v1064_v61 = vadd.f32 %v1063_v2, %v935_v14  ;;  %v1012_v17 = vpop.f32.mrb[5].mxu0  ;;  %v1065_v62 = vpop.f32.mrb[5].mxu1 }
 0x371   :  { %v1013_v41 = vadd.f32 %v1012_v17, %v935_v14  ;;  %v1066_v36 = vadd.f32 %v1065_v62, %v935_v14  ;;  %v1014_v16 = vpop.f32.mrb[6].mxu0  ;;  %v1067_v38 = vpop.f32.mrb[6].mxu1 }
 0x372   :  { %v1015_v10 = vadd.f32 %v1014_v16, %v940_v43  ;;  %v1068_v59 = vadd.f32 %v1067_v38, %v940_v43  ;;  %v1016_v39 = vpop.f32.mrb[7].mxu0  ;;  %v1069_v18 = vpop.f32.mrb[7].mxu1  ;;  %v1082_v15 = vmax.f32 %v1011_v49, 0.0  ;;  %v1084_v4 = vmax.f32 %v1064_v61, 0.0 }
 0x373   :  { %v1017_v60 = vadd.f32 %v1016_v39, %v940_v43  ;;  %v1070_v37 = vadd.f32 %v1069_v18, %v940_v43  ;;  %v1083_v52 = vmax.f32 %v1013_v41, 0.0  ;;  %v1085_v9 = vmax.f32 %v1066_v36, 0.0 }
 0x374   :  { %v1086_v5 = vmax.f32 %v1015_v10, 0.0  ;;  %v1088_v45 = vmax.f32 %v1068_v59, 0.0 }
 0x375   :  { %v1087_v40 = vmax.f32 %v1017_v60, 0.0  ;;  %v1089_v2 = vmax.f32 %v1070_v37, 0.0 }
 0x376   :  { %v10593_v17 = vpack.c.bf16 %v1086_v5, %v1082_v15  ;;  %v10595_v14 = vpack.c.bf16 %v1088_v45, %v1084_v4 }
 0x377   :  { %v10597_v62 = vpack.c.bf16 %v1087_v40, %v1083_v52  ;;  %v10599_v16 = vpack.c.bf16 %v1089_v2, %v1085_v9  ;;  %v1020_v38 = vpop.f32.mrb[8].mxu0  ;;  %v1073_v43 = vpop.f32.mrb[8].mxu1 }
 0x378   :  { %v1021_v49 = vadd.f32 %v1020_v38, %v945_v11  ;;  %v1074_v61 = vadd.f32 %v1073_v43, %v945_v11  ;;  %v1022_v10 = vpop.f32.mrb[9].mxu0  ;;  %v1075_v59 = vpop.f32.mrb[9].mxu1  ;;  %1295 = vrot.lane.b32.xlu1 %v10593_v17, %s9956_s1  ;;  %1123 = vrot.lane.b32.xlu0 %v10593_v17, %s9953_s29 }
 0x379   :  { %v1023_v41 = vadd.f32 %v1022_v10, %v945_v11  ;;  %v1076_v36 = vadd.f32 %v1075_v59, %v945_v11  ;;  %v1024_v39 = vpop.f32.mrb[10].mxu0  ;;  %v1077_v18 = vpop.f32.mrb[10].mxu1 }
 0x37a   :  { %v1025_v60 = vadd.f32 %v1024_v39, %v950_v32  ;;  %v1078_v37 = vadd.f32 %v1077_v18, %v950_v32  ;;  %v1026_v15 = vpop.f32.mrb[11].mxu0  ;;  %v1079_v4 = vpop.f32.mrb[11].mxu1  ;;  %v1090_v52 = vmax.f32 %v1021_v49, 0.0  ;;  %v1092_v9 = vmax.f32 %v1074_v61, 0.0  ;;  %v9574_v49 = vld [vmem:[%s14086_s5 + $0x4] ss:$12 sps:$4 sm:$0xff]  }
 0x37b   :  { %v1027_v5 = vadd.f32 %v1026_v15, %v950_v32  ;;  %v1080_v45 = vadd.f32 %v1079_v4, %v950_v32  ;;  %v1091_v38 = vmax.f32 %v1023_v41, 0.0  ;;  %v1093_v11 = vmax.f32 %v1076_v36, 0.0  ;;  %1568 = vmatprep.mubr.bf16.mxu0 %v9574_v49  ;;  %1674 = vmatprep.mubr.bf16.mxu1 %v9574_v49 }
 0x37c   :  { %v1094_v40 = vmax.f32 %v1025_v60, 0.0  ;;  %v1096_v2 = vmax.f32 %v1078_v37, 0.0  ;;  %1299 = vrot.lane.b32.xlu1 %v10595_v14, %s9956_s1  ;;  %1127 = vrot.lane.b32.xlu0 %v10595_v14, %s9953_s29 }
 0x37d   :  { %v1095_v43 = vmax.f32 %v1027_v5, 0.0  ;;  %v1097_v10 = vmax.f32 %v1080_v45, 0.0  ;;  %v8075_v45 = vld [vmem:[%s14227_s28 + $0x100] sm:$0xff] }
 0x37e   :  { %v10609_v59 = vpack.c.bf16 %v1094_v40, %v1090_v52  ;;  %v10611_v39 = vpack.c.bf16 %v1096_v2, %v1092_v9  ;;  %v8076_v52 = vld [vmem:[%s14227_s28 + $0x108] sm:$0xff] }
 0x37f   :  { %v10613_v18 = vpack.c.bf16 %v1095_v43, %v1091_v38  ;;  %v10615_v32 = vpack.c.bf16 %v1097_v10, %v1093_v11 }
 0x380   :  { %1113 = vrot.lane.b32.xlu1 %v10599_v16, %s9953_s29  ;;  %1167 = vrot.lane.b32.xlu0 %v10593_v17, %s9951_s30 }
 0x384   :  { %1125 = vrot.lane.b32.xlu1 %v10597_v62, %s9953_s29  ;;  %1171 = vrot.lane.b32.xlu0 %v10595_v14, %s9951_s30 }
 0x388   :  { %1163 = vrot.lane.b32.xlu1 %v10599_v16, %s9951_s30  ;;  %1211 = vrot.lane.b32.xlu0 %v10593_v17, %s9954_s23 }
 0x38c   :  { %1169 = vrot.lane.b32.xlu1 %v10597_v62, %s9951_s30  ;;  %1215 = vrot.lane.b32.xlu0 %v10595_v14, %s9954_s23 }
 0x390   :  { %1207 = vrot.lane.b32.xlu1 %v10599_v16, %s9954_s23  ;;  %1255 = vrot.lane.b32.xlu0 %v10593_v17, %s9955_s19 }
 0x394   :  { %1213 = vrot.lane.b32.xlu1 %v10597_v62, %s9954_s23  ;;  %1259 = vrot.lane.b32.xlu0 %v10595_v14, %s9955_s19 }
 0x398   :  { %1251 = vrot.lane.b32.xlu1 %v10599_v16, %s9955_s19  ;;  %1297 = vrot.lane.b32.xlu0 %v10597_v62, %s9956_s1 }
 0x39c   :  { %1257 = vrot.lane.b32.xlu1 %v10597_v62, %s9955_s19  ;;  %1301 = vrot.lane.b32.xlu0 %v10599_v16, %s9956_s1 }
 0x3a0   :  { %1303 = vrot.lane.b32.xlu1 %v10609_v59, %s9956_s1  ;;  %1129 = vrot.lane.b32.xlu0 %v10609_v59, %s9953_s29 }
 0x3a4   :  { %1307 = vrot.lane.b32.xlu1 %v10611_v39, %s9956_s1  ;;  %1133 = vrot.lane.b32.xlu0 %v10611_v39, %s9953_s29 }
 0x3a8   :  { %1115 = vrot.lane.b32.xlu1 %v10615_v32, %s9953_s29  ;;  %1173 = vrot.lane.b32.xlu0 %v10609_v59, %s9951_s30 }
 0x3ac   :  { %1131 = vrot.lane.b32.xlu1 %v10613_v18, %s9953_s29  ;;  %1177 = vrot.lane.b32.xlu0 %v10611_v39, %s9951_s30 }
 0x3b0   :  { %1165 = vrot.lane.b32.xlu1 %v10615_v32, %s9951_s30  ;;  %1217 = vrot.lane.b32.xlu0 %v10609_v59, %s9954_s23 }
 0x3b4   :  { %1175 = vrot.lane.b32.xlu1 %v10613_v18, %s9951_s30  ;;  %1221 = vrot.lane.b32.xlu0 %v10611_v39, %s9954_s23 }
 0x3b8   :  { %1209 = vrot.lane.b32.xlu1 %v10615_v32, %s9954_s23  ;;  %1261 = vrot.lane.b32.xlu0 %v10609_v59, %s9955_s19 }
 0x3bc   :  { %1219 = vrot.lane.b32.xlu1 %v10613_v18, %s9954_s23  ;;  %1265 = vrot.lane.b32.xlu0 %v10611_v39, %s9955_s19 }
 0x3c0   :  { %1253 = vrot.lane.b32.xlu1 %v10615_v32, %s9955_s19  ;;  %1341 = vrot.lane.b32.xlu0 %v10597_v62, %s9957_s20 }
 0x3c4   :  { %1263 = vrot.lane.b32.xlu1 %v10613_v18, %s9955_s19  ;;  %1345 = vrot.lane.b32.xlu0 %v10599_v16, %s9957_s20 }
 0x3c8   :  { %1339 = vrot.lane.b32.xlu1 %v10593_v17, %s9957_s20  ;;  %1385 = vrot.lane.b32.xlu0 %v10597_v62, %s9958_s21 }
 0x3cc   :  { %1343 = vrot.lane.b32.xlu1 %v10595_v14, %s9957_s20  ;;  %1389 = vrot.lane.b32.xlu0 %v10599_v16, %s9958_s21 }
 0x3d0   :  { %1347 = vrot.lane.b32.xlu1 %v10609_v59, %s9957_s20  ;;  %1305 = vrot.lane.b32.xlu0 %v10613_v18, %s9956_s1 }
 0x3d4   :  { %1351 = vrot.lane.b32.xlu1 %v10611_v39, %s9957_s20  ;;  %1309 = vrot.lane.b32.xlu0 %v10615_v32, %s9956_s1 }
 0x3d8   :  { %1383 = vrot.lane.b32.xlu1 %v10593_v17, %s9958_s21  ;;  %1349 = vrot.lane.b32.xlu0 %v10613_v18, %s9957_s20 }
 0x3dc   :  { %1387 = vrot.lane.b32.xlu1 %v10595_v14, %s9958_s21  ;;  %1353 = vrot.lane.b32.xlu0 %v10615_v32, %s9957_s20 }
 0x3e0   :  { %1391 = vrot.lane.b32.xlu1 %v10609_v59, %s9958_s21  ;;  %1393 = vrot.lane.b32.xlu0 %v10613_v18, %s9958_s21 }
 0x3e4   :  { %1395 = vrot.lane.b32.xlu1 %v10611_v39, %s9958_s21  ;;  %1397 = vrot.lane.b32.xlu0 %v10615_v32, %s9958_s21 }
 0x3e8   :  { %1427 = vrot.lane.b32.xlu1 %v10593_v17, %s9959_s26  ;;  %1429 = vrot.lane.b32.xlu0 %v10597_v62, %s9959_s26 }
 0x3ea   :  { %v10728_v61 = vpop.permute.xlu1 %1295  ;;  %v1124_v41 = vpop.permute.xlu0 %1123 }
 0x3ec   :  { %1431 = vrot.lane.b32.xlu1 %v10595_v14, %s9959_s26  ;;  %1433 = vrot.lane.b32.xlu0 %v10599_v16, %s9959_s26 }
 0x3ee   :  { %v10734_v36 = vpop.permute.xlu1 %1299  ;;  %v1128_v60 = vpop.permute.xlu0 %1127 }
 0x3f0   :  { %1435 = vrot.lane.b32.xlu1 %v10609_v59, %s9959_s26  ;;  %1437 = vrot.lane.b32.xlu0 %v10613_v18, %s9959_s26 }
 0x3f2   :  { %v1114_v37 = vpop.permute.xlu1 %1113  ;;  %v10740_v15 = vpop.permute.xlu0 %1167 }
 0x3f3   :  { %v1137_v4 = vsel %vm145_vm1, %v1128_v60, %v1114_v37  ;;  %v1149_v9 = vsel %vm145_vm1, %v1114_v37, %v1124_v41  ;;  %v8090_v37 = vld [vmem:[%s14227_s28 + $0x188] sm:$0xff] }
 0x3f4   :  { %1439 = vrot.lane.b32.xlu1 %v10611_v39, %s9959_s26  ;;  %1441 = vrot.lane.b32.xlu0 %v10615_v32, %s9959_s26  ;;  %v1158_v5 = vmul.bf16 %v1137_v4, %v10206_v27  ;;  %v1155_v49 = vmul.bf16 %v1149_v9, %v10203_v26  ;;  %v8089_v4 = vld [vmem:[%s14227_s28 + $0x180] sm:$0xff] }
 0x3f6   :  { %v1126_v40 = vpop.permute.xlu1 %1125  ;;  %1642 = vmatprep.subr.bf16.mxu1 %v1158_v5  ;;  %v1172_v2 = vpop.permute.xlu0 %1171 }
 0x3f7   :  { %v1135_v38 = vsel %vm145_vm1, %v1124_v41, %v1126_v40  ;;  %v1136_v11 = vsel %vm145_vm1, %v1126_v40, %v1128_v60  ;;  %v8077_v60 = vld [vmem:[%s14227_s28 + $0x110] sm:$0xff] }
 0x3f8   :  { %v1157_v43 = vmul.bf16 %v1136_v11, %v10209_v28  ;;  %1481 = vperm.xlu1 %9536, %v8075_v45   ;;  %1486 = vperm.xlu0 %9535, %v8076_v52   ;;  %v1156_v10 = vmul.bf16 %v1135_v38, %v10200_v25  ;;  %v8078_v45 = vld [vmem:[%s14227_s28 + $0x118] sm:$0xff]  ;;  %v8091_v40 = vld [vmem:[%s14227_s28 + $0x190] sm:$0xff] }
 0x3f9   :  { %v8092_v38 = vld [vmem:[%s14227_s28 + $0x198] sm:$0xff] }
 0x3fa   :  { %v1164_v5 = vpop.permute.xlu1 %1163  ;;  %1536 = vmatprep.subr.bf16.mxu0 %v1156_v10  ;;  %1643 = vmatpush1.bf16.msra.mxu1 %v1157_v43  ;;  %v10766_v41 = vpop.permute.xlu0 %1211 }
 0x3fb   :  { %1537 = vmatpush1.bf16.msra.mxu0 %v1155_v49  ;;  %v1181_v29 = vsel %vm209_vm0, %v1172_v2, %v1164_v5 }
 0x3fc   :  { %1763 = vperm.xlu1 %9536, %v8089_v4   ;;  %1768 = vperm.xlu0 %9535, %v8090_v37  }
 0x3fe   :  { %v1170_v52 = vpop.permute.xlu1 %1169  ;;  %v1216_v9 = vpop.permute.xlu0 %1215 }
 0x3ff   :  { %v1179_v48 = vsel %vm209_vm0, %v10740_v15, %v1170_v52 }
 0x400   :  { %1491 = vperm.xlu1 %9536, %v8077_v60   ;;  %1496 = vperm.xlu0 %9535, %v8078_v45  }
 0x402   :  { %v1208_v11 = vpop.permute.xlu1 %1207  ;;  %v10780_v43 = vpop.permute.xlu0 %1255 }
 0x404   :  { %1773 = vperm.xlu1 %9536, %v8091_v40   ;;  %1778 = vperm.xlu0 %9535, %v8092_v38  }
 0x406   :  { %v1214_v10 = vpop.permute.xlu1 %1213  ;;  %v10782_v49 = vpop.permute.xlu0 %1259 }
 0x40a   :  { %v10784_v4 = vpop.permute.xlu1 %1251  ;;  %v10786_v37 = vpop.permute.xlu0 %1297 }
 0x40e   :  { %v10788_v60 = vpop.permute.xlu1 %1257  ;;  %v10790_v45 = vpop.permute.xlu0 %1301 }
 0x412   :  { %v10792_v63 = vpop.permute.xlu1 %1303  ;;  %v1130_v13 = vpop.permute.xlu0 %1129 }
 0x416   :  { %v10794_v12 = vpop.permute.xlu1 %1307  ;;  %v1134_v42 = vpop.permute.xlu0 %1133 }
 0x41a   :  { %v1116_v0 = vpop.permute.xlu1 %1115  ;;  %v1174_v40 = vpop.permute.xlu0 %1173 }
 0x41b   :  { %v1140_v38 = vsel %vm145_vm1, %v1134_v42, %v1116_v0  ;;  %v1153_v24 = vsel %vm145_vm1, %v1116_v0, %v1130_v13  ;;  %v1202_v0 = vmul.bf16 %v1181_v29, %v10223_v53  ;;  %v1225_v29 = vsel %vm261_vm2, %v1216_v9, %v1208_v11 }
 0x41c   :  { %v1162_v1 = vmul.bf16 %v1140_v38, %v10206_v27  ;;  %v1180_v38 = vsel %vm209_vm0, %v1170_v52, %v1172_v2  ;;  %v1159_v27 = vmul.bf16 %v1153_v24, %v10203_v26  ;;  %v1224_v52 = vsel %vm261_vm2, %v1214_v10, %v1216_v9 }
 0x41e   :  { %v1132_v23 = vpop.permute.xlu1 %1131  ;;  %1644 = vmatprep.subr.bf16.mxu1 %v1162_v1  ;;  %v1178_v31 = vpop.permute.xlu0 %1177  ;;  %v1193_v1 = vsel %vm209_vm0, %v1164_v5, %v10740_v15 }
 0x41f   :  { %v1138_v47 = vsel %vm145_vm1, %v1130_v13, %v1132_v23  ;;  %v1139_v46 = vsel %vm145_vm1, %v1132_v23, %v1134_v42  ;;  %v1200_v13 = vmul.bf16 %v1179_v48, %v10220_v51  ;;  %v1199_v24 = vmul.bf16 %v1193_v1, %v10226_v54 }
 0x420   :  { %v1161_v44 = vmul.bf16 %v1139_v46, %v10209_v28  ;;  %v1160_v8 = vmul.bf16 %v1138_v47, %v10200_v25  ;;  %v1201_v46 = vmul.bf16 %v1180_v38, %v10229_v55  ;;  %v1223_v48 = vsel %vm261_vm2, %v10766_v41, %v1214_v10 }
 0x421   :  { %v1246_v38 = vmul.bf16 %v1225_v29, %v10246_v20 }
 0x422   :  { %v1166_v7 = vpop.permute.xlu1 %1165  ;;  %1538 = vmatprep.subr.bf16.mxu0 %v1160_v8  ;;  %1645 = vmatpush1.bf16.msra.mxu1 %v1161_v44  ;;  %v1218_v6 = vpop.permute.xlu0 %1217 }
 0x423   :  { %v1184_v23 = vsel %vm209_vm0, %v1178_v31, %v1166_v7  ;;  %1539 = vmatpush1.bf16.msra.mxu0 %v1159_v27  ;;  %1646 = vmatprep.subr.bf16.mxu1 %v1202_v0  ;;  %v1197_v42 = vsel %vm209_vm0, %v1166_v7, %v1174_v40  ;;  %v1237_v0 = vsel %vm261_vm2, %v1208_v11, %v10766_v41 }
 0x424   :  { %1540 = vmatprep.subr.bf16.mxu0 %v1200_v13  ;;  %v1206_v47 = vmul.bf16 %v1184_v23, %v10223_v53  ;;  %v1203_v7 = vmul.bf16 %v1197_v42, %v10226_v54  ;;  %v1245_v23 = vmul.bf16 %v1224_v52, %v10252_v22  ;;  %v1243_v10 = vmul.bf16 %v1237_v0, %v10249_v21 }
 0x425   :  { %v1269_v41 = vsel %vm325_vm3, %v10782_v49, %v10784_v4 }
 0x426   :  { %v1176_v8 = vpop.permute.xlu1 %1175  ;;  %1647 = vmatpush1.bf16.msra.mxu1 %v1201_v46  ;;  %v1222_v44 = vpop.permute.xlu0 %1221 }
 0x427   :  { %v1182_v27 = vsel %vm209_vm0, %v1174_v40, %v1176_v8  ;;  %v1183_v15 = vsel %vm209_vm0, %v1176_v8, %v1178_v31  ;;  %1541 = vmatpush1.bf16.msra.mxu0 %v1199_v24  ;;  %1648 = vmatprep.subr.bf16.mxu1 %v1206_v47  ;;  %v1244_v31 = vmul.bf16 %v1223_v48, %v10243_v19 }
 0x428   :  { %v1205_v2 = vmul.bf16 %v1183_v15, %v10229_v55  ;;  %v1204_v5 = vmul.bf16 %v1182_v27, %v10220_v51  ;;  %v1267_v24 = vsel %vm325_vm3, %v10780_v43, %v10788_v60  ;;  %v1268_v27 = vsel %vm325_vm3, %v10788_v60, %v10782_v49 }
 0x429   :  { %v1288_v52 = vmul.bf16 %v1267_v24, %v10263_v50  ;;  %v1289_v49 = vmul.bf16 %v1268_v27, %v10272_v58 }
 0x42a   :  { %v1210_v1 = vpop.permute.xlu1 %1209  ;;  %1542 = vmatprep.subr.bf16.mxu0 %v1204_v5  ;;  %1649 = vmatpush1.bf16.msra.mxu1 %v1205_v2  ;;  %v1262_v40 = vpop.permute.xlu0 %1261  ;;  %v1290_v2 = vmul.bf16 %v1269_v41, %v10266_v56 }
 0x42b   :  { %v1228_v13 = vsel %vm261_vm2, %v1222_v44, %v1210_v1  ;;  %1543 = vmatpush1.bf16.msra.mxu0 %v1203_v7  ;;  %1650 = vmatprep.subr.bf16.mxu1 %v1246_v38  ;;  %v1241_v11 = vsel %vm261_vm2, %v1210_v1, %v1218_v6 }
 0x42c   :  { %1544 = vmatprep.subr.bf16.mxu0 %v1244_v31  ;;  %v1250_v9 = vmul.bf16 %v1228_v13, %v10246_v20  ;;  %v1247_v15 = vmul.bf16 %v1241_v11, %v10249_v21 }
 0x42e   :  { %v1220_v46 = vpop.permute.xlu1 %1219  ;;  %1651 = vmatpush1.bf16.msra.mxu1 %v1245_v23  ;;  %v1266_v47 = vpop.permute.xlu0 %1265 }
 0x42f   :  { %v1226_v29 = vsel %vm261_vm2, %v1218_v6, %v1220_v46  ;;  %v1227_v42 = vsel %vm261_vm2, %v1220_v46, %v1222_v44  ;;  %1545 = vmatpush1.bf16.msra.mxu0 %v1243_v10  ;;  %1652 = vmatprep.subr.bf16.mxu1 %v1250_v9  ;;  %v1281_v6 = vsel %vm325_vm3, %v10784_v4, %v10780_v43 }
 0x430   :  { %v1249_v8 = vmul.bf16 %v1227_v42, %v10252_v22  ;;  %v1248_v48 = vmul.bf16 %v1226_v29, %v10243_v19  ;;  %v1287_v38 = vmul.bf16 %v1281_v6, %v10269_v57 }
 0x432   :  { %v1254_v5 = vpop.permute.xlu1 %1253  ;;  %1546 = vmatprep.subr.bf16.mxu0 %v1248_v48  ;;  %1653 = vmatpush1.bf16.msra.mxu1 %v1249_v8  ;;  %v10853_v44 = vpop.permute.xlu0 %1341 }
 0x433   :  { %v1272_v7 = vsel %vm325_vm3, %v1266_v47, %v1254_v5  ;;  %1547 = vmatpush1.bf16.msra.mxu0 %v1247_v15  ;;  %1654 = vmatprep.subr.bf16.mxu1 %v1290_v2  ;;  %v1285_v43 = vsel %vm325_vm3, %v1254_v5, %v1262_v40 }
 0x434   :  { %1548 = vmatprep.subr.bf16.mxu0 %v1288_v52  ;;  %v1294_v60 = vmul.bf16 %v1272_v7, %v10266_v56  ;;  %v1291_v9 = vmul.bf16 %v1285_v43, %v10269_v57 }
 0x436   :  { %v1264_v4 = vpop.permute.xlu1 %1263  ;;  %1655 = vmatpush1.bf16.msra.mxu1 %v1289_v49  ;;  %v1346_v0 = vpop.permute.xlu0 %1345  ;;  %v14261_v49 = vld [vmem:[#allocation26_spill] sm:$0xff] }
 0x437   :  { %v1270_v1 = vsel %vm325_vm3, %v1262_v40, %v1264_v4  ;;  %v1271_v31 = vsel %vm325_vm3, %v1264_v4, %v1266_v47  ;;  %1549 = vmatpush1.bf16.msra.mxu0 %v1287_v38  ;;  %1656 = vmatprep.subr.bf16.mxu1 %v1294_v60  ;;  %v1325_v40 = vsel %vm377_vm4, %v10790_v45, %v10728_v61  ;;  %v14262_v38 = vld [vmem:[#allocation27_spill] sm:$0xff]  ;;  %v14263_v4 = vld [vmem:[#allocation28_spill] sm:$0xff] }
 0x438   :  { %v1293_v13 = vmul.bf16 %v1271_v31, %v10272_v58  ;;  %v1292_v23 = vmul.bf16 %v1270_v1, %v10263_v50  ;;  %v1312_v47 = vsel %vm377_vm4, %v10786_v37, %v10734_v36 }
 0x43a   :  { %v1340_v10 = vpop.permute.xlu1 %1339  ;;  %1550 = vmatprep.subr.bf16.mxu0 %v1292_v23  ;;  %1657 = vmatpush1.bf16.msra.mxu1 %v1293_v13  ;;  %v10866_v41 = vpop.permute.xlu0 %1385 }
 0x43b   :  { %1551 = vmatpush1.bf16.msra.mxu0 %v1291_v9  ;;  %1658 = vmatprep.subr.bf16.mxu1 %v10599_v16  ;;  %v1334_v16 = vmul.bf16 %v1325_v40, %v10293_v33  ;;  %v1369_v48 = vsel %vm445_vm5, %v1346_v0, %v1340_v10  ;;  %v1355_v6 = vsel %vm445_vm5, %v1340_v10, %v10853_v44 }
 0x43c   :  { %1552 = vmatprep.subr.bf16.mxu0 %v10597_v62  ;;  %v1313_v62 = vsel %vm377_vm4, %v10734_v36, %v10790_v45  ;;  %v1378_v60 = vmul.bf16 %v1369_v48, %v14261_v49  ;;  %v1375_v43 = vmul.bf16 %v1355_v6, %v14262_v38 }
 0x43e   :  { %v1344_v11 = vpop.permute.xlu1 %1343  ;;  %1659 = vmatpush1.bf16.msra.mxu1 %v10595_v14  ;;  %v10874_v46 = vpop.permute.xlu0 %1389  ;;  %v1311_v14 = vsel %vm377_vm4, %v10728_v61, %v10786_v37 }
 0x43f   :  { %1553 = vmatpush1.bf16.msra.mxu0 %v10593_v17  ;;  %1660 = vmatprep.subr.bf16.mxu1 %v10615_v32  ;;  %v1332_v17 = vmul.bf16 %v1312_v47, %v10287_v30  ;;  %v1331_v36 = vmul.bf16 %v1311_v14, %v10296_v34  ;;  %v1356_v42 = vsel %vm445_vm5, %v10853_v44, %v1344_v11 }
 0x440   :  { %1554 = vmatprep.subr.bf16.mxu0 %v10613_v18  ;;  %v1333_v18 = vmul.bf16 %v1313_v62, %v10299_v35 }
 0x442   :  { %v1348_v24 = vpop.permute.xlu1 %1347  ;;  %1661 = vmatpush1.bf16.msra.mxu1 %v10611_v39  ;;  %v1306_v29 = vpop.permute.xlu0 %1305 }
 0x443   :  { %v1315_v32 = vsel %vm377_vm4, %v1306_v29, %v10794_v12  ;;  %1555 = vmatpush1.bf16.msra.mxu0 %v10609_v59  ;;  %1662 = vmatprep.subr.bf16.mxu1 %v1334_v16  ;;  %v1314_v61 = vsel %vm377_vm4, %v10792_v63, %v1306_v29 }
 0x444   :  { %1556 = vmatprep.subr.bf16.mxu0 %v1332_v17  ;;  %v1336_v45 = vmul.bf16 %v1315_v32, %v10287_v30  ;;  %v1335_v2 = vmul.bf16 %v1314_v61, %v10296_v34  ;;  %v14264_v17 = vld [vmem:[#allocation29_spill] sm:$0xff]  ;;  %v14266_v61 = vld [vmem:[#allocation31_spill] sm:$0xff] }
 0x446   :  { %v1352_v37 = vpop.permute.xlu1 %1351  ;;  %1663 = vmatpush1.bf16.msra.mxu1 %v1333_v18  ;;  %v1310_v39 = vpop.permute.xlu0 %1309  ;;  %v14265_v18 = vld [vmem:[#allocation30_spill] sm:$0xff] }
 0x447   :  { %v1316_v59 = vsel %vm377_vm4, %v10794_v12, %v1310_v39  ;;  %v1329_v8 = vsel %vm377_vm4, %v1310_v39, %v10792_v63  ;;  %1557 = vmatpush1.bf16.msra.mxu0 %v1331_v36  ;;  %v1376_v12 = vmul.bf16 %v1356_v42, %v10319_v3  ;;  %v1357_v63 = vsel %vm445_vm5, %v1344_v11, %v1346_v0  ;;  %v14267_v39 = vld [vmem:[#allocation32_spill] sm:$0xff] }
 0x448   :  { %v1337_v27 = vmul.bf16 %v1316_v59, %v10299_v35  ;;  %1558 = vmatprep.subr.bf16.mxu0 %v1336_v45  ;;  %v1338_v15 = vmul.bf16 %v1329_v8, %v10293_v33  ;;  %v1377_v1 = vmul.bf16 %v1357_v63, %v14263_v4  ;;  %v9575_v63 = vld [vmem:[%s14086_s5 + $0x1c] ss:$12 sps:$4 sm:$0xff]  }
 0x44a   :  { %v1384_v5 = vpop.permute.xlu1 %1383  ;;  %1664 = vmatprep.subr.bf16.mxu1 %v1338_v15  ;;  %v1350_v52 = vpop.permute.xlu0 %1349 }
 0x44b   :  { %v1359_v7 = vsel %vm445_vm5, %v1350_v52, %v1352_v37  ;;  %1559 = vmatpush1.bf16.msra.mxu0 %v1335_v2  ;;  %1665 = vmatpush1.bf16.msra.mxu1 %v1337_v27  ;;  %v1358_v44 = vsel %vm445_vm5, %v1348_v24, %v1350_v52  ;;  %v1413_v40 = vsel %vm509_vm6, %v10874_v46, %v1384_v5 }
 0x44c   :  { %1560 = vmatprep.subr.bf16.mxu0 %v1376_v12  ;;  %1666 = vmatprep.subr.bf16.mxu1 %v1378_v60  ;;  %v1380_v23 = vmul.bf16 %v1359_v7, %v10319_v3  ;;  %v1379_v62 = vmul.bf16 %v1358_v44, %v14262_v38  ;;  %v1399_v16 = vsel %vm509_vm6, %v1384_v5, %v10866_v41  ;;  %v9572_v12 = vld [vmem:[%s14086_s5] ss:$12 sps:$4 sm:$0xff]  }
 0x44d   :  { %v1422_v36 = vmul.bf16 %v1413_v40, %v14265_v18 }
 0x44e   :  { %v1388_v31 = vpop.permute.xlu1 %1387  ;;  %v1354_v13 = vpop.permute.xlu0 %1353 }
 0x44f   :  { %v1400_v0 = vsel %vm509_vm6, %v10866_v41, %v1388_v31  ;;  %v1360_v9 = vsel %vm445_vm5, %v1352_v37, %v1354_v13  ;;  %v1373_v10 = vsel %vm445_vm5, %v1354_v13, %v1348_v24  ;;  %1561 = vmatpush1.bf16.msra.mxu0 %v1375_v43  ;;  %1667 = vmatpush1.bf16.msra.mxu1 %v1377_v1  ;;  %v14268_v13 = vld [vmem:[#allocation36_spill] sm:$0xff] }
 0x450   :  { %v1381_v11 = vmul.bf16 %v1360_v9, %v14263_v4  ;;  %1562 = vmatprep.subr.bf16.mxu0 %v1380_v23  ;;  %v1382_v47 = vmul.bf16 %v1373_v10, %v14261_v49  ;;  %v1420_v24 = vmul.bf16 %v1400_v0, %v14264_v17  ;;  %v1401_v32 = vsel %vm509_vm6, %v1388_v31, %v10874_v46  ;;  %v14269_v0 = vld [vmem:[#allocation33_spill] sm:$0xff]  ;;  %v14270_v10 = vld [vmem:[#allocation34_spill] sm:$0xff] }
 0x451   :  { %v1419_v37 = vmul.bf16 %v1399_v16, %v14266_v61  ;;  %v1421_v45 = vmul.bf16 %v1401_v32, %v14267_v39 }
 0x452   :  { %v1392_v14 = vpop.permute.xlu1 %1391  ;;  %1668 = vmatprep.subr.bf16.mxu1 %v1382_v47  ;;  %v1394_v29 = vpop.permute.xlu0 %1393 }
 0x453   :  { %1563 = vmatpush1.bf16.msra.mxu0 %v1379_v62  ;;  %1669 = vmatpush1.bf16.msra.mxu1 %v1381_v11  ;;  %v1402_v41 = vsel %vm509_vm6, %v1392_v14, %v1394_v29  ;;  %v14271_v11 = vld [vmem:[#allocation35_spill] sm:$0xff] }
 0x454   :  { %1564 = vmatprep.subr.bf16.mxu0 %v1420_v24  ;;  %1670 = vmatprep.subr.bf16.mxu1 %v1422_v36  ;;  %v1423_v6 = vmul.bf16 %v1402_v41, %v14266_v61  ;;  %v14272_v41 = vmov 0  }
 0x456   :  { %v1396_v42 = vpop.permute.xlu1 %1395  ;;  %v1398_v59 = vpop.permute.xlu0 %1397 }
 0x457   :  { %v1403_v8 = vsel %vm509_vm6, %v1394_v29, %v1396_v42  ;;  %v1404_v48 = vsel %vm509_vm6, %v1396_v42, %v1398_v59  ;;  %v1417_v46 = vsel %vm509_vm6, %v1398_v59, %v1392_v14  ;;  %1565 = vmatpush1.bf16.msra.mxu0 %v1419_v37  ;;  %1671 = vmatpush1.bf16.msra.mxu1 %v1421_v45  ;;  %v9577_v14 = vld [vmem:[%s14086_s5 + $0x18] ss:$12 sps:$4 sm:$0xff]  }
 0x458   :  { %v1425_v27 = vmul.bf16 %v1404_v48, %v14267_v39  ;;  %v1424_v15 = vmul.bf16 %v1403_v8, %v14264_v17  ;;  %v1426_v2 = vmul.bf16 %v1417_v46, %v14265_v18  ;;  %v9578_v46 = vld [vmem:[%s14086_s5 + $0x8] ss:$12 sps:$4 sm:$0xff]  }
 0x45a   :  { %v1428_v5 = vpop.permute.xlu1 %1427  ;;  %1566 = vmatprep.subr.bf16.mxu0 %v1424_v15  ;;  %1672 = vmatprep.subr.bf16.mxu1 %v1426_v2  ;;  %v1430_v52 = vpop.permute.xlu0 %1429  ;;  %v14274_v15 = vld [vmem:[#allocation38_spill] sm:$0xff] }
 0x45b   :  { %1567 = vmatpush1.bf16.msra.mxu0 %v1423_v6  ;;  %1673 = vmatpush1.bf16.msra.mxu1 %v1425_v27  ;;  %v1443_v7 = vsel %vm561_vm7, %v1428_v5, %v1430_v52  ;;  %v14273_v27 = vld [vmem:[#allocation43_spill] sm:$0xff]  ;;  %v14276_v6 = vld [vmem:[#allocation44_spill] sm:$0xff] }
 0x45c   :  { %v1463_v47 = vmul.bf16 %v1443_v7, %v14271_v11  ;;  %v14275_v2 = vpack.c.bf16 %v14273_v27, %v14274_v15 }
 0x45e   :  { %v1432_v60 = vpop.permute.xlu1 %1431  ;;  %1569 = vmatmul.mubr.bf16.vlgmr.msra.gmra.mrb[12].mxu0 %v9572_v12  ;;  %v1434_v43 = vpop.permute.xlu0 %1433  ;;  %1675 = vmatmul.mubr.bf16.vlgmr.msra.gmra.mrb[12].mxu1 %v9572_v12  ;;  %v14279_v12 = vld [vmem:[#allocation41_spill] sm:$0xff] }
 0x45f   :  { %v1444_v1 = vsel %vm561_vm7, %v1430_v52, %v1432_v60  ;;  %v1445_v44 = vsel %vm561_vm7, %v1432_v60, %v1434_v43  ;;  %v1457_v31 = vsel %vm561_vm7, %v1434_v43, %v1428_v5  ;;  %1578 = vmatprep.mubr.bf16.mxu0 %v9575_v63  ;;  %1684 = vmatprep.mubr.bf16.mxu1 %v9575_v63  ;;  %v14277_v5 = vld [vmem:[#allocation40_spill] sm:$0xff]  ;;  %v14280_v63 = vld [vmem:[#allocation37_spill] sm:$0xff]  ;;  %v14282_v60 = vld [vmem:[#allocation42_spill] sm:$0xff] }
 0x460   :  { %v1465_v23 = vmul.bf16 %v1445_v44, %v14268_v13  ;;  %v1464_v9 = vmul.bf16 %v1444_v1, %v14269_v0  ;;  %v1466_v40 = vmul.bf16 %v1457_v31, %v14270_v10  ;;  %v14278_v52 = vpack.c.bf16 %v14276_v6, %v14277_v5  ;;  %v14283_v43 = vld [vmem:[#allocation39_spill] sm:$0xff]  ;;  %v9579_v44 = vld [vmem:[%s14086_s5 + $0x20] ss:$12 sps:$4 sm:$0xff]  }
 0x461   :  { %v14281_v7 = vpack.c.bf16 %v14279_v12, %v14280_v63  ;;  %v14284_v1 = vpack.c.bf16 %v14282_v60, %v14283_v43  ;;  %v9580_v31 = vld [vmem:[#allocation4] sm:$0xff]  }
 0x462   :  { %v1436_v62 = vpop.permute.xlu1 %1435  ;;  %1589 = vmatprep.subr.bf16.mxu0 %v1464_v9  ;;  %1695 = vmatprep.subr.bf16.mxu1 %v1466_v40  ;;  %v1438_v16 = vpop.permute.xlu0 %1437 }
 0x463   :  { %1590 = vmatpush1.bf16.msra.mxu0 %v1463_v47  ;;  %1696 = vmatpush1.bf16.msra.mxu1 %v1465_v23  ;;  %v1446_v29 = vsel %vm561_vm7, %v1436_v62, %v1438_v16  ;;  %v9581_v23 = vld [vmem:[#allocation4 + $0x8] sm:$0xff]  }
 0x464   :  { %v1467_v48 = vmul.bf16 %v1446_v29, %v14271_v11 }
 0x466   :  { %v1440_v24 = vpop.permute.xlu1 %1439  ;;  %1579 = vmatmul.mubr.bf16.gmra.mrb[16].mxu0 %v9577_v14  ;;  %v1442_v32 = vpop.permute.xlu0 %1441  ;;  %1685 = vmatmul.mubr.bf16.gmra.mrb[16].mxu1 %v9577_v14 }
 0x467   :  { %v1447_v36 = vsel %vm561_vm7, %v1438_v16, %v1440_v24  ;;  %v1448_v37 = vsel %vm561_vm7, %v1440_v24, %v1442_v32  ;;  %v1461_v45 = vsel %vm561_vm7, %v1442_v32, %v1436_v62  ;;  %1621 = vmatprep.mubr.bf16.mxu0 %v14272_v41  ;;  %1727 = vmatprep.mubr.bf16.mxu1 %v14272_v41 }
 0x468   :  { %v1469_v42 = vmul.bf16 %v1448_v37, %v14268_v13  ;;  %v1468_v59 = vmul.bf16 %v1447_v36, %v14269_v0  ;;  %v1470_v8 = vmul.bf16 %v1461_v45, %v14270_v10 }
 0x46a   :  { %1591 = vmatprep.subr.bf16.mxu0 %v1468_v59  ;;  %1697 = vmatprep.subr.bf16.mxu1 %v1470_v8 }
 0x46b   :  { %1592 = vmatpush1.bf16.msra.mxu0 %v1467_v48  ;;  %1698 = vmatpush1.bf16.msra.mxu1 %v1469_v42 }
 0x46c   :  { %1797 = vmatprep.subr.bf16.mxu0 %v14275_v2  ;;  %1850 = vmatprep.subr.bf16.mxu1 %v14278_v52 }
 0x46e   :  { %8085 = vmatmul.mubr.msk.bf16.vlgmr.msra.gmra.mrb[12].mxu0 %vm1529_vm8, %v9578_v46  ;;  %8087 = vmatmul.mubr.msk.bf16.vlgmr.msra.gmra.mrb[12].mxu1 %vm1529_vm8, %v9578_v46 }
 0x46f   :  { %1798 = vmatpush1.bf16.msra.mxu0 %v14281_v7  ;;  %1851 = vmatpush1.bf16.msra.mxu1 %v14284_v1 }
 0x470   :  { %1631 = vmatprep.mubr.bf16.mxu0 %v14272_v41  ;;  %1737 = vmatprep.mubr.bf16.mxu1 %v14272_v41 }
 0x476   :  { %8086 = vmatmul.mubr.msk.bf16.gmra.mrb[16].mxu0 %vm1529_vm8, %v9579_v44  ;;  %8088 = vmatmul.mubr.msk.bf16.gmra.mrb[16].mxu1 %vm1529_vm8, %v9579_v44 }
 0x477   :  { %1829 = vmatprep.mubr.bf16.mxu0 %v14272_v41  ;;  %1882 = vmatprep.mubr.bf16.mxu1 %v14272_v41  ;;  %v1482_v9 = vpop.permute.xlu1 %1481  ;;  %v1487_v40 = vpop.permute.xlu0 %1486 }
 0x47b   :  { %v1764_v47 = vpop.permute.xlu1 %1763  ;;  %v1769_v62 = vpop.permute.xlu0 %1768 }
 0x47c   :  { %v9257_v14 = vadd.f32 %v1764_v47, %v1482_v9  ;;  %v9261_v36 = vadd.f32 %v1769_v62, %v1487_v40  ;;  %v8099_v62 = vld [vmem:[%s14227_s28 + $0x200] sm:$0xff] }
 0x47e   :  { %8095 = vmatmul.mubr.msk.bf16.vlgmr.msra.gmra.mrb[12].mxu0 %vm209_vm0, %v9580_v31  ;;  %8097 = vmatmul.mubr.msk.bf16.vlgmr.msra.gmra.mrb[12].mxu1 %vm209_vm0, %v9580_v31 }
 0x47f   :  { %1839 = vmatprep.mubr.bf16.mxu0 %v14272_v41  ;;  %1892 = vmatprep.mubr.bf16.mxu1 %v14272_v41  ;;  %v1492_v16 = vpop.permute.xlu1 %1491  ;;  %v1497_v29 = vpop.permute.xlu0 %1496 }
 0x483   :  { %v1774_v24 = vpop.permute.xlu1 %1773 }
 0x484   :  { %v9265_v27 = vadd.f32 %v1774_v24, %v1492_v16 }
 0x486   :  { %8096 = vmatmul.mubr.msk.bf16.gmra.mrb[16].mxu0 %vm209_vm0, %v9581_v23  ;;  %8098 = vmatmul.mubr.msk.bf16.gmra.mrb[16].mxu1 %vm209_vm0, %v9581_v23  ;;  %v1779_v23 = vpop.permute.xlu0 %1778 }
 0x551   :  { %v1831_v32 = vpop.f32.mrb[12].mxu0  ;;  %v1884_v45 = vpop.f32.mrb[12].mxu1 }
 0x552   :  { %v11003_v37 = vadd.f32 %v9257_v14, %v1831_v32  ;;  %v1833_v42 = vpop.f32.mrb[13].mxu0  ;;  %v11005_v59 = vadd.f32 %v9257_v14, %v1884_v45  ;;  %v1886_v48 = vpop.f32.mrb[13].mxu1  ;;  %v8100_v32 = vld [vmem:[%s14227_s28 + $0x208] sm:$0xff] }
 0x553   :  { %v11007_v8 = vadd.f32 %v9257_v14, %v1833_v42  ;;  %v1835_v46 = vpop.f32.mrb[14].mxu0  ;;  %v11009_v15 = vadd.f32 %v9257_v14, %v1886_v48  ;;  %v1888_v6 = vpop.f32.mrb[14].mxu1  ;;  %v9269_v48 = vadd.f32 %v1779_v23, %v1497_v29 }
 0x554   :  { %14285 = vst [vmem:[#allocation43_spill] sm:$0xff] %v11003_v37  ;;  %14286 = vst [vmem:[#allocation38_spill] sm:$0xff] %v11005_v59  ;;  %v11011_v2 = vadd.f32 %v9261_v36, %v1835_v46  ;;  %v1837_v5 = vpop.f32.mrb[15].mxu0  ;;  %v1919_v52 = vmax.f32 %v11003_v37, 0.0  ;;  %v1921_v12 = vmax.f32 %v11005_v59, 0.0  ;;  %v11015_v63 = vadd.f32 %v9261_v36, %v1888_v6  ;;  %v1890_v60 = vpop.f32.mrb[15].mxu1 }
 0x555   :  { %14287 = vst [vmem:[#allocation44_spill] sm:$0xff] %v11007_v8  ;;  %14288 = vst [vmem:[#allocation40_spill] sm:$0xff] %v11009_v15  ;;  %v11017_v7 = vadd.f32 %v9261_v36, %v1837_v5  ;;  %v1920_v43 = vmax.f32 %v11007_v8, 0.0  ;;  %v11023_v31 = vadd.f32 %v9261_v36, %v1890_v60  ;;  %v1922_v16 = vmax.f32 %v11009_v15, 0.0  ;;  %v8101_v37 = vld [vmem:[%s14227_s28 + $0x210] sm:$0xff] }
 0x556   :  { %14289 = vst [vmem:[#allocation41_spill] sm:$0xff] %v11011_v2  ;;  %14290 = vst [vmem:[#allocation37_spill] sm:$0xff] %v11015_v63  ;;  %v1923_v1 = vmax.f32 %v11011_v2, 0.0  ;;  %v1925_v9 = vmax.f32 %v11015_v63, 0.0 }
 0x557   :  { %14291 = vst [vmem:[#allocation42_spill] sm:$0xff] %v11017_v7  ;;  %14292 = vst [vmem:[#allocation39_spill] sm:$0xff] %v11023_v31  ;;  %v1924_v47 = vmax.f32 %v11017_v7, 0.0  ;;  %v1926_v24 = vmax.f32 %v11023_v31, 0.0 }
 0x558   :  { %v11032_v14 = vpack.c.bf16 %v1923_v1, %v1919_v52  ;;  %v11037_v36 = vpack.c.bf16 %v1925_v9, %v1921_v12 }
 0x559   :  { %v11039_v45 = vpack.c.bf16 %v1924_v47, %v1920_v43  ;;  %v1841_v42 = vpop.f32.mrb[16].mxu0  ;;  %v11041_v46 = vpack.c.bf16 %v1926_v24, %v1922_v16  ;;  %v1894_v5 = vpop.f32.mrb[16].mxu1 }
 0x55a   :  { %v11043_v6 = vadd.f32 %v9265_v27, %v1841_v42  ;;  %v1843_v60 = vpop.f32.mrb[17].mxu0  ;;  %2136 = vrot.lane.b32.xlu1 %v11032_v14, %s9956_s1  ;;  %1964 = vrot.lane.b32.xlu0 %v11032_v14, %s9953_s29  ;;  %v11049_v52 = vadd.f32 %v9265_v27, %v1894_v5  ;;  %v1896_v43 = vpop.f32.mrb[17].mxu1 }
 0x55b   :  { %v11051_v12 = vadd.f32 %v9265_v27, %v1843_v60  ;;  %v1845_v1 = vpop.f32.mrb[18].mxu0  ;;  %v11053_v9 = vadd.f32 %v9265_v27, %v1896_v43  ;;  %v1898_v23 = vpop.f32.mrb[18].mxu1 }
 0x55c   :  { %14293 = vst [vmem:[#allocation45_spill] sm:$0xff] %v11043_v6  ;;  %14294 = vst [vmem:[#allocation46_spill] sm:$0xff] %v11049_v52  ;;  %v11055_v29 = vadd.f32 %v9269_v48, %v1845_v1  ;;  %v1847_v47 = vpop.f32.mrb[19].mxu0  ;;  %v1927_v16 = vmax.f32 %v11043_v6, 0.0  ;;  %v1929_v24 = vmax.f32 %v11049_v52, 0.0  ;;  %v11059_v42 = vadd.f32 %v9269_v48, %v1898_v23  ;;  %v1900_v5 = vpop.f32.mrb[19].mxu1 }
 0x55d   :  { %14295 = vst [vmem:[#allocation47_spill] sm:$0xff] %v11051_v12  ;;  %14296 = vst [vmem:[#allocation48_spill] sm:$0xff] %v11053_v9  ;;  %v11061_v40 = vadd.f32 %v9269_v48, %v1847_v47  ;;  %v1928_v60 = vmax.f32 %v11051_v12, 0.0  ;;  %v11067_v43 = vadd.f32 %v9269_v48, %v1900_v5  ;;  %v1930_v27 = vmax.f32 %v11053_v9, 0.0 }
 0x55e   :  { %14297 = vst [vmem:[#allocation49_spill] sm:$0xff] %v11055_v29  ;;  %14298 = vst [vmem:[#allocation50_spill] sm:$0xff] %v11059_v42  ;;  %v1931_v44 = vmax.f32 %v11055_v29, 0.0  ;;  %2140 = vrot.lane.b32.xlu1 %v11037_v36, %s9956_s1  ;;  %1968 = vrot.lane.b32.xlu0 %v11037_v36, %s9953_s29  ;;  %v1933_v1 = vmax.f32 %v11059_v42, 0.0 }
 0x55f   :  { %14299 = vst [vmem:[#allocation51_spill] sm:$0xff] %v11061_v40  ;;  %14300 = vst [vmem:[#allocation52_spill] sm:$0xff] %v11067_v43  ;;  %v1932_v47 = vmax.f32 %v11061_v40, 0.0  ;;  %v1934_v5 = vmax.f32 %v11067_v43, 0.0 }
 0x560   :  { %v11080_v48 = vpack.c.bf16 %v1931_v44, %v1927_v16  ;;  %v11085_v6 = vpack.c.bf16 %v1933_v1, %v1929_v24  ;;  %v9584_v44 = vld [vmem:[%s14088_s7 + $0x4] ss:$12 sps:$4 sm:$0xff]  }
 0x561   :  { %v11087_v29 = vpack.c.bf16 %v1932_v47, %v1928_v60  ;;  %v11089_v59 = vpack.c.bf16 %v1934_v5, %v1930_v27  ;;  %2472 = vmatprep.mubr.bf16.mxu0 %v9584_v44  ;;  %2618 = vmatprep.mubr.bf16.mxu1 %v9584_v44  ;;  %v14301_v44 = vld [vmem:[#allocation13_spill] sm:$0xff] }
 0x562   :  { %1954 = vrot.lane.b32.xlu1 %v11041_v46, %s9953_s29  ;;  %2008 = vrot.lane.b32.xlu0 %v11032_v14, %s9951_s30 }
 0x566   :  { %1966 = vrot.lane.b32.xlu1 %v11039_v45, %s9953_s29  ;;  %2012 = vrot.lane.b32.xlu0 %v11037_v36, %s9951_s30 }
 0x56a   :  { %2004 = vrot.lane.b32.xlu1 %v11041_v46, %s9951_s30  ;;  %2052 = vrot.lane.b32.xlu0 %v11032_v14, %s9954_s23 }
 0x56e   :  { %2010 = vrot.lane.b32.xlu1 %v11039_v45, %s9951_s30  ;;  %2056 = vrot.lane.b32.xlu0 %v11037_v36, %s9954_s23 }
 0x572   :  { %2048 = vrot.lane.b32.xlu1 %v11041_v46, %s9954_s23  ;;  %2096 = vrot.lane.b32.xlu0 %v11032_v14, %s9955_s19 }
 0x576   :  { %2054 = vrot.lane.b32.xlu1 %v11039_v45, %s9954_s23  ;;  %2100 = vrot.lane.b32.xlu0 %v11037_v36, %s9955_s19 }
 0x57a   :  { %2092 = vrot.lane.b32.xlu1 %v11041_v46, %s9955_s19  ;;  %2138 = vrot.lane.b32.xlu0 %v11039_v45, %s9956_s1 }
 0x57e   :  { %2098 = vrot.lane.b32.xlu1 %v11039_v45, %s9955_s19  ;;  %2142 = vrot.lane.b32.xlu0 %v11041_v46, %s9956_s1 }
 0x582   :  { %2144 = vrot.lane.b32.xlu1 %v11080_v48, %s9956_s1  ;;  %1970 = vrot.lane.b32.xlu0 %v11080_v48, %s9953_s29 }
 0x586   :  { %2148 = vrot.lane.b32.xlu1 %v11085_v6, %s9956_s1  ;;  %1974 = vrot.lane.b32.xlu0 %v11085_v6, %s9953_s29 }
 0x58a   :  { %1956 = vrot.lane.b32.xlu1 %v11089_v59, %s9953_s29  ;;  %2014 = vrot.lane.b32.xlu0 %v11080_v48, %s9951_s30 }
 0x58e   :  { %1972 = vrot.lane.b32.xlu1 %v11087_v29, %s9953_s29  ;;  %2018 = vrot.lane.b32.xlu0 %v11085_v6, %s9951_s30 }
 0x592   :  { %2006 = vrot.lane.b32.xlu1 %v11089_v59, %s9951_s30  ;;  %2058 = vrot.lane.b32.xlu0 %v11080_v48, %s9954_s23 }
 0x596   :  { %2016 = vrot.lane.b32.xlu1 %v11087_v29, %s9951_s30  ;;  %2062 = vrot.lane.b32.xlu0 %v11085_v6, %s9954_s23 }
 0x59a   :  { %2050 = vrot.lane.b32.xlu1 %v11089_v59, %s9954_s23  ;;  %2102 = vrot.lane.b32.xlu0 %v11080_v48, %s9955_s19 }
 0x59e   :  { %2060 = vrot.lane.b32.xlu1 %v11087_v29, %s9954_s23  ;;  %2106 = vrot.lane.b32.xlu0 %v11085_v6, %s9955_s19 }
 0x5a2   :  { %2094 = vrot.lane.b32.xlu1 %v11089_v59, %s9955_s19  ;;  %2182 = vrot.lane.b32.xlu0 %v11039_v45, %s9957_s20 }
 0x5a6   :  { %2104 = vrot.lane.b32.xlu1 %v11087_v29, %s9955_s19  ;;  %2186 = vrot.lane.b32.xlu0 %v11041_v46, %s9957_s20 }
 0x5aa   :  { %2180 = vrot.lane.b32.xlu1 %v11032_v14, %s9957_s20  ;;  %2226 = vrot.lane.b32.xlu0 %v11039_v45, %s9958_s21 }
 0x5ae   :  { %2184 = vrot.lane.b32.xlu1 %v11037_v36, %s9957_s20  ;;  %2230 = vrot.lane.b32.xlu0 %v11041_v46, %s9958_s21 }
 0x5b2   :  { %2188 = vrot.lane.b32.xlu1 %v11080_v48, %s9957_s20  ;;  %2146 = vrot.lane.b32.xlu0 %v11087_v29, %s9956_s1 }
 0x5b6   :  { %2192 = vrot.lane.b32.xlu1 %v11085_v6, %s9957_s20  ;;  %2150 = vrot.lane.b32.xlu0 %v11089_v59, %s9956_s1 }
 0x5ba   :  { %2224 = vrot.lane.b32.xlu1 %v11032_v14, %s9958_s21  ;;  %2190 = vrot.lane.b32.xlu0 %v11087_v29, %s9957_s20 }
 0x5be   :  { %2228 = vrot.lane.b32.xlu1 %v11037_v36, %s9958_s21  ;;  %2194 = vrot.lane.b32.xlu0 %v11089_v59, %s9957_s20 }
 0x5c2   :  { %2232 = vrot.lane.b32.xlu1 %v11080_v48, %s9958_s21  ;;  %2234 = vrot.lane.b32.xlu0 %v11087_v29, %s9958_s21 }
 0x5c6   :  { %2236 = vrot.lane.b32.xlu1 %v11085_v6, %s9958_s21  ;;  %2238 = vrot.lane.b32.xlu0 %v11089_v59, %s9958_s21 }
 0x5ca   :  { %2268 = vrot.lane.b32.xlu1 %v11032_v14, %s9959_s26  ;;  %2270 = vrot.lane.b32.xlu0 %v11039_v45, %s9959_s26 }
 0x5cc   :  { %v11202_v16 = vpop.permute.xlu1 %2136  ;;  %v1965_v24 = vpop.permute.xlu0 %1964 }
 0x5ce   :  { %2272 = vrot.lane.b32.xlu1 %v11037_v36, %s9959_s26  ;;  %2274 = vrot.lane.b32.xlu0 %v11041_v46, %s9959_s26 }
 0x5d0   :  { %v11208_v60 = vpop.permute.xlu1 %2140  ;;  %v1969_v27 = vpop.permute.xlu0 %1968 }
 0x5d2   :  { %2276 = vrot.lane.b32.xlu1 %v11080_v48, %s9959_s26  ;;  %2278 = vrot.lane.b32.xlu0 %v11087_v29, %s9959_s26 }
 0x5d4   :  { %v1955_v1 = vpop.permute.xlu1 %1954  ;;  %v11214_v47 = vpop.permute.xlu0 %2008 }
 0x5d5   :  { %v1978_v5 = vsel %vm145_vm1, %v1969_v27, %v1955_v1  ;;  %v1990_v52 = vsel %vm145_vm1, %v1955_v1, %v1965_v24 }
 0x5d6   :  { %2280 = vrot.lane.b32.xlu1 %v11085_v6, %s9959_s26  ;;  %2282 = vrot.lane.b32.xlu0 %v11089_v59, %s9959_s26  ;;  %v1999_v23 = vmul.bf16 %v1978_v5, %v14301_v44  ;;  %v1996_v63 = vmul.bf16 %v1990_v52, %v10203_v26 }
 0x5d8   :  { %v1967_v42 = vpop.permute.xlu1 %1966  ;;  %2586 = vmatprep.subr.bf16.mxu1 %v1999_v23  ;;  %v2013_v9 = vpop.permute.xlu0 %2012  ;;  %v8102_v23 = vld [vmem:[%s14227_s28 + $0x218] sm:$0xff] }
 0x5d9   :  { %v1976_v43 = vsel %vm145_vm1, %v1965_v24, %v1967_v42  ;;  %v1977_v12 = vsel %vm145_vm1, %v1967_v42, %v1969_v27 }
 0x5da   :  { %v1998_v40 = vmul.bf16 %v1977_v12, %v10209_v28  ;;  %2330 = vperm.xlu1 %9536, %v8099_v62   ;;  %2335 = vperm.xlu0 %9535, %v8100_v32   ;;  %v1997_v5 = vmul.bf16 %v1976_v43, %v10200_v25  ;;  %v8103_v62 = vld [vmem:[%s14227_s28 + $0x220] sm:$0xff]  ;;  %v8104_v32 = vld [vmem:[%s14227_s28 + $0x228] sm:$0xff] }
 0x5dc   :  { %v2005_v1 = vpop.permute.xlu1 %2004  ;;  %2440 = vmatprep.subr.bf16.mxu0 %v1997_v5  ;;  %2587 = vmatpush1.bf16.msra.mxu1 %v1998_v40  ;;  %v11240_v42 = vpop.permute.xlu0 %2052  ;;  %v8105_v40 = vld [vmem:[%s14227_s28 + $0x230] sm:$0xff] }
 0x5dd   :  { %2441 = vmatpush1.bf16.msra.mxu0 %v1996_v63  ;;  %v2022_v11 = vsel %vm209_vm0, %v2013_v9, %v2005_v1 }
 0x5de   :  { %2340 = vperm.xlu1 %9536, %v8101_v37   ;;  %2345 = vperm.xlu0 %9535, %v8102_v23   ;;  %v8106_v37 = vld [vmem:[%s14227_s28 + $0x238] sm:$0xff] }
 0x5e0   :  { %v2011_v52 = vpop.permute.xlu1 %2010  ;;  %v2057_v12 = vpop.permute.xlu0 %2056 }
 0x5e1   :  { %v2020_v39 = vsel %vm209_vm0, %v11214_v47, %v2011_v52 }
 0x5e2   :  { %2350 = vperm.xlu1 %9536, %v8103_v62   ;;  %2355 = vperm.xlu0 %9535, %v8104_v32  }
 0x5e4   :  { %v2049_v63 = vpop.permute.xlu1 %2048  ;;  %v11254_v43 = vpop.permute.xlu0 %2096 }
 0x5e6   :  { %2360 = vperm.xlu1 %9536, %v8105_v40   ;;  %2365 = vperm.xlu0 %9535, %v8106_v37  }
 0x5e8   :  { %v2055_v24 = vpop.permute.xlu1 %2054  ;;  %v11256_v27 = vpop.permute.xlu0 %2100 }
 0x5ec   :  { %v11258_v5 = vpop.permute.xlu1 %2092  ;;  %v11260_v23 = vpop.permute.xlu0 %2138 }
 0x5f0   :  { %v11262_v62 = vpop.permute.xlu1 %2098  ;;  %v11264_v32 = vpop.permute.xlu0 %2142 }
 0x5f4   :  { %v11266_v2 = vpop.permute.xlu1 %2144  ;;  %v1971_v15 = vpop.permute.xlu0 %1970 }
 0x5f8   :  { %v11268_v31 = vpop.permute.xlu1 %2148  ;;  %v1975_v8 = vpop.permute.xlu0 %1974 }
 0x5fc   :  { %v1957_v7 = vpop.permute.xlu1 %1956  ;;  %v2015_v40 = vpop.permute.xlu0 %2014 }
 0x5fd   :  { %v1981_v37 = vsel %vm145_vm1, %v1975_v8, %v1957_v7  ;;  %v1994_v10 = vsel %vm145_vm1, %v1957_v7, %v1971_v15  ;;  %v2043_v7 = vmul.bf16 %v2022_v11, %v10223_v53  ;;  %v2066_v11 = vsel %vm261_vm2, %v2057_v12, %v2049_v63 }
 0x5fe   :  { %v2003_v41 = vmul.bf16 %v1981_v37, %v14301_v44  ;;  %v2021_v37 = vsel %vm209_vm0, %v2011_v52, %v2013_v9  ;;  %v2000_v44 = vmul.bf16 %v1994_v10, %v10203_v26  ;;  %v2065_v52 = vsel %vm261_vm2, %v2055_v24, %v2057_v12 }
 0x600   :  { %v1973_v0 = vpop.permute.xlu1 %1972  ;;  %2588 = vmatprep.subr.bf16.mxu1 %v2003_v41  ;;  %v2019_v13 = vpop.permute.xlu0 %2018  ;;  %v2034_v41 = vsel %vm209_vm0, %v2005_v1, %v11214_v47 }
 0x601   :  { %v1979_v61 = vsel %vm145_vm1, %v1971_v15, %v1973_v0  ;;  %v1980_v18 = vsel %vm145_vm1, %v1973_v0, %v1975_v8  ;;  %v2041_v15 = vmul.bf16 %v2020_v39, %v10220_v51  ;;  %v2040_v10 = vmul.bf16 %v2034_v41, %v10226_v54 }
 0x602   :  { %v2002_v17 = vmul.bf16 %v1980_v18, %v10209_v28  ;;  %v2001_v4 = vmul.bf16 %v1979_v61, %v10200_v25  ;;  %v2042_v18 = vmul.bf16 %v2021_v37, %v10229_v55  ;;  %v2064_v39 = vsel %vm261_vm2, %v11240_v42, %v2055_v24 }
 0x603   :  { %v2087_v37 = vmul.bf16 %v2066_v11, %v10246_v20 }
 0x604   :  { %v2007_v38 = vpop.permute.xlu1 %2006  ;;  %2442 = vmatprep.subr.bf16.mxu0 %v2001_v4  ;;  %2589 = vmatpush1.bf16.msra.mxu1 %v2002_v17  ;;  %v2059_v49 = vpop.permute.xlu0 %2058 }
 0x605   :  { %v2025_v0 = vsel %vm209_vm0, %v2019_v13, %v2007_v38  ;;  %2443 = vmatpush1.bf16.msra.mxu0 %v2000_v44  ;;  %2590 = vmatprep.subr.bf16.mxu1 %v2043_v7  ;;  %v2038_v8 = vsel %vm209_vm0, %v2007_v38, %v2015_v40  ;;  %v2078_v7 = vsel %vm261_vm2, %v2049_v63, %v11240_v42 }
 0x606   :  { %2444 = vmatprep.subr.bf16.mxu0 %v2041_v15  ;;  %v2047_v61 = vmul.bf16 %v2025_v0, %v10223_v53  ;;  %v2044_v38 = vmul.bf16 %v2038_v8, %v10226_v54  ;;  %v2086_v0 = vmul.bf16 %v2065_v52, %v10252_v22  ;;  %v2084_v24 = vmul.bf16 %v2078_v7, %v10249_v21 }
 0x607   :  { %v2110_v42 = vsel %vm325_vm3, %v11256_v27, %v11258_v5 }
 0x608   :  { %v2017_v4 = vpop.permute.xlu1 %2016  ;;  %2591 = vmatpush1.bf16.msra.mxu1 %v2042_v18  ;;  %v2063_v17 = vpop.permute.xlu0 %2062 }
 0x609   :  { %v2023_v9 = vsel %vm209_vm0, %v2015_v40, %v2017_v4  ;;  %v2024_v47 = vsel %vm209_vm0, %v2017_v4, %v2019_v13  ;;  %2445 = vmatpush1.bf16.msra.mxu0 %v2040_v10  ;;  %2592 = vmatprep.subr.bf16.mxu1 %v2047_v61  ;;  %v2085_v13 = vmul.bf16 %v2064_v39, %v10243_v19 }
 0x60a   :  { %v2046_v44 = vmul.bf16 %v2024_v47, %v10229_v55  ;;  %v2045_v1 = vmul.bf16 %v2023_v9, %v10220_v51  ;;  %v2108_v10 = vsel %vm325_vm3, %v11254_v43, %v11262_v62  ;;  %v2109_v9 = vsel %vm325_vm3, %v11262_v62, %v11256_v27 }
 0x60b   :  { %v2129_v52 = vmul.bf16 %v2108_v10, %v10263_v50  ;;  %v2130_v27 = vmul.bf16 %v2109_v9, %v10272_v58 }
 0x60c   :  { %v2051_v41 = vpop.permute.xlu1 %2050  ;;  %2446 = vmatprep.subr.bf16.mxu0 %v2045_v1  ;;  %2593 = vmatpush1.bf16.msra.mxu1 %v2046_v44  ;;  %v2103_v40 = vpop.permute.xlu0 %2102  ;;  %v2131_v44 = vmul.bf16 %v2110_v42, %v10266_v56 }
 0x60d   :  { %v2069_v15 = vsel %vm261_vm2, %v2063_v17, %v2051_v41  ;;  %2447 = vmatpush1.bf16.msra.mxu0 %v2044_v38  ;;  %2594 = vmatprep.subr.bf16.mxu1 %v2087_v37  ;;  %v2082_v63 = vsel %vm261_vm2, %v2051_v41, %v2059_v49 }
 0x60e   :  { %2448 = vmatprep.subr.bf16.mxu0 %v2085_v13  ;;  %v2091_v12 = vmul.bf16 %v2069_v15, %v10246_v20  ;;  %v2088_v47 = vmul.bf16 %v2082_v63, %v10249_v21 }
 0x610   :  { %v2061_v18 = vpop.permute.xlu1 %2060  ;;  %2595 = vmatpush1.bf16.msra.mxu1 %v2086_v0  ;;  %v2107_v61 = vpop.permute.xlu0 %2106 }
 0x611   :  { %v2067_v11 = vsel %vm261_vm2, %v2059_v49, %v2061_v18  ;;  %v2068_v8 = vsel %vm261_vm2, %v2061_v18, %v2063_v17  ;;  %2449 = vmatpush1.bf16.msra.mxu0 %v2084_v24  ;;  %2596 = vmatprep.subr.bf16.mxu1 %v2091_v12  ;;  %v2122_v49 = vsel %vm325_vm3, %v11258_v5, %v11254_v43 }
 0x612   :  { %v2090_v4 = vmul.bf16 %v2068_v8, %v10252_v22  ;;  %v2089_v39 = vmul.bf16 %v2067_v11, %v10243_v19  ;;  %v2128_v37 = vmul.bf16 %v2122_v49, %v10269_v57 }
 0x614   :  { %v2095_v1 = vpop.permute.xlu1 %2094  ;;  %2450 = vmatprep.subr.bf16.mxu0 %v2089_v39  ;;  %2597 = vmatpush1.bf16.msra.mxu1 %v2090_v4  ;;  %v11327_v17 = vpop.permute.xlu0 %2182 }
 0x615   :  { %v2113_v38 = vsel %vm325_vm3, %v2107_v61, %v2095_v1  ;;  %2451 = vmatpush1.bf16.msra.mxu0 %v2088_v47  ;;  %2598 = vmatprep.subr.bf16.mxu1 %v2131_v44  ;;  %v2126_v43 = vsel %vm325_vm3, %v2095_v1, %v2103_v40 }
 0x616   :  { %2452 = vmatprep.subr.bf16.mxu0 %v2129_v52  ;;  %v2135_v62 = vmul.bf16 %v2113_v38, %v10266_v56  ;;  %v2132_v12 = vmul.bf16 %v2126_v43, %v10269_v57 }
 0x618   :  { %v2105_v5 = vpop.permute.xlu1 %2104  ;;  %2599 = vmatpush1.bf16.msra.mxu1 %v2130_v27  ;;  %v2187_v7 = vpop.permute.xlu0 %2186  ;;  %v14302_v27 = vld [vmem:[#allocation26_spill] sm:$0xff] }
 0x619   :  { %v2111_v41 = vsel %vm325_vm3, %v2103_v40, %v2105_v5  ;;  %v2112_v13 = vsel %vm325_vm3, %v2105_v5, %v2107_v61  ;;  %2453 = vmatpush1.bf16.msra.mxu0 %v2128_v37  ;;  %2600 = vmatprep.subr.bf16.mxu1 %v2135_v62  ;;  %v2166_v40 = vsel %vm377_vm4, %v11264_v32, %v11202_v16  ;;  %v14303_v37 = vld [vmem:[#allocation27_spill] sm:$0xff]  ;;  %v14304_v5 = vld [vmem:[#allocation28_spill] sm:$0xff] }
 0x61a   :  { %v2134_v15 = vmul.bf16 %v2112_v13, %v10272_v58  ;;  %v2133_v0 = vmul.bf16 %v2111_v41, %v10263_v50  ;;  %v2153_v61 = vsel %vm377_vm4, %v11260_v23, %v11208_v60 }
 0x61c   :  { %v2181_v24 = vpop.permute.xlu1 %2180  ;;  %2454 = vmatprep.subr.bf16.mxu0 %v2133_v0  ;;  %2601 = vmatpush1.bf16.msra.mxu1 %v2134_v15  ;;  %v11340_v42 = vpop.permute.xlu0 %2226 }
 0x61d   :  { %2455 = vmatpush1.bf16.msra.mxu0 %v2132_v12  ;;  %2602 = vmatprep.subr.bf16.mxu1 %v11041_v46  ;;  %v2175_v46 = vmul.bf16 %v2166_v40, %v10293_v33  ;;  %v2210_v39 = vsel %vm445_vm5, %v2187_v7, %v2181_v24  ;;  %v2196_v49 = vsel %vm445_vm5, %v2181_v24, %v11327_v17 }
 0x61e   :  { %2456 = vmatprep.subr.bf16.mxu0 %v11039_v45  ;;  %v2154_v45 = vsel %vm377_vm4, %v11208_v60, %v11264_v32  ;;  %v2219_v62 = vmul.bf16 %v2210_v39, %v14302_v27  ;;  %v2216_v43 = vmul.bf16 %v2196_v49, %v14303_v37 }
 0x620   :  { %v2185_v63 = vpop.permute.xlu1 %2184  ;;  %2603 = vmatpush1.bf16.msra.mxu1 %v11037_v36  ;;  %v11348_v18 = vpop.permute.xlu0 %2230  ;;  %v2152_v36 = vsel %vm377_vm4, %v11202_v16, %v11260_v23 }
 0x621   :  { %2457 = vmatpush1.bf16.msra.mxu0 %v11032_v14  ;;  %2604 = vmatprep.subr.bf16.mxu1 %v11089_v59  ;;  %v2173_v14 = vmul.bf16 %v2153_v61, %v10287_v30  ;;  %v2172_v60 = vmul.bf16 %v2152_v36, %v10296_v34  ;;  %v2197_v8 = vsel %vm445_vm5, %v11327_v17, %v2185_v63 }
 0x622   :  { %2458 = vmatprep.subr.bf16.mxu0 %v11087_v29  ;;  %v2174_v29 = vmul.bf16 %v2154_v45, %v10299_v35 }
 0x624   :  { %v2189_v10 = vpop.permute.xlu1 %2188  ;;  %2605 = vmatpush1.bf16.msra.mxu1 %v11085_v6  ;;  %v2147_v11 = vpop.permute.xlu0 %2146 }
 0x625   :  { %v2156_v59 = vsel %vm377_vm4, %v2147_v11, %v11268_v31  ;;  %2459 = vmatpush1.bf16.msra.mxu0 %v11080_v48  ;;  %2606 = vmatprep.subr.bf16.mxu1 %v2175_v46  ;;  %v2155_v16 = vsel %vm377_vm4, %v11266_v2, %v2147_v11 }
 0x626   :  { %2460 = vmatprep.subr.bf16.mxu0 %v2173_v14  ;;  %v2177_v32 = vmul.bf16 %v2156_v59, %v10287_v30  ;;  %v2176_v44 = vmul.bf16 %v2155_v16, %v10296_v34  ;;  %v14305_v14 = vld [vmem:[#allocation29_spill] sm:$0xff]  ;;  %v14307_v16 = vld [vmem:[#allocation31_spill] sm:$0xff] }
 0x628   :  { %v2193_v23 = vpop.permute.xlu1 %2192  ;;  %2607 = vmatpush1.bf16.msra.mxu1 %v2174_v29  ;;  %v2151_v6 = vpop.permute.xlu0 %2150  ;;  %v14306_v29 = vld [vmem:[#allocation30_spill] sm:$0xff] }
 0x629   :  { %v2157_v48 = vsel %vm377_vm4, %v11268_v31, %v2151_v6  ;;  %v2170_v4 = vsel %vm377_vm4, %v2151_v6, %v11266_v2  ;;  %2461 = vmatpush1.bf16.msra.mxu0 %v2172_v60  ;;  %v2217_v31 = vmul.bf16 %v2197_v8, %v10319_v3  ;;  %v2198_v2 = vsel %vm445_vm5, %v2185_v63, %v2187_v7  ;;  %v14308_v6 = vld [vmem:[#allocation32_spill] sm:$0xff] }
 0x62a   :  { %v2178_v9 = vmul.bf16 %v2157_v48, %v10299_v35  ;;  %2462 = vmatprep.subr.bf16.mxu0 %v2177_v32  ;;  %v2179_v47 = vmul.bf16 %v2170_v4, %v10293_v33  ;;  %v2218_v41 = vmul.bf16 %v2198_v2, %v14304_v5  ;;  %v9585_v2 = vld [vmem:[%s14088_s7 + $0x1c] ss:$12 sps:$4 sm:$0xff]  }
 0x62c   :  { %v2225_v1 = vpop.permute.xlu1 %2224  ;;  %2608 = vmatprep.subr.bf16.mxu1 %v2179_v47  ;;  %v2191_v52 = vpop.permute.xlu0 %2190 }
 0x62d   :  { %v2200_v38 = vsel %vm445_vm5, %v2191_v52, %v2193_v23  ;;  %2463 = vmatpush1.bf16.msra.mxu0 %v2176_v44  ;;  %2609 = vmatpush1.bf16.msra.mxu1 %v2178_v9  ;;  %v2199_v17 = vsel %vm445_vm5, %v2189_v10, %v2191_v52  ;;  %v2254_v40 = vsel %vm509_vm6, %v11348_v18, %v2225_v1 }
 0x62e   :  { %2464 = vmatprep.subr.bf16.mxu0 %v2217_v31  ;;  %2610 = vmatprep.subr.bf16.mxu1 %v2219_v62  ;;  %v2221_v0 = vmul.bf16 %v2200_v38, %v10319_v3  ;;  %v2220_v45 = vmul.bf16 %v2199_v17, %v14303_v37  ;;  %v2240_v46 = vsel %vm509_vm6, %v2225_v1, %v11340_v42  ;;  %v9582_v31 = vld [vmem:[%s14088_s7] ss:$12 sps:$4 sm:$0xff]  }
 0x62f   :  { %v2263_v60 = vmul.bf16 %v2254_v40, %v14306_v29 }
 0x630   :  { %v2229_v13 = vpop.permute.xlu1 %2228  ;;  %v2195_v15 = vpop.permute.xlu0 %2194 }
 0x631   :  { %v2241_v7 = vsel %vm509_vm6, %v11340_v42, %v2229_v13  ;;  %v2201_v12 = vsel %vm445_vm5, %v2193_v23, %v2195_v15  ;;  %v2214_v24 = vsel %vm445_vm5, %v2195_v15, %v2189_v10  ;;  %2465 = vmatpush1.bf16.msra.mxu0 %v2216_v43  ;;  %2611 = vmatpush1.bf16.msra.mxu1 %v2218_v41  ;;  %v14309_v15 = vld [vmem:[#allocation36_spill] sm:$0xff] }
 0x632   :  { %v2222_v63 = vmul.bf16 %v2201_v12, %v14304_v5  ;;  %2466 = vmatprep.subr.bf16.mxu0 %v2221_v0  ;;  %v2223_v61 = vmul.bf16 %v2214_v24, %v14302_v27  ;;  %v2261_v10 = vmul.bf16 %v2241_v7, %v14305_v14  ;;  %v2242_v59 = vsel %vm509_vm6, %v2229_v13, %v11348_v18  ;;  %v14310_v7 = vld [vmem:[#allocation33_spill] sm:$0xff]  ;;  %v14311_v24 = vld [vmem:[#allocation34_spill] sm:$0xff] }
 0x633   :  { %v2260_v23 = vmul.bf16 %v2240_v46, %v14307_v16  ;;  %v2262_v32 = vmul.bf16 %v2242_v59, %v14308_v6 }
 0x634   :  { %v2233_v36 = vpop.permute.xlu1 %2232  ;;  %2612 = vmatprep.subr.bf16.mxu1 %v2223_v61  ;;  %v2235_v11 = vpop.permute.xlu0 %2234 }
 0x635   :  { %2467 = vmatpush1.bf16.msra.mxu0 %v2220_v45  ;;  %2613 = vmatpush1.bf16.msra.mxu1 %v2222_v63  ;;  %v2243_v42 = vsel %vm509_vm6, %v2233_v36, %v2235_v11  ;;  %v14312_v63 = vld [vmem:[#allocation35_spill] sm:$0xff] }
 0x636   :  { %2468 = vmatprep.subr.bf16.mxu0 %v2261_v10  ;;  %2614 = vmatprep.subr.bf16.mxu1 %v2263_v60  ;;  %v2264_v49 = vmul.bf16 %v2243_v42, %v14307_v16 }
 0x638   :  { %v2237_v8 = vpop.permute.xlu1 %2236  ;;  %v2239_v48 = vpop.permute.xlu0 %2238 }
 0x639   :  { %v2244_v4 = vsel %vm509_vm6, %v2235_v11, %v2237_v8  ;;  %v2245_v39 = vsel %vm509_vm6, %v2237_v8, %v2239_v48  ;;  %v2258_v18 = vsel %vm509_vm6, %v2239_v48, %v2233_v36  ;;  %2469 = vmatpush1.bf16.msra.mxu0 %v2260_v23  ;;  %2615 = vmatpush1.bf16.msra.mxu1 %v2262_v32  ;;  %v9587_v36 = vld [vmem:[%s14088_s7 + $0x18] ss:$12 sps:$4 sm:$0xff]   ;;  %v9588_v11 = vld [vmem:[%s14088_s7 + $0x34] ss:$12 sps:$4 sm:$0xff]  }
 0x63a   :  { %v2266_v9 = vmul.bf16 %v2245_v39, %v14308_v6  ;;  %v2265_v47 = vmul.bf16 %v2244_v4, %v14305_v14  ;;  %v2267_v44 = vmul.bf16 %v2258_v18, %v14306_v29  ;;  %v9590_v18 = vld [vmem:[%s14088_s7 + $0x30] ss:$12 sps:$4 sm:$0xff]  }
 0x63c   :  { %v2269_v1 = vpop.permute.xlu1 %2268  ;;  %2470 = vmatprep.subr.bf16.mxu0 %v2265_v47  ;;  %2616 = vmatprep.subr.bf16.mxu1 %v2267_v44  ;;  %v2271_v52 = vpop.permute.xlu0 %2270  ;;  %v9593_v47 = vld [vmem:[%s14088_s7 + $0x48] ss:$12 sps:$4 sm:$0xff]   ;;  %v14313_v44 = vmov 0  }
 0x63d   :  { %2471 = vmatpush1.bf16.msra.mxu0 %v2264_v49  ;;  %2617 = vmatpush1.bf16.msra.mxu1 %v2266_v9  ;;  %v2284_v38 = vsel %vm561_vm7, %v2269_v1, %v2271_v52  ;;  %v9591_v9 = vld [vmem:[%s14088_s7 + $0x4c] ss:$12 sps:$4 sm:$0xff]   ;;  %v9594_v49 = vld [vmem:[%s14088_s7 + $0x8] ss:$12 sps:$4 sm:$0xff]  }
 0x63e   :  { %v2304_v61 = vmul.bf16 %v2284_v38, %v14312_v63 }
 0x640   :  { %v2273_v62 = vpop.permute.xlu1 %2272  ;;  %2473 = vmatmul.mubr.bf16.vlgmr.msra.gmra.mrb[20].mxu0 %v9582_v31  ;;  %v2275_v43 = vpop.permute.xlu0 %2274  ;;  %2619 = vmatmul.mubr.bf16.vlgmr.msra.gmra.mrb[20].mxu1 %v9582_v31  ;;  %v9597_v31 = vld [vmem:[%s14088_s7 + $0x50] ss:$12 sps:$4 sm:$0xff]  }
 0x641   :  { %v2285_v41 = vsel %vm561_vm7, %v2271_v52, %v2273_v62  ;;  %v2286_v17 = vsel %vm561_vm7, %v2273_v62, %v2275_v43  ;;  %v2298_v13 = vsel %vm561_vm7, %v2275_v43, %v2269_v1  ;;  %2482 = vmatprep.mubr.bf16.mxu0 %v9585_v2  ;;  %2628 = vmatprep.mubr.bf16.mxu1 %v9585_v2  ;;  %v9595_v1 = vld [vmem:[%s14088_s7 + $0x20] ss:$12 sps:$4 sm:$0xff]   ;;  %v9596_v52 = vld [vmem:[%s14088_s7 + $0x38] ss:$12 sps:$4 sm:$0xff]  }
 0x642   :  { %v2306_v0 = vmul.bf16 %v2286_v17, %v14309_v15  ;;  %v2305_v12 = vmul.bf16 %v2285_v41, %v14310_v7  ;;  %v2307_v40 = vmul.bf16 %v2298_v13, %v14311_v24 }
 0x644   :  { %v2277_v45 = vpop.permute.xlu1 %2276  ;;  %2513 = vmatprep.subr.bf16.mxu0 %v2305_v12  ;;  %2659 = vmatprep.subr.bf16.mxu1 %v2307_v40  ;;  %v2279_v46 = vpop.permute.xlu0 %2278 }
 0x645   :  { %2514 = vmatpush1.bf16.msra.mxu0 %v2304_v61  ;;  %2660 = vmatpush1.bf16.msra.mxu1 %v2306_v0  ;;  %v2287_v10 = vsel %vm561_vm7, %v2277_v45, %v2279_v46 }
 0x646   :  { %v2308_v39 = vmul.bf16 %v2287_v10, %v14312_v63  ;;  %v9600_v63 = vld [vmem:[%s14089_s8 + $0x4] ss:$20 sps:$4 sm:$0xff]  }
 0x648   :  { %v2281_v59 = vpop.permute.xlu1 %2280  ;;  %2483 = vmatmul.mubr.bf16.gmra.mrb[24].mxu0 %v9587_v36  ;;  %v2283_v60 = vpop.permute.xlu0 %2282  ;;  %2629 = vmatmul.mubr.bf16.gmra.mrb[24].mxu1 %v9587_v36 }
 0x649   :  { %v2288_v23 = vsel %vm561_vm7, %v2279_v46, %v2281_v59  ;;  %v2289_v32 = vsel %vm561_vm7, %v2281_v59, %v2283_v60  ;;  %v2302_v42 = vsel %vm561_vm7, %v2283_v60, %v2277_v45  ;;  %2492 = vmatprep.mubr.bf16.mxu0 %v9588_v11  ;;  %2638 = vmatprep.mubr.bf16.mxu1 %v9588_v11 }
 0x64a   :  { %v2310_v8 = vmul.bf16 %v2289_v32, %v14309_v15  ;;  %v2309_v48 = vmul.bf16 %v2288_v23, %v14310_v7  ;;  %v2311_v4 = vmul.bf16 %v2302_v42, %v14311_v24 }
 0x64c   :  { %2515 = vmatprep.subr.bf16.mxu0 %v2309_v48  ;;  %2661 = vmatprep.subr.bf16.mxu1 %v2311_v4 }
 0x64d   :  { %2516 = vmatpush1.bf16.msra.mxu0 %v2308_v39  ;;  %2662 = vmatpush1.bf16.msra.mxu1 %v2310_v8 }
 0x650   :  { %2493 = vmatmul.mubr.bf16.gmra.mrb[28].mxu0 %v9590_v18  ;;  %2639 = vmatmul.mubr.bf16.gmra.mrb[28].mxu1 %v9590_v18 }
 0x651   :  { %2502 = vmatprep.mubr.bf16.mxu0 %v9591_v9  ;;  %2648 = vmatprep.mubr.bf16.mxu1 %v9591_v9 }
 0x658   :  { %2503 = vmatmul.mubr.bf16.gmra.mrb[32].mxu0 %v9593_v47  ;;  %2649 = vmatmul.mubr.bf16.gmra.mrb[32].mxu1 %v9593_v47 }
 0x659   :  { %2545 = vmatprep.mubr.bf16.mxu0 %v14313_v44  ;;  %2691 = vmatprep.mubr.bf16.mxu1 %v14313_v44  ;;  %v2331_v2 = vpop.permute.xlu1 %2330  ;;  %v2336_v38 = vpop.permute.xlu0 %2335 }
 0x65d   :  { %v2341_v39 = vpop.permute.xlu1 %2340 }
 0x660   :  { %8119 = vmatmul.mubr.msk.bf16.vlgmr.msra.gmra.mrb[20].mxu0 %vm1529_vm8, %v9594_v49  ;;  %8123 = vmatmul.mubr.msk.bf16.vlgmr.msra.gmra.mrb[20].mxu1 %vm1529_vm8, %v9594_v49  ;;  %v2346_v49 = vpop.permute.xlu0 %2345 }
 0x661   :  { %2555 = vmatprep.mubr.bf16.mxu0 %v14313_v44  ;;  %2701 = vmatprep.mubr.bf16.mxu1 %v14313_v44 }
 0x668   :  { %8120 = vmatmul.mubr.msk.bf16.gmra.mrb[24].mxu0 %vm1529_vm8, %v9595_v1  ;;  %8124 = vmatmul.mubr.msk.bf16.gmra.mrb[24].mxu1 %vm1529_vm8, %v9595_v1 }
 0x669   :  { %2565 = vmatprep.mubr.bf16.mxu0 %v14313_v44  ;;  %2711 = vmatprep.mubr.bf16.mxu1 %v14313_v44 }
 0x670   :  { %8121 = vmatmul.mubr.msk.bf16.gmra.mrb[28].mxu0 %vm1529_vm8, %v9596_v52  ;;  %8125 = vmatmul.mubr.msk.bf16.gmra.mrb[28].mxu1 %vm1529_vm8, %v9596_v52 }
 0x671   :  { %2575 = vmatprep.mubr.bf16.mxu0 %v14313_v44  ;;  %2721 = vmatprep.mubr.bf16.mxu1 %v14313_v44 }
 0x678   :  { %8122 = vmatmul.mubr.msk.bf16.gmra.mrb[32].mxu0 %vm1529_vm8, %v9597_v31  ;;  %8126 = vmatmul.mubr.msk.bf16.gmra.mrb[32].mxu1 %vm1529_vm8, %v9597_v31 }
 0x679   :  { %3718 = vmatprep.mubr.bf16.mxu0 %v9600_v63  ;;  %3937 = vmatprep.mubr.bf16.mxu1 %v9600_v63 }
 0x733   :  { %v2547_v62 = vpop.f32.mrb[20].mxu0  ;;  %v2693_v41 = vpop.f32.mrb[20].mxu1 }
 0x734   :  { %v9289_v43 = vadd.f32 %v2547_v62, %v2331_v2  ;;  %v2549_v17 = vpop.f32.mrb[21].mxu0  ;;  %v9305_v13 = vadd.f32 %v2693_v41, %v2331_v2  ;;  %v2695_v12 = vpop.f32.mrb[21].mxu1 }
 0x735   :  { %v9290_v0 = vadd.f32 %v2549_v17, %v2331_v2  ;;  %v2551_v40 = vpop.f32.mrb[22].mxu0  ;;  %v9306_v61 = vadd.f32 %v2695_v12, %v2331_v2  ;;  %v2697_v46 = vpop.f32.mrb[22].mxu1 }
 0x736   :  { %v9291_v45 = vadd.f32 %v2551_v40, %v2336_v38  ;;  %v2553_v36 = vpop.f32.mrb[23].mxu0  ;;  %v9307_v11 = vadd.f32 %v2697_v46, %v2336_v38  ;;  %v2699_v59 = vpop.f32.mrb[23].mxu1  ;;  %v2732_v60 = vmax.f32 %v9289_v43, 0.0  ;;  %v2734_v42 = vmax.f32 %v9305_v13, 0.0 }
 0x737   :  { %v9292_v10 = vadd.f32 %v2553_v36, %v2336_v38  ;;  %v9308_v32 = vadd.f32 %v2699_v59, %v2336_v38  ;;  %v2733_v8 = vmax.f32 %v9290_v0, 0.0  ;;  %v2735_v18 = vmax.f32 %v9306_v61, 0.0 }
 0x738   :  { %v2736_v23 = vmax.f32 %v9291_v45, 0.0  ;;  %v2738_v48 = vmax.f32 %v9307_v11, 0.0 }
 0x739   :  { %v2737_v4 = vmax.f32 %v9292_v10, 0.0  ;;  %v2739_v47 = vmax.f32 %v9308_v32, 0.0 }
 0x73a   :  { %v11483_v9 = vpack.c.bf16 %v2736_v23, %v2732_v60  ;;  %v11485_v1 = vpack.c.bf16 %v2738_v48, %v2734_v42  ;;  %v2351_v48 = vpop.permute.xlu1 %2350 }
 0x73b   :  { %v11487_v52 = vpack.c.bf16 %v2737_v4, %v2733_v8  ;;  %v2557_v31 = vpop.f32.mrb[24].mxu0  ;;  %v11489_v2 = vpack.c.bf16 %v2739_v47, %v2735_v18  ;;  %v2703_v43 = vpop.f32.mrb[24].mxu1 }
 0x73c   :  { %v9293_v62 = vadd.f32 %v2557_v31, %v2341_v39  ;;  %v2559_v38 = vpop.f32.mrb[25].mxu0  ;;  %3157 = vrot.lane.b32.xlu1 %v11483_v9, %s9956_s1  ;;  %2813 = vrot.lane.b32.xlu0 %v11483_v9, %s9953_s29  ;;  %v9309_v41 = vadd.f32 %v2703_v43, %v2341_v39  ;;  %v2705_v13 = vpop.f32.mrb[25].mxu1 }
 0x73d   :  { %v9294_v17 = vadd.f32 %v2559_v38, %v2341_v39  ;;  %v2561_v0 = vpop.f32.mrb[26].mxu0  ;;  %v9310_v12 = vadd.f32 %v2705_v13, %v2341_v39  ;;  %v2707_v61 = vpop.f32.mrb[26].mxu1 }
 0x73e   :  { %v9295_v40 = vadd.f32 %v2561_v0, %v2346_v49  ;;  %v2563_v45 = vpop.f32.mrb[27].mxu0  ;;  %v9311_v46 = vadd.f32 %v2707_v61, %v2346_v49  ;;  %v2709_v11 = vpop.f32.mrb[27].mxu1  ;;  %v2740_v10 = vmax.f32 %v9293_v62, 0.0  ;;  %v2742_v23 = vmax.f32 %v9309_v41, 0.0 }
 0x73f   :  { %v9296_v36 = vadd.f32 %v2563_v45, %v2346_v49  ;;  %v9312_v60 = vadd.f32 %v2709_v11, %v2346_v49  ;;  %v2741_v32 = vmax.f32 %v9294_v17, 0.0  ;;  %v2743_v4 = vmax.f32 %v9310_v12, 0.0  ;;  %v2356_v47 = vpop.permute.xlu0 %2355 }
 0x740   :  { %v2744_v59 = vmax.f32 %v9295_v40, 0.0  ;;  %3161 = vrot.lane.b32.xlu1 %v11485_v1, %s9956_s1  ;;  %2817 = vrot.lane.b32.xlu0 %v11485_v1, %s9953_s29  ;;  %v2746_v42 = vmax.f32 %v9311_v46, 0.0 }
 0x741   :  { %v2745_v8 = vmax.f32 %v9296_v36, 0.0  ;;  %v2747_v18 = vmax.f32 %v9312_v60, 0.0 }
 0x742   :  { %v11499_v39 = vpack.c.bf16 %v2744_v59, %v2740_v10  ;;  %v11501_v31 = vpack.c.bf16 %v2746_v42, %v2742_v23 }
 0x743   :  { %v11503_v62 = vpack.c.bf16 %v2745_v8, %v2741_v32  ;;  %v2567_v49 = vpop.f32.mrb[28].mxu0  ;;  %v11505_v43 = vpack.c.bf16 %v2747_v18, %v2743_v4  ;;  %v2713_v13 = vpop.f32.mrb[28].mxu1 }
 0x744   :  { %v9297_v38 = vadd.f32 %v2567_v49, %v2351_v48  ;;  %v2569_v0 = vpop.f32.mrb[29].mxu0  ;;  %2793 = vrot.lane.b32.xlu1 %v11489_v2, %s9953_s29  ;;  %2901 = vrot.lane.b32.xlu0 %v11483_v9, %s9951_s30  ;;  %v9313_v41 = vadd.f32 %v2713_v13, %v2351_v48  ;;  %v2715_v12 = vpop.f32.mrb[29].mxu1 }
 0x745   :  { %v9298_v17 = vadd.f32 %v2569_v0, %v2351_v48  ;;  %v2571_v40 = vpop.f32.mrb[30].mxu0  ;;  %v9314_v61 = vadd.f32 %v2715_v12, %v2351_v48  ;;  %v2717_v46 = vpop.f32.mrb[30].mxu1 }
 0x746   :  { %v9299_v45 = vadd.f32 %v2571_v40, %v2356_v47  ;;  %v2573_v36 = vpop.f32.mrb[31].mxu0  ;;  %v9315_v11 = vadd.f32 %v2717_v46, %v2356_v47  ;;  %v2719_v59 = vpop.f32.mrb[31].mxu1  ;;  %v2748_v60 = vmax.f32 %v9297_v38, 0.0  ;;  %v2750_v42 = vmax.f32 %v9313_v41, 0.0 }
 0x747   :  { %v9300_v10 = vadd.f32 %v2573_v36, %v2356_v47  ;;  %v9316_v32 = vadd.f32 %v2719_v59, %v2356_v47  ;;  %v2749_v8 = vmax.f32 %v9298_v17, 0.0  ;;  %v2361_v48 = vpop.permute.xlu1 %2360  ;;  %v2751_v49 = vmax.f32 %v9314_v61, 0.0  ;;  %v2366_v12 = vpop.permute.xlu0 %2365 }
 0x748   :  { %v2752_v23 = vmax.f32 %v9299_v45, 0.0  ;;  %2815 = vrot.lane.b32.xlu1 %v11487_v52, %s9953_s29  ;;  %2905 = vrot.lane.b32.xlu0 %v11485_v1, %s9951_s30  ;;  %v2754_v4 = vmax.f32 %v9315_v11, 0.0 }
 0x749   :  { %v2753_v18 = vmax.f32 %v9300_v10, 0.0  ;;  %v2755_v0 = vmax.f32 %v9316_v32, 0.0 }
 0x74a   :  { %v11515_v13 = vpack.c.bf16 %v2752_v23, %v2748_v60  ;;  %v11517_v40 = vpack.c.bf16 %v2754_v4, %v2750_v42 }
 0x74b   :  { %v11519_v38 = vpack.c.bf16 %v2753_v18, %v2749_v8  ;;  %v2577_v47 = vpop.f32.mrb[32].mxu0  ;;  %v11521_v45 = vpack.c.bf16 %v2755_v0, %v2751_v49  ;;  %v2723_v36 = vpop.f32.mrb[32].mxu1 }
 0x74c   :  { %v9301_v46 = vadd.f32 %v2577_v47, %v2361_v48  ;;  %v2579_v59 = vpop.f32.mrb[33].mxu0  ;;  %2893 = vrot.lane.b32.xlu1 %v11489_v2, %s9951_s30  ;;  %2989 = vrot.lane.b32.xlu0 %v11483_v9, %s9954_s23  ;;  %v9317_v41 = vadd.f32 %v2723_v36, %v2361_v48  ;;  %v2725_v61 = vpop.f32.mrb[33].mxu1 }
 0x74d   :  { %v9302_v17 = vadd.f32 %v2579_v59, %v2361_v48  ;;  %v2581_v11 = vpop.f32.mrb[34].mxu0  ;;  %v9318_v10 = vadd.f32 %v2725_v61, %v2361_v48  ;;  %v2727_v23 = vpop.f32.mrb[34].mxu1 }
 0x74e   :  { %v9303_v60 = vadd.f32 %v2581_v11, %v2366_v12  ;;  %v2583_v32 = vpop.f32.mrb[35].mxu0  ;;  %v9319_v42 = vadd.f32 %v2727_v23, %v2366_v12  ;;  %v2729_v4 = vpop.f32.mrb[35].mxu1  ;;  %v2756_v18 = vmax.f32 %v9301_v46, 0.0  ;;  %v2758_v47 = vmax.f32 %v9317_v41, 0.0 }
 0x74f   :  { %v9304_v8 = vadd.f32 %v2583_v32, %v2366_v12  ;;  %v9320_v0 = vadd.f32 %v2729_v4, %v2366_v12  ;;  %v2757_v36 = vmax.f32 %v9302_v17, 0.0  ;;  %v2759_v48 = vmax.f32 %v9318_v10, 0.0 }
 0x750   :  { %v2760_v49 = vmax.f32 %v9303_v60, 0.0  ;;  %2903 = vrot.lane.b32.xlu1 %v11487_v52, %s9951_s30  ;;  %2993 = vrot.lane.b32.xlu0 %v11485_v1, %s9954_s23  ;;  %v2762_v59 = vmax.f32 %v9319_v42, 0.0 }
 0x751   :  { %v2761_v44 = vmax.f32 %v9304_v8, 0.0  ;;  %v2763_v11 = vmax.f32 %v9320_v0, 0.0  ;;  %v14318_v8 = vld [vmem:[#allocation13_spill] sm:$0xff] }
 0x752   :  { %v11531_v61 = vpack.c.bf16 %v2760_v49, %v2756_v18  ;;  %v11533_v23 = vpack.c.bf16 %v2762_v59, %v2758_v47 }
 0x753   :  { %v11535_v32 = vpack.c.bf16 %v2761_v44, %v2757_v36  ;;  %v11537_v46 = vpack.c.bf16 %v2763_v11, %v2759_v48 }
 0x754   :  { %14314 = vst [vmem:[#allocation53_spill] sm:$0xff] %v11533_v23  ;;  %2981 = vrot.lane.b32.xlu1 %v11489_v2, %s9954_s23  ;;  %3077 = vrot.lane.b32.xlu0 %v11483_v9, %s9955_s19 }
 0x755   :  { %14315 = vst [vmem:[#allocation54_spill] sm:$0xff] %v11537_v46 }
 0x758   :  { %2991 = vrot.lane.b32.xlu1 %v11487_v52, %s9954_s23  ;;  %3081 = vrot.lane.b32.xlu0 %v11485_v1, %s9955_s19 }
 0x75c   :  { %3069 = vrot.lane.b32.xlu1 %v11489_v2, %s9955_s19  ;;  %3159 = vrot.lane.b32.xlu0 %v11487_v52, %s9956_s1 }
 0x760   :  { %3079 = vrot.lane.b32.xlu1 %v11487_v52, %s9955_s19  ;;  %3163 = vrot.lane.b32.xlu0 %v11489_v2, %s9956_s1 }
 0x764   :  { %2795 = vrot.lane.b32.xlu1 %v11505_v43, %s9953_s29  ;;  %2819 = vrot.lane.b32.xlu0 %v11499_v39, %s9953_s29 }
 0x768   :  { %2821 = vrot.lane.b32.xlu1 %v11503_v62, %s9953_s29  ;;  %2823 = vrot.lane.b32.xlu0 %v11501_v31, %s9953_s29 }
 0x76c   :  { %2895 = vrot.lane.b32.xlu1 %v11505_v43, %s9951_s30  ;;  %2907 = vrot.lane.b32.xlu0 %v11499_v39, %s9951_s30 }
 0x770   :  { %2909 = vrot.lane.b32.xlu1 %v11503_v62, %s9951_s30  ;;  %2911 = vrot.lane.b32.xlu0 %v11501_v31, %s9951_s30 }
 0x774   :  { %2983 = vrot.lane.b32.xlu1 %v11505_v43, %s9954_s23  ;;  %2995 = vrot.lane.b32.xlu0 %v11499_v39, %s9954_s23 }
 0x778   :  { %2997 = vrot.lane.b32.xlu1 %v11503_v62, %s9954_s23  ;;  %2999 = vrot.lane.b32.xlu0 %v11501_v31, %s9954_s23 }
 0x77c   :  { %3071 = vrot.lane.b32.xlu1 %v11505_v43, %s9955_s19  ;;  %3083 = vrot.lane.b32.xlu0 %v11499_v39, %s9955_s19 }
 0x780   :  { %3085 = vrot.lane.b32.xlu1 %v11503_v62, %s9955_s19  ;;  %3087 = vrot.lane.b32.xlu0 %v11501_v31, %s9955_s19 }
 0x784   :  { %2797 = vrot.lane.b32.xlu1 %v11521_v45, %s9953_s29  ;;  %2825 = vrot.lane.b32.xlu0 %v11515_v13, %s9953_s29 }
 0x788   :  { %2827 = vrot.lane.b32.xlu1 %v11519_v38, %s9953_s29  ;;  %2829 = vrot.lane.b32.xlu0 %v11517_v40, %s9953_s29 }
 0x78c   :  { %2897 = vrot.lane.b32.xlu1 %v11521_v45, %s9951_s30  ;;  %2913 = vrot.lane.b32.xlu0 %v11515_v13, %s9951_s30 }
 0x790   :  { %2915 = vrot.lane.b32.xlu1 %v11519_v38, %s9951_s30  ;;  %2917 = vrot.lane.b32.xlu0 %v11517_v40, %s9951_s30 }
 0x794   :  { %2985 = vrot.lane.b32.xlu1 %v11521_v45, %s9954_s23  ;;  %3001 = vrot.lane.b32.xlu0 %v11515_v13, %s9954_s23 }
 0x798   :  { %3003 = vrot.lane.b32.xlu1 %v11519_v38, %s9954_s23  ;;  %3005 = vrot.lane.b32.xlu0 %v11517_v40, %s9954_s23 }
 0x79c   :  { %3073 = vrot.lane.b32.xlu1 %v11521_v45, %s9955_s19  ;;  %3089 = vrot.lane.b32.xlu0 %v11515_v13, %s9955_s19 }
 0x7a0   :  { %3091 = vrot.lane.b32.xlu1 %v11519_v38, %s9955_s19  ;;  %3093 = vrot.lane.b32.xlu0 %v11517_v40, %s9955_s19 }
 0x7a4   :  { %2799 = vrot.lane.b32.xlu1 %v11537_v46, %s9953_s29  ;;  %2831 = vrot.lane.b32.xlu0 %v11531_v61, %s9953_s29 }
 0x7a8   :  { %2833 = vrot.lane.b32.xlu1 %v11535_v32, %s9953_s29  ;;  %2835 = vrot.lane.b32.xlu0 %v11533_v23, %s9953_s29 }
 0x7ac   :  { %3165 = vrot.lane.b32.xlu1 %v11499_v39, %s9956_s1  ;;  %2919 = vrot.lane.b32.xlu0 %v11531_v61, %s9951_s30 }
 0x7ae   :  { %v11631_v44 = vpop.permute.xlu1 %3157  ;;  %v2814_v12 = vpop.permute.xlu0 %2813 }
 0x7af   :  { %14316 = vst [vmem:[#allocation55_spill] sm:$0xff] %v11631_v44 }
 0x7b0   :  { %3169 = vrot.lane.b32.xlu1 %v11501_v31, %s9956_s1  ;;  %2923 = vrot.lane.b32.xlu0 %v11533_v23, %s9951_s30 }
 0x7b2   :  { %v11637_v41 = vpop.permute.xlu1 %3161  ;;  %v2818_v17 = vpop.permute.xlu0 %2817 }
 0x7b3   :  { %14317 = vst [vmem:[#allocation56_spill] sm:$0xff] %v11637_v41 }
 0x7b4   :  { %2899 = vrot.lane.b32.xlu1 %v11537_v46, %s9951_s30  ;;  %3007 = vrot.lane.b32.xlu0 %v11531_v61, %s9954_s23 }
 0x7b6   :  { %v2794_v10 = vpop.permute.xlu1 %2793  ;;  %v11643_v60 = vpop.permute.xlu0 %2901 }
 0x7b7   :  { %v2839_v42 = vsel %vm145_vm1, %v2818_v17, %v2794_v10  ;;  %v2863_v18 = vsel %vm145_vm1, %v2794_v10, %v2814_v12 }
 0x7b8   :  { %2921 = vrot.lane.b32.xlu1 %v11535_v32, %s9951_s30  ;;  %3011 = vrot.lane.b32.xlu0 %v11533_v23, %s9954_s23  ;;  %v2880_v4 = vmul.bf16 %v2839_v42, %v14318_v8  ;;  %v2877_v11 = vmul.bf16 %v2863_v18, %v10203_v26 }
 0x7ba   :  { %v2816_v49 = vpop.permute.xlu1 %2815  ;;  %3905 = vmatprep.subr.bf16.mxu1 %v2880_v4  ;;  %v11652_v0 = vpop.permute.xlu0 %2905 }
 0x7bb   :  { %v2837_v47 = vsel %vm145_vm1, %v2814_v12, %v2816_v49  ;;  %v2838_v36 = vsel %vm145_vm1, %v2816_v49, %v2818_v17 }
 0x7bc   :  { %v2879_v59 = vmul.bf16 %v2838_v36, %v10209_v28  ;;  %3173 = vrot.lane.b32.xlu1 %v11515_v13, %s9956_s1  ;;  %3095 = vrot.lane.b32.xlu0 %v11531_v61, %s9955_s19  ;;  %v2878_v48 = vmul.bf16 %v2837_v47, %v10200_v25 }
 0x7be   :  { %v11663_v10 = vpop.permute.xlu1 %2893  ;;  %3686 = vmatprep.subr.bf16.mxu0 %v2878_v48  ;;  %3906 = vmatpush1.bf16.msra.mxu1 %v2879_v59  ;;  %v11665_v42 = vpop.permute.xlu0 %2989 }
 0x7bf   :  { %3687 = vmatpush1.bf16.msra.mxu0 %v2877_v11 }
 0x7c0   :  { %3177 = vrot.lane.b32.xlu1 %v11517_v40, %s9956_s1  ;;  %3099 = vrot.lane.b32.xlu0 %v11533_v23, %s9955_s19 }
 0x7c2   :  { %v11671_v12 = vpop.permute.xlu1 %2903  ;;  %v11673_v17 = vpop.permute.xlu0 %2993 }
 0x7c4   :  { %2987 = vrot.lane.b32.xlu1 %v11537_v46, %s9954_s23  ;;  %3167 = vrot.lane.b32.xlu0 %v11503_v62, %s9956_s1 }
 0x7c6   :  { %v11679_v4 = vpop.permute.xlu1 %2981  ;;  %v11681_v18 = vpop.permute.xlu0 %3077 }
 0x7c7   :  { %14319 = vst [vmem:[#allocation13_spill] sm:$0xff] %v11681_v18 }
 0x7c8   :  { %3009 = vrot.lane.b32.xlu1 %v11535_v32, %s9954_s23  ;;  %3171 = vrot.lane.b32.xlu0 %v11505_v43, %s9956_s1 }
 0x7ca   :  { %v11687_v49 = vpop.permute.xlu1 %2991  ;;  %v11689_v47 = vpop.permute.xlu0 %3081 }
 0x7cb   :  { %14320 = vst [vmem:[#allocation57_spill] sm:$0xff] %v11689_v47 }
 0x7cc   :  { %3181 = vrot.lane.b32.xlu1 %v11531_v61, %s9956_s1  ;;  %3175 = vrot.lane.b32.xlu0 %v11519_v38, %s9956_s1 }
 0x7ce   :  { %v11695_v36 = vpop.permute.xlu1 %3069  ;;  %v11697_v59 = vpop.permute.xlu0 %3159 }
 0x7cf   :  { %14321 = vst [vmem:[#allocation58_spill] sm:$0xff] %v11695_v36  ;;  %14322 = vst [vmem:[#allocation59_spill] sm:$0xff] %v11697_v59 }
 0x7d0   :  { %3185 = vrot.lane.b32.xlu1 %v11533_v23, %s9956_s1  ;;  %3179 = vrot.lane.b32.xlu0 %v11521_v45, %s9956_s1 }
 0x7d2   :  { %v11703_v48 = vpop.permute.xlu1 %3079  ;;  %v11705_v11 = vpop.permute.xlu0 %3163 }
 0x7d3   :  { %14323 = vst [vmem:[#allocation60_spill] sm:$0xff] %v11703_v48  ;;  %14324 = vst [vmem:[#allocation61_spill] sm:$0xff] %v11705_v11 }
 0x7d4   :  { %3075 = vrot.lane.b32.xlu1 %v11537_v46, %s9955_s19  ;;  %3247 = vrot.lane.b32.xlu0 %v11487_v52, %s9957_s20 }
 0x7d6   :  { %v2796_v24 = vpop.permute.xlu1 %2795  ;;  %v2820_v7 = vpop.permute.xlu0 %2819 }
 0x7d7   :  { %v2867_v15 = vsel %vm145_vm1, %v2796_v24, %v2820_v7 }
 0x7d8   :  { %3097 = vrot.lane.b32.xlu1 %v11535_v32, %s9955_s19  ;;  %3251 = vrot.lane.b32.xlu0 %v11489_v2, %s9957_s20  ;;  %v2881_v3 = vmul.bf16 %v2867_v15, %v10203_v26 }
 0x7da   :  { %v2822_v6 = vpop.permute.xlu1 %2821  ;;  %v2824_v16 = vpop.permute.xlu0 %2823 }
 0x7db   :  { %v2840_v29 = vsel %vm145_vm1, %v2820_v7, %v2822_v6  ;;  %v2841_v14 = vsel %vm145_vm1, %v2822_v6, %v2824_v16  ;;  %v2842_v5 = vsel %vm145_vm1, %v2824_v16, %v2796_v24 }
 0x7dc   :  { %v2883_v63 = vmul.bf16 %v2841_v14, %v10209_v28  ;;  %3245 = vrot.lane.b32.xlu1 %v11483_v9, %s9957_s20  ;;  %3255 = vrot.lane.b32.xlu0 %v11503_v62, %s9957_s20  ;;  %v2882_v37 = vmul.bf16 %v2840_v29, %v10200_v25  ;;  %v2884_v27 = vmul.bf16 %v2842_v5, %v14318_v8 }
 0x7de   :  { %v11730_v35 = vpop.permute.xlu1 %2895  ;;  %3688 = vmatprep.subr.bf16.mxu0 %v2882_v37  ;;  %3907 = vmatprep.subr.bf16.mxu1 %v2884_v27  ;;  %v11732_v6 = vpop.permute.xlu0 %2907 }
 0x7df   :  { %3689 = vmatpush1.bf16.msra.mxu0 %v2881_v3  ;;  %3908 = vmatpush1.bf16.msra.mxu1 %v2883_v63 }
 0x7e0   :  { %3249 = vrot.lane.b32.xlu1 %v11485_v1, %s9957_s20  ;;  %3259 = vrot.lane.b32.xlu0 %v11505_v43, %s9957_s20 }
 0x7e2   :  { %v11738_v14 = vpop.permute.xlu1 %2909  ;;  %v11740_v29 = vpop.permute.xlu0 %2911 }
 0x7e4   :  { %3253 = vrot.lane.b32.xlu1 %v11499_v39, %s9957_s20  ;;  %3263 = vrot.lane.b32.xlu0 %v11519_v38, %s9957_s20 }
 0x7e6   :  { %v11746_v27 = vpop.permute.xlu1 %2983  ;;  %v11748_v3 = vpop.permute.xlu0 %2995 }
 0x7e8   :  { %3257 = vrot.lane.b32.xlu1 %v11501_v31, %s9957_s20  ;;  %3267 = vrot.lane.b32.xlu0 %v11521_v45, %s9957_s20 }
 0x7ea   :  { %v11754_v37 = vpop.permute.xlu1 %2997  ;;  %v11756_v5 = vpop.permute.xlu0 %2999 }
 0x7ec   :  { %3261 = vrot.lane.b32.xlu1 %v11515_v13, %s9957_s20  ;;  %3335 = vrot.lane.b32.xlu0 %v11487_v52, %s9958_s21 }
 0x7ee   :  { %v11762_v16 = vpop.permute.xlu1 %3071  ;;  %v11764_v15 = vpop.permute.xlu0 %3083 }
 0x7ef   :  { %14325 = vst [vmem:[#allocation62_spill] sm:$0xff] %v11762_v16  ;;  %14326 = vst [vmem:[#allocation63_spill] sm:$0xff] %v11764_v15 }
 0x7f0   :  { %3265 = vrot.lane.b32.xlu1 %v11517_v40, %s9957_s20  ;;  %3339 = vrot.lane.b32.xlu0 %v11489_v2, %s9958_s21 }
 0x7f2   :  { %v11770_v7 = vpop.permute.xlu1 %3085  ;;  %v11772_v24 = vpop.permute.xlu0 %3087 }
 0x7f3   :  { %14327 = vst [vmem:[#allocation64_spill] sm:$0xff] %v11770_v7  ;;  %14328 = vst [vmem:[#allocation65_spill] sm:$0xff] %v11772_v24  ;;  %v2925_v7 = vsel %vm209_vm0, %v11643_v60, %v11671_v12 }
 0x7f4   :  { %3269 = vrot.lane.b32.xlu1 %v11531_v61, %s9957_s20  ;;  %3183 = vrot.lane.b32.xlu0 %v11535_v32, %s9956_s1 }
 0x7f6   :  { %v2798_v63 = vpop.permute.xlu1 %2797  ;;  %v2826_v34 = vpop.permute.xlu0 %2825 }
 0x7f7   :  { %v2871_v33 = vsel %vm145_vm1, %v2798_v63, %v2826_v34 }
 0x7f8   :  { %3273 = vrot.lane.b32.xlu1 %v11533_v23, %s9957_s20  ;;  %3187 = vrot.lane.b32.xlu0 %v11537_v46, %s9956_s1  ;;  %v2885_v57 = vmul.bf16 %v2871_v33, %v10203_v26 }
 0x7fa   :  { %v2828_v30 = vpop.permute.xlu1 %2827  ;;  %v2830_v11 = vpop.permute.xlu0 %2829 }
 0x7fb   :  { %v2843_v44 = vsel %vm145_vm1, %v2826_v34, %v2828_v30  ;;  %v2844_v59 = vsel %vm145_vm1, %v2828_v30, %v2830_v11  ;;  %v2845_v41 = vsel %vm145_vm1, %v2830_v11, %v2798_v63 }
 0x7fc   :  { %v2887_v58 = vmul.bf16 %v2844_v59, %v10209_v28  ;;  %3333 = vrot.lane.b32.xlu1 %v11483_v9, %s9958_s21  ;;  %3343 = vrot.lane.b32.xlu0 %v11503_v62, %s9958_s21  ;;  %v2886_v24 = vmul.bf16 %v2843_v44, %v10200_v25  ;;  %v2888_v16 = vmul.bf16 %v2845_v41, %v14318_v8 }
 0x7fe   :  { %v11794_v56 = vpop.permute.xlu1 %2897  ;;  %3690 = vmatprep.subr.bf16.mxu0 %v2886_v24  ;;  %3909 = vmatprep.subr.bf16.mxu1 %v2888_v16  ;;  %v11796_v30 = vpop.permute.xlu0 %2913 }
 0x7ff   :  { %3691 = vmatpush1.bf16.msra.mxu0 %v2885_v57  ;;  %3910 = vmatpush1.bf16.msra.mxu1 %v2887_v58 }
 0x800   :  { %3337 = vrot.lane.b32.xlu1 %v11485_v1, %s9958_s21  ;;  %3347 = vrot.lane.b32.xlu0 %v11505_v43, %s9958_s21 }
 0x802   :  { %v11802_v34 = vpop.permute.xlu1 %2915  ;;  %v11804_v44 = vpop.permute.xlu0 %2917 }
 0x804   :  { %3341 = vrot.lane.b32.xlu1 %v11499_v39, %s9958_s21  ;;  %3271 = vrot.lane.b32.xlu0 %v11535_v32, %s9957_s20 }
 0x806   :  { %v11810_v33 = vpop.permute.xlu1 %2985  ;;  %v11812_v57 = vpop.permute.xlu0 %3001 }
 0x808   :  { %3345 = vrot.lane.b32.xlu1 %v11501_v31, %s9958_s21  ;;  %3275 = vrot.lane.b32.xlu0 %v11537_v46, %s9957_s20 }
 0x80a   :  { %v11818_v58 = vpop.permute.xlu1 %3003  ;;  %v11820_v41 = vpop.permute.xlu0 %3005 }
 0x80c   :  { %3349 = vrot.lane.b32.xlu1 %v11515_v13, %s9958_s21  ;;  %3351 = vrot.lane.b32.xlu0 %v11519_v38, %s9958_s21 }
 0x80e   :  { %v11826_v59 = vpop.permute.xlu1 %3073  ;;  %v11828_v11 = vpop.permute.xlu0 %3089 }
 0x80f   :  { %14329 = vst [vmem:[#allocation66_spill] sm:$0xff] %v11826_v59  ;;  %14330 = vst [vmem:[#allocation67_spill] sm:$0xff] %v11828_v11  ;;  %v2927_v11 = vsel %vm209_vm0, %v11652_v0, %v11663_v10 }
 0x810   :  { %3353 = vrot.lane.b32.xlu1 %v11517_v40, %s9958_s21  ;;  %3355 = vrot.lane.b32.xlu0 %v11521_v45, %s9958_s21 }
 0x812   :  { %v11834_v16 = vpop.permute.xlu1 %3091  ;;  %v11836_v24 = vpop.permute.xlu0 %3093 }
 0x813   :  { %14331 = vst [vmem:[#allocation68_spill] sm:$0xff] %v11834_v16  ;;  %14332 = vst [vmem:[#allocation69_spill] sm:$0xff] %v11836_v24 }
 0x814   :  { %3357 = vrot.lane.b32.xlu1 %v11531_v61, %s9958_s21  ;;  %3359 = vrot.lane.b32.xlu0 %v11535_v32, %s9958_s21 }
 0x816   :  { %v2800_v63 = vpop.permute.xlu1 %2799  ;;  %v2832_v59 = vpop.permute.xlu0 %2831 }
 0x817   :  { %v2875_v24 = vsel %vm145_vm1, %v2800_v63, %v2832_v59 }
 0x818   :  { %3361 = vrot.lane.b32.xlu1 %v11533_v23, %s9958_s21  ;;  %3363 = vrot.lane.b32.xlu0 %v11537_v46, %s9958_s21  ;;  %v2889_v23 = vmul.bf16 %v2875_v24, %v10203_v26  ;;  %v2928_v26 = vsel %vm209_vm0, %v11732_v6, %v11738_v14 }
 0x81a   :  { %v2834_v16 = vpop.permute.xlu1 %2833  ;;  %v2836_v15 = vpop.permute.xlu0 %2835 }
 0x81b   :  { %v2846_v50 = vsel %vm145_vm1, %v2832_v59, %v2834_v16  ;;  %v2847_v47 = vsel %vm145_vm1, %v2834_v16, %v2836_v15  ;;  %v2848_v36 = vsel %vm145_vm1, %v2836_v15, %v2800_v63  ;;  %v2951_v59 = vsel %vm209_vm0, %v11663_v10, %v11643_v60 }
 0x81c   :  { %v2891_v18 = vmul.bf16 %v2847_v47, %v10209_v28  ;;  %3421 = vrot.lane.b32.xlu1 %v11483_v9, %s9959_s26  ;;  %3423 = vrot.lane.b32.xlu0 %v11487_v52, %s9959_s26  ;;  %v2890_v48 = vmul.bf16 %v2846_v50, %v10200_v25  ;;  %v2892_v46 = vmul.bf16 %v2848_v36, %v14318_v8 }
 0x81d   :  { %v2926_v28 = vsel %vm209_vm0, %v11671_v12, %v11652_v0  ;;  %v2966_v25 = vmul.bf16 %v2925_v7, %v10220_v51  ;;  %v2968_v50 = vmul.bf16 %v2927_v11, %v10223_v53  ;;  %v2930_v60 = vsel %vm209_vm0, %v11740_v29, %v11730_v35 }
 0x81e   :  { %v11870_v47 = vpop.permute.xlu1 %3165  ;;  %3692 = vmatprep.subr.bf16.mxu0 %v2890_v48  ;;  %3911 = vmatprep.subr.bf16.mxu1 %v2892_v46  ;;  %v2920_v15 = vpop.permute.xlu0 %2919  ;;  %v2967_v46 = vmul.bf16 %v2926_v28, %v10229_v55  ;;  %v2955_v8 = vsel %vm209_vm0, %v11730_v35, %v11732_v6  ;;  %v2929_v0 = vsel %vm209_vm0, %v11738_v14, %v11740_v29 }
 0x81f   :  { %3693 = vmatpush1.bf16.msra.mxu0 %v2889_v23  ;;  %3912 = vmatpush1.bf16.msra.mxu1 %v2891_v18  ;;  %v2965_v23 = vmul.bf16 %v2951_v59, %v10226_v54  ;;  %v2970_v18 = vmul.bf16 %v2928_v26, %v10220_v51  ;;  %v2972_v36 = vmul.bf16 %v2930_v60, %v10223_v53 }
 0x820   :  { %3425 = vrot.lane.b32.xlu1 %v11485_v1, %s9959_s26  ;;  %3427 = vrot.lane.b32.xlu0 %v11489_v2, %s9959_s26  ;;  %v2931_v48 = vsel %vm209_vm0, %v11796_v30, %v11802_v34  ;;  %v2933_v35 = vsel %vm209_vm0, %v11804_v44, %v11794_v56  ;;  %v2969_v6 = vmul.bf16 %v2955_v8, %v10226_v54 }
 0x821   :  { %3694 = vmatprep.subr.bf16.mxu0 %v2966_v25  ;;  %3913 = vmatprep.subr.bf16.mxu1 %v2968_v50  ;;  %v2971_v14 = vmul.bf16 %v2929_v0, %v10229_v55  ;;  %v2959_v29 = vsel %vm209_vm0, %v11794_v56, %v11796_v30  ;;  %v2932_v7 = vsel %vm209_vm0, %v11802_v34, %v11804_v44 }
 0x822   :  { %v11892_v10 = vpop.permute.xlu1 %3169  ;;  %v2924_v12 = vpop.permute.xlu0 %2923  ;;  %v2974_v24 = vmul.bf16 %v2931_v48, %v10220_v51  ;;  %v2976_v63 = vmul.bf16 %v2933_v35, %v10223_v53  ;;  %v2973_v56 = vmul.bf16 %v2959_v29, %v10226_v54  ;;  %v2975_v30 = vmul.bf16 %v2932_v7, %v10229_v55 }
 0x823   :  { %3695 = vmatpush1.bf16.msra.mxu0 %v2965_v23  ;;  %3914 = vmatpush1.bf16.msra.mxu1 %v2967_v46  ;;  %v3015_v34 = vsel %vm261_vm2, %v11673_v17, %v11679_v4  ;;  %v3013_v23 = vsel %vm261_vm2, %v11665_v42, %v11687_v49  ;;  %v3014_v0 = vsel %vm261_vm2, %v11687_v49, %v11673_v17 }
 0x824   :  { %3429 = vrot.lane.b32.xlu1 %v11499_v39, %s9959_s26  ;;  %3431 = vrot.lane.b32.xlu0 %v11503_v62, %s9959_s26  ;;  %v3043_v49 = vsel %vm261_vm2, %v11746_v27, %v11748_v3  ;;  %v3017_v35 = vsel %vm261_vm2, %v11754_v37, %v11756_v5  ;;  %v3019_v29 = vsel %vm261_vm2, %v11812_v57, %v11818_v58 }
 0x825   :  { %3696 = vmatprep.subr.bf16.mxu0 %v2970_v18  ;;  %3915 = vmatprep.subr.bf16.mxu1 %v2972_v36  ;;  %v3016_v18 = vsel %vm261_vm2, %v11748_v3, %v11754_v37  ;;  %v3021_v3 = vsel %vm261_vm2, %v11820_v41, %v11810_v33  ;;  %v3059_v37 = vmul.bf16 %v3017_v35, %v10252_v22  ;;  %v14341_v35 = vld [vmem:[#allocation63_spill] sm:$0xff] }
 0x826   :  { %v2900_v11 = vpop.permute.xlu1 %2899  ;;  %v11914_v16 = vpop.permute.xlu0 %3007 }
 0x827   :  { %3697 = vmatpush1.bf16.msra.mxu0 %v2969_v6  ;;  %3916 = vmatpush1.bf16.msra.mxu1 %v2971_v14  ;;  %v2936_v59 = vsel %vm209_vm0, %v2924_v12, %v2900_v11  ;;  %v2963_v44 = vsel %vm209_vm0, %v2900_v11, %v2920_v15  ;;  %v3058_v6 = vmul.bf16 %v3016_v18, %v10243_v19 }
 0x828   :  { %3433 = vrot.lane.b32.xlu1 %v11501_v31, %s9959_s26  ;;  %3435 = vrot.lane.b32.xlu0 %v11505_v43, %s9959_s26  ;;  %v2980_v60 = vmul.bf16 %v2936_v59, %v10223_v53  ;;  %v2977_v8 = vmul.bf16 %v2963_v44, %v10226_v54  ;;  %v3039_v53 = vsel %vm261_vm2, %v11679_v4, %v11665_v42 }
 0x829   :  { %3698 = vmatprep.subr.bf16.mxu0 %v2974_v24  ;;  %3917 = vmatprep.subr.bf16.mxu1 %v2976_v63  ;;  %v3056_v54 = vmul.bf16 %v3015_v34, %v10246_v20  ;;  %v3018_v42 = vsel %vm261_vm2, %v11756_v5, %v11746_v27  ;;  %v3053_v17 = vmul.bf16 %v3039_v53, %v10249_v21 }
 0x82a   :  { %v2922_v28 = vpop.permute.xlu1 %2921  ;;  %v11929_v25 = vpop.permute.xlu0 %3011  ;;  %v3055_v4 = vmul.bf16 %v3014_v0, %v10252_v22  ;;  %v3060_v14 = vmul.bf16 %v3018_v42, %v10246_v20  ;;  %v3057_v27 = vmul.bf16 %v3043_v49, %v10249_v21  ;;  %v3047_v5 = vsel %vm261_vm2, %v11810_v33, %v11812_v57  ;;  %v14334_v57 = vld [vmem:[#allocation54_spill] sm:$0xff]  ;;  %v8130_v42 = vld [vmem:[%s14227_s28 + $0x298] sm:$0xff] }
 0x82b   :  { %v2934_v50 = vsel %vm209_vm0, %v2920_v15, %v2922_v28  ;;  %v2935_v26 = vsel %vm209_vm0, %v2922_v28, %v2924_v12  ;;  %3699 = vmatpush1.bf16.msra.mxu0 %v2973_v56  ;;  %3918 = vmatpush1.bf16.msra.mxu1 %v2975_v30  ;;  %v3020_v24 = vsel %vm261_vm2, %v11818_v58, %v11820_v41  ;;  %v14333_v56 = vld [vmem:[#allocation53_spill] sm:$0xff]  ;;  %v14340_v49 = vld [vmem:[#allocation64_spill] sm:$0xff] }
 0x82c   :  { %v2979_v46 = vmul.bf16 %v2935_v26, %v10229_v55  ;;  %3437 = vrot.lane.b32.xlu1 %v11515_v13, %s9959_s26  ;;  %3439 = vrot.lane.b32.xlu0 %v11519_v38, %s9959_s26  ;;  %v2978_v15 = vmul.bf16 %v2934_v50, %v10220_v51  ;;  %v3054_v51 = vmul.bf16 %v3013_v23, %v10243_v19  ;;  %v8127_v58 = vld [vmem:[%s14227_s28 + $0x280] sm:$0xff]  ;;  %v8128_v50 = vld [vmem:[%s14227_s28 + $0x288] sm:$0xff] }
 0x82d   :  { %3919 = vmatprep.subr.bf16.mxu1 %v2980_v60  ;;  %v3062_v63 = vmul.bf16 %v3019_v29, %v10243_v19  ;;  %v3064_v30 = vmul.bf16 %v3021_v3, %v10246_v20  ;;  %v3061_v33 = vmul.bf16 %v3047_v5, %v10249_v21  ;;  %v3063_v41 = vmul.bf16 %v3020_v24, %v10252_v22  ;;  %v14345_v5 = vld [vmem:[#allocation65_spill] sm:$0xff] }
 0x82e   :  { %v11950_v55 = vpop.permute.xlu1 %3173  ;;  %3700 = vmatprep.subr.bf16.mxu0 %v2978_v15  ;;  %v11952_v12 = vpop.permute.xlu0 %3095  ;;  %v14336_v15 = vld [vmem:[#allocation13_spill] sm:$0xff] }
 0x82f   :  { %3701 = vmatpush1.bf16.msra.mxu0 %v2977_v8  ;;  %3920 = vmatpush1.bf16.msra.mxu1 %v2979_v46  ;;  %v14335_v46 = vld [vmem:[#allocation60_spill] sm:$0xff]  ;;  %v8131_v24 = vld [vmem:[%s14227_s28 + $0x2a0] sm:$0xff] }
 0x830   :  { %3441 = vrot.lane.b32.xlu1 %v11517_v40, %s9959_s26  ;;  %3443 = vrot.lane.b32.xlu0 %v11521_v45, %s9959_s26  ;;  %v3101_v8 = vsel %vm325_vm3, %v14336_v15, %v14335_v46 }
 0x831   :  { %3702 = vmatprep.subr.bf16.mxu0 %v3054_v51  ;;  %3921 = vmatprep.subr.bf16.mxu1 %v3056_v54  ;;  %v14337_v51 = vld [vmem:[#allocation58_spill] sm:$0xff]  ;;  %v14338_v54 = vld [vmem:[#allocation57_spill] sm:$0xff] }
 0x832   :  { %v11971_v36 = vpop.permute.xlu1 %3177  ;;  %v11973_v48 = vpop.permute.xlu0 %3099 }
 0x833   :  { %3703 = vmatpush1.bf16.msra.mxu0 %v3053_v17  ;;  %3922 = vmatpush1.bf16.msra.mxu1 %v3055_v4  ;;  %v14339_v17 = vld [vmem:[#allocation15_spill] sm:$0xff] }
 0x834   :  { %3445 = vrot.lane.b32.xlu1 %v11531_v61, %s9959_s26  ;;  %3447 = vrot.lane.b32.xlu0 %v11535_v32, %s9959_s26  ;;  %v3142_v4 = vmul.bf16 %v3101_v8, %v14339_v17  ;;  %v14350_v8 = vld [vmem:[#allocation69_spill] sm:$0xff] }
 0x835   :  { %3704 = vmatprep.subr.bf16.mxu0 %v3058_v6  ;;  %3923 = vmatprep.subr.bf16.mxu1 %v3060_v14  ;;  %v3104_v6 = vsel %vm325_vm3, %v14341_v35, %v14340_v49  ;;  %v14342_v14 = vld [vmem:[#allocation16_spill] sm:$0xff] }
 0x836   :  { %v2988_v7 = vpop.permute.xlu1 %2987  ;;  %v11995_v11 = vpop.permute.xlu0 %3167 }
 0x837   :  { %3705 = vmatpush1.bf16.msra.mxu0 %v3057_v27  ;;  %v3024_v59 = vsel %vm261_vm2, %v11929_v25, %v2988_v7  ;;  %3924 = vmatpush1.bf16.msra.mxu1 %v3059_v37  ;;  %v3051_v34 = vsel %vm261_vm2, %v2988_v7, %v11914_v16  ;;  %v14343_v27 = vld [vmem:[#allocation17_spill] sm:$0xff]  ;;  %v14344_v37 = vld [vmem:[#allocation62_spill] sm:$0xff] }
 0x838   :  { %3449 = vrot.lane.b32.xlu1 %v14333_v56, %s9959_s26  ;;  %3451 = vrot.lane.b32.xlu0 %v14334_v57, %s9959_s26  ;;  %v3068_v23 = vmul.bf16 %v3024_v59, %v10246_v20  ;;  %v3065_v18 = vmul.bf16 %v3051_v34, %v10249_v21  ;;  %v8129_v20 = vld [vmem:[%s14227_s28 + $0x290] sm:$0xff]  ;;  %v3102_v21 = vsel %vm325_vm3, %v14335_v46, %v14338_v54  ;;  %s14372_s26 = sld [smem:[#allocation72_spill]] }
 0x839   :  { %3706 = vmatprep.subr.bf16.mxu0 %v3062_v63  ;;  %3925 = vmatprep.subr.bf16.mxu1 %v3064_v30  ;;  %v3106_v7 = vsel %vm325_vm3, %v14345_v5, %v14344_v37  ;;  %v14346_v63 = vld [vmem:[#allocation18_spill] sm:$0xff]  ;;  %v3131_v30 = vsel %vm325_vm3, %v14344_v37, %v14341_v35  ;;  %v3105_v34 = vsel %vm325_vm3, %v14340_v49, %v14345_v5  ;;  %v8195_v35 = vld [vmem:[%s14227_s28 + $0x300] sm:$0xff] }
 0x83a   :  { %v3010_v44 = vpop.permute.xlu1 %3009  ;;  %v12015_v28 = vpop.permute.xlu0 %3171  ;;  %v3143_v59 = vmul.bf16 %v3102_v21, %v14346_v63  ;;  %v3145_v46 = vmul.bf16 %v3131_v30, %v14343_v27  ;;  %v8196_v5 = vld [vmem:[%s14227_s28 + $0x308] sm:$0xff] }
 0x83b   :  { %v3022_v26 = vsel %vm261_vm2, %v11914_v16, %v3010_v44  ;;  %v3023_v60 = vsel %vm261_vm2, %v3010_v44, %v11929_v25  ;;  %3707 = vmatpush1.bf16.msra.mxu0 %v3061_v33  ;;  %3926 = vmatpush1.bf16.msra.mxu1 %v3063_v41  ;;  %v3103_v16 = vsel %vm325_vm3, %v14338_v54, %v14337_v51  ;;  %v8132_v41 = vld [vmem:[%s14227_s28 + $0x2a8] sm:$0xff] }
 0x83c   :  { %v3067_v53 = vmul.bf16 %v3023_v60, %v10252_v22  ;;  %3535 = vperm.xlu1 %9536, %v8127_v58   ;;  %v3066_v0 = vmul.bf16 %v3022_v26, %v10243_v19  ;;  %3540 = vperm.xlu0 %9535, %v8128_v50   ;;  %v3127_v22 = vsel %vm325_vm3, %v14337_v51, %v14336_v15  ;;  %v14347_v50 = vld [vmem:[#allocation68_spill] sm:$0xff]  ;;  %v14348_v26 = vld [vmem:[#allocation67_spill] sm:$0xff]  ;;  %v14349_v15 = vld [vmem:[#allocation66_spill] sm:$0xff] }
 0x83d   :  { %3927 = vmatprep.subr.bf16.mxu1 %v3068_v23  ;;  %v3144_v29 = vmul.bf16 %v3103_v16, %v14342_v14  ;;  %v3141_v3 = vmul.bf16 %v3127_v22, %v14343_v27  ;;  %v3146_v44 = vmul.bf16 %v3104_v6, %v14339_v17  ;;  %v3107_v60 = vsel %vm325_vm3, %v14348_v26, %v14347_v50 }
 0x83e   :  { %v12040_v25 = vpop.permute.xlu1 %3181  ;;  %3708 = vmatprep.subr.bf16.mxu0 %v3066_v0  ;;  %v12042_v19 = vpop.permute.xlu0 %3175  ;;  %v3148_v23 = vmul.bf16 %v3106_v7, %v14342_v14  ;;  %v8133_v0 = vld [vmem:[%s14227_s28 + $0x2b0] sm:$0xff]  ;;  %v3147_v51 = vmul.bf16 %v3105_v34, %v14346_v63  ;;  %v3135_v54 = vsel %vm325_vm3, %v14349_v15, %v14348_v26  ;;  %v3108_v22 = vsel %vm325_vm3, %v14347_v50, %v14350_v8  ;;  %v8200_v26 = vld [vmem:[%s14227_s28 + $0x328] sm:$0xff] }
 0x83f   :  { %3709 = vmatpush1.bf16.msra.mxu0 %v3065_v18  ;;  %3928 = vmatpush1.bf16.msra.mxu1 %v3067_v53  ;;  %v3109_v53 = vsel %vm325_vm3, %v14350_v8, %v14349_v15  ;;  %v3149_v49 = vmul.bf16 %v3135_v54, %v14343_v27  ;;  %v3151_v6 = vmul.bf16 %v3108_v22, %v14346_v63  ;;  %v14351_v15 = vld [vmem:[#allocation56_spill] sm:$0xff] }
 0x840   :  { %3545 = vperm.xlu1 %9536, %v8129_v20   ;;  %3550 = vperm.xlu0 %9535, %v8130_v42   ;;  %v8134_v20 = vld [vmem:[%s14227_s28 + $0x2b8] sm:$0xff]  ;;  %v3150_v42 = vmul.bf16 %v3107_v60, %v14339_v17  ;;  %v9601_v60 = vld [vmem:[%s14089_s8 + $0x2c] ss:$20 sps:$4 sm:$0xff]   ;;  %v3219_v22 = vsel %vm377_vm4, %v12015_v28, %v11870_v47 }
 0x841   :  { %3710 = vmatprep.subr.bf16.mxu0 %v3142_v4  ;;  %3929 = vmatprep.subr.bf16.mxu1 %v3144_v29  ;;  %v3152_v4 = vmul.bf16 %v3109_v53, %v14342_v14 }
 0x842   :  { %v12066_v33 = vpop.permute.xlu1 %3185  ;;  %v12068_v58 = vpop.permute.xlu0 %3179 }
 0x843   :  { %3711 = vmatpush1.bf16.msra.mxu0 %v3141_v3  ;;  %3930 = vmatpush1.bf16.msra.mxu1 %v3143_v59 }
 0x844   :  { %3555 = vperm.xlu1 %9536, %v8131_v24   ;;  %3560 = vperm.xlu0 %9535, %v8132_v41  }
 0x845   :  { %3712 = vmatprep.subr.bf16.mxu0 %v3146_v44  ;;  %3931 = vmatprep.subr.bf16.mxu1 %v3148_v23 }
 0x846   :  { %v3076_v16 = vpop.permute.xlu1 %3075  ;;  %v12092_v18 = vpop.permute.xlu0 %3247 }
 0x847   :  { %3713 = vmatpush1.bf16.msra.mxu0 %v3145_v46  ;;  %v3112_v21 = vsel %vm325_vm3, %v11973_v48, %v3076_v16  ;;  %3932 = vmatpush1.bf16.msra.mxu1 %v3147_v51  ;;  %v3139_v29 = vsel %vm325_vm3, %v3076_v16, %v11952_v12  ;;  %v14356_v16 = vld [vmem:[#allocation21_spill] sm:$0xff] }
 0x848   :  { %3565 = vperm.xlu1 %9536, %v8133_v0   ;;  %3570 = vperm.xlu0 %9535, %v8134_v20   ;;  %v3156_v59 = vmul.bf16 %v3112_v21, %v14342_v14  ;;  %v3153_v34 = vmul.bf16 %v3139_v29, %v14343_v27  ;;  %v8198_v14 = vld [vmem:[%s14227_s28 + $0x318] sm:$0xff]  ;;  %v8199_v27 = vld [vmem:[%s14227_s28 + $0x320] sm:$0xff] }
 0x849   :  { %3714 = vmatprep.subr.bf16.mxu0 %v3150_v42  ;;  %3933 = vmatprep.subr.bf16.mxu1 %v3152_v4  ;;  %v14357_v42 = vld [vmem:[#allocation22_spill] sm:$0xff]  ;;  %v9607_v4 = vld [vmem:[%s14089_s8 + $0x7c] ss:$20 sps:$4 sm:$0xff]  }
 0x84a   :  { %v3098_v3 = vpop.permute.xlu1 %3097  ;;  %v12111_v37 = vpop.permute.xlu0 %3251 }
 0x84b   :  { %v3110_v7 = vsel %vm325_vm3, %v11952_v12, %v3098_v3  ;;  %v3111_v24 = vsel %vm325_vm3, %v3098_v3, %v11973_v48  ;;  %3715 = vmatpush1.bf16.msra.mxu0 %v3149_v49  ;;  %3934 = vmatpush1.bf16.msra.mxu1 %v3151_v6  ;;  %v8197_v12 = vld [vmem:[%s14227_s28 + $0x310] sm:$0xff]  ;;  %v3194_v3 = vsel %vm377_vm4, %v11892_v10, %v12015_v28 }
 0x84c   :  { %v3155_v30 = vmul.bf16 %v3111_v24, %v14346_v63  ;;  %4523 = vperm.xlu1 %9536, %v8195_v35   ;;  %v3154_v41 = vmul.bf16 %v3110_v7, %v14339_v17  ;;  %4528 = vperm.xlu0 %9535, %v8196_v5   ;;  %v9598_v17 = vld [vmem:[%s14089_s8] ss:$20 sps:$4 sm:$0xff]   ;;  %v3196_v5 = vsel %vm377_vm4, %v12042_v19, %v11971_v36 }
 0x84d   :  { %3935 = vmatprep.subr.bf16.mxu1 %v3156_v59  ;;  %v14358_v49 = vld [vmem:[#allocation23_spill] sm:$0xff]  ;;  %v3236_v7 = vmul.bf16 %v3219_v22, %v14356_v16  ;;  %v3195_v28 = vsel %vm377_vm4, %v11950_v55, %v12042_v19 }
 0x84e   :  { %v12127_v44 = vpop.permute.xlu1 %3245  ;;  %3716 = vmatprep.subr.bf16.mxu0 %v3154_v41  ;;  %v12129_v48 = vpop.permute.xlu0 %3255  ;;  %v9609_v41 = vld [vmem:[%s14089_s8 + $0x78] ss:$20 sps:$4 sm:$0xff]   ;;  %v3237_v19 = vmul.bf16 %v3195_v28, %v14357_v42 }
 0x84f   :  { %3717 = vmatpush1.bf16.msra.mxu0 %v3153_v34  ;;  %3936 = vmatpush1.bf16.msra.mxu1 %v3155_v30  ;;  %v3197_v34 = vsel %vm377_vm4, %v11971_v36, %v12068_v58 }
 0x850   :  { %4533 = vperm.xlu1 %9536, %v8197_v12   ;;  %4538 = vperm.xlu0 %9535, %v8198_v14   ;;  %v9612_v14 = vld [vmem:[%s14089_s8 + $0xc] ss:$20 sps:$4 sm:$0xff]  }
 0x851   :  { %3759 = vmatprep.subr.bf16.mxu0 %v11487_v52  ;;  %3978 = vmatprep.subr.bf16.mxu1 %v11489_v2  ;;  %v8201_v52 = vld [vmem:[%s14227_s28 + $0x330] sm:$0xff] }
 0x852   :  { %v12142_v63 = vpop.permute.xlu1 %3249  ;;  %v12144_v50 = vpop.permute.xlu0 %3259  ;;  %3719 = vmatmul.mubr.bf16.vlgmr.msra.gmra.mrb[36].mxu0 %v9598_v17  ;;  %3938 = vmatmul.mubr.bf16.vlgmr.msra.gmra.mrb[36].mxu1 %v9598_v17  ;;  %v3239_v17 = vmul.bf16 %v3197_v34, %v14358_v49 }
 0x853   :  { %3760 = vmatpush1.bf16.msra.mxu0 %v11483_v9  ;;  %3979 = vmatpush1.bf16.msra.mxu1 %v11485_v1  ;;  %v8202_v9 = vld [vmem:[%s14227_s28 + $0x338] sm:$0xff] }
 0x854   :  { %4543 = vperm.xlu1 %9536, %v8199_v27   ;;  %4548 = vperm.xlu0 %9535, %v8200_v26   ;;  %v9603_v1 = vld [vmem:[%s14089_s8 + $0x28] ss:$20 sps:$4 sm:$0xff]  }
 0x855   :  { %3761 = vmatprep.subr.bf16.mxu0 %v11503_v62  ;;  %3980 = vmatprep.subr.bf16.mxu1 %v11505_v43  ;;  %v9604_v62 = vld [vmem:[%s14089_s8 + $0x54] ss:$20 sps:$4 sm:$0xff]  }
 0x856   :  { %v12159_v2 = vpop.permute.xlu1 %3253  ;;  %v12161_v23 = vpop.permute.xlu0 %3263  ;;  %3728 = vmatprep.mubr.bf16.mxu0 %v9601_v60  ;;  %3947 = vmatprep.mubr.bf16.mxu1 %v9601_v60  ;;  %v3278_v60 = vsel %vm445_vm5, %v12092_v18, %v12142_v63 }
 0x857   :  { %3762 = vmatpush1.bf16.msra.mxu0 %v11499_v39  ;;  %3981 = vmatpush1.bf16.msra.mxu1 %v11501_v31  ;;  %v14352_v39 = vld [vmem:[#allocation59_spill] sm:$0xff] }
 0x858   :  { %4553 = vperm.xlu1 %9536, %v8201_v52   ;;  %4558 = vperm.xlu0 %9535, %v8202_v9   ;;  %v3190_v8 = vsel %vm377_vm4, %v14352_v39, %v14351_v15  ;;  %v14353_v31 = vld [vmem:[#allocation55_spill] sm:$0xff] }
 0x859   :  { %3763 = vmatprep.subr.bf16.mxu0 %v11519_v38  ;;  %3982 = vmatprep.subr.bf16.mxu1 %v11521_v45  ;;  %v14354_v38 = vld [vmem:[#allocation61_spill] sm:$0xff]  ;;  %v3189_v45 = vsel %vm377_vm4, %v14353_v31, %v14352_v39 }
 0x85a   :  { %v12176_v43 = vpop.permute.xlu1 %3257  ;;  %v12178_v46 = vpop.permute.xlu0 %3267  ;;  %3729 = vmatmul.mubr.bf16.gmra.mrb[40].mxu0 %v9603_v1  ;;  %3948 = vmatmul.mubr.bf16.gmra.mrb[40].mxu1 %v9603_v1  ;;  %v3215_v53 = vsel %vm377_vm4, %v14354_v38, %v14353_v31  ;;  %v3229_v21 = vmul.bf16 %v3189_v45, %v14357_v42  ;;  %v3303_v1 = vsel %vm445_vm5, %v12111_v37, %v12127_v44  ;;  %v14359_v31 = vld [vmem:[#allocation25_spill] sm:$0xff] }
 0x85b   :  { %3764 = vmatpush1.bf16.msra.mxu0 %v11515_v13  ;;  %3983 = vmatpush1.bf16.msra.mxu1 %v11517_v40  ;;  %v14355_v13 = vld [vmem:[#allocation20_spill] sm:$0xff]  ;;  %v9606_v40 = vld [vmem:[%s14089_s8 + $0x50] ss:$20 sps:$4 sm:$0xff]   ;;  %v3232_v20 = vmul.bf16 %v3215_v53, %v14356_v16  ;;  %v3279_v53 = vsel %vm445_vm5, %v12142_v63, %v12111_v37  ;;  %v3281_v45 = vsel %vm445_vm5, %v12129_v48, %v12176_v43 }
 0x85c   :  { %3765 = vmatprep.subr.bf16.mxu0 %v11535_v32  ;;  %3984 = vmatprep.subr.bf16.mxu1 %v14334_v57  ;;  %v3230_v54 = vmul.bf16 %v3190_v8, %v14355_v13  ;;  %v3191_v32 = vsel %vm377_vm4, %v14351_v15, %v14354_v38  ;;  %v3193_v57 = vsel %vm377_vm4, %v11995_v11, %v11892_v10 }
 0x85d   :  { %3738 = vmatprep.mubr.bf16.mxu0 %v9604_v62  ;;  %3957 = vmatprep.mubr.bf16.mxu1 %v9604_v62  ;;  %v3231_v35 = vmul.bf16 %v3191_v32, %v14358_v49  ;;  %v3235_v10 = vmul.bf16 %v3194_v3, %v14358_v49  ;;  %v3238_v30 = vmul.bf16 %v3196_v5, %v14355_v13  ;;  %v14362_v32 = vld [vmem:[#allocation28_spill] sm:$0xff] }
 0x85e   :  { %v12193_v0 = vpop.permute.xlu1 %3261  ;;  %v12195_v51 = vpop.permute.xlu0 %3335  ;;  %v3318_v38 = vmul.bf16 %v3278_v60, %v14359_v31  ;;  %v3280_v37 = vsel %vm445_vm5, %v12159_v2, %v12129_v48  ;;  %v3282_v22 = vsel %vm445_vm5, %v12176_v43, %v12144_v50  ;;  %v14366_v60 = vld [vmem:[#allocation32_spill] sm:$0xff] }
 0x85f   :  { %3766 = vmatpush1.bf16.msra.mxu0 %v11531_v61  ;;  %3985 = vmatpush1.bf16.msra.mxu1 %v14333_v56  ;;  %v3192_v61 = vsel %vm377_vm4, %v11870_v47, %v11995_v11  ;;  %v3234_v56 = vmul.bf16 %v3193_v57, %v14355_v13  ;;  %v3223_v47 = vsel %vm377_vm4, %v12068_v58, %v11950_v55 }
 0x860   :  { %3767 = vmatprep.subr.bf16.mxu0 %v3230_v54  ;;  %3986 = vmatprep.subr.bf16.mxu1 %v3232_v20  ;;  %v3233_v11 = vmul.bf16 %v3192_v61, %v14357_v42  ;;  %v3240_v55 = vmul.bf16 %v3223_v47, %v14356_v16  ;;  %v3319_v57 = vmul.bf16 %v3279_v53, %v14362_v32 }
 0x861   :  { %v3322_v20 = vmul.bf16 %v3281_v45, %v14359_v31 }
 0x862   :  { %v12221_v6 = vpop.permute.xlu1 %3265  ;;  %v12223_v29 = vpop.permute.xlu0 %3339  ;;  %3739 = vmatmul.mubr.bf16.gmra.mrb[44].mxu0 %v9606_v40  ;;  %3958 = vmatmul.mubr.bf16.gmra.mrb[44].mxu1 %v9606_v40 }
 0x863   :  { %3768 = vmatpush1.bf16.msra.mxu0 %v3229_v21  ;;  %3987 = vmatpush1.bf16.msra.mxu1 %v3231_v35  ;;  %v3285_v61 = vsel %vm445_vm5, %v12221_v6, %v12178_v46 }
 0x864   :  { %3769 = vmatprep.subr.bf16.mxu0 %v3234_v56  ;;  %3988 = vmatprep.subr.bf16.mxu1 %v3236_v7 }
 0x865   :  { %3748 = vmatprep.mubr.bf16.mxu0 %v9607_v4  ;;  %3967 = vmatprep.mubr.bf16.mxu1 %v9607_v4  ;;  %v3311_v4 = vsel %vm445_vm5, %v12178_v46, %v12193_v0 }
 0x866   :  { %v12241_v24 = vpop.permute.xlu1 %3269  ;;  %v3184_v59 = vpop.permute.xlu0 %3183 }
 0x867   :  { %v3199_v12 = vsel %vm377_vm4, %v3184_v59, %v12066_v33  ;;  %3770 = vmatpush1.bf16.msra.mxu0 %v3233_v11  ;;  %3989 = vmatpush1.bf16.msra.mxu1 %v3235_v10  ;;  %v3198_v36 = vsel %vm377_vm4, %v12040_v25, %v3184_v59 }
 0x868   :  { %3771 = vmatprep.subr.bf16.mxu0 %v3238_v30  ;;  %3990 = vmatprep.subr.bf16.mxu1 %v3240_v55  ;;  %v3242_v26 = vmul.bf16 %v3199_v12, %v14355_v13  ;;  %v3241_v39 = vmul.bf16 %v3198_v36, %v14357_v42  ;;  %v14360_v13 = vld [vmem:[#allocation26_spill] sm:$0xff]  ;;  %v3284_v42 = vsel %vm445_vm5, %v12161_v23, %v12221_v6 }
 0x869   :  { %v3320_v54 = vmul.bf16 %v3303_v1, %v14360_v13  ;;  %v3326_v35 = vmul.bf16 %v3284_v42, %v14359_v31  ;;  %v3328_v3 = vmul.bf16 %v3311_v4, %v14360_v13  ;;  %v14364_v36 = vld [vmem:[#allocation30_spill] sm:$0xff] }
 0x86a   :  { %v12260_v58 = vpop.permute.xlu1 %3273  ;;  %v3188_v27 = vpop.permute.xlu0 %3187  ;;  %3749 = vmatmul.mubr.bf16.gmra.mrb[48].mxu0 %v9609_v41  ;;  %3968 = vmatmul.mubr.bf16.gmra.mrb[48].mxu1 %v9609_v41 }
 0x86b   :  { %v3200_v52 = vsel %vm377_vm4, %v12066_v33, %v3188_v27  ;;  %v3227_v9 = vsel %vm377_vm4, %v3188_v27, %v12040_v25  ;;  %3772 = vmatpush1.bf16.msra.mxu0 %v3237_v19  ;;  %3991 = vmatpush1.bf16.msra.mxu1 %v3239_v17  ;;  %v3277_v25 = vsel %vm445_vm5, %v12127_v44, %v12092_v18  ;;  %v14361_v44 = vld [vmem:[#allocation27_spill] sm:$0xff]  ;;  %v14363_v19 = vld [vmem:[#allocation29_spill] sm:$0xff] }
 0x86c   :  { %v3243_v62 = vmul.bf16 %v3200_v52, %v14358_v49  ;;  %3773 = vmatprep.subr.bf16.mxu0 %v3242_v26  ;;  %v3244_v15 = vmul.bf16 %v3227_v9, %v14356_v16  ;;  %3791 = vmatprep.mubr.bf16.mxu0 %v9612_v14  ;;  %v3307_v18 = vsel %vm445_vm5, %v12144_v50, %v12159_v2  ;;  %v14365_v26 = vld [vmem:[#allocation31_spill] sm:$0xff] }
 0x86d   :  { %4010 = vmatprep.mubr.bf16.mxu1 %v9612_v14  ;;  %v3317_v40 = vmul.bf16 %v3277_v25, %v14361_v44  ;;  %v3324_v21 = vmul.bf16 %v3307_v18, %v14360_v13  ;;  %v3321_v48 = vmul.bf16 %v3280_v37, %v14361_v44  ;;  %v3323_v2 = vmul.bf16 %v3282_v22, %v14362_v32 }
 0x86e   :  { %v3334_v33 = vpop.permute.xlu1 %3333  ;;  %3992 = vmatprep.subr.bf16.mxu1 %v3244_v15  ;;  %v12279_v8 = vpop.permute.xlu0 %3343  ;;  %v3283_v50 = vsel %vm445_vm5, %v12193_v0, %v12161_v23  ;;  %v3327_v23 = vmul.bf16 %v3285_v61, %v14362_v32 }
 0x86f   :  { %3774 = vmatpush1.bf16.msra.mxu0 %v3241_v39  ;;  %3993 = vmatpush1.bf16.msra.mxu1 %v3243_v62  ;;  %v3325_v5 = vmul.bf16 %v3283_v50, %v14361_v44  ;;  %v3391_v28 = vsel %vm509_vm6, %v12223_v29, %v3334_v33  ;;  %v3365_v34 = vsel %vm509_vm6, %v3334_v33, %v12195_v51  ;;  %v9610_v50 = vld [vmem:[%s14089_s8 + $0x8] ss:$20 sps:$4 sm:$0xff]  }
 0x870   :  { %3775 = vmatprep.subr.bf16.mxu0 %v3318_v38  ;;  %3994 = vmatprep.subr.bf16.mxu1 %v3320_v54 }
 0x872   :  { %v3338_v63 = vpop.permute.xlu1 %3337  ;;  %v3348_v16 = vpop.permute.xlu0 %3347 }
 0x873   :  { %3776 = vmatpush1.bf16.msra.mxu0 %v3317_v40  ;;  %3995 = vmatpush1.bf16.msra.mxu1 %v3319_v57  ;;  %v3366_v6 = vsel %vm509_vm6, %v12195_v51, %v3338_v63  ;;  %v3367_v14 = vsel %vm509_vm6, %v3338_v63, %v12223_v29  ;;  %v3405_v51 = vmul.bf16 %v3365_v34, %v14365_v26 }
 0x874   :  { %3777 = vmatprep.subr.bf16.mxu0 %v3322_v20  ;;  %3996 = vmatprep.subr.bf16.mxu1 %v3324_v21  ;;  %v3407_v52 = vmul.bf16 %v3367_v14, %v14366_v60 }
 0x876   :  { %v3342_v43 = vpop.permute.xlu1 %3341  ;;  %v3272_v49 = vpop.permute.xlu0 %3271 }
 0x877   :  { %v3287_v56 = vsel %vm445_vm5, %v3272_v49, %v12260_v58  ;;  %3778 = vmatpush1.bf16.msra.mxu0 %v3321_v48  ;;  %3997 = vmatpush1.bf16.msra.mxu1 %v3323_v2  ;;  %v3286_v0 = vsel %vm445_vm5, %v12241_v24, %v3272_v49  ;;  %v3395_v27 = vsel %vm509_vm6, %v3348_v16, %v3342_v43 }
 0x878   :  { %3779 = vmatprep.subr.bf16.mxu0 %v3326_v35  ;;  %3998 = vmatprep.subr.bf16.mxu1 %v3328_v3  ;;  %v3330_v46 = vmul.bf16 %v3287_v56, %v14359_v31  ;;  %v3329_v41 = vmul.bf16 %v3286_v0, %v14361_v44  ;;  %v3368_v9 = vsel %vm509_vm6, %v3342_v43, %v12279_v8  ;;  %v9613_v43 = vld [vmem:[%s14089_s8 + $0x34] ss:$20 sps:$4 sm:$0xff]  }
 0x879   :  { %v3412_v25 = vmul.bf16 %v3395_v27, %v14364_v36  ;;  %v3409_v31 = vmul.bf16 %v3368_v9, %v14365_v26 }
 0x87a   :  { %v3346_v7 = vpop.permute.xlu1 %3345  ;;  %v3276_v47 = vpop.permute.xlu0 %3275 }
 0x87b   :  { %v3288_v11 = vsel %vm445_vm5, %v12260_v58, %v3276_v47  ;;  %v3315_v10 = vsel %vm445_vm5, %v3276_v47, %v12241_v24  ;;  %3780 = vmatpush1.bf16.msra.mxu0 %v3325_v5  ;;  %3999 = vmatpush1.bf16.msra.mxu1 %v3327_v23  ;;  %v3406_v24 = vmul.bf16 %v3366_v6, %v14363_v19  ;;  %v14367_v23 = vld [vmem:[#allocation36_spill] sm:$0xff] }
 0x87c   :  { %v3331_v59 = vmul.bf16 %v3288_v11, %v14362_v32  ;;  %3781 = vmatprep.subr.bf16.mxu0 %v3330_v46  ;;  %v3332_v30 = vmul.bf16 %v3315_v10, %v14360_v13  ;;  %v3369_v17 = vsel %vm509_vm6, %v12279_v8, %v3346_v7  ;;  %v3408_v58 = vmul.bf16 %v3391_v28, %v14364_v36  ;;  %v14369_v46 = vld [vmem:[#allocation34_spill] sm:$0xff]  ;;  %v14370_v11 = vld [vmem:[#allocation35_spill] sm:$0xff] }
 0x87d   :  { %v3410_v62 = vmul.bf16 %v3369_v17, %v14363_v19  ;;  %v3370_v15 = vsel %vm509_vm6, %v3346_v7, %v3348_v16  ;;  %v14368_v7 = vld [vmem:[#allocation33_spill] sm:$0xff] }
 0x87e   :  { %v3350_v12 = vpop.permute.xlu1 %3349  ;;  %4000 = vmatprep.subr.bf16.mxu1 %v3332_v30  ;;  %v3352_v55 = vpop.permute.xlu0 %3351  ;;  %v3411_v8 = vmul.bf16 %v3370_v15, %v14366_v60  ;;  %v9615_v30 = vld [vmem:[%s14089_s8 + $0x30] ss:$20 sps:$4 sm:$0xff]  }
 0x87f   :  { %3782 = vmatpush1.bf16.msra.mxu0 %v3329_v41  ;;  %4001 = vmatpush1.bf16.msra.mxu1 %v3331_v59  ;;  %v3371_v38 = vsel %vm509_vm6, %v3350_v12, %v3352_v55  ;;  %v9616_v41 = vld [vmem:[%s14089_s8 + $0x5c] ss:$20 sps:$4 sm:$0xff]  }
 0x880   :  { %3783 = vmatprep.subr.bf16.mxu0 %v3406_v24  ;;  %4002 = vmatprep.subr.bf16.mxu1 %v3408_v58  ;;  %v3413_v44 = vmul.bf16 %v3371_v38, %v14365_v26 }
 0x882   :  { %v3354_v1 = vpop.permute.xlu1 %3353  ;;  %v3356_v29 = vpop.permute.xlu0 %3355 }
 0x883   :  { %v3372_v39 = vsel %vm509_vm6, %v3352_v55, %v3354_v1  ;;  %3784 = vmatpush1.bf16.msra.mxu0 %v3405_v51  ;;  %v3399_v33 = vsel %vm509_vm6, %v3356_v29, %v3350_v12  ;;  %4003 = vmatpush1.bf16.msra.mxu1 %v3407_v52  ;;  %v3373_v54 = vsel %vm509_vm6, %v3354_v1, %v3356_v29  ;;  %v9619_v52 = vld [vmem:[%s14089_s8 + $0x84] ss:$20 sps:$4 sm:$0xff]  }
 0x884   :  { %3785 = vmatprep.subr.bf16.mxu0 %v3410_v62  ;;  %4004 = vmatprep.subr.bf16.mxu1 %v3412_v25  ;;  %v3414_v13 = vmul.bf16 %v3372_v39, %v14363_v19  ;;  %v3416_v18 = vmul.bf16 %v3399_v33, %v14364_v36  ;;  %v3415_v40 = vmul.bf16 %v3373_v54, %v14366_v60 }
 0x886   :  { %v3358_v53 = vpop.permute.xlu1 %3357  ;;  %v3360_v45 = vpop.permute.xlu0 %3359 }
 0x887   :  { %3786 = vmatpush1.bf16.msra.mxu0 %v3409_v31  ;;  %4005 = vmatpush1.bf16.msra.mxu1 %v3411_v8  ;;  %v3374_v32 = vsel %vm509_vm6, %v3358_v53, %v3360_v45 }
 0x888   :  { %3787 = vmatprep.subr.bf16.mxu0 %v3414_v13  ;;  %4006 = vmatprep.subr.bf16.mxu1 %v3416_v18  ;;  %v3417_v4 = vmul.bf16 %v3374_v32, %v14365_v26 }
 0x88a   :  { %v3362_v57 = vpop.permute.xlu1 %3361  ;;  %v3364_v37 = vpop.permute.xlu0 %3363 }
 0x88b   :  { %v3375_v63 = vsel %vm509_vm6, %v3360_v45, %v3362_v57  ;;  %v3376_v16 = vsel %vm509_vm6, %v3362_v57, %v3364_v37  ;;  %v3403_v20 = vsel %vm509_vm6, %v3364_v37, %v3358_v53  ;;  %3788 = vmatpush1.bf16.msra.mxu0 %v3413_v44  ;;  %4007 = vmatpush1.bf16.msra.mxu1 %v3415_v40  ;;  %v9621_v45 = vld [vmem:[%s14089_s8 + $0x80] ss:$20 sps:$4 sm:$0xff]   ;;  %v14371_v40 = vmov 0  }
 0x88c   :  { %v3419_v22 = vmul.bf16 %v3376_v16, %v14366_v60  ;;  %v3418_v42 = vmul.bf16 %v3375_v63, %v14363_v19  ;;  %v3420_v21 = vmul.bf16 %v3403_v20, %v14364_v36  ;;  %v9618_v60 = vld [vmem:[%s14089_s8 + $0x58] ss:$20 sps:$4 sm:$0xff]   ;;  %v12425_v63 = vld [vmem:[%s14372_s26 + $0x40] sm:$0xff]  }
 0x88e   :  { %v3422_v48 = vpop.permute.xlu1 %3421  ;;  %3789 = vmatprep.subr.bf16.mxu0 %v3418_v42  ;;  %4008 = vmatprep.subr.bf16.mxu1 %v3420_v21  ;;  %v3424_v2 = vpop.permute.xlu0 %3423  ;;  %v12433_v42 = vld [vmem:[%s14372_s26 + $0xc0] sm:$0xff]  }
 0x88f   :  { %3790 = vmatpush1.bf16.msra.mxu0 %v3417_v4  ;;  %4009 = vmatpush1.bf16.msra.mxu1 %v3419_v22  ;;  %v3453_v49 = vsel %vm561_vm7, %v3422_v48, %v3424_v2  ;;  %v9622_v21 = vld [vmem:[%s14089_s8 + $0x10] ss:$20 sps:$4 sm:$0xff]  }
 0x890   :  { %v3493_v10 = vmul.bf16 %v3453_v49, %v14370_v11  ;;  %v12441_v4 = vld [vmem:[%s14372_s26] sm:$0xff]   ;;  %v12473_v49 = vld [vmem:[%s14372_s26 + $0x88] sm:$0xff]  }
 0x892   :  { %v3426_v35 = vpop.permute.xlu1 %3425  ;;  %3792 = vmatmul.mubr.bf16.vlgmr.msra.gmra.mrb[36].mxu0 %v9610_v50  ;;  %v3428_v61 = vpop.permute.xlu0 %3427  ;;  %4011 = vmatmul.mubr.bf16.vlgmr.msra.gmra.mrb[36].mxu1 %v9610_v50  ;;  %v12458_v50 = vld [vmem:[%s14372_s26 + $0xc8] sm:$0xff]  }
 0x893   :  { %v3454_v56 = vsel %vm561_vm7, %v3424_v2, %v3426_v35  ;;  %v3455_v3 = vsel %vm561_vm7, %v3426_v35, %v3428_v61  ;;  %v3479_v5 = vsel %vm561_vm7, %v3428_v61, %v3422_v48  ;;  %3801 = vmatprep.mubr.bf16.mxu0 %v9613_v43  ;;  %4020 = vmatprep.mubr.bf16.mxu1 %v9613_v43  ;;  %v12447_v48 = vld [vmem:[%s14372_s26 + $0x80] sm:$0xff]   ;;  %v12452_v2 = vld [vmem:[%s14372_s26 + $0x48] sm:$0xff]   ;;  %v12478_v35 = vld [vmem:[%s14372_s26 + $0x50] sm:$0xff]  }
 0x894   :  { %v3495_v0 = vmul.bf16 %v3455_v3, %v14367_v23  ;;  %v3494_v47 = vmul.bf16 %v3454_v56, %v14368_v7  ;;  %v3496_v6 = vmul.bf16 %v3479_v5, %v14369_v46  ;;  %v12466_v43 = vld [vmem:[%s14372_s26 + $0x8] sm:$0xff]   ;;  %v12485_v61 = vld [vmem:[%s14372_s26 + $0xd0] sm:$0xff]  }
 0x895   :  { %v9631_v56 = vld [vmem:[%s14089_s8 + $0x38] ss:$20 sps:$4 sm:$0xff]   ;;  %v12495_v3 = vld [vmem:[%s14372_s26 + $0x10] sm:$0xff]  }
 0x896   :  { %v3430_v28 = vpop.permute.xlu1 %3429  ;;  %3832 = vmatprep.subr.bf16.mxu0 %v3494_v47  ;;  %4051 = vmatprep.subr.bf16.mxu1 %v3496_v6  ;;  %v3432_v59 = vpop.permute.xlu0 %3431  ;;  %v12502_v5 = vld [vmem:[%s14372_s26 + $0x90] sm:$0xff]   ;;  %v12528_v47 = vld [vmem:[%s14372_s26 + $0x98] sm:$0xff]   ;;  %v12538_v6 = vld [vmem:[%s14372_s26 + $0xe0] sm:$0xff]  }
 0x897   :  { %3833 = vmatpush1.bf16.msra.mxu0 %v3493_v10  ;;  %4052 = vmatpush1.bf16.msra.mxu1 %v3495_v0  ;;  %v3456_v34 = vsel %vm561_vm7, %v3430_v28, %v3432_v59  ;;  %v12513_v0 = vld [vmem:[%s14372_s26 + $0xd8] sm:$0xff]   ;;  %v9643_v10 = vld [vmem:[%s14372_s26 + $0x20] sm:$0xff]  }
 0x898   :  { %v3497_v27 = vmul.bf16 %v3456_v34, %v14370_v11  ;;  %v12572_v34 = vld [vmem:[%s14372_s26 + $0xa8] sm:$0xff]  }
 0x89a   :  { %v3434_v12 = vpop.permute.xlu1 %3433  ;;  %3802 = vmatmul.mubr.bf16.gmra.mrb[40].mxu0 %v9615_v30  ;;  %v3436_v55 = vpop.permute.xlu0 %3435  ;;  %4021 = vmatmul.mubr.bf16.gmra.mrb[40].mxu1 %v9615_v30  ;;  %v12561_v30 = vld [vmem:[%s14372_s26 + $0xe8] sm:$0xff]  }
 0x89b   :  { %v3457_v19 = vsel %vm561_vm7, %v3432_v59, %v3434_v12  ;;  %v3458_v24 = vsel %vm561_vm7, %v3434_v12, %v3436_v55  ;;  %v3483_v14 = vsel %vm561_vm7, %v3436_v55, %v3430_v28  ;;  %3811 = vmatprep.mubr.bf16.mxu0 %v9616_v41  ;;  %4030 = vmatprep.mubr.bf16.mxu1 %v9616_v41  ;;  %v12552_v28 = vld [vmem:[%s14372_s26 + $0xa0] sm:$0xff]   ;;  %v9645_v59 = vld [vmem:[%s14372_s26 + $0x68] sm:$0xff]   ;;  %v9650_v12 = vld [vmem:[%s14372_s26 + $0x70] sm:$0xff]  }
 0x89c   :  { %v3499_v17 = vmul.bf16 %v3458_v24, %v14367_v23  ;;  %v3498_v36 = vmul.bf16 %v3457_v19, %v14368_v7  ;;  %v3500_v58 = vmul.bf16 %v3483_v14, %v14369_v46  ;;  %v9647_v41 = vld [vmem:[%s14372_s26 + $0x28] sm:$0xff]   ;;  %v12582_v55 = vld [vmem:[%s14372_s26 + $0xf0] sm:$0xff]  }
 0x89d   :  { %v9649_v19 = vld [vmem:[%s14089_s8 + $0x88] ss:$20 sps:$4 sm:$0xff]   ;;  %v9652_v24 = vld [vmem:[%s14372_s26 + $0x30] sm:$0xff]  }
 0x89e   :  { %v3438_v26 = vpop.permute.xlu1 %3437  ;;  %3834 = vmatprep.subr.bf16.mxu0 %v3498_v36  ;;  %4053 = vmatprep.subr.bf16.mxu1 %v3500_v58  ;;  %v3440_v51 = vpop.permute.xlu0 %3439  ;;  %v12595_v14 = vld [vmem:[%s14372_s26 + $0xb0] sm:$0xff]   ;;  %v12605_v36 = vld [vmem:[%s14372_s26 + $0xf8] sm:$0xff]  }
 0x89f   :  { %3835 = vmatpush1.bf16.msra.mxu0 %v3497_v27  ;;  %4054 = vmatpush1.bf16.msra.mxu1 %v3499_v17  ;;  %v3459_v9 = vsel %vm561_vm7, %v3438_v26, %v3440_v51  ;;  %v9654_v17 = vld [vmem:[%s14372_s26 + $0x78] sm:$0xff]   ;;  %v14373_v27 = vld [vmem:[#allocation42_spill] sm:$0xff] }
 0x8a0   :  { %v3501_v8 = vmul.bf16 %v3459_v9, %v14370_v11  ;;  %v9656_v58 = vld [vmem:[%s14372_s26 + $0x38] sm:$0xff]  }
 0x8a1   :  { %v14377_v9 = vld [vmem:[#allocation40_spill] sm:$0xff] }
 0x8a2   :  { %v3442_v1 = vpop.permute.xlu1 %3441  ;;  %3812 = vmatmul.mubr.bf16.gmra.mrb[44].mxu0 %v9618_v60  ;;  %v3444_v29 = vpop.permute.xlu0 %3443  ;;  %4031 = vmatmul.mubr.bf16.gmra.mrb[44].mxu1 %v9618_v60  ;;  %v12618_v60 = vld [vmem:[%s14372_s26 + $0xb8] sm:$0xff]  }
 0x8a3   :  { %v3460_v62 = vsel %vm561_vm7, %v3440_v51, %v3442_v1  ;;  %v3461_v15 = vsel %vm561_vm7, %v3442_v1, %v3444_v29  ;;  %v3487_v39 = vsel %vm561_vm7, %v3444_v29, %v3438_v26  ;;  %3821 = vmatprep.mubr.bf16.mxu0 %v9619_v52  ;;  %4040 = vmatprep.mubr.bf16.mxu1 %v9619_v52  ;;  %v14374_v26 = vld [vmem:[#allocation44_spill] sm:$0xff]  ;;  %v14376_v52 = vld [vmem:[#allocation39_spill] sm:$0xff]  ;;  %v14379_v29 = vld [vmem:[#allocation41_spill] sm:$0xff] }
 0x8a4   :  { %v3503_v25 = vmul.bf16 %v3461_v15, %v14367_v23  ;;  %v3502_v33 = vmul.bf16 %v3460_v62, %v14368_v7  ;;  %v3504_v31 = vmul.bf16 %v3487_v39, %v14369_v46  ;;  %v14375_v51 = vpack.c.bf16 %v14373_v27, %v14374_v26  ;;  %v14380_v62 = vld [vmem:[#allocation43_spill] sm:$0xff]  ;;  %v14382_v39 = vld [vmem:[#allocation37_spill] sm:$0xff] }
 0x8a5   :  { %v14378_v1 = vpack.c.bf16 %v14376_v52, %v14377_v9  ;;  %v14381_v15 = vpack.c.bf16 %v14379_v29, %v14380_v62 }
 0x8a6   :  { %v3446_v38 = vpop.permute.xlu1 %3445  ;;  %3836 = vmatprep.subr.bf16.mxu0 %v3502_v33  ;;  %4055 = vmatprep.subr.bf16.mxu1 %v3504_v31  ;;  %v3448_v53 = vpop.permute.xlu0 %3447  ;;  %v14385_v31 = vld [vmem:[#allocation51_spill] sm:$0xff] }
 0x8a7   :  { %3837 = vmatpush1.bf16.msra.mxu0 %v3501_v8  ;;  %4056 = vmatpush1.bf16.msra.mxu1 %v3503_v25  ;;  %v3462_v13 = vsel %vm561_vm7, %v3446_v38, %v3448_v53  ;;  %v14383_v25 = vld [vmem:[#allocation38_spill] sm:$0xff]  ;;  %v14386_v8 = vld [vmem:[#allocation47_spill] sm:$0xff] }
 0x8a8   :  { %v3505_v16 = vmul.bf16 %v3462_v13, %v14370_v11  ;;  %v9640_v11 = vld [vmem:[%s14089_s8 + $0x60] ss:$20 sps:$4 sm:$0xff]   ;;  %v14384_v33 = vpack.c.bf16 %v14382_v39, %v14383_v25 }
 0x8aa   :  { %v3450_v54 = vpop.permute.xlu1 %3449  ;;  %3822 = vmatmul.mubr.bf16.gmra.mrb[48].mxu0 %v9621_v45  ;;  %4041 = vmatmul.mubr.bf16.gmra.mrb[48].mxu1 %v9621_v45  ;;  %v3452_v44 = vpop.permute.xlu0 %3451  ;;  %v14389_v45 = vld [vmem:[#allocation48_spill] sm:$0xff] }
 0x8ab   :  { %v3463_v18 = vsel %vm561_vm7, %v3448_v53, %v3450_v54  ;;  %3864 = vmatprep.mubr.bf16.mxu0 %v14371_v40  ;;  %v3464_v32 = vsel %vm561_vm7, %v3450_v54, %v3452_v44  ;;  %v3491_v57 = vsel %vm561_vm7, %v3452_v44, %v3446_v38  ;;  %4083 = vmatprep.mubr.bf16.mxu1 %v14371_v40  ;;  %v14388_v53 = vld [vmem:[#allocation52_spill] sm:$0xff]  ;;  %v14391_v54 = vld [vmem:[#allocation49_spill] sm:$0xff] }
 0x8ac   :  { %v3506_v37 = vmul.bf16 %v3463_v18, %v14368_v7  ;;  %v3507_v20 = vmul.bf16 %v3464_v32, %v14367_v23  ;;  %v3508_v22 = vmul.bf16 %v3491_v57, %v14369_v46  ;;  %v12507_v23 = vld [vmem:[%s14372_s26 + $0x58] sm:$0xff]   ;;  %v9641_v46 = vld [vmem:[%s14372_s26 + $0x60] sm:$0xff]   ;;  %v14387_v38 = vpack.c.bf16 %v14385_v31, %v14386_v8  ;;  %v14395_v32 = vld [vmem:[#allocation46_spill] sm:$0xff] }
 0x8ad   :  { %v12521_v7 = vld [vmem:[%s14372_s26 + $0x18] sm:$0xff]   ;;  %v14390_v13 = vpack.c.bf16 %v14388_v53, %v14389_v45  ;;  %v14392_v18 = vld [vmem:[#allocation45_spill] sm:$0xff] }
 0x8ae   :  { %3838 = vmatprep.subr.bf16.mxu0 %v3506_v37  ;;  %4057 = vmatprep.subr.bf16.mxu1 %v3508_v22  ;;  %v14393_v44 = vpack.c.bf16 %v14391_v54, %v14392_v18  ;;  %v9658_v37 = vld [vmem:[%s14090_s9] sm:$0xff]  }
 0x8af   :  { %3839 = vmatpush1.bf16.msra.mxu0 %v3505_v16  ;;  %4058 = vmatpush1.bf16.msra.mxu1 %v3507_v20 }
 0x8b0   :  { %8437 = vmatprep.subr.bf16.mxu0 %v12425_v63  ;;  %8465 = vmatprep.subr.bf16.mxu1 %v12433_v42 }
 0x8b2   :  { %8155 = vmatmul.mubr.msk.bf16.vlgmr.msra.gmra.mrb[36].mxu0 %vm3673_vm9, %v9622_v21  ;;  %8159 = vmatmul.mubr.msk.bf16.vlgmr.msra.gmra.mrb[36].mxu1 %vm3673_vm9, %v9622_v21 }
 0x8b3   :  { %8438 = vmatpush3.bf16.msra.mxu0 %v12441_v4  ;;  %8466 = vmatpush3.bf16.msra.mxu1 %v12447_v48 }
 0x8b4   :  { %8439 = vmatprep.subr.bf16.mxu0 %v12452_v2  ;;  %8467 = vmatprep.subr.bf16.mxu1 %v12458_v50 }
 0x8b5   :  { %3874 = vmatprep.mubr.bf16.mxu0 %v14371_v40  ;;  %4093 = vmatprep.mubr.bf16.mxu1 %v14371_v40 }
 0x8b7   :  { %8440 = vmatpush3.bf16.msra.mxu0 %v12466_v43  ;;  %8468 = vmatpush3.bf16.msra.mxu1 %v12473_v49 }
 0x8b8   :  { %8441 = vmatprep.subr.bf16.mxu0 %v12478_v35  ;;  %8469 = vmatprep.subr.bf16.mxu1 %v12485_v61 }
 0x8ba   :  { %8156 = vmatmul.mubr.msk.bf16.gmra.mrb[40].mxu0 %vm3673_vm9, %v9631_v56  ;;  %8160 = vmatmul.mubr.msk.bf16.gmra.mrb[40].mxu1 %vm3673_vm9, %v9631_v56 }
 0x8bb   :  { %8442 = vmatpush3.bf16.msra.mxu0 %v12495_v3  ;;  %8470 = vmatpush3.bf16.msra.mxu1 %v12502_v5  ;;  %v3541_v16 = vpop.permute.xlu0 %3540 }
 0x8bc   :  { %8443 = vmatprep.subr.bf16.mxu0 %v12507_v23  ;;  %8471 = vmatprep.subr.bf16.mxu1 %v12513_v0 }
 0x8bd   :  { %3884 = vmatprep.mubr.bf16.mxu0 %v14371_v40  ;;  %4103 = vmatprep.mubr.bf16.mxu1 %v14371_v40 }
 0x8bf   :  { %8444 = vmatpush3.bf16.msra.mxu0 %v12521_v7  ;;  %8472 = vmatpush3.bf16.msra.mxu1 %v12528_v47  ;;  %v3551_v27 = vpop.permute.xlu0 %3550 }
 0x8c0   :  { %8445 = vmatprep.subr.bf16.mxu0 %v9641_v46  ;;  %8473 = vmatprep.subr.bf16.mxu1 %v12538_v6 }
 0x8c2   :  { %8157 = vmatmul.mubr.msk.bf16.gmra.mrb[44].mxu0 %vm3673_vm9, %v9640_v11  ;;  %8161 = vmatmul.mubr.msk.bf16.gmra.mrb[44].mxu1 %vm3673_vm9, %v9640_v11 }
 0x8c3   :  { %8446 = vmatpush3.bf16.msra.mxu0 %v9643_v10  ;;  %8474 = vmatpush3.bf16.msra.mxu1 %v12552_v28 }
 0x8c4   :  { %8447 = vmatprep.subr.bf16.mxu0 %v9645_v59  ;;  %8475 = vmatprep.subr.bf16.mxu1 %v12561_v30 }
 0x8c5   :  { %3894 = vmatprep.mubr.bf16.mxu0 %v14371_v40  ;;  %4113 = vmatprep.mubr.bf16.mxu1 %v14371_v40  ;;  %v14394_v40 = vld [vmem:[#allocation50_spill] sm:$0xff] }
 0x8c6   :  { %v14396_v57 = vpack.c.bf16 %v14394_v40, %v14395_v32  ;;  %v3561_v32 = vpop.permute.xlu0 %3560 }
 0x8c7   :  { %8448 = vmatpush3.bf16.msra.mxu0 %v9647_v41  ;;  %8476 = vmatpush3.bf16.msra.mxu1 %v12572_v34 }
 0x8c8   :  { %8449 = vmatprep.subr.bf16.mxu0 %v9650_v12  ;;  %8477 = vmatprep.subr.bf16.mxu1 %v12582_v55 }
 0x8ca   :  { %8158 = vmatmul.mubr.msk.bf16.gmra.mrb[48].mxu0 %vm3673_vm9, %v9649_v19  ;;  %8162 = vmatmul.mubr.msk.bf16.gmra.mrb[48].mxu1 %vm3673_vm9, %v9649_v19 }
 0x8cb   :  { %8450 = vmatpush3.bf16.msra.mxu0 %v9652_v24  ;;  %4436 = vmatprep.mubr.bf16.mxu0 %v14375_v51 }
 0x8cc   :  { %8478 = vmatpush3.bf16.msra.mxu1 %v12595_v14  ;;  %4485 = vmatprep.mubr.bf16.mxu1 %v14378_v1 }
 0x8cd   :  { %8451 = vmatprep.subr.bf16.mxu0 %v9654_v17  ;;  %8479 = vmatprep.subr.bf16.mxu1 %v12605_v36 }
 0x8cf   :  { %8452 = vmatpush3.bf16.msra.mxu0 %v9656_v58 }
 0x8d0   :  { %8480 = vmatpush3.bf16.msra.mxu1 %v12618_v60 }
 0x8d1   :  { %8499 = vmatprep.subr.bf16.mxu1 %v12425_v63  ;;  %v3536_v63 = vpop.permute.xlu1 %3535 }
 0x8d2   :  { %4437 = vmatmul.mubr.bf16.vlgmr.msra.gmra.mrb[52].mxu0 %v14381_v15 }
 0x8d3   :  { %4486 = vmatmul.mubr.bf16.vlgmr.msra.gmra.mrb[52].mxu1 %v14384_v33  ;;  %4444 = vmatprep.mubr.bf16.mxu0 %v14387_v38 }
 0x8d4   :  { %4493 = vmatprep.mubr.bf16.mxu1 %v14390_v13  ;;  %8500 = vmatpush3.bf16.msra.mxu1 %v12441_v4 }
 0x8d5   :  { %8501 = vmatprep.subr.bf16.mxu1 %v12452_v2 }
 0x8d8   :  { %8502 = vmatpush3.bf16.msra.mxu1 %v12466_v43 }
 0x8d9   :  { %8503 = vmatprep.subr.bf16.mxu1 %v12478_v35 }
 0x8da   :  { %4445 = vmatmul.mubr.bf16.gmra.mrb[56].mxu0 %v14393_v44 }
 0x8db   :  { %4494 = vmatmul.mubr.bf16.gmra.mrb[56].mxu1 %v14396_v57  ;;  %9061 = vmatprep.mubr.msk.bf16.mxu0 %vm1529_vm8, %v9658_v37 }
 0x8dc   :  { %8504 = vmatpush3.bf16.msra.mxu1 %v12495_v3 }
 0x8dd   :  { %8505 = vmatprep.subr.bf16.mxu1 %v12507_v23 }
 0x8e0   :  { %8506 = vmatpush3.bf16.msra.mxu1 %v12521_v7 }
 0x8e1   :  { %8507 = vmatprep.subr.bf16.mxu1 %v9641_v46 }
 0x8e4   :  { %8508 = vmatpush3.bf16.msra.mxu1 %v9643_v10 }
 0x8e5   :  { %8509 = vmatprep.subr.bf16.mxu1 %v9645_v59 }
 0x8e8   :  { %8510 = vmatpush3.bf16.msra.mxu1 %v9647_v41 }
 0x8e9   :  { %8511 = vmatprep.subr.bf16.mxu1 %v9650_v12 }
 0x8ec   :  { %8512 = vmatpush3.bf16.msra.mxu1 %v9652_v24 }
 0x8ed   :  { %8513 = vmatprep.subr.bf16.mxu1 %v9654_v17  ;;  %v3546_v17 = vpop.permute.xlu1 %3545 }
 0x8f0   :  { %8514 = vmatpush3.bf16.msra.mxu1 %v9656_v58 }
 0x8f1   :  { %v3556_v44 = vpop.permute.xlu1 %3555 }
 0x985   :  { %v3866_v20 = vpop.f32.mrb[36].mxu0  ;;  %v4085_v22 = vpop.f32.mrb[36].mxu1 }
 0x986   :  { %v3868_v21 = vpop.f32.mrb[37].mxu0  ;;  %v4087_v4 = vpop.f32.mrb[37].mxu1  ;;  %v9321_v43 = vadd.f32 %v3866_v20, %v3536_v63  ;;  %v12655_v23 = vadd.f32 %v4085_v22, %v3536_v63 }
 0x987   :  { %v3870_v2 = vpop.f32.mrb[38].mxu0  ;;  %v4089_v56 = vpop.f32.mrb[38].mxu1  ;;  %v9322_v7 = vadd.f32 %v3868_v21, %v3536_v63  ;;  %v12659_v59 = vadd.f32 %v4087_v4, %v3536_v63 }
 0x988   :  { %v9323_v35 = vadd.f32 %v3870_v2, %v3541_v16  ;;  %v3872_v3 = vpop.f32.mrb[39].mxu0  ;;  %v12657_v46 = vadd.f32 %v4089_v56, %v3541_v16  ;;  %v4091_v10 = vpop.f32.mrb[39].mxu1 }
 0x989   :  { %v9324_v11 = vadd.f32 %v3872_v3, %v3541_v16  ;;  %v12661_v12 = vadd.f32 %v4091_v10, %v3541_v16 }
 0x98a   :  { %v4124_v41 = vpack.c.bf16 %v9323_v35, %v9321_v43  ;;  %v4126_v19 = vpack.c.bf16 %v12657_v46, %v12655_v23 }
 0x98b   :  { %v4125_v24 = vpack.c.bf16 %v9324_v11, %v9322_v7  ;;  %v4127_v58 = vpack.c.bf16 %v12661_v12, %v12659_v59 }
 0x98d   :  { %v3876_v26 = vpop.f32.mrb[40].mxu0  ;;  %4690 = vmatprep.mubr.bf16.mxu1 %v4125_v24  ;;  %v4095_v51 = vpop.f32.mrb[40].mxu1 }
 0x98e   :  { %v3878_v52 = vpop.f32.mrb[41].mxu0  ;;  %4691 = vmatmul.mubr.bf16.vlgmr.msra.gmra.mrb[60].mxu1 %v4124_v41  ;;  %v4097_v9 = vpop.f32.mrb[41].mxu1  ;;  %v9325_v29 = vadd.f32 %v3876_v26, %v3546_v17  ;;  %v12667_v25 = vadd.f32 %v4095_v51, %v3546_v17 }
 0x98f   :  { %v3880_v1 = vpop.f32.mrb[42].mxu0  ;;  %v4099_v15 = vpop.f32.mrb[42].mxu1  ;;  %v9326_v33 = vadd.f32 %v3878_v52, %v3546_v17  ;;  %v12671_v53 = vadd.f32 %v4097_v9, %v3546_v17 }
 0x990   :  { %v9327_v62 = vadd.f32 %v3880_v1, %v3551_v27  ;;  %v3882_v39 = vpop.f32.mrb[43].mxu0  ;;  %v12669_v31 = vadd.f32 %v4099_v15, %v3551_v27  ;;  %v4101_v38 = vpop.f32.mrb[43].mxu1 }
 0x991   :  { %v9328_v8 = vadd.f32 %v3882_v39, %v3551_v27  ;;  %v12673_v13 = vadd.f32 %v4101_v38, %v3551_v27  ;;  %v3566_v27 = vpop.permute.xlu1 %3565  ;;  %v3571_v51 = vpop.permute.xlu0 %3570 }
 0x992   :  { %v4128_v45 = vpack.c.bf16 %v9327_v62, %v9325_v29  ;;  %v4130_v54 = vpack.c.bf16 %v12669_v31, %v12667_v25 }
 0x993   :  { %v4129_v18 = vpack.c.bf16 %v9328_v8, %v9326_v33  ;;  %v4131_v40 = vpack.c.bf16 %v12673_v13, %v12671_v53 }
 0x995   :  { %v3886_v57 = vpop.f32.mrb[44].mxu0  ;;  %4698 = vmatprep.mubr.bf16.mxu1 %v4129_v18  ;;  %v4105_v37 = vpop.f32.mrb[44].mxu1 }
 0x996   :  { %v3888_v63 = vpop.f32.mrb[45].mxu0  ;;  %4699 = vmatmul.mubr.bf16.gmra.mrb[64].mxu1 %v4128_v45  ;;  %v4107_v16 = vpop.f32.mrb[45].mxu1  ;;  %v9329_v22 = vadd.f32 %v3886_v57, %v3556_v44  ;;  %v12679_v43 = vadd.f32 %v4105_v37, %v3556_v44 }
 0x997   :  { %v3890_v20 = vpop.f32.mrb[46].mxu0  ;;  %v4109_v4 = vpop.f32.mrb[46].mxu1  ;;  %v9330_v35 = vadd.f32 %v3888_v63, %v3556_v44  ;;  %v12683_v11 = vadd.f32 %v4107_v16, %v3556_v44 }
 0x998   :  { %v9331_v21 = vadd.f32 %v3890_v20, %v3561_v32  ;;  %v3892_v2 = vpop.f32.mrb[47].mxu0  ;;  %v12681_v56 = vadd.f32 %v4109_v4, %v3561_v32  ;;  %v4111_v7 = vpop.f32.mrb[47].mxu1 }
 0x999   :  { %v9332_v3 = vadd.f32 %v3892_v2, %v3561_v32  ;;  %v12685_v41 = vadd.f32 %v4111_v7, %v3561_v32  ;;  %v4524_v53 = vpop.permute.xlu1 %4523  ;;  %v4529_v13 = vpop.permute.xlu0 %4528 }
 0x99a   :  { %v4132_v10 = vpack.c.bf16 %v9331_v21, %v9329_v22  ;;  %v4134_v24 = vpack.c.bf16 %v12681_v56, %v12679_v43 }
 0x99b   :  { %v4133_v17 = vpack.c.bf16 %v9332_v3, %v9330_v35  ;;  %v4135_v26 = vpack.c.bf16 %v12685_v41, %v12683_v11 }
 0x99d   :  { %v3896_v52 = vpop.f32.mrb[48].mxu0  ;;  %4706 = vmatprep.mubr.bf16.mxu1 %v4133_v17  ;;  %v4115_v9 = vpop.f32.mrb[48].mxu1 }
 0x99e   :  { %v3898_v1 = vpop.f32.mrb[49].mxu0  ;;  %4707 = vmatmul.mubr.bf16.gmra.mrb[68].mxu1 %v4132_v10  ;;  %v4117_v29 = vpop.f32.mrb[49].mxu1  ;;  %v9333_v15 = vadd.f32 %v3896_v52, %v3566_v27  ;;  %v12691_v38 = vadd.f32 %v4115_v9, %v3566_v27 }
 0x99f   :  { %v3900_v62 = vpop.f32.mrb[50].mxu0  ;;  %v4119_v33 = vpop.f32.mrb[50].mxu1  ;;  %v9334_v45 = vadd.f32 %v3898_v1, %v3566_v27  ;;  %v12695_v57 = vadd.f32 %v4117_v29, %v3566_v27 }
 0x9a0   :  { %v9335_v39 = vadd.f32 %v3900_v62, %v3571_v51  ;;  %v3902_v8 = vpop.f32.mrb[51].mxu0  ;;  %v12693_v18 = vadd.f32 %v4119_v33, %v3571_v51  ;;  %v4121_v32 = vpop.f32.mrb[51].mxu1 }
 0x9a1   :  { %v9336_v44 = vadd.f32 %v3902_v8, %v3571_v51  ;;  %v12697_v63 = vadd.f32 %v4121_v32, %v3571_v51 }
 0x9a2   :  { %v4136_v37 = vpack.c.bf16 %v9335_v39, %v9333_v15  ;;  %v4138_v16 = vpack.c.bf16 %v12693_v18, %v12691_v38 }
 0x9a3   :  { %v4137_v20 = vpack.c.bf16 %v9336_v44, %v9334_v45  ;;  %v4139_v22 = vpack.c.bf16 %v12697_v63, %v12695_v57 }
 0x9a5   :  { %v8453_v21 = vpop.f32.mrb[52].mxu0  ;;  %4714 = vmatprep.mubr.bf16.mxu1 %v4137_v20 }
 0x9a6   :  { %v8481_v4 = vpop.f32.mrb[52].mxu1  ;;  %v8454_v2 = vpop.f32.mrb[53].mxu0  ;;  %4715 = vmatmul.mubr.bf16.gmra.mrb[72].mxu1 %v4136_v37 }
 0x9a7   :  { %v8455_v35 = vadd.f32 %v8454_v2, %v8453_v21  ;;  %v8482_v3 = vpop.f32.mrb[53].mxu1  ;;  %v8456_v7 = vpop.f32.mrb[54].mxu0 }
 0x9a8   :  { %v8483_v10 = vadd.f32 %v8482_v3, %v8481_v4  ;;  %v8484_v17 = vpop.f32.mrb[54].mxu1  ;;  %v8457_v27 = vpop.f32.mrb[55].mxu0 }
 0x9a9   :  { %v8458_v51 = vadd.f32 %v8457_v27, %v8456_v7  ;;  %v8485_v52 = vpop.f32.mrb[55].mxu1  ;;  %v9661_v27 = vld [vmem:[%s14090_s9 + $0x18] sm:$0xff]  }
 0x9aa   :  { %v4488_v9 = vadd.f32 %v8483_v10, %v8455_v35  ;;  %v8486_v1 = vadd.f32 %v8485_v52, %v8484_v17  ;;  %v9659_v10 = vld [vmem:[%s14090_s9 + $0x8] sm:$0xff]   ;;  %v9660_v17 = vld [vmem:[%s14090_s9 + $0x10] sm:$0xff]   ;;  %s9961_s9 = smov 9  }
 0x9ac   :  { %v4491_v29 = vadd.f32 %v8486_v1, %v8458_v51 }
 0x9ad   :  { %v8459_v62 = vpop.f32.mrb[56].mxu0 }
 0x9ae   :  { %v8487_v15 = vpop.f32.mrb[56].mxu1  ;;  %v8460_v39 = vpop.f32.mrb[57].mxu0  ;;  %v4502_v33 = vpack.c.bf16 %v4491_v29, %v4488_v9 }
 0x9af   :  { %v8461_v8 = vadd.f32 %v8460_v39, %v8459_v62  ;;  %v8488_v45 = vpop.f32.mrb[57].mxu1  ;;  %v8462_v44 = vpop.f32.mrb[58].mxu0 }
 0x9b0   :  { %v8489_v32 = vadd.f32 %v8488_v45, %v8487_v15  ;;  %v8490_v37 = vpop.f32.mrb[58].mxu1  ;;  %9057 = vmatprep.subr.bf16.mxu0 %v4502_v33  ;;  %v8463_v20 = vpop.f32.mrb[59].mxu0 }
 0x9b1   :  { %v8464_v21 = vadd.f32 %v8463_v20, %v8462_v44  ;;  %v8491_v4 = vpop.f32.mrb[59].mxu1  ;;  %9058 = vmatpush3.bf16.msra.mxu0 %v4502_v33 }
 0x9b2   :  { %v4496_v2 = vadd.f32 %v8489_v32, %v8461_v8  ;;  %v8492_v3 = vadd.f32 %v8491_v4, %v8490_v37 }
 0x9b4   :  { %v4499_v7 = vadd.f32 %v8492_v3, %v8464_v21 }
 0x9b6   :  { %v4503_v35 = vpack.c.bf16 %v4499_v7, %v4496_v2 }
 0x9b8   :  { %9059 = vmatprep.subr.bf16.mxu0 %v4503_v35 }
 0x9b9   :  { %9060 = vmatpush3.bf16.msra.mxu0 %v4503_v35 }
 0x9ba   :  { %8539 = vmatprep.subr.bf16.mxu0 %v12433_v42 }
 0x9bc   :  { %9062 = vmatmul.mubr.msk.bf16.vlgmr.msra.gmra.mrb[60].mxu0 %vm1529_vm8, %v9659_v10 }
 0x9bd   :  { %8540 = vmatpush3.bf16.msra.mxu0 %v12447_v48  ;;  %9065 = vmatprep.mubr.msk.bf16.mxu0 %vm1529_vm8, %v9660_v17 }
 0x9be   :  { %8541 = vmatprep.subr.bf16.mxu0 %v12458_v50 }
 0x9c1   :  { %8542 = vmatpush3.bf16.msra.mxu0 %v12473_v49 }
 0x9c2   :  { %8543 = vmatprep.subr.bf16.mxu0 %v12485_v61 }
 0x9c4   :  { %9066 = vmatmul.mubr.msk.bf16.gmra.mrb[64].mxu0 %vm1529_vm8, %v9661_v27 }
 0x9c5   :  { %8544 = vmatpush3.bf16.msra.mxu0 %v12502_v5  ;;  %4755 = vmatprep.mubr.bf16.mxu0 %v4127_v58 }
 0x9c6   :  { %8545 = vmatprep.subr.bf16.mxu0 %v12513_v0 }
 0x9c9   :  { %8546 = vmatpush3.bf16.msra.mxu0 %v12528_v47 }
 0x9ca   :  { %8547 = vmatprep.subr.bf16.mxu0 %v12538_v6 }
 0x9cd   :  { %8548 = vmatpush3.bf16.msra.mxu0 %v12552_v28 }
 0x9ce   :  { %8549 = vmatprep.subr.bf16.mxu0 %v12561_v30 }
 0x9d1   :  { %8550 = vmatpush3.bf16.msra.mxu0 %v12572_v34 }
 0x9d2   :  { %8551 = vmatprep.subr.bf16.mxu0 %v12582_v55 }
 0x9d5   :  { %8552 = vmatpush3.bf16.msra.mxu0 %v12595_v14 }
 0x9d6   :  { %8553 = vmatprep.subr.bf16.mxu0 %v12605_v36 }
 0x9d9   :  { %8554 = vmatpush3.bf16.msra.mxu0 %v12618_v60 }
 0x9dc   :  { %4756 = vmatmul.mubr.bf16.vlgmr.msra.gmra.mrb[68].mxu0 %v4126_v19 }
 0x9dd   :  { %4763 = vmatprep.mubr.bf16.mxu0 %v4131_v40  ;;  %v4539_v40 = vpop.permute.xlu0 %4538 }
 0x9e1   :  { %v4549_v63 = vpop.permute.xlu0 %4548 }
 0x9e4   :  { %4764 = vmatmul.mubr.bf16.gmra.mrb[72].mxu0 %v4130_v54  ;;  %v4534_v54 = vpop.permute.xlu1 %4533 }
 0x9e5   :  { %4771 = vmatprep.mubr.bf16.mxu0 %v4135_v26  ;;  %v4559_v15 = vpop.permute.xlu0 %4558 }
 0x9e8   :  { %v4544_v41 = vpop.permute.xlu1 %4543 }
 0x9ec   :  { %4772 = vmatmul.mubr.bf16.gmra.mrb[76].mxu0 %v4134_v24  ;;  %v4554_v9 = vpop.permute.xlu1 %4553 }
 0x9ed   :  { %4779 = vmatprep.mubr.bf16.mxu0 %v4139_v22 }
 0x9f4   :  { %4780 = vmatmul.mubr.bf16.gmra.mrb[80].mxu0 %v4138_v16 }
 0xa61   :  { %v8515_v42 = vpop.f32.mrb[60].mxu1 }
 0xa62   :  { %v8516_v48 = vpop.f32.mrb[61].mxu1 }
 0xa63   :  { %v8517_v50 = vadd.f32 %v8516_v48, %v8515_v42  ;;  %v8518_v49 = vpop.f32.mrb[62].mxu1 }
 0xa64   :  { %v8519_v61 = vpop.f32.mrb[63].mxu1 }
 0xa65   :  { %v8520_v5 = vadd.f32 %v8519_v61, %v8518_v49 }
 0xa69   :  { %v8521_v0 = vpop.f32.mrb[64].mxu1 }
 0xa6a   :  { %v8522_v47 = vpop.f32.mrb[65].mxu1 }
 0xa6b   :  { %v8523_v6 = vadd.f32 %v8522_v47, %v8521_v0  ;;  %v8524_v28 = vpop.f32.mrb[66].mxu1 }
 0xa6c   :  { %v8525_v30 = vpop.f32.mrb[67].mxu1 }
 0xa6d   :  { %v8526_v34 = vadd.f32 %v8525_v30, %v8524_v28 }
 0xa71   :  { %v8527_v55 = vpop.f32.mrb[68].mxu1 }
 0xa72   :  { %v8528_v14 = vpop.f32.mrb[69].mxu1 }
 0xa73   :  { %v8529_v36 = vadd.f32 %v8528_v14, %v8527_v55  ;;  %v8530_v60 = vpop.f32.mrb[70].mxu1 }
 0xa74   :  { %v8531_v23 = vpop.f32.mrb[71].mxu1 }
 0xa75   :  { %v8532_v46 = vadd.f32 %v8531_v23, %v8530_v60 }
 0xa79   :  { %v8533_v59 = vpop.f32.mrb[72].mxu1 }
 0xa7a   :  { %v8534_v12 = vpop.f32.mrb[73].mxu1 }
 0xa7b   :  { %v8535_v19 = vadd.f32 %v8534_v12, %v8533_v59  ;;  %v8536_v58 = vpop.f32.mrb[74].mxu1 }
 0xa7c   :  { %v8537_v25 = vpop.f32.mrb[75].mxu1 }
 0xa7d   :  { %v8538_v31 = vadd.f32 %v8537_v25, %v8536_v58 }
 0xa8f   :  { %v9063_v43 = vpop.f32.mrb[60].mxu0 }
 0xa90   :  { %v4636_v56 = vadd.f32 %v9063_v43, %v4534_v54  ;;  %v4627_v11 = vpop.f32.mrb[61].mxu0 }
 0xa91   :  { %v4628_v24 = vadd.f32 %v4627_v11, %v4524_v53  ;;  %v9064_v26 = vpop.f32.mrb[62].mxu0 }
 0xa92   :  { %v4701_v38 = vadd.f32 %v8523_v6, %v4636_v56  ;;  %v4639_v18 = vadd.f32 %v9064_v26, %v4539_v40  ;;  %v4630_v57 = vpop.f32.mrb[63].mxu0 }
 0xa93   :  { %v4693_v16 = vadd.f32 %v8517_v50, %v4628_v24  ;;  %v4631_v22 = vadd.f32 %v4630_v57, %v4529_v13 }
 0xa94   :  { %v4704_v51 = vadd.f32 %v8526_v34, %v4639_v18 }
 0xa95   :  { %v4696_v52 = vadd.f32 %v8520_v5, %v4631_v22 }
 0xa97   :  { %v9067_v1 = vpop.f32.mrb[64].mxu0 }
 0xa98   :  { %v4652_v29 = vadd.f32 %v9067_v1, %v4554_v9  ;;  %v4643_v62 = vpop.f32.mrb[65].mxu0  ;;  %v8212_v9 = vld [vmem:[%s14227_s28 + $0x388] sm:$0xff]  ;;  %v8211_v1 = vld [vmem:[%s14227_s28 + $0x380] sm:$0xff] }
 0xa99   :  { %v4644_v39 = vadd.f32 %v4643_v62, %v4544_v41  ;;  %v9068_v33 = vpop.f32.mrb[66].mxu0  ;;  %v8213_v62 = vld [vmem:[%s14227_s28 + $0x390] sm:$0xff] }
 0xa9a   :  { %v4717_v8 = vadd.f32 %v8535_v19, %v4652_v29  ;;  %v4655_v45 = vadd.f32 %v9068_v33, %v4559_v15  ;;  %v4646_v44 = vpop.f32.mrb[67].mxu0  ;;  %v8214_v29 = vld [vmem:[%s14227_s28 + $0x398] sm:$0xff]  ;;  %v8216_v15 = vld [vmem:[%s14227_s28 + $0x3a8] sm:$0xff] }
 0xa9b   :  { %v4709_v32 = vadd.f32 %v8529_v36, %v4644_v39  ;;  %v4647_v37 = vadd.f32 %v4646_v44, %v4549_v63  ;;  %v8215_v39 = vld [vmem:[%s14227_s28 + $0x3a0] sm:$0xff]  ;;  %v8218_v33 = vld [vmem:[%s14227_s28 + $0x3b8] sm:$0xff] }
 0xa9c   :  { %v4720_v20 = vadd.f32 %v8538_v31, %v4655_v45  ;;  %v8220_v45 = vld [vmem:[%s14227_s28 + $0x3c8] sm:$0xff]  ;;  %v8219_v44 = vld [vmem:[%s14227_s28 + $0x3c0] sm:$0xff] }
 0xa9d   :  { %v4712_v21 = vadd.f32 %v8532_v46, %v4647_v37  ;;  %v8221_v37 = vld [vmem:[%s14227_s28 + $0x3d0] sm:$0xff] }
 0xaaf   :  { %v8555_v4 = vpop.f32.mrb[68].mxu0 }
 0xab0   :  { %v8556_v2 = vpop.f32.mrb[69].mxu0 }
 0xab1   :  { %v8557_v3 = vadd.f32 %v8556_v2, %v8555_v4  ;;  %v8558_v7 = vpop.f32.mrb[70].mxu0  ;;  %v8226_v4 = vld [vmem:[%s14227_s28 + $0x3f8] sm:$0xff]  ;;  %v8225_v2 = vld [vmem:[%s14227_s28 + $0x3f0] sm:$0xff] }
 0xab2   :  { %v8559_v35 = vpop.f32.mrb[71].mxu0 }
 0xab3   :  { %v12755_v10 = vadd.f32 %v8557_v3, %v4693_v16  ;;  %v8560_v17 = vadd.f32 %v8559_v35, %v8558_v7  ;;  %v4892_v3 = vld [vmem:[#allocation7] sm:$0x2]  ;;  %v4837_v7 = vld [vmem:[#allocation7] sm:$0x1] }
 0xab4   :  { %v4894_v35 = vpack.i.b16 %v4892_v3, %v4892_v3 }
 0xab5   :  { %v12757_v27 = vadd.f32 %v8560_v17, %v4696_v52  ;;  %v4788_v42 = vmax.f32 %v12755_v10, 0.0  ;;  %v9678_v52 = vld [vmem:[%s14091_s10 + $0xc] ss:$20 sps:$4 sm:$0xff]   ;;  %v4839_v17 = vpack.i.b16 %v4837_v7, %v4837_v7 }
 0xab6   :  { %5524 = vmatprep.mubr.bf16.mxu0 %v9678_v52 }
 0xab7   :  { %v4789_v48 = vmax.f32 %v12757_v27, 0.0  ;;  %v8561_v50 = vpop.f32.mrb[72].mxu0  ;;  %v7092_v49 = vpack.c.bf16 %v12757_v27, %v12755_v10  ;;  %v9809_v10 = vld [vmem:[%s14092_s11 + $0xe8] ss:$36 sps:$4 sm:$0xff]  }
 0xab8   :  { %v8562_v61 = vpop.f32.mrb[73].mxu0 }
 0xab9   :  { %v12763_v5 = vpack.c.bf16 %v4789_v48, %v4788_v42  ;;  %v8563_v0 = vadd.f32 %v8562_v61, %v8561_v50  ;;  %v8564_v47 = vpop.f32.mrb[74].mxu0  ;;  %v14397_v42 = vld [vmem:[#allocation14_spill] sm:$0xff]  ;;  %v14398_v50 = vld [vmem:[#allocation12_spill] sm:$0xff] }
 0xaba   :  { %v8565_v6 = vpop.f32.mrb[75].mxu0  ;;  %v12914_v48 = vrot.slane %v4894_v35, %v14397_v42  ;;  %v12917_v61 = vrot.slane %v4839_v17, %v14398_v50  ;;  %v9662_v35 = vld [vmem:[%s14091_s10] ss:$20 sps:$4 sm:$0xff]  }
 0xabb   :  { %v12765_v28 = vadd.f32 %v8563_v0, %v4701_v38  ;;  %v8566_v30 = vadd.f32 %v8565_v6, %v8564_v47  ;;  %4821 = vrot.lane.b32.xlu0 %v12763_v5, %s9961_s9  ;;  %4876 = vrot.lane.b32.xlu1 %v12763_v5, %s9962_s3 }
 0xabd   :  { %v12771_v34 = vadd.f32 %v8566_v30, %v4704_v51  ;;  %v4790_v55 = vmax.f32 %v12765_v28, 0.0  ;;  %v9664_v51 = vld [vmem:[%s14091_s10 + $0x4] ss:$20 sps:$4 sm:$0xff]  }
 0xabe   :  { %5427 = vmatprep.mubr.bf16.mxu1 %v9664_v51 }
 0xabf   :  { %v4791_v14 = vmax.f32 %v12771_v34, 0.0  ;;  %v7093_v36 = vpack.c.bf16 %v12771_v34, %v12765_v28  ;;  %v8567_v60 = vpop.f32.mrb[76].mxu0  ;;  %v9812_v28 = vld [vmem:[%s14092_s11 + $0x130] ss:$36 sps:$4 sm:$0xff]   ;;  %v9813_v34 = vld [vmem:[%s14092_s11 + $0x17c] ss:$36 sps:$4 sm:$0xff]  }
 0xac0   :  { %v8568_v23 = vpop.f32.mrb[77].mxu0 }
 0xac1   :  { %v12777_v46 = vpack.c.bf16 %v4791_v14, %v4790_v55  ;;  %v8569_v59 = vadd.f32 %v8568_v23, %v8567_v60  ;;  %v8570_v12 = vpop.f32.mrb[78].mxu0 }
 0xac2   :  { %v8571_v19 = vpop.f32.mrb[79].mxu0 }
 0xac3   :  { %v12779_v58 = vadd.f32 %v8569_v59, %v4709_v32  ;;  %v8572_v25 = vadd.f32 %v8571_v19, %v8570_v12  ;;  %4823 = vrot.lane.b32.xlu0 %v12777_v46, %s9961_s9  ;;  %4878 = vrot.lane.b32.xlu1 %v12777_v46, %s9962_s3  ;;  %v8222_v32 = vld [vmem:[%s14227_s28 + $0x3d8] sm:$0xff] }
 0xac5   :  { %v12785_v31 = vadd.f32 %v8572_v25, %v4712_v21  ;;  %v4792_v53 = vmax.f32 %v12779_v58, 0.0  ;;  %v8223_v21 = vld [vmem:[%s14227_s28 + $0x3e0] sm:$0xff] }
 0xac7   :  { %v4793_v13 = vmax.f32 %v12785_v31, 0.0  ;;  %v8573_v54 = vpop.f32.mrb[80].mxu0  ;;  %v7094_v40 = vpack.c.bf16 %v12785_v31, %v12779_v58  ;;  %v9816_v58 = vld [vmem:[%s14092_s11 + $0x1c4] ss:$36 sps:$4 sm:$0xff]  }
 0xac8   :  { %v8574_v43 = vpop.f32.mrb[81].mxu0  ;;  %v9818_v31 = vld [vmem:[%s14092_s11 + $0x1c0] ss:$36 sps:$4 sm:$0xff]  }
 0xac9   :  { %v12791_v56 = vpack.c.bf16 %v4793_v13, %v4792_v53  ;;  %v8575_v11 = vadd.f32 %v8574_v43, %v8573_v54  ;;  %v8576_v41 = vpop.f32.mrb[82].mxu0  ;;  %v4920_v53 = vshrl.u32 %v4892_v3, 16  ;;  %v4865_v13 = vshrl.u32 %v4837_v7, 16  ;;  %v14399_v3 = vld [vmem:[#allocation24_spill] sm:$0xff] }
 0xaca   :  { %v8577_v24 = vpop.f32.mrb[83].mxu0 }
 0xacb   :  { %v12793_v26 = vadd.f32 %v8575_v11, %v4717_v8  ;;  %v8578_v38 = vadd.f32 %v8577_v24, %v8576_v41  ;;  %4825 = vrot.lane.b32.xlu0 %v12791_v56, %s9961_s9  ;;  %4880 = vrot.lane.b32.xlu1 %v12791_v56, %s9962_s3  ;;  %v8217_v8 = vld [vmem:[%s14227_s28 + $0x3b0] sm:$0xff]  ;;  %v4921_v54 = vpack.i.b16 %v4920_v53, %v4920_v53 }
 0xacc   :  { %v4866_v43 = vpack.i.b16 %v4865_v13, %v4865_v13 }
 0xacd   :  { %v12799_v18 = vadd.f32 %v8578_v38, %v4720_v20  ;;  %v4794_v57 = vmax.f32 %v12793_v26, 0.0  ;;  %v8224_v20 = vld [vmem:[%s14227_s28 + $0x3e8] sm:$0xff] }
 0xacf   :  { %v4795_v63 = vmax.f32 %v12799_v18, 0.0  ;;  %v7095_v16 = vpack.c.bf16 %v12799_v18, %v12793_v26  ;;  %v9821_v26 = vld [vmem:[%s14092_s11 + $0x208] ss:$36 sps:$4 sm:$0xff]   ;;  %v9822_v18 = vld [vmem:[%s14092_s11 + $0x20] ss:$36 sps:$4 sm:$0xff]  }
 0xad1   :  { %v12805_v22 = vpack.c.bf16 %v4795_v63, %v4794_v57  ;;  %v12928_v57 = vrot.slane %v4921_v54, %v14397_v42  ;;  %v12931_v63 = vrot.slane %v4866_v43, %v14398_v50 }
 0xad3   :  { %4827 = vrot.lane.b32.xlu0 %v12805_v22, %s9961_s9  ;;  %4882 = vrot.lane.b32.xlu1 %v12805_v22, %s9962_s3 }
 0xad7   :  { %4849 = vrot.lane.b32.xlu0 %v12763_v5, %s9963_s6  ;;  %4904 = vrot.lane.b32.xlu1 %v12763_v5, %s9955_s19 }
 0xadb   :  { %4851 = vrot.lane.b32.xlu0 %v12777_v46, %s9963_s6  ;;  %4906 = vrot.lane.b32.xlu1 %v12777_v46, %s9955_s19 }
 0xadf   :  { %4853 = vrot.lane.b32.xlu0 %v12791_v56, %s9963_s6  ;;  %4908 = vrot.lane.b32.xlu1 %v12791_v56, %s9955_s19 }
 0xae3   :  { %4855 = vrot.lane.b32.xlu0 %v12805_v22, %s9963_s6  ;;  %4910 = vrot.lane.b32.xlu1 %v12805_v22, %s9955_s19 }
 0xae7   :  { %4962 = vrot.lane.b32.xlu0 %v12777_v46, %s9964_s27  ;;  %4960 = vrot.lane.b32.xlu1 %v12763_v5, %s9964_s27 }
 0xaeb   :  { %4966 = vrot.lane.b32.xlu0 %v12805_v22, %s9964_s27  ;;  %4964 = vrot.lane.b32.xlu1 %v12791_v56, %s9964_s27 }
 0xaef   :  { %4931 = vrot.lane.b32.xlu0 %v12763_v5, %s9956_s1  ;;  %4988 = vrot.lane.b32.xlu1 %v12763_v5, %s9965_s0 }
 0xaf3   :  { %4933 = vrot.lane.b32.xlu0 %v12777_v46, %s9956_s1  ;;  %4990 = vrot.lane.b32.xlu1 %v12777_v46, %s9965_s0 }
 0xaf7   :  { %4935 = vrot.lane.b32.xlu0 %v12791_v56, %s9956_s1  ;;  %4992 = vrot.lane.b32.xlu1 %v12791_v56, %s9965_s0 }
 0xafb   :  { %4937 = vrot.lane.b32.xlu0 %v12805_v22, %s9956_s1  ;;  %4994 = vrot.lane.b32.xlu1 %v12805_v22, %s9965_s0 }
 0xaff   :  { %5017 = vrot.lane.b32.xlu0 %v12777_v46, %s9966_s24  ;;  %5015 = vrot.lane.b32.xlu1 %v12763_v5, %s9966_s24 }
 0xb03   :  { %5021 = vrot.lane.b32.xlu0 %v12805_v22, %s9966_s24  ;;  %5019 = vrot.lane.b32.xlu1 %v12791_v56, %s9966_s24 }
 0xb07   :  { %5098 = vperm.xlu0 %9535, %v8212_v9   ;;  %5093 = vperm.xlu1 %9536, %v8211_v1  }
 0xb0b   :  { %5108 = vperm.xlu0 %9535, %v8214_v29   ;;  %5103 = vperm.xlu1 %9536, %v8213_v62  }
 0xb0f   :  { %5118 = vperm.xlu0 %9535, %v8216_v15   ;;  %5113 = vperm.xlu1 %9536, %v8215_v39  }
 0xb13   :  { %5128 = vperm.xlu0 %9535, %v8218_v33   ;;  %5123 = vperm.xlu1 %9536, %v8217_v8   ;;  %v4976_v33 = vld [vmem:[#allocation7] sm:$0x8] }
 0xb17   :  { %5138 = vperm.xlu0 %9535, %v8220_v45   ;;  %5133 = vperm.xlu1 %9536, %v8219_v44  }
 0xb1b   :  { %5148 = vperm.xlu0 %9535, %v8222_v32   ;;  %5143 = vperm.xlu1 %9536, %v8221_v37   ;;  %v4978_v37 = vpack.i.b16 %v4976_v33, %v4976_v33 }
 0xb1d   :  { %v12942_v7 = vrot.slane %v4978_v37, %v14399_v3 }
 0xb1f   :  { %5158 = vperm.xlu0 %9535, %v8224_v20   ;;  %5153 = vperm.xlu1 %9536, %v8223_v21  }
 0xb23   :  { %5168 = vperm.xlu0 %9535, %v8226_v4   ;;  %5163 = vperm.xlu1 %9536, %v8225_v2  }
 0xb2d   :  { %v4877_v0 = vpop.permute.xlu1 %4876  ;;  %v4822_v47 = vpop.permute.xlu0 %4821 }
 0xb2e   :  { %v4900_v6 = vmul.bf16 %v12914_v48, %v4877_v0  ;;  %v4845_v30 = vmul.bf16 %v12917_v61, %v4822_v47  ;;  %v9665_v0 = vld [vmem:[%s14091_s10 + $0x2c] ss:$20 sps:$4 sm:$0xff]  }
 0xb30   :  { %8579 = vmatprep.subr.bf16.mxu1 %v4900_v6 }
 0xb31   :  { %8580 = vmatpush3.bf16.msra.mxu1 %v4845_v30  ;;  %v5004_v30 = vshrl.u32 %v4976_v33, 16 }
 0xb35   :  { %v4879_v55 = vpop.permute.xlu1 %4878  ;;  %v4824_v14 = vpop.permute.xlu0 %4823 }
 0xb36   :  { %v4901_v60 = vmul.bf16 %v12914_v48, %v4879_v55  ;;  %v4846_v23 = vmul.bf16 %v12917_v61, %v4824_v14  ;;  %v4947_v55 = vld [vmem:[#allocation7] sm:$0x4] }
 0xb38   :  { %8581 = vmatprep.subr.bf16.mxu1 %v4901_v60 }
 0xb39   :  { %8582 = vmatpush3.bf16.msra.mxu1 %v4846_v23  ;;  %v4949_v23 = vshrl.u32 %v4947_v55, 16 }
 0xb3b   :  { %v4950_v13 = vpack.i.b16 %v4949_v23, %v4949_v23  ;;  %v9686_v23 = vld [vmem:[%s14091_s10 + $0xf4] ss:$20 sps:$4 sm:$0xff]  }
 0xb3d   :  { %v4881_v59 = vpop.permute.xlu1 %4880  ;;  %v4826_v12 = vpop.permute.xlu0 %4825 }
 0xb3e   :  { %v4902_v19 = vmul.bf16 %v12914_v48, %v4881_v59  ;;  %v4847_v25 = vmul.bf16 %v12917_v61, %v4826_v12  ;;  %v5005_v12 = vpack.i.b16 %v5004_v30, %v5004_v30  ;;  %v9682_v30 = vld [vmem:[%s14091_s10 + $0x34] ss:$20 sps:$4 sm:$0xff]  }
 0xb40   :  { %8583 = vmatprep.subr.bf16.mxu1 %v4902_v19  ;;  %v9667_v19 = vld [vmem:[%s14091_s10 + $0x28] ss:$20 sps:$4 sm:$0xff]   ;;  %v12963_v43 = vrot.slane %v5005_v12, %v14399_v3  ;;  %v9690_v12 = vld [vmem:[%s14091_s10 + $0xf0] ss:$20 sps:$4 sm:$0xff]  }
 0xb41   :  { %8584 = vmatpush3.bf16.msra.mxu1 %v4847_v25 }
 0xb45   :  { %v4883_v11 = vpop.permute.xlu1 %4882  ;;  %v4828_v41 = vpop.permute.xlu0 %4827 }
 0xb46   :  { %v4903_v24 = vmul.bf16 %v12914_v48, %v4883_v11  ;;  %v4848_v38 = vmul.bf16 %v12917_v61, %v4828_v41 }
 0xb48   :  { %8585 = vmatprep.subr.bf16.mxu1 %v4903_v24 }
 0xb49   :  { %v4905_v51 = vpop.permute.xlu1 %4904  ;;  %8586 = vmatpush3.bf16.msra.mxu1 %v4848_v38  ;;  %v4850_v52 = vpop.permute.xlu0 %4849  ;;  %v5031_v38 = vld [vmem:[#allocation7 + $0x4] sm:$0x1] }
 0xb4a   :  { %v4927_v9 = vmul.bf16 %v12928_v57, %v4905_v51  ;;  %v4872_v1 = vmul.bf16 %v12931_v63, %v4850_v52  ;;  %v9670_v52 = vld [vmem:[%s14091_s10 + $0x50] ss:$20 sps:$4 sm:$0xff]  }
 0xb4c   :  { %8587 = vmatprep.subr.bf16.mxu1 %v4927_v9 }
 0xb4d   :  { %v4907_v29 = vpop.permute.xlu1 %4906  ;;  %8588 = vmatpush3.bf16.msra.mxu1 %v4872_v1  ;;  %v4852_v62 = vpop.permute.xlu0 %4851 }
 0xb4e   :  { %v4928_v15 = vmul.bf16 %v12928_v57, %v4907_v29  ;;  %v4873_v39 = vmul.bf16 %v12931_v63, %v4852_v62  ;;  %v5033_v29 = vpack.i.b16 %v5031_v38, %v5031_v38  ;;  %v9703_v38 = vld [vmem:[%s14091_s10 + $0xd4] ss:$20 sps:$4 sm:$0xff]  }
 0xb50   :  { %8589 = vmatprep.subr.bf16.mxu1 %v4928_v15 }
 0xb51   :  { %v4909_v8 = vpop.permute.xlu1 %4908  ;;  %8590 = vmatpush3.bf16.msra.mxu1 %v4873_v39  ;;  %v4854_v45 = vpop.permute.xlu0 %4853 }
 0xb52   :  { %v4929_v44 = vmul.bf16 %v12928_v57, %v4909_v8  ;;  %v4874_v32 = vmul.bf16 %v12931_v63, %v4854_v45  ;;  %v12980_v8 = vrot.slane %v5033_v29, %v14398_v50  ;;  %v9674_v50 = vld [vmem:[%s14091_s10 + $0xa4] ss:$20 sps:$4 sm:$0xff]  }
 0xb53   :  { %v9711_v29 = vld [vmem:[%s14091_s10 + $0xf8] ss:$20 sps:$4 sm:$0xff]  }
 0xb54   :  { %8591 = vmatprep.subr.bf16.mxu1 %v4929_v44  ;;  %v9673_v44 = vld [vmem:[%s14091_s10 + $0x78] ss:$20 sps:$4 sm:$0xff]  }
 0xb55   :  { %v4911_v20 = vpop.permute.xlu1 %4910  ;;  %8592 = vmatpush3.bf16.msra.mxu1 %v4874_v32  ;;  %v4856_v21 = vpop.permute.xlu0 %4855 }
 0xb56   :  { %v4930_v4 = vmul.bf16 %v12928_v57, %v4911_v20  ;;  %v4875_v2 = vmul.bf16 %v12931_v63, %v4856_v21 }
 0xb58   :  { %8593 = vmatprep.subr.bf16.mxu1 %v4930_v4 }
 0xb59   :  { %v4961_v17 = vpop.permute.xlu1 %4960  ;;  %8594 = vmatpush3.bf16.msra.mxu1 %v4875_v2  ;;  %v4963_v42 = vpop.permute.xlu0 %4962 }
 0xb5a   :  { %v4984_v47 = vmul.bf16 %v12942_v7, %v4961_v17  ;;  %v4985_v6 = vmul.bf16 %v12942_v7, %v4963_v42  ;;  %v9676_v42 = vld [vmem:[%s14091_s10 + $0x8] ss:$20 sps:$4 sm:$0xff]  }
 0xb5c   :  { %5428 = vmatmul.mubr.bf16.vlgmr.msra.gmra.mrb[76].mxu1 %v9662_v35  ;;  %8643 = vmatprep.subr.bf16.mxu0 %v4984_v47 }
 0xb5d   :  { %8644 = vmatpush3.bf16.msra.mxu0 %v12763_v5  ;;  %v4965_v14 = vpop.permute.xlu1 %4964  ;;  %v4967_v60 = vpop.permute.xlu0 %4966  ;;  %5435 = vmatprep.mubr.bf16.mxu1 %v9665_v0  ;;  %v9668_v5 = vld [vmem:[%s14091_s10 + $0x54] ss:$20 sps:$4 sm:$0xff]  }
 0xb5e   :  { %8645 = vmatprep.subr.bf16.mxu0 %v4985_v6  ;;  %v4986_v59 = vmul.bf16 %v12942_v7, %v4965_v14  ;;  %v4987_v54 = vmul.bf16 %v12942_v7, %v4967_v60  ;;  %v9679_v0 = vld [vmem:[%s14091_s10 + $0xa0] ss:$20 sps:$4 sm:$0xff]   ;;  %v9684_v14 = vld [vmem:[%s14091_s10 + $0xc8] ss:$20 sps:$4 sm:$0xff]   ;;  %v9685_v60 = vld [vmem:[%s14091_s10 + $0x30] ss:$20 sps:$4 sm:$0xff]  }
 0xb5f   :  { %v9680_v6 = vld [vmem:[%s14091_s10 + $0xcc] ss:$20 sps:$4 sm:$0xff]  }
 0xb61   :  { %v4989_v25 = vpop.permute.xlu1 %4988  ;;  %8646 = vmatpush3.bf16.msra.mxu0 %v12777_v46  ;;  %v4932_v53 = vpop.permute.xlu0 %4931  ;;  %v14400_v46 = vld [vmem:[#allocation19_spill] sm:$0xff] }
 0xb62   :  { %8647 = vmatprep.subr.bf16.mxu0 %v4986_v59  ;;  %v12967_v24 = vrot.slane %v4950_v13, %v14400_v46  ;;  %v5011_v51 = vmul.bf16 %v12963_v43, %v4989_v25  ;;  %v9688_v59 = vld [vmem:[%s14091_s10 + $0x5c] ss:$20 sps:$4 sm:$0xff]   ;;  %v9697_v13 = vld [vmem:[%s14091_s10 + $0x80] ss:$20 sps:$4 sm:$0xff]   ;;  %v9702_v46 = vld [vmem:[%s14091_s10 + $0x38] ss:$20 sps:$4 sm:$0xff]  }
 0xb63   :  { %v9692_v25 = vld [vmem:[%s14091_s10 + $0x11c] ss:$20 sps:$4 sm:$0xff]  }
 0xb64   :  { %5436 = vmatmul.mubr.bf16.gmra.mrb[80].mxu1 %v9667_v19  ;;  %v4956_v62 = vmul.bf16 %v12967_v24, %v4932_v53  ;;  %v9691_v19 = vld [vmem:[%s14091_s10 + $0x58] ss:$20 sps:$4 sm:$0xff]  }
 0xb65   :  { %v4991_v11 = vpop.permute.xlu1 %4990  ;;  %8648 = vmatpush3.bf16.msra.mxu0 %v12791_v56  ;;  %v4934_v41 = vpop.permute.xlu0 %4933  ;;  %5443 = vmatprep.mubr.bf16.mxu1 %v9668_v5  ;;  %v9671_v56 = vld [vmem:[%s14091_s10 + $0x7c] ss:$20 sps:$4 sm:$0xff]   ;;  %v9694_v53 = vld [vmem:[%s14091_s10 + $0x84] ss:$20 sps:$4 sm:$0xff]  }
 0xb66   :  { %8649 = vmatprep.subr.bf16.mxu0 %v4987_v54  ;;  %v5012_v15 = vmul.bf16 %v12963_v43, %v4991_v11  ;;  %v9696_v5 = vld [vmem:[%s14091_s10 + $0x118] ss:$20 sps:$4 sm:$0xff]   ;;  %v9700_v11 = vld [vmem:[%s14091_s10 + $0x10] ss:$20 sps:$4 sm:$0xff]  }
 0xb67   :  { %v9698_v54 = vld [vmem:[%s14091_s10 + $0xac] ss:$20 sps:$4 sm:$0xff]  }
 0xb69   :  { %v4993_v9 = vpop.permute.xlu1 %4992  ;;  %8650 = vmatpush3.bf16.msra.mxu0 %v12805_v22  ;;  %v4936_v1 = vpop.permute.xlu0 %4935  ;;  %v4957_v22 = vmul.bf16 %v12967_v24, %v4934_v41  ;;  %v9701_v41 = vld [vmem:[%s14091_s10 + $0xa8] ss:$20 sps:$4 sm:$0xff]  }
 0xb6a   :  { %8651 = vmatprep.subr.bf16.mxu0 %v5011_v51  ;;  %v5013_v45 = vmul.bf16 %v12963_v43, %v4993_v9  ;;  %v4958_v21 = vmul.bf16 %v12967_v24, %v4936_v1  ;;  %v9705_v51 = vld [vmem:[%s14091_s10 + $0x60] ss:$20 sps:$4 sm:$0xff]   ;;  %v9707_v9 = vld [vmem:[%s14091_s10 + $0x88] ss:$20 sps:$4 sm:$0xff]  }
 0xb6b   :  { %v9708_v1 = vld [vmem:[%s14091_s10 + $0xfc] ss:$20 sps:$4 sm:$0xff]  }
 0xb6c   :  { %5444 = vmatmul.mubr.bf16.gmra.mrb[84].mxu1 %v9670_v52  ;;  %v9706_v52 = vld [vmem:[%s14091_s10 + $0xd0] ss:$20 sps:$4 sm:$0xff]  }
 0xb6d   :  { %v4995_v39 = vpop.permute.xlu1 %4994  ;;  %8652 = vmatpush3.bf16.msra.mxu0 %v4956_v62  ;;  %v4938_v33 = vpop.permute.xlu0 %4937  ;;  %5451 = vmatprep.mubr.bf16.mxu1 %v9671_v56  ;;  %v9710_v56 = vld [vmem:[%s14091_s10 + $0xb0] ss:$20 sps:$4 sm:$0xff]   ;;  %v9712_v62 = vld [vmem:[%s14091_s10 + $0xd8] ss:$20 sps:$4 sm:$0xff]  }
 0xb6e   :  { %8653 = vmatprep.subr.bf16.mxu0 %v5012_v15  ;;  %v5014_v4 = vmul.bf16 %v12963_v43, %v4995_v39  ;;  %v4959_v35 = vmul.bf16 %v12967_v24, %v4938_v33  ;;  %v9713_v15 = vld [vmem:[%s14091_s10 + $0x124] ss:$20 sps:$4 sm:$0xff]   ;;  %v9715_v39 = vld [vmem:[%s14091_s10 + $0x100] ss:$20 sps:$4 sm:$0xff]  }
 0xb6f   :  { %v9716_v33 = vld [vmem:[%s14091_s10 + $0x120] ss:$20 sps:$4 sm:$0xff]  }
 0xb71   :  { %v5016_v32 = vpop.permute.xlu1 %5015  ;;  %8654 = vmatpush3.bf16.msra.mxu0 %v4957_v22  ;;  %v5018_v37 = vpop.permute.xlu0 %5017  ;;  %v9717_v22 = vld [vmem:[%s14091_s10 + $0x128] ss:$20 sps:$4 sm:$0xff]  }
 0xb72   :  { %v5039_v20 = vmul.bf16 %v12980_v8, %v5016_v32  ;;  %8655 = vmatprep.subr.bf16.mxu0 %v5013_v45  ;;  %v5040_v2 = vmul.bf16 %v12980_v8, %v5018_v37 }
 0xb74   :  { %5452 = vmatmul.mubr.bf16.gmra.mrb[88].mxu1 %v9673_v44  ;;  %9069 = vmatprep.subr.bf16.mxu1 %v5039_v20 }
 0xb75   :  { %v5020_v3 = vpop.permute.xlu1 %5019  ;;  %8656 = vmatpush3.bf16.msra.mxu0 %v4958_v21  ;;  %9070 = vmatpush3.bf16.msra.mxu1 %v5039_v20  ;;  %v5022_v47 = vpop.permute.xlu0 %5021 }
 0xb76   :  { %8657 = vmatprep.subr.bf16.mxu0 %v5014_v4  ;;  %9071 = vmatprep.subr.bf16.mxu1 %v5040_v2  ;;  %v5041_v17 = vmul.bf16 %v12980_v8, %v5020_v3  ;;  %v5042_v55 = vmul.bf16 %v12980_v8, %v5022_v47 }
 0xb77   :  { %5459 = vmatprep.mubr.bf16.mxu1 %v9674_v50 }
 0xb79   :  { %8658 = vmatpush3.bf16.msra.mxu0 %v4959_v35  ;;  %9072 = vmatpush3.bf16.msra.mxu1 %v5040_v2 }
 0xb7a   :  { %9073 = vmatprep.subr.bf16.mxu1 %v5041_v17 }
 0xb7c   :  { %5460 = vmatmul.mubr.bf16.gmra.mrb[92].mxu1 %v9679_v0  ;;  %5525 = vmatmul.mubr.bf16.vlgmr.msra.gmra.mrb[84].mxu0 %v9676_v42 }
 0xb7d   :  { %9074 = vmatpush3.bf16.msra.mxu1 %v5041_v17  ;;  %5467 = vmatprep.mubr.bf16.mxu1 %v9680_v6 }
 0xb7e   :  { %9075 = vmatprep.subr.bf16.mxu1 %v5042_v55  ;;  %5532 = vmatprep.mubr.bf16.mxu0 %v9682_v30 }
 0xb81   :  { %9076 = vmatpush3.bf16.msra.mxu1 %v5042_v55 }
 0xb84   :  { %5468 = vmatmul.mubr.bf16.gmra.mrb[96].mxu1 %v9684_v14  ;;  %5533 = vmatmul.mubr.bf16.gmra.mrb[88].mxu0 %v9685_v60 }
 0xb85   :  { %5475 = vmatprep.mubr.bf16.mxu1 %v9686_v23  ;;  %5540 = vmatprep.mubr.bf16.mxu0 %v9688_v59 }
 0xb8c   :  { %5476 = vmatmul.mubr.bf16.gmra.mrb[100].mxu1 %v9690_v12  ;;  %5541 = vmatmul.mubr.bf16.gmra.mrb[92].mxu0 %v9691_v19 }
 0xb8d   :  { %5483 = vmatprep.mubr.bf16.mxu1 %v9692_v25  ;;  %5548 = vmatprep.mubr.bf16.mxu0 %v9694_v53  ;;  %v5094_v25 = vpop.permute.xlu1 %5093  ;;  %v5099_v53 = vpop.permute.xlu0 %5098 }
 0xb94   :  { %5484 = vmatmul.mubr.bf16.gmra.mrb[104].mxu1 %v9696_v5  ;;  %5549 = vmatmul.mubr.bf16.gmra.mrb[96].mxu0 %v9697_v13 }
 0xb95   :  { %5556 = vmatprep.mubr.bf16.mxu0 %v9698_v54  ;;  %9077 = vmatprep.mubr.msk.bf16.mxu1 %vm3673_vm9, %v9700_v11 }
 0xb9c   :  { %5557 = vmatmul.mubr.bf16.gmra.mrb[100].mxu0 %v9701_v41  ;;  %9078 = vmatmul.mubr.msk.bf16.vlgmr.msra.gmra.mrb[108].mxu1 %vm3673_vm9, %v9702_v46 }
 0xb9d   :  { %5564 = vmatprep.mubr.bf16.mxu0 %v9703_v38  ;;  %9081 = vmatprep.mubr.msk.bf16.mxu1 %vm3673_vm9, %v9705_v51 }
 0xba4   :  { %5565 = vmatmul.mubr.bf16.gmra.mrb[104].mxu0 %v9706_v52  ;;  %9082 = vmatmul.mubr.msk.bf16.gmra.mrb[112].mxu1 %vm3673_vm9, %v9707_v9 }
 0xba5   :  { %5572 = vmatprep.mubr.bf16.mxu0 %v9708_v1  ;;  %9085 = vmatprep.mubr.msk.bf16.mxu1 %vm3673_vm9, %v9710_v56 }
 0xbac   :  { %5573 = vmatmul.mubr.bf16.gmra.mrb[108].mxu0 %v9711_v29  ;;  %9086 = vmatmul.mubr.msk.bf16.gmra.mrb[116].mxu1 %vm3673_vm9, %v9712_v62 }
 0xbad   :  { %5580 = vmatprep.mubr.bf16.mxu0 %v9713_v15  ;;  %9089 = vmatprep.mubr.msk.bf16.mxu1 %vm3673_vm9, %v9715_v39 }
 0xbb4   :  { %5581 = vmatmul.mubr.bf16.gmra.mrb[112].mxu0 %v9716_v33  ;;  %9090 = vmatmul.mubr.msk.bf16.gmra.mrb[120].mxu1 %vm3673_vm9, %v9717_v22  ;;  %v5104_v33 = vpop.permute.xlu1 %5103  ;;  %v5109_v22 = vpop.permute.xlu0 %5108 }
 0xc2f   :  { %v8595_v45 = vpop.f32.mrb[76].mxu1 }
 0xc30   :  { %v8596_v44 = vpop.f32.mrb[77].mxu1 }
 0xc31   :  { %v8597_v32 = vadd.f32 %v8596_v44, %v8595_v45  ;;  %v8598_v37 = vpop.f32.mrb[78].mxu1 }
 0xc32   :  { %v8599_v20 = vpop.f32.mrb[79].mxu1 }
 0xc33   :  { %v8600_v21 = vadd.f32 %v8599_v20, %v8598_v37  ;;  %v5430_v41 = vadd.f32 %v8597_v32, %v5094_v25 }
 0xc35   :  { %v5433_v56 = vadd.f32 %v8600_v21, %v5099_v53 }
 0xc37   :  { %v8601_v50 = vpop.f32.mrb[80].mxu1 }
 0xc38   :  { %v8602_v4 = vpop.f32.mrb[81].mxu1 }
 0xc39   :  { %v8603_v2 = vadd.f32 %v8602_v4, %v8601_v50  ;;  %v8604_v3 = vpop.f32.mrb[82].mxu1 }
 0xc3a   :  { %v8605_v35 = vpop.f32.mrb[83].mxu1 }
 0xc3b   :  { %v8606_v17 = vadd.f32 %v8605_v35, %v8604_v3  ;;  %v5438_v20 = vadd.f32 %v8603_v2, %v5104_v33 }
 0xc3f   :  { %v8607_v42 = vpop.f32.mrb[84].mxu1 }
 0xc40   :  { %v8608_v0 = vpop.f32.mrb[85].mxu1 }
 0xc41   :  { %v8609_v47 = vadd.f32 %v8608_v0, %v8607_v42  ;;  %v8610_v6 = vpop.f32.mrb[86].mxu1  ;;  %v5441_v0 = vadd.f32 %v8606_v17, %v5109_v22 }
 0xc42   :  { %v8611_v30 = vpop.f32.mrb[87].mxu1 }
 0xc43   :  { %v8612_v55 = vadd.f32 %v8611_v30, %v8610_v6 }
 0xc47   :  { %v8613_v14 = vpop.f32.mrb[88].mxu1 }
 0xc48   :  { %v8614_v60 = vpop.f32.mrb[89].mxu1 }
 0xc49   :  { %v13095_v23 = vadd.f32 %v8614_v60, %v8613_v14  ;;  %v8616_v59 = vpop.f32.mrb[90].mxu1 }
 0xc4a   :  { %v8617_v12 = vpop.f32.mrb[91].mxu1 }
 0xc4b   :  { %v13097_v19 = vadd.f32 %v8617_v12, %v8616_v59  ;;  %v5114_v59 = vpop.permute.xlu1 %5113  ;;  %v5119_v12 = vpop.permute.xlu0 %5118 }
 0xc4c   :  { %v5446_v2 = vadd.f32 %v8609_v47, %v5114_v59  ;;  %v5449_v17 = vadd.f32 %v8612_v55, %v5119_v12 }
 0xc4f   :  { %v8619_v5 = vpop.f32.mrb[92].mxu1  ;;  %v8659_v13 = vpop.f32.mrb[84].mxu0 }
 0xc50   :  { %v8620_v54 = vpop.f32.mrb[93].mxu1  ;;  %v8660_v11 = vpop.f32.mrb[85].mxu0 }
 0xc51   :  { %v13099_v46 = vadd.f32 %v8620_v54, %v8619_v5  ;;  %v8661_v38 = vadd.f32 %v8660_v11, %v8659_v13  ;;  %v8622_v51 = vpop.f32.mrb[94].mxu1  ;;  %v8662_v52 = vpop.f32.mrb[86].mxu0 }
 0xc52   :  { %v8623_v9 = vpop.f32.mrb[95].mxu1  ;;  %v8663_v1 = vpop.f32.mrb[87].mxu0 }
 0xc53   :  { %v13101_v29 = vadd.f32 %v8623_v9, %v8622_v51  ;;  %v8664_v62 = vadd.f32 %v8663_v1, %v8662_v52  ;;  %v13103_v15 = vadd.f32 %v8661_v38, %v5430_v41  ;;  %v5124_v33 = vpop.permute.xlu1 %5123  ;;  %v5129_v22 = vpop.permute.xlu0 %5128 }
 0xc55   :  { %v13105_v39 = vadd.f32 %v8664_v62, %v5433_v56 }
 0xc57   :  { %v8625_v45 = vpop.f32.mrb[96].mxu1  ;;  %v8665_v44 = vpop.f32.mrb[88].mxu0 }
 0xc58   :  { %v8626_v32 = vpop.f32.mrb[97].mxu1  ;;  %v8666_v37 = vpop.f32.mrb[89].mxu0 }
 0xc59   :  { %v13107_v50 = vadd.f32 %v8626_v32, %v8625_v45  ;;  %v8667_v4 = vadd.f32 %v8666_v37, %v8665_v44  ;;  %v8628_v3 = vpop.f32.mrb[98].mxu1  ;;  %v8668_v35 = vpop.f32.mrb[90].mxu0  ;;  %v5454_v37 = vadd.f32 %v13095_v23, %v5124_v33 }
 0xc5a   :  { %v8629_v21 = vpop.f32.mrb[99].mxu1  ;;  %v8669_v42 = vpop.f32.mrb[91].mxu0 }
 0xc5b   :  { %v13109_v6 = vadd.f32 %v8629_v21, %v8628_v3  ;;  %v8670_v30 = vadd.f32 %v8669_v42, %v8668_v35  ;;  %v5535_v14 = vadd.f32 %v8667_v4, %v5438_v20  ;;  %v5457_v42 = vadd.f32 %v13097_v19, %v5129_v22 }
 0xc5d   :  { %v5538_v60 = vadd.f32 %v8670_v30, %v5441_v0 }
 0xc5f   :  { %v8631_v25 = vpop.f32.mrb[100].mxu1  ;;  %v8671_v53 = vpop.f32.mrb[92].mxu0 }
 0xc60   :  { %v8632_v5 = vpop.f32.mrb[101].mxu1  ;;  %v8672_v13 = vpop.f32.mrb[93].mxu0 }
 0xc61   :  { %v13111_v54 = vadd.f32 %v8632_v5, %v8631_v25  ;;  %v8673_v11 = vadd.f32 %v8672_v13, %v8671_v53  ;;  %v8634_v41 = vpop.f32.mrb[102].mxu1  ;;  %v8674_v38 = vpop.f32.mrb[94].mxu0 }
 0xc62   :  { %v8635_v51 = vpop.f32.mrb[103].mxu1  ;;  %v8675_v52 = vpop.f32.mrb[95].mxu0 }
 0xc63   :  { %v13113_v9 = vadd.f32 %v8635_v51, %v8634_v41  ;;  %v8676_v1 = vadd.f32 %v8675_v52, %v8674_v38  ;;  %v5543_v56 = vadd.f32 %v8673_v11, %v5446_v2  ;;  %v5134_v25 = vpop.permute.xlu1 %5133  ;;  %v5139_v53 = vpop.permute.xlu0 %5138 }
 0xc64   :  { %v5462_v41 = vadd.f32 %v13099_v46, %v5134_v25  ;;  %v5465_v22 = vadd.f32 %v13101_v29, %v5139_v53 }
 0xc65   :  { %v13115_v62 = vadd.f32 %v8676_v1, %v5449_v17 }
 0xc67   :  { %v8637_v45 = vpop.f32.mrb[104].mxu1  ;;  %v8677_v44 = vpop.f32.mrb[96].mxu0 }
 0xc68   :  { %v8638_v32 = vpop.f32.mrb[105].mxu1  ;;  %v8678_v47 = vpop.f32.mrb[97].mxu0 }
 0xc69   :  { %v13118_v20 = vadd.f32 %v8638_v32, %v8637_v45  ;;  %v8679_v4 = vadd.f32 %v8678_v47, %v8677_v44  ;;  %v8640_v3 = vpop.f32.mrb[106].mxu1  ;;  %v8680_v35 = vpop.f32.mrb[98].mxu0 }
 0xc6a   :  { %v8641_v55 = vpop.f32.mrb[107].mxu1  ;;  %v8681_v21 = vpop.f32.mrb[99].mxu0 }
 0xc6b   :  { %v13121_v0 = vadd.f32 %v8641_v55, %v8640_v3  ;;  %v8682_v30 = vadd.f32 %v8681_v21, %v8680_v35  ;;  %v5551_v59 = vadd.f32 %v8679_v4, %v5454_v37  ;;  %v5144_v46 = vpop.permute.xlu1 %5143  ;;  %v5149_v35 = vpop.permute.xlu0 %5148 }
 0xc6c   :  { %v5470_v25 = vadd.f32 %v13107_v50, %v5144_v46 }
 0xc6d   :  { %v5554_v12 = vadd.f32 %v8682_v30, %v5457_v42 }
 0xc6f   :  { %v8683_v5 = vpop.f32.mrb[100].mxu0  ;;  %v9079_v13 = vpop.f32.mrb[108].mxu1 }
 0xc70   :  { %v5632_v2 = vadd.f32 %v9079_v13, %v5535_v14  ;;  %v8684_v23 = vpop.f32.mrb[101].mxu0  ;;  %v5623_v11 = vpop.f32.mrb[109].mxu1 }
 0xc71   :  { %v8685_v38 = vadd.f32 %v8684_v23, %v8683_v5  ;;  %v5624_v51 = vadd.f32 %v5623_v11, %v13103_v15  ;;  %v8686_v52 = vpop.f32.mrb[102].mxu0  ;;  %v9080_v17 = vpop.f32.mrb[110].mxu1 }
 0xc72   :  { %v5635_v19 = vadd.f32 %v9080_v17, %v5538_v60  ;;  %v8687_v1 = vpop.f32.mrb[103].mxu0  ;;  %v5626_v33 = vpop.f32.mrb[111].mxu1  ;;  %v5688_v47 = vmax.f32 %v5632_v2, 0.0 }
 0xc73   :  { %v8688_v45 = vadd.f32 %v8687_v1, %v8686_v52  ;;  %v5627_v44 = vadd.f32 %v5626_v33, %v13105_v39  ;;  %v5559_v32 = vadd.f32 %v8685_v38, %v5462_v41  ;;  %v5686_v37 = vmax.f32 %v5624_v51, 0.0  ;;  %v5159_v1 = vpop.permute.xlu0 %5158 }
 0xc74   :  { %v5689_v14 = vmax.f32 %v5635_v19, 0.0  ;;  %v5473_v41 = vadd.f32 %v13109_v6, %v5149_v35 }
 0xc75   :  { %v5687_v4 = vmax.f32 %v5627_v44, 0.0  ;;  %v5562_v3 = vadd.f32 %v8688_v45, %v5465_v22 }
 0xc76   :  { %v13127_v55 = vpack.c.bf16 %v5689_v14, %v5688_v47 }
 0xc77   :  { %v13129_v15 = vpack.c.bf16 %v5687_v4, %v5686_v37  ;;  %v8689_v60 = vpop.f32.mrb[104].mxu0  ;;  %v9083_v21 = vpop.f32.mrb[112].mxu1 }
 0xc78   :  { %v5648_v42 = vadd.f32 %v9083_v21, %v5551_v59  ;;  %v8690_v30 = vpop.f32.mrb[105].mxu0  ;;  %v5639_v29 = vpop.f32.mrb[113].mxu1 }
 0xc79   :  { %v8691_v39 = vadd.f32 %v8690_v30, %v8689_v60  ;;  %v5640_v53 = vadd.f32 %v5639_v29, %v5543_v56  ;;  %v8692_v5 = vpop.f32.mrb[106].mxu0  ;;  %v9084_v13 = vpop.f32.mrb[114].mxu1  ;;  %5815 = vrot.lane.b32.xlu0 %v13129_v15, %s9962_s3  ;;  %5855 = vrot.lane.b32.xlu1 %v13129_v15, %s9955_s19  ;;  %v5481_v30 = vadd.f32 %v13113_v9, %v5159_v1 }
 0xc7a   :  { %v5651_v2 = vadd.f32 %v9084_v13, %v5554_v12  ;;  %v8693_v23 = vpop.f32.mrb[107].mxu0  ;;  %v5642_v11 = vpop.f32.mrb[115].mxu1  ;;  %v5692_v50 = vmax.f32 %v5648_v42, 0.0 }
 0xc7b   :  { %v8694_v59 = vadd.f32 %v8693_v23, %v8692_v5  ;;  %v5643_v38 = vadd.f32 %v5642_v11, %v13115_v62  ;;  %v5567_v51 = vadd.f32 %v8691_v39, %v5470_v25  ;;  %v5690_v56 = vmax.f32 %v5640_v53, 0.0  ;;  %v5154_v12 = vpop.permute.xlu1 %5153  ;;  %v5169_v23 = vpop.permute.xlu0 %5168 }
 0xc7c   :  { %v5693_v52 = vmax.f32 %v5651_v2, 0.0  ;;  %v5478_v14 = vadd.f32 %v13111_v54, %v5154_v12  ;;  %v5489_v1 = vadd.f32 %v13121_v0, %v5169_v23 }
 0xc7d   :  { %v5691_v17 = vmax.f32 %v5643_v38, 0.0  ;;  %5817 = vrot.lane.b32.xlu0 %v13127_v55, %s9962_s3  ;;  %5857 = vrot.lane.b32.xlu1 %v13127_v55, %s9955_s19  ;;  %v5570_v19 = vadd.f32 %v8694_v59, %v5473_v41 }
 0xc7e   :  { %v13142_v33 = vpack.c.bf16 %v5693_v52, %v5692_v50 }
 0xc7f   :  { %v13144_v6 = vpack.c.bf16 %v5691_v17, %v5690_v56  ;;  %v8695_v22 = vpop.f32.mrb[108].mxu0  ;;  %v9087_v62 = vpop.f32.mrb[116].mxu1 }
 0xc80   :  { %v5664_v45 = vadd.f32 %v9087_v62, %v5567_v51  ;;  %v8696_v44 = vpop.f32.mrb[109].mxu0  ;;  %v5655_v47 = vpop.f32.mrb[117].mxu1 }
 0xc81   :  { %v8697_v37 = vadd.f32 %v8696_v44, %v8695_v22  ;;  %v5656_v4 = vadd.f32 %v5655_v47, %v5559_v32  ;;  %v8698_v46 = vpop.f32.mrb[110].mxu0  ;;  %v9088_v35 = vpop.f32.mrb[118].mxu1  ;;  %5819 = vrot.lane.b32.xlu0 %v13144_v6, %s9962_s3  ;;  %5859 = vrot.lane.b32.xlu1 %v13144_v6, %s9955_s19 }
 0xc82   :  { %v5667_v60 = vadd.f32 %v9088_v35, %v5570_v19  ;;  %v8699_v21 = vpop.f32.mrb[111].mxu0  ;;  %v5658_v42 = vpop.f32.mrb[119].mxu1  ;;  %v5696_v53 = vmax.f32 %v5664_v45, 0.0 }
 0xc83   :  { %v8700_v29 = vadd.f32 %v8699_v21, %v8698_v46  ;;  %v5659_v25 = vadd.f32 %v5658_v42, %v5562_v3  ;;  %v5575_v39 = vadd.f32 %v8697_v37, %v5478_v14  ;;  %v5694_v5 = vmax.f32 %v5656_v4, 0.0  ;;  %v5164_v2 = vpop.permute.xlu1 %5163  ;;  %v9738_v21 = vld [vmem:[%s14092_s11 + $0x4] ss:$36 sps:$4 sm:$0xff]  }
 0xc84   :  { %v5697_v54 = vmax.f32 %v5667_v60, 0.0  ;;  %v5486_v51 = vadd.f32 %v13118_v20, %v5164_v2  ;;  %v9720_v20 = vld [vmem:[%s14092_s11 + $0xc] ss:$36 sps:$4 sm:$0xff]   ;;  %6615 = vmatprep.mubr.bf16.mxu0 %v9738_v21 }
 0xc85   :  { %v5695_v32 = vmax.f32 %v5659_v25, 0.0  ;;  %5821 = vrot.lane.b32.xlu0 %v13142_v33, %s9962_s3  ;;  %5861 = vrot.lane.b32.xlu1 %v13142_v33, %s9955_s19  ;;  %v5578_v13 = vadd.f32 %v8700_v29, %v5481_v30 }
 0xc86   :  { %v13156_v11 = vpack.c.bf16 %v5697_v54, %v5696_v53  ;;  %6712 = vmatprep.mubr.bf16.mxu1 %v9720_v20 }
 0xc87   :  { %v13158_v41 = vpack.c.bf16 %v5695_v32, %v5694_v5  ;;  %v8701_v9 = vpop.f32.mrb[112].mxu0  ;;  %v9091_v3 = vpop.f32.mrb[120].mxu1 }
 0xc88   :  { %v8702_v59 = vpop.f32.mrb[113].mxu0  ;;  %v5671_v38 = vpop.f32.mrb[121].mxu1 }
 0xc89   :  { %v8703_v50 = vadd.f32 %v8702_v59, %v8701_v9  ;;  %v5672_v52 = vadd.f32 %v5671_v38, %v5575_v39  ;;  %v8704_v56 = vpop.f32.mrb[114].mxu0  ;;  %v9092_v17 = vpop.f32.mrb[122].mxu1  ;;  %5823 = vrot.lane.b32.xlu0 %v13158_v41, %s9962_s3  ;;  %5863 = vrot.lane.b32.xlu1 %v13158_v41, %s9955_s19  ;;  %v8276_v9 = vld [vmem:[%s14227_s28 + $0x408] sm:$0xff] }
 0xc8a   :  { %v8705_v19 = vpop.f32.mrb[115].mxu0  ;;  %v5674_v12 = vpop.f32.mrb[123].mxu1 }
 0xc8b   :  { %v5583_v22 = vadd.f32 %v8703_v50, %v5486_v51  ;;  %v8706_v62 = vadd.f32 %v8705_v19, %v8704_v56  ;;  %v5675_v45 = vadd.f32 %v5674_v12, %v5578_v13  ;;  %v5698_v47 = vmax.f32 %v5672_v52, 0.0  ;;  %v8278_v52 = vld [vmem:[%s14227_s28 + $0x418] sm:$0xff]  ;;  %v8277_v56 = vld [vmem:[%s14227_s28 + $0x410] sm:$0xff] }
 0xc8d   :  { %v5680_v44 = vadd.f32 %v9091_v3, %v5583_v22  ;;  %v5586_v14 = vadd.f32 %v8706_v62, %v5489_v1  ;;  %v5699_v37 = vmax.f32 %v5675_v45, 0.0  ;;  %5825 = vrot.lane.b32.xlu0 %v13156_v11, %s9962_s3  ;;  %5865 = vrot.lane.b32.xlu1 %v13156_v11, %s9955_s19  ;;  %v8275_v3 = vld [vmem:[%s14227_s28 + $0x400] sm:$0xff]  ;;  %v8280_v22 = vld [vmem:[%s14227_s28 + $0x428] sm:$0xff] }
 0xc8e   :  { %v8279_v62 = vld [vmem:[%s14227_s28 + $0x420] sm:$0xff] }
 0xc8f   :  { %v5683_v4 = vadd.f32 %v9092_v17, %v5586_v14  ;;  %v13173_v0 = vpack.c.bf16 %v5699_v37, %v5698_v47  ;;  %v5700_v46 = vmax.f32 %v5680_v44, 0.0  ;;  %v8282_v14 = vld [vmem:[%s14227_s28 + $0x438] sm:$0xff]  ;;  %v8281_v37 = vld [vmem:[%s14227_s28 + $0x430] sm:$0xff] }
 0xc91   :  { %v5701_v35 = vmax.f32 %v5683_v4, 0.0  ;;  %5827 = vrot.lane.b32.xlu0 %v13173_v0, %s9962_s3  ;;  %5867 = vrot.lane.b32.xlu1 %v13173_v0, %s9955_s19 }
 0xc93   :  { %v13179_v60 = vpack.c.bf16 %v5701_v35, %v5700_v46 }
 0xc95   :  { %5829 = vrot.lane.b32.xlu0 %v13179_v60, %s9962_s3  ;;  %5869 = vrot.lane.b32.xlu1 %v13179_v60, %s9955_s19 }
 0xc99   :  { %5735 = vrot.lane.b32.xlu0 %v13129_v15, %s9961_s9  ;;  %5775 = vrot.lane.b32.xlu1 %v13129_v15, %s9963_s6 }
 0xc9d   :  { %5737 = vrot.lane.b32.xlu0 %v13127_v55, %s9961_s9  ;;  %5777 = vrot.lane.b32.xlu1 %v13127_v55, %s9963_s6 }
 0xca1   :  { %5739 = vrot.lane.b32.xlu0 %v13144_v6, %s9961_s9  ;;  %5779 = vrot.lane.b32.xlu1 %v13144_v6, %s9963_s6 }
 0xca5   :  { %5741 = vrot.lane.b32.xlu0 %v13142_v33, %s9961_s9  ;;  %5781 = vrot.lane.b32.xlu1 %v13142_v33, %s9963_s6 }
 0xca9   :  { %5743 = vrot.lane.b32.xlu0 %v13158_v41, %s9961_s9  ;;  %5783 = vrot.lane.b32.xlu1 %v13158_v41, %s9963_s6 }
 0xcad   :  { %5785 = vrot.lane.b32.xlu0 %v13156_v11, %s9963_s6  ;;  %5975 = vrot.lane.b32.xlu1 %v13129_v15, %s9965_s0 }
 0xcb1   :  { %5745 = vrot.lane.b32.xlu0 %v13156_v11, %s9961_s9  ;;  %5935 = vrot.lane.b32.xlu1 %v13129_v15, %s9964_s27 }
 0xcb5   :  { %5789 = vrot.lane.b32.xlu0 %v13179_v60, %s9963_s6  ;;  %5977 = vrot.lane.b32.xlu1 %v13127_v55, %s9965_s0 }
 0xcb9   :  { %5787 = vrot.lane.b32.xlu0 %v13173_v0, %s9963_s6  ;;  %5937 = vrot.lane.b32.xlu1 %v13127_v55, %s9964_s27 }
 0xcbd   :  { %5747 = vrot.lane.b32.xlu0 %v13173_v0, %s9961_s9  ;;  %5979 = vrot.lane.b32.xlu1 %v13144_v6, %s9965_s0 }
 0xcc1   :  { %5749 = vrot.lane.b32.xlu0 %v13179_v60, %s9961_s9  ;;  %5939 = vrot.lane.b32.xlu1 %v13144_v6, %s9964_s27 }
 0xcc5   :  { %5941 = vrot.lane.b32.xlu0 %v13142_v33, %s9964_s27  ;;  %5981 = vrot.lane.b32.xlu1 %v13142_v33, %s9965_s0 }
 0xcc9   :  { %5943 = vrot.lane.b32.xlu0 %v13158_v41, %s9964_s27  ;;  %5983 = vrot.lane.b32.xlu1 %v13158_v41, %s9965_s0 }
 0xccd   :  { %5945 = vrot.lane.b32.xlu0 %v13156_v11, %s9964_s27  ;;  %5985 = vrot.lane.b32.xlu1 %v13156_v11, %s9965_s0 }
 0xcd1   :  { %5947 = vrot.lane.b32.xlu0 %v13173_v0, %s9964_s27  ;;  %5987 = vrot.lane.b32.xlu1 %v13173_v0, %s9965_s0 }
 0xcd5   :  { %5949 = vrot.lane.b32.xlu0 %v13179_v60, %s9964_s27  ;;  %5989 = vrot.lane.b32.xlu1 %v13179_v60, %s9965_s0 }
 0xcd9   :  { %5897 = vrot.lane.b32.xlu0 %v13127_v55, %s9956_s1  ;;  %5895 = vrot.lane.b32.xlu1 %v13129_v15, %s9956_s1 }
 0xcdd   :  { %5901 = vrot.lane.b32.xlu0 %v13142_v33, %s9956_s1  ;;  %5899 = vrot.lane.b32.xlu1 %v13144_v6, %s9956_s1 }
 0xce1   :  { %5905 = vrot.lane.b32.xlu0 %v13156_v11, %s9956_s1  ;;  %5903 = vrot.lane.b32.xlu1 %v13158_v41, %s9956_s1 }
 0xce5   :  { %5909 = vrot.lane.b32.xlu0 %v13179_v60, %s9956_s1  ;;  %5907 = vrot.lane.b32.xlu1 %v13173_v0, %s9956_s1 }
 0xce9   :  { %6017 = vrot.lane.b32.xlu0 %v13127_v55, %s9966_s24  ;;  %6015 = vrot.lane.b32.xlu1 %v13129_v15, %s9966_s24 }
 0xceb   :  { %v5856_v42 = vpop.permute.xlu1 %5855  ;;  %v5816_v30 = vpop.permute.xlu0 %5815 }
 0xcec   :  { %v5887_v29 = vmul.bf16 %v5856_v42, %v12928_v57  ;;  %v5847_v25 = vmul.bf16 %v5816_v30, %v12914_v48  ;;  %v8284_v42 = vld [vmem:[%s14227_s28 + $0x448] sm:$0xff]  ;;  %v8283_v30 = vld [vmem:[%s14227_s28 + $0x440] sm:$0xff] }
 0xced   :  { %6021 = vrot.lane.b32.xlu0 %v13142_v33, %s9966_s24  ;;  %6019 = vrot.lane.b32.xlu1 %v13144_v6, %s9966_s24 }
 0xcee   :  { %8783 = vmatprep.subr.bf16.mxu1 %v5887_v29 }
 0xcef   :  { %v5858_v39 = vpop.permute.xlu1 %5857  ;;  %8784 = vmatpush3.bf16.msra.mxu1 %v5847_v25  ;;  %v5818_v53 = vpop.permute.xlu0 %5817 }
 0xcf0   :  { %v5888_v54 = vmul.bf16 %v5858_v39, %v12928_v57  ;;  %v5848_v5 = vmul.bf16 %v5818_v53, %v12914_v48 }
 0xcf1   :  { %6025 = vrot.lane.b32.xlu0 %v13156_v11, %s9966_s24  ;;  %6023 = vrot.lane.b32.xlu1 %v13158_v41, %s9966_s24 }
 0xcf2   :  { %8785 = vmatprep.subr.bf16.mxu1 %v5888_v54  ;;  %v9718_v54 = vld [vmem:[%s14092_s11 + $0x8] ss:$36 sps:$4 sm:$0xff]  }
 0xcf3   :  { %v5860_v32 = vpop.permute.xlu1 %5859  ;;  %8786 = vmatpush3.bf16.msra.mxu1 %v5848_v5  ;;  %v5820_v13 = vpop.permute.xlu0 %5819  ;;  %v8286_v5 = vld [vmem:[%s14227_s28 + $0x458] sm:$0xff] }
 0xcf4   :  { %v5889_v2 = vmul.bf16 %v5860_v32, %v12928_v57  ;;  %v5849_v23 = vmul.bf16 %v5820_v13, %v12914_v48  ;;  %v8285_v32 = vld [vmem:[%s14227_s28 + $0x450] sm:$0xff] }
 0xcf5   :  { %6029 = vrot.lane.b32.xlu0 %v13179_v60, %s9966_s24  ;;  %6027 = vrot.lane.b32.xlu1 %v13173_v0, %s9966_s24 }
 0xcf6   :  { %8787 = vmatprep.subr.bf16.mxu1 %v5889_v2 }
 0xcf7   :  { %v5862_v59 = vpop.permute.xlu1 %5861  ;;  %8788 = vmatpush3.bf16.msra.mxu1 %v5849_v23  ;;  %v5822_v38 = vpop.permute.xlu0 %5821 }
 0xcf8   :  { %v5890_v51 = vmul.bf16 %v5862_v59, %v12928_v57  ;;  %v5850_v50 = vmul.bf16 %v5822_v38, %v12914_v48 }
 0xcf9   :  { %6142 = vperm.xlu0 %9535, %v8276_v9   ;;  %6137 = vperm.xlu1 %9536, %v8275_v3   ;;  %v8288_v9 = vld [vmem:[%s14227_s28 + $0x468] sm:$0xff]  ;;  %v8287_v3 = vld [vmem:[%s14227_s28 + $0x460] sm:$0xff] }
 0xcfa   :  { %8789 = vmatprep.subr.bf16.mxu1 %v5890_v51 }
 0xcfb   :  { %v5864_v17 = vpop.permute.xlu1 %5863  ;;  %8790 = vmatpush3.bf16.msra.mxu1 %v5850_v50  ;;  %v5824_v19 = vpop.permute.xlu0 %5823 }
 0xcfc   :  { %v5891_v12 = vmul.bf16 %v5864_v17, %v12928_v57  ;;  %v5851_v1 = vmul.bf16 %v5824_v19, %v12914_v48  ;;  %v9723_v17 = vld [vmem:[%s14092_s11 + $0x50] ss:$36 sps:$4 sm:$0xff]  }
 0xcfd   :  { %6152 = vperm.xlu0 %9535, %v8278_v52   ;;  %6147 = vperm.xlu1 %9536, %v8277_v56   ;;  %v8290_v52 = vld [vmem:[%s14227_s28 + $0x478] sm:$0xff]  ;;  %v8289_v56 = vld [vmem:[%s14227_s28 + $0x470] sm:$0xff] }
 0xcfe   :  { %8791 = vmatprep.subr.bf16.mxu1 %v5891_v12 }
 0xcff   :  { %v5866_v45 = vpop.permute.xlu1 %5865  ;;  %8792 = vmatpush3.bf16.msra.mxu1 %v5851_v1  ;;  %v5826_v20 = vpop.permute.xlu0 %5825  ;;  %v9724_v1 = vld [vmem:[%s14092_s11 + $0x9c] ss:$36 sps:$4 sm:$0xff]  }
 0xd00   :  { %v5892_v44 = vmul.bf16 %v5866_v45, %v12928_v57  ;;  %v5852_v47 = vmul.bf16 %v5826_v20, %v12914_v48  ;;  %v8372_v45 = vld [vmem:[%s14227_s28 + $0x488] sm:$0xff]  ;;  %v8371_v20 = vld [vmem:[%s14227_s28 + $0x480] sm:$0xff] }
 0xd01   :  { %6162 = vperm.xlu0 %9535, %v8280_v22   ;;  %6157 = vperm.xlu1 %9536, %v8279_v62  }
 0xd02   :  { %8793 = vmatprep.subr.bf16.mxu1 %v5892_v44 }
 0xd03   :  { %v5868_v4 = vpop.permute.xlu1 %5867  ;;  %8794 = vmatpush3.bf16.msra.mxu1 %v5852_v47  ;;  %v5828_v46 = vpop.permute.xlu0 %5827 }
 0xd04   :  { %v5893_v35 = vmul.bf16 %v5868_v4, %v12928_v57  ;;  %v5853_v21 = vmul.bf16 %v5828_v46, %v12914_v48  ;;  %v8374_v4 = vld [vmem:[%s14227_s28 + $0x498] sm:$0xff]  ;;  %v8373_v46 = vld [vmem:[%s14227_s28 + $0x490] sm:$0xff] }
 0xd05   :  { %6172 = vperm.xlu0 %9535, %v8282_v14   ;;  %6167 = vperm.xlu1 %9536, %v8281_v37  }
 0xd06   :  { %8795 = vmatprep.subr.bf16.mxu1 %v5893_v35  ;;  %v9726_v35 = vld [vmem:[%s14092_s11 + $0x98] ss:$36 sps:$4 sm:$0xff]  }
 0xd07   :  { %v5870_v29 = vpop.permute.xlu1 %5869  ;;  %8796 = vmatpush3.bf16.msra.mxu1 %v5853_v21  ;;  %v5830_v25 = vpop.permute.xlu0 %5829 }
 0xd08   :  { %v5894_v39 = vmul.bf16 %v5870_v29, %v12928_v57  ;;  %v5854_v53 = vmul.bf16 %v5830_v25, %v12914_v48  ;;  %v9721_v48 = vld [vmem:[%s14092_s11 + $0x54] ss:$36 sps:$4 sm:$0xff]  }
 0xd09   :  { %6182 = vperm.xlu0 %9535, %v8284_v42   ;;  %6177 = vperm.xlu1 %9536, %v8283_v30   ;;  %v9727_v30 = vld [vmem:[%s14092_s11 + $0xe4] ss:$36 sps:$4 sm:$0xff]  }
 0xd0a   :  { %8797 = vmatprep.subr.bf16.mxu1 %v5894_v39  ;;  %v8376_v39 = vld [vmem:[%s14227_s28 + $0x4a8] sm:$0xff] }
 0xd0b   :  { %v5776_v13 = vpop.permute.xlu1 %5775  ;;  %8798 = vmatpush3.bf16.msra.mxu1 %v5854_v53  ;;  %v5736_v57 = vpop.permute.xlu0 %5735  ;;  %v8375_v53 = vld [vmem:[%s14227_s28 + $0x4a0] sm:$0xff] }
 0xd0c   :  { %v5807_v2 = vmul.bf16 %v5776_v13, %v12931_v63  ;;  %v5767_v23 = vmul.bf16 %v5736_v57, %v12917_v61  ;;  %v8378_v57 = vld [vmem:[%s14227_s28 + $0x4b8] sm:$0xff] }
 0xd0d   :  { %6192 = vperm.xlu0 %9535, %v8286_v5   ;;  %6187 = vperm.xlu1 %9536, %v8285_v32  }
 0xd0e   :  { %8719 = vmatprep.subr.bf16.mxu0 %v5807_v2  ;;  %6713 = vmatmul.mubr.bf16.vlgmr.msra.gmra.mrb[124].mxu1 %v9718_v54  ;;  %v9729_v2 = vld [vmem:[%s14092_s11 + $0xe0] ss:$36 sps:$4 sm:$0xff]  }
 0xd0f   :  { %v5778_v59 = vpop.permute.xlu1 %5777  ;;  %8720 = vmatpush3.bf16.msra.mxu0 %v5767_v23  ;;  %v5738_v38 = vpop.permute.xlu0 %5737  ;;  %6720 = vmatprep.mubr.bf16.mxu1 %v9721_v48  ;;  %v8377_v48 = vld [vmem:[%s14227_s28 + $0x4b0] sm:$0xff] }
 0xd10   :  { %v5808_v51 = vmul.bf16 %v5778_v59, %v12931_v63  ;;  %v5768_v50 = vmul.bf16 %v5738_v38, %v12917_v61 }
 0xd11   :  { %6202 = vperm.xlu0 %9535, %v8288_v9   ;;  %6197 = vperm.xlu1 %9536, %v8287_v3   ;;  %v9730_v3 = vld [vmem:[%s14092_s11 + $0x12c] ss:$36 sps:$4 sm:$0xff]  }
 0xd12   :  { %8721 = vmatprep.subr.bf16.mxu0 %v5808_v51  ;;  %v8380_v51 = vld [vmem:[%s14227_s28 + $0x4c8] sm:$0xff] }
 0xd13   :  { %v5780_v19 = vpop.permute.xlu1 %5779  ;;  %8722 = vmatpush3.bf16.msra.mxu0 %v5768_v50  ;;  %v5740_v12 = vpop.permute.xlu0 %5739  ;;  %v8379_v50 = vld [vmem:[%s14227_s28 + $0x4c0] sm:$0xff] }
 0xd14   :  { %v5809_v22 = vmul.bf16 %v5780_v19, %v12931_v63  ;;  %v5769_v62 = vmul.bf16 %v5740_v12, %v12917_v61  ;;  %v8382_v19 = vld [vmem:[%s14227_s28 + $0x4d8] sm:$0xff]  ;;  %v8381_v12 = vld [vmem:[%s14227_s28 + $0x4d0] sm:$0xff] }
 0xd15   :  { %6212 = vperm.xlu0 %9535, %v8290_v52   ;;  %6207 = vperm.xlu1 %9536, %v8289_v56  }
 0xd16   :  { %8723 = vmatprep.subr.bf16.mxu0 %v5809_v22  ;;  %6721 = vmatmul.mubr.bf16.gmra.mrb[128].mxu1 %v9723_v17 }
 0xd17   :  { %v5782_v44 = vpop.permute.xlu1 %5781  ;;  %8724 = vmatpush3.bf16.msra.mxu0 %v5769_v62  ;;  %v5742_v47 = vpop.permute.xlu0 %5741  ;;  %6728 = vmatprep.mubr.bf16.mxu1 %v9724_v1  ;;  %v9732_v1 = vld [vmem:[%s14092_s11 + $0x128] ss:$36 sps:$4 sm:$0xff]  }
 0xd18   :  { %v5810_v14 = vmul.bf16 %v5782_v44, %v12931_v63  ;;  %v5770_v37 = vmul.bf16 %v5742_v47, %v12917_v61  ;;  %v8384_v47 = vld [vmem:[%s14227_s28 + $0x4e8] sm:$0xff] }
 0xd19   :  { %7253 = vperm.xlu0 %9535, %v8372_v45   ;;  %7248 = vperm.xlu1 %9536, %v8371_v20   ;;  %v9733_v45 = vld [vmem:[%s14092_s11 + $0x174] ss:$36 sps:$4 sm:$0xff]  }
 0xd1a   :  { %8725 = vmatprep.subr.bf16.mxu0 %v5810_v14  ;;  %v8383_v14 = vld [vmem:[%s14227_s28 + $0x4e0] sm:$0xff] }
 0xd1b   :  { %v5784_v21 = vpop.permute.xlu1 %5783  ;;  %8726 = vmatpush3.bf16.msra.mxu0 %v5770_v37  ;;  %v5744_v42 = vpop.permute.xlu0 %5743 }
 0xd1c   :  { %v5811_v29 = vmul.bf16 %v5784_v21, %v12931_v63  ;;  %v5771_v25 = vmul.bf16 %v5744_v42, %v12917_v61  ;;  %v8386_v42 = vld [vmem:[%s14227_s28 + $0x4f8] sm:$0xff] }
 0xd1d   :  { %7263 = vperm.xlu0 %9535, %v8374_v4   ;;  %7258 = vperm.xlu1 %9536, %v8373_v46  }
 0xd1e   :  { %8727 = vmatprep.subr.bf16.mxu0 %v5811_v29  ;;  %6729 = vmatmul.mubr.bf16.gmra.mrb[132].mxu1 %v9726_v35  ;;  %v9735_v29 = vld [vmem:[%s14092_s11 + $0x170] ss:$36 sps:$4 sm:$0xff]  }
 0xd1f   :  { %v5976_v54 = vpop.permute.xlu1 %5975  ;;  %8728 = vmatpush3.bf16.msra.mxu0 %v5771_v25  ;;  %v5786_v5 = vpop.permute.xlu0 %5785  ;;  %6736 = vmatprep.mubr.bf16.mxu1 %v9727_v30  ;;  %v8385_v30 = vld [vmem:[%s14227_s28 + $0x4f0] sm:$0xff] }
 0xd20   :  { %v6007_v32 = vmul.bf16 %v5976_v54, %v12963_v43  ;;  %v5812_v13 = vmul.bf16 %v5786_v5, %v12931_v63  ;;  %v9736_v5 = vld [vmem:[%s14092_s11] ss:$36 sps:$4 sm:$0xff]  }
 0xd21   :  { %7273 = vperm.xlu0 %9535, %v8376_v39   ;;  %7268 = vperm.xlu1 %9536, %v8375_v53  }
 0xd22   :  { %8729 = vmatprep.subr.bf16.mxu0 %v5812_v13  ;;  %8911 = vmatprep.subr.bf16.mxu1 %v6007_v32  ;;  %v8414_v32 = vld [vmem:[%s14227_s28 + $0x508] sm:$0xff]  ;;  %v8413_v13 = vld [vmem:[%s14227_s28 + $0x500] sm:$0xff] }
 0xd23   :  { %v5936_v23 = vpop.permute.xlu1 %5935  ;;  %v5746_v9 = vpop.permute.xlu0 %5745 }
 0xd24   :  { %v5967_v59 = vmul.bf16 %v5936_v23, %v12942_v7  ;;  %v5772_v38 = vmul.bf16 %v5746_v9, %v12917_v61  ;;  %v8415_v9 = vld [vmem:[%s14227_s28 + $0x510] sm:$0xff] }
 0xd25   :  { %7283 = vperm.xlu0 %9535, %v8378_v57   ;;  %7278 = vperm.xlu1 %9536, %v8377_v48  }
 0xd26   :  { %8730 = vmatpush3.bf16.msra.mxu0 %v5772_v38  ;;  %6737 = vmatmul.mubr.bf16.gmra.mrb[136].mxu1 %v9729_v2 }
 0xd27   :  { %8912 = vmatpush3.bf16.msra.mxu1 %v5967_v59  ;;  %v5978_v52 = vpop.permute.xlu1 %5977  ;;  %v5790_v56 = vpop.permute.xlu0 %5789  ;;  %6744 = vmatprep.mubr.bf16.mxu1 %v9730_v3  ;;  %v8416_v3 = vld [vmem:[%s14227_s28 + $0x518] sm:$0xff] }
 0xd28   :  { %v6008_v17 = vmul.bf16 %v5978_v52, %v12963_v43  ;;  %v5814_v21 = vmul.bf16 %v5790_v56, %v12931_v63  ;;  %v9741_v59 = vld [vmem:[%s14092_s11 + $0x1b8] ss:$36 sps:$4 sm:$0xff]  }
 0xd29   :  { %7293 = vperm.xlu0 %9535, %v8380_v51   ;;  %7288 = vperm.xlu1 %9536, %v8379_v50   ;;  %v9745_v50 = vld [vmem:[%s14092_s11 + $0x204] ss:$36 sps:$4 sm:$0xff]  }
 0xd2a   :  { %8913 = vmatprep.subr.bf16.mxu1 %v6008_v17  ;;  %v8417_v17 = vld [vmem:[%s14227_s28 + $0x520] sm:$0xff] }
 0xd2b   :  { %v5938_v22 = vpop.permute.xlu1 %5937  ;;  %v5788_v62 = vpop.permute.xlu0 %5787 }
 0xd2c   :  { %v5968_v20 = vmul.bf16 %v5938_v22, %v12942_v7  ;;  %v5813_v44 = vmul.bf16 %v5788_v62, %v12931_v63  ;;  %v9739_v63 = vld [vmem:[%s14092_s11 + $0x1bc] ss:$36 sps:$4 sm:$0xff]   ;;  %v9748_v62 = vld [vmem:[%s14092_s11 + $0x94] ss:$36 sps:$4 sm:$0xff]  }
 0xd2d   :  { %7303 = vperm.xlu0 %9535, %v8382_v19   ;;  %7298 = vperm.xlu1 %9536, %v8381_v12   ;;  %v8418_v19 = vld [vmem:[%s14227_s28 + $0x528] sm:$0xff] }
 0xd2e   :  { %8731 = vmatprep.subr.bf16.mxu0 %v5813_v44  ;;  %6745 = vmatmul.mubr.bf16.gmra.mrb[140].mxu1 %v9732_v1  ;;  %v9744_v12 = vld [vmem:[%s14092_s11 + $0x48] ss:$36 sps:$4 sm:$0xff]   ;;  %v8419_v44 = vld [vmem:[%s14227_s28 + $0x530] sm:$0xff] }
 0xd2f   :  { %8914 = vmatpush3.bf16.msra.mxu1 %v5968_v20  ;;  %v5980_v37 = vpop.permute.xlu1 %5979  ;;  %v5748_v4 = vpop.permute.xlu0 %5747  ;;  %6752 = vmatprep.mubr.bf16.mxu1 %v9733_v45 }
 0xd30   :  { %v6009_v46 = vmul.bf16 %v5980_v37, %v12963_v43  ;;  %v5773_v35 = vmul.bf16 %v5748_v4, %v12917_v61 }
 0xd31   :  { %7313 = vperm.xlu0 %9535, %v8384_v47   ;;  %7308 = vperm.xlu1 %9536, %v8383_v14   ;;  %v8420_v47 = vld [vmem:[%s14227_s28 + $0x538] sm:$0xff]  ;;  %v9747_v14 = vld [vmem:[%s14092_s11 + $0x200] ss:$36 sps:$4 sm:$0xff]  }
 0xd32   :  { %8732 = vmatpush3.bf16.msra.mxu0 %v5773_v35  ;;  %8915 = vmatprep.subr.bf16.mxu1 %v6009_v46  ;;  %v9753_v46 = vld [vmem:[%s14092_s11 + $0x1c] ss:$36 sps:$4 sm:$0xff]  }
 0xd33   :  { %v5940_v25 = vpop.permute.xlu1 %5939  ;;  %8733 = vmatprep.subr.bf16.mxu0 %v5814_v21  ;;  %v5750_v39 = vpop.permute.xlu0 %5749 }
 0xd34   :  { %v5969_v53 = vmul.bf16 %v5940_v25, %v12942_v7  ;;  %v5774_v54 = vmul.bf16 %v5750_v39, %v12917_v61  ;;  %v9742_v61 = vld [vmem:[%s14092_s11 + $0x4c] ss:$36 sps:$4 sm:$0xff]  }
 0xd35   :  { %7323 = vperm.xlu0 %9535, %v8386_v42   ;;  %7318 = vperm.xlu1 %9536, %v8385_v30   ;;  %v8421_v42 = vld [vmem:[%s14227_s28 + $0x540] sm:$0xff]  ;;  %v8422_v30 = vld [vmem:[%s14227_s28 + $0x548] sm:$0xff] }
 0xd36   :  { %8734 = vmatpush3.bf16.msra.mxu0 %v5774_v54  ;;  %6753 = vmatmul.mubr.bf16.gmra.mrb[144].mxu1 %v9735_v29  ;;  %v9750_v29 = vld [vmem:[%s14092_s11 + $0x90] ss:$36 sps:$4 sm:$0xff]  }
 0xd37   :  { %8916 = vmatpush3.bf16.msra.mxu1 %v5969_v53  ;;  %v5982_v57 = vpop.permute.xlu1 %5981  ;;  %v5942_v48 = vpop.permute.xlu0 %5941  ;;  %6760 = vmatprep.mubr.bf16.mxu1 %v9739_v63  ;;  %v9754_v63 = vld [vmem:[%s14092_s11 + $0xdc] ss:$36 sps:$4 sm:$0xff]  }
 0xd38   :  { %v6010_v2 = vmul.bf16 %v5982_v57, %v12963_v43  ;;  %v5970_v23 = vmul.bf16 %v5942_v48, %v12942_v7  ;;  %v9757_v48 = vld [vmem:[%s14092_s11 + $0x64] ss:$36 sps:$4 sm:$0xff]  }
 0xd39   :  { %7793 = vperm.xlu0 %9535, %v8414_v32   ;;  %7788 = vperm.xlu1 %9536, %v8413_v13   ;;  %v8423_v32 = vld [vmem:[%s14227_s28 + $0x550] sm:$0xff]  ;;  %v8424_v13 = vld [vmem:[%s14227_s28 + $0x558] sm:$0xff] }
 0xd3a   :  { %6616 = vmatmul.mubr.bf16.vlgmr.msra.gmra.mrb[116].mxu0 %v9736_v5  ;;  %8917 = vmatprep.subr.bf16.mxu1 %v6010_v2  ;;  %v13524_v5 = vld [vmem:[#allocation2] sm:$0xff]  }
 0xd3b   :  { %v5984_v38 = vpop.permute.xlu1 %5983  ;;  %8918 = vmatpush3.bf16.msra.mxu1 %v5970_v23  ;;  %v5944_v51 = vpop.permute.xlu0 %5943  ;;  %6623 = vmatprep.mubr.bf16.mxu0 %v9742_v61  ;;  %v8425_v2 = vld [vmem:[%s14227_s28 + $0x560] sm:$0xff] }
 0xd3c   :  { %v6011_v52 = vmul.bf16 %v5984_v38, %v12963_v43  ;;  %v5971_v56 = vmul.bf16 %v5944_v51, %v12942_v7  ;;  %v9760_v51 = vld [vmem:[%s14092_s11 + $0x124] ss:$36 sps:$4 sm:$0xff]  }
 0xd3d   :  { %7798 = vperm.xlu1 %9536, %v8415_v9   ;;  %7803 = vperm.xlu0 %9535, %v8416_v3   ;;  %v8426_v9 = vld [vmem:[%s14227_s28 + $0x568] sm:$0xff]  ;;  %v9756_v3 = vld [vmem:[%s14092_s11 + $0xd8] ss:$36 sps:$4 sm:$0xff]  }
 0xd3e   :  { %6761 = vmatmul.mubr.bf16.gmra.mrb[148].mxu1 %v9741_v59  ;;  %8919 = vmatprep.subr.bf16.mxu1 %v6011_v52  ;;  %v13550_v59 = vld [vmem:[#allocation2 + $0x8] sm:$0xff]  }
 0xd3f   :  { %v5986_v1 = vpop.permute.xlu1 %5985  ;;  %8920 = vmatpush3.bf16.msra.mxu1 %v5971_v56  ;;  %v5946_v22 = vpop.permute.xlu0 %5945  ;;  %6768 = vmatprep.mubr.bf16.mxu1 %v9745_v50  ;;  %v8427_v50 = vld [vmem:[%s14227_s28 + $0x570] sm:$0xff]  ;;  %v9759_v56 = vld [vmem:[%s14092_s11 + $0x60] ss:$36 sps:$4 sm:$0xff]  }
 0xd40   :  { %v6012_v45 = vmul.bf16 %v5986_v1, %v12963_v43  ;;  %v5972_v20 = vmul.bf16 %v5946_v22, %v12942_v7  ;;  %v13575_v1 = vld [vmem:[#allocation2 + $0x18] sm:$0xff]  }
 0xd41   :  { %7808 = vperm.xlu1 %9536, %v8417_v17   ;;  %7813 = vperm.xlu0 %9535, %v8418_v19   ;;  %v13568_v17 = vld [vmem:[#allocation2 + $0x10] sm:$0xff]  }
 0xd42   :  { %6624 = vmatmul.mubr.bf16.gmra.mrb[120].mxu0 %v9744_v12  ;;  %8921 = vmatprep.subr.bf16.mxu1 %v6012_v45  ;;  %v9763_v12 = vld [vmem:[%s14092_s11 + $0xac] ss:$36 sps:$4 sm:$0xff]  }
 0xd43   :  { %v5988_v37 = vpop.permute.xlu1 %5987  ;;  %8922 = vmatpush3.bf16.msra.mxu1 %v5972_v20  ;;  %v5948_v4 = vpop.permute.xlu0 %5947  ;;  %6631 = vmatprep.mubr.bf16.mxu0 %v9748_v62  ;;  %v9762_v62 = vld [vmem:[%s14092_s11 + $0x120] ss:$36 sps:$4 sm:$0xff]   ;;  %v9766_v45 = vld [vmem:[%s14092_s11 + $0x16c] ss:$36 sps:$4 sm:$0xff]  }
 0xd44   :  { %v6013_v35 = vmul.bf16 %v5988_v37, %v12963_v43  ;;  %v5973_v21 = vmul.bf16 %v5948_v4, %v12942_v7  ;;  %v13588_v20 = vld [vmem:[#allocation2 + $0x20] sm:$0xff]   ;;  %v13600_v37 = vld [vmem:[#allocation2 + $0x28] sm:$0xff]  }
 0xd45   :  { %7818 = vperm.xlu1 %9536, %v8419_v44   ;;  %7823 = vperm.xlu0 %9535, %v8420_v47   ;;  %v9765_v47 = vld [vmem:[%s14092_s11 + $0xa8] ss:$36 sps:$4 sm:$0xff]  }
 0xd46   :  { %6769 = vmatmul.mubr.bf16.gmra.mrb[152].mxu1 %v9747_v14  ;;  %8923 = vmatprep.subr.bf16.mxu1 %v6013_v35  ;;  %v9769_v14 = vld [vmem:[%s14092_s11 + $0xf4] ss:$36 sps:$4 sm:$0xff]  }
 0xd47   :  { %v5990_v25 = vpop.permute.xlu1 %5989  ;;  %8924 = vmatpush3.bf16.msra.mxu1 %v5973_v21  ;;  %v5950_v39 = vpop.permute.xlu0 %5949  ;;  %6906 = vmatprep.mubr.bf16.mxu1 %v9753_v46  ;;  %v9768_v46 = vld [vmem:[%s14092_s11 + $0x168] ss:$36 sps:$4 sm:$0xff]   ;;  %v9773_v35 = vld [vmem:[%s14092_s11 + $0x1b4] ss:$36 sps:$4 sm:$0xff]  }
 0xd48   :  { %v6014_v53 = vmul.bf16 %v5990_v25, %v12963_v43  ;;  %v5974_v54 = vmul.bf16 %v5950_v39, %v12942_v7  ;;  %v9751_v43 = vld [vmem:[%s14092_s11 + $0x18] ss:$36 sps:$4 sm:$0xff]   ;;  %v13612_v21 = vld [vmem:[#allocation2 + $0x30] sm:$0xff]  }
 0xd49   :  { %7828 = vperm.xlu1 %9536, %v8421_v42   ;;  %7833 = vperm.xlu0 %9535, %v8422_v30   ;;  %v9771_v30 = vld [vmem:[%s14092_s11 + $0xf0] ss:$36 sps:$4 sm:$0xff]   ;;  %v13624_v25 = vld [vmem:[#allocation2 + $0x38] sm:$0xff]  }
 0xd4a   :  { %6632 = vmatmul.mubr.bf16.gmra.mrb[124].mxu0 %v9750_v29  ;;  %8925 = vmatprep.subr.bf16.mxu1 %v6014_v53  ;;  %v9776_v29 = vld [vmem:[%s14092_s11 + $0x13c] ss:$36 sps:$4 sm:$0xff]  }
 0xd4b   :  { %v5896_v57 = vpop.permute.xlu1 %5895  ;;  %8926 = vmatpush3.bf16.msra.mxu1 %v5974_v54  ;;  %v5898_v7 = vpop.permute.xlu0 %5897  ;;  %6639 = vmatprep.mubr.bf16.mxu0 %v9754_v63  ;;  %v9775_v63 = vld [vmem:[%s14092_s11 + $0x1b0] ss:$36 sps:$4 sm:$0xff]   ;;  %v9780_v53 = vld [vmem:[%s14092_s11 + $0x1fc] ss:$36 sps:$4 sm:$0xff]  }
 0xd4c   :  { %v5927_v61 = vmul.bf16 %v5896_v57, %v12967_v24  ;;  %9125 = vmatprep.subr.bf16.mxu1 %v13524_v5  ;;  %v5928_v23 = vmul.bf16 %v5898_v7, %v12967_v24  ;;  %v9778_v54 = vld [vmem:[%s14092_s11 + $0x138] ss:$36 sps:$4 sm:$0xff]   ;;  %v9787_v57 = vld [vmem:[%s14092_s11 + $0x10] ss:$36 sps:$4 sm:$0xff]  }
 0xd4d   :  { %7838 = vperm.xlu1 %9536, %v8423_v32   ;;  %7843 = vperm.xlu0 %9535, %v8424_v13   ;;  %v9782_v32 = vld [vmem:[%s14092_s11 + $0x1f8] ss:$36 sps:$4 sm:$0xff]  }
 0xd4e   :  { %8847 = vmatprep.subr.bf16.mxu0 %v5927_v61  ;;  %6907 = vmatmul.mubr.bf16.vlgmr.msra.gmra.mrb[156].mxu1 %v9751_v43  ;;  %v9789_v13 = vld [vmem:[%s14092_s11 + $0x14] ss:$36 sps:$4 sm:$0xff]   ;;  %v9791_v43 = vld [vmem:[%s14092_s11 + $0x1cc] ss:$36 sps:$4 sm:$0xff]  }
 0xd4f   :  { %v5900_v38 = vpop.permute.xlu1 %5899  ;;  %8848 = vmatpush3.bf16.msra.mxu0 %v13129_v15  ;;  %6914 = vmatprep.mubr.bf16.mxu1 %v9757_v48  ;;  %v8428_v15 = vld [vmem:[%s14227_s28 + $0x578] sm:$0xff]  ;;  %v5902_v19 = vpop.permute.xlu0 %5901 }
 0xd50   :  { %8849 = vmatprep.subr.bf16.mxu0 %v5928_v23  ;;  %9126 = vmatpush3.bf16.msra.mxu1 %v13524_v5  ;;  %v5929_v52 = vmul.bf16 %v5900_v38, %v12967_v24  ;;  %v5930_v22 = vmul.bf16 %v5902_v19, %v12967_v24  ;;  %v9795_v48 = vld [vmem:[%s14092_s11 + $0x5c] ss:$36 sps:$4 sm:$0xff]  }
 0xd51   :  { %7848 = vperm.xlu1 %9536, %v8425_v2   ;;  %7853 = vperm.xlu0 %9535, %v8426_v9   ;;  %v9793_v2 = vld [vmem:[%s14092_s11 + $0x1c8] ss:$36 sps:$4 sm:$0xff]   ;;  %v9799_v9 = vld [vmem:[%s14092_s11 + $0x214] ss:$36 sps:$4 sm:$0xff]  }
 0xd52   :  { %6640 = vmatmul.mubr.bf16.gmra.mrb[128].mxu0 %v9756_v3  ;;  %9127 = vmatprep.subr.bf16.mxu1 %v13550_v59  ;;  %v9797_v38 = vld [vmem:[%s14092_s11 + $0x58] ss:$36 sps:$4 sm:$0xff]  }
 0xd53   :  { %8850 = vmatpush3.bf16.msra.mxu0 %v13127_v55  ;;  %6647 = vmatprep.mubr.bf16.mxu0 %v9760_v51  ;;  %v5904_v55 = vpop.permute.xlu1 %5903 }
 0xd54   :  { %8851 = vmatprep.subr.bf16.mxu0 %v5929_v52  ;;  %9128 = vmatpush3.bf16.msra.mxu1 %v13550_v59  ;;  %v5931_v44 = vmul.bf16 %v5904_v55, %v12967_v24 }
 0xd55   :  { %7858 = vperm.xlu1 %9536, %v8427_v50   ;;  %7863 = vperm.xlu0 %9535, %v8428_v15   ;;  %v9803_v50 = vld [vmem:[%s14092_s11 + $0xa4] ss:$36 sps:$4 sm:$0xff]   ;;  %v9801_v15 = vld [vmem:[%s14092_s11 + $0x210] ss:$36 sps:$4 sm:$0xff]  }
 0xd56   :  { %6915 = vmatmul.mubr.bf16.gmra.mrb[160].mxu1 %v9759_v56  ;;  %9129 = vmatprep.subr.bf16.mxu1 %v13568_v17 }
 0xd57   :  { %8852 = vmatpush3.bf16.msra.mxu0 %v13144_v6  ;;  %6922 = vmatprep.mubr.bf16.mxu1 %v9763_v12  ;;  %v5906_v6 = vpop.permute.xlu0 %5905  ;;  %v9805_v12 = vld [vmem:[%s14092_s11 + $0xa0] ss:$36 sps:$4 sm:$0xff]  }
 0xd58   :  { %8853 = vmatprep.subr.bf16.mxu0 %v5930_v22  ;;  %9130 = vmatpush3.bf16.msra.mxu1 %v13568_v17  ;;  %v5932_v4 = vmul.bf16 %v5906_v6, %v12967_v24  ;;  %v9825_v6 = vld [vmem:[%s14092_s11 + $0xf8] ss:$36 sps:$4 sm:$0xff]  }
 0xd59   :  { %9131 = vmatprep.subr.bf16.mxu1 %v13575_v1 }
 0xd5a   :  { %6648 = vmatmul.mubr.bf16.gmra.mrb[132].mxu0 %v9762_v62  ;;  %v9807_v62 = vld [vmem:[%s14092_s11 + $0xec] ss:$36 sps:$4 sm:$0xff]  }
 0xd5b   :  { %8854 = vmatpush3.bf16.msra.mxu0 %v13142_v33  ;;  %6655 = vmatprep.mubr.bf16.mxu0 %v9766_v45  ;;  %v5908_v33 = vpop.permute.xlu1 %5907 }
 0xd5c   :  { %8855 = vmatprep.subr.bf16.mxu0 %v5931_v44  ;;  %9132 = vmatpush3.bf16.msra.mxu1 %v13575_v1  ;;  %v5933_v42 = vmul.bf16 %v5908_v33, %v12967_v24  ;;  %v9829_v33 = vld [vmem:[%s14092_s11 + $0x218] ss:$36 sps:$4 sm:$0xff]  }
 0xd5d   :  { %9133 = vmatprep.subr.bf16.mxu1 %v13588_v20 }
 0xd5e   :  { %6923 = vmatmul.mubr.bf16.gmra.mrb[164].mxu1 %v9765_v47 }
 0xd5f   :  { %8856 = vmatpush3.bf16.msra.mxu0 %v13158_v41  ;;  %6930 = vmatprep.mubr.bf16.mxu1 %v9769_v14  ;;  %v5910_v41 = vpop.permute.xlu0 %5909  ;;  %v9826_v14 = vld [vmem:[%s14092_s11 + $0x140] ss:$36 sps:$4 sm:$0xff]  }
 0xd60   :  { %8857 = vmatprep.subr.bf16.mxu0 %v5932_v4  ;;  %9134 = vmatpush3.bf16.msra.mxu1 %v13588_v20  ;;  %v5934_v39 = vmul.bf16 %v5910_v41, %v12967_v24  ;;  %v9827_v4 = vld [vmem:[%s14092_s11 + $0x188] ss:$36 sps:$4 sm:$0xff]  }
 0xd61   :  { %9135 = vmatprep.subr.bf16.mxu1 %v13600_v37 }
 0xd62   :  { %6656 = vmatmul.mubr.bf16.gmra.mrb[136].mxu0 %v9768_v46  ;;  %v9828_v46 = vld [vmem:[%s14092_s11 + $0x1d0] ss:$36 sps:$4 sm:$0xff]  }
 0xd63   :  { %8858 = vmatpush3.bf16.msra.mxu0 %v13156_v11  ;;  %6663 = vmatprep.mubr.bf16.mxu0 %v9773_v35  ;;  %v6016_v11 = vpop.permute.xlu1 %6015  ;;  %v6018_v7 = vpop.permute.xlu0 %6017 }
 0xd64   :  { %8859 = vmatprep.subr.bf16.mxu0 %v5933_v42  ;;  %9136 = vmatpush3.bf16.msra.mxu1 %v13600_v37  ;;  %v6047_v24 = vmul.bf16 %v6016_v11, %v12980_v8  ;;  %v6048_v61 = vmul.bf16 %v6018_v7, %v12980_v8 }
 0xd65   :  { %9137 = vmatprep.subr.bf16.mxu1 %v13612_v21 }
 0xd66   :  { %6931 = vmatmul.mubr.bf16.gmra.mrb[168].mxu1 %v9771_v30 }
 0xd67   :  { %8860 = vmatpush3.bf16.msra.mxu0 %v13173_v0  ;;  %6938 = vmatprep.mubr.bf16.mxu1 %v9776_v29  ;;  %v9783_v0 = vld [vmem:[%s14092_s11 + $0x184] ss:$36 sps:$4 sm:$0xff]   ;;  %v6020_v23 = vpop.permute.xlu1 %6019  ;;  %v6022_v51 = vpop.permute.xlu0 %6021 }
 0xd68   :  { %8861 = vmatprep.subr.bf16.mxu0 %v5934_v39  ;;  %9138 = vmatpush3.bf16.msra.mxu1 %v13612_v21  ;;  %v6049_v3 = vmul.bf16 %v6020_v23, %v12980_v8  ;;  %v6050_v52 = vmul.bf16 %v6022_v51, %v12980_v8 }
 0xd69   :  { %9139 = vmatprep.subr.bf16.mxu1 %v13624_v25 }
 0xd6a   :  { %6664 = vmatmul.mubr.bf16.gmra.mrb[140].mxu0 %v9775_v63 }
 0xd6b   :  { %8862 = vmatpush3.bf16.msra.mxu0 %v13179_v60  ;;  %6671 = vmatprep.mubr.bf16.mxu0 %v9780_v53  ;;  %v9785_v60 = vld [vmem:[%s14092_s11 + $0x180] ss:$36 sps:$4 sm:$0xff]   ;;  %v6024_v56 = vpop.permute.xlu1 %6023  ;;  %v6026_v22 = vpop.permute.xlu0 %6025 }
 0xd6c   :  { %9093 = vmatprep.subr.bf16.mxu0 %v6047_v24  ;;  %9140 = vmatpush3.bf16.msra.mxu1 %v13624_v25  ;;  %v6051_v19 = vmul.bf16 %v6024_v56, %v12980_v8  ;;  %v6052_v55 = vmul.bf16 %v6026_v22, %v12980_v8 }
 0xd6e   :  { %6939 = vmatmul.mubr.bf16.gmra.mrb[172].mxu1 %v9778_v54 }
 0xd6f   :  { %6946 = vmatprep.mubr.bf16.mxu1 %v9783_v0  ;;  %v6028_v45 = vpop.permute.xlu1 %6027  ;;  %v6030_v27 = vpop.permute.xlu0 %6029 }
 0xd70   :  { %v6053_v44 = vmul.bf16 %v6028_v45, %v12980_v8  ;;  %v6054_v47 = vmul.bf16 %v6030_v27, %v12980_v8  ;;  %v9824_v8 = vld [vmem:[%s14092_s11 + $0xb0] ss:$36 sps:$4 sm:$0xff]  }
 0xd72   :  { %6672 = vmatmul.mubr.bf16.gmra.mrb[144].mxu0 %v9782_v32 }
 0xd73   :  { %6809 = vmatprep.mubr.bf16.mxu0 %v9789_v13 }
 0xd76   :  { %6947 = vmatmul.mubr.bf16.gmra.mrb[176].mxu1 %v9785_v60 }
 0xd77   :  { %6954 = vmatprep.mubr.bf16.mxu1 %v9791_v43 }
 0xd7a   :  { %6810 = vmatmul.mubr.bf16.vlgmr.msra.gmra.mrb[148].mxu0 %v9787_v57 }
 0xd7b   :  { %9094 = vmatpush3.bf16.msra.mxu0 %v6047_v24  ;;  %6817 = vmatprep.mubr.bf16.mxu0 %v9795_v48  ;;  %v9830_v48 = vld [vmem:[%s14093_s12] sm:$0xff]  }
 0xd7c   :  { %9095 = vmatprep.subr.bf16.mxu0 %v6048_v61 }
 0xd7e   :  { %6955 = vmatmul.mubr.bf16.gmra.mrb[180].mxu1 %v9793_v2 }
 0xd7f   :  { %9096 = vmatpush3.bf16.msra.mxu0 %v6048_v61  ;;  %6962 = vmatprep.mubr.bf16.mxu1 %v9799_v9 }
 0xd80   :  { %9097 = vmatprep.subr.bf16.mxu0 %v6049_v3 }
 0xd82   :  { %6818 = vmatmul.mubr.bf16.gmra.mrb[152].mxu0 %v9797_v38 }
 0xd83   :  { %9098 = vmatpush3.bf16.msra.mxu0 %v6049_v3  ;;  %6825 = vmatprep.mubr.bf16.mxu0 %v9803_v50 }
 0xd84   :  { %9099 = vmatprep.subr.bf16.mxu0 %v6050_v52 }
 0xd86   :  { %6963 = vmatmul.mubr.bf16.gmra.mrb[184].mxu1 %v9801_v15 }
 0xd87   :  { %9100 = vmatpush3.bf16.msra.mxu0 %v6050_v52  ;;  %9141 = vmatprep.mubr.bf16.mxu1 %v7092_v49  ;;  %v9810_v49 = vld [vmem:[%s14092_s11 + $0x134] ss:$36 sps:$4 sm:$0xff]  }
 0xd88   :  { %9101 = vmatprep.subr.bf16.mxu0 %v6051_v19 }
 0xd8a   :  { %6826 = vmatmul.mubr.bf16.gmra.mrb[156].mxu0 %v9805_v12 }
 0xd8b   :  { %9102 = vmatpush3.bf16.msra.mxu0 %v6051_v19  ;;  %6833 = vmatprep.mubr.bf16.mxu0 %v9807_v62 }
 0xd8c   :  { %9103 = vmatprep.subr.bf16.mxu0 %v6052_v55 }
 0xd8e   :  { %9142 = vmatmul.mubr.bf16.vlgmr.msra.gmra.mrb[188].mxu1 %v7093_v36  ;;  %v9815_v36 = vld [vmem:[%s14092_s11 + $0x178] ss:$36 sps:$4 sm:$0xff]  }
 0xd8f   :  { %9104 = vmatpush3.bf16.msra.mxu0 %v6052_v55  ;;  %9145 = vmatprep.mubr.bf16.mxu1 %v7094_v40  ;;  %v9819_v40 = vld [vmem:[%s14092_s11 + $0x20c] ss:$36 sps:$4 sm:$0xff]  }
 0xd90   :  { %9105 = vmatprep.subr.bf16.mxu0 %v6053_v44 }
 0xd92   :  { %6834 = vmatmul.mubr.bf16.gmra.mrb[160].mxu0 %v9809_v10 }
 0xd93   :  { %9106 = vmatpush3.bf16.msra.mxu0 %v6053_v44  ;;  %6841 = vmatprep.mubr.bf16.mxu0 %v9810_v49 }
 0xd94   :  { %9107 = vmatprep.subr.bf16.mxu0 %v6054_v47 }
 0xd96   :  { %9146 = vmatmul.mubr.bf16.gmra.mrb[192].mxu1 %v7095_v16  ;;  %v9823_v16 = vld [vmem:[%s14092_s11 + $0x68] ss:$36 sps:$4 sm:$0xff]  }
 0xd97   :  { %9108 = vmatpush3.bf16.msra.mxu0 %v6054_v47 }
 0xd9a   :  { %6842 = vmatmul.mubr.bf16.gmra.mrb[164].mxu0 %v9812_v28  ;;  %v6138_v28 = vpop.permute.xlu1 %6137 }
 0xd9b   :  { %6849 = vmatprep.mubr.bf16.mxu0 %v9813_v34 }
 0xda2   :  { %6850 = vmatmul.mubr.bf16.gmra.mrb[168].mxu0 %v9815_v36 }
 0xda3   :  { %6857 = vmatprep.mubr.bf16.mxu0 %v9816_v58 }
 0xdaa   :  { %6858 = vmatmul.mubr.bf16.gmra.mrb[172].mxu0 %v9818_v31 }
 0xdab   :  { %6865 = vmatprep.mubr.bf16.mxu0 %v9819_v40  ;;  %v6143_v40 = vpop.permute.xlu0 %6142 }
 0xdb2   :  { %6866 = vmatmul.mubr.bf16.gmra.mrb[176].mxu0 %v9821_v26 }
 0xdb3   :  { %9109 = vmatprep.mubr.bf16.mxu0 %v9822_v18 }
 0xdba   :  { %9110 = vmatmul.mubr.bf16.vlgmr.msra.gmra.mrb[180].mxu0 %v9823_v16 }
 0xdbb   :  { %9113 = vmatprep.mubr.bf16.mxu0 %v9824_v8 }
 0xdc2   :  { %9114 = vmatmul.mubr.bf16.gmra.mrb[184].mxu0 %v9825_v6 }
 0xdc3   :  { %9117 = vmatprep.mubr.bf16.mxu0 %v9826_v14 }
 0xdca   :  { %9118 = vmatmul.mubr.bf16.gmra.mrb[188].mxu0 %v9827_v4 }
 0xdcb   :  { %9121 = vmatprep.mubr.bf16.mxu0 %v9828_v46 }
 0xdd2   :  { %9122 = vmatmul.mubr.bf16.gmra.mrb[192].mxu0 %v9829_v33 }
 0xdd3   :  { %9157 = vmatprep.mubr.msk.bf16.mxu0 %vm3673_vm9, %v9830_v48 }
 0xde1   :  { %v8799_v35 = vpop.f32.mrb[124].mxu1 }
 0xde2   :  { %v8800_v42 = vpop.f32.mrb[125].mxu1 }
 0xde3   :  { %v8801_v30 = vadd.f32 %v8800_v42, %v8799_v35  ;;  %v8802_v41 = vpop.f32.mrb[126].mxu1 }
 0xde4   :  { %v8803_v29 = vpop.f32.mrb[127].mxu1 }
 0xde5   :  { %v8804_v39 = vadd.f32 %v8803_v29, %v8802_v41  ;;  %v6148_v29 = vpop.permute.xlu1 %6147 }
 0xde9   :  { %v8805_v63 = vpop.f32.mrb[128].mxu1 }
 0xdea   :  { %v8806_v11 = vpop.f32.mrb[129].mxu1 }
 0xdeb   :  { %v8807_v53 = vadd.f32 %v8806_v11, %v8805_v63  ;;  %v8808_v24 = vpop.f32.mrb[130].mxu1 }
 0xdec   :  { %v8809_v54 = vpop.f32.mrb[131].mxu1 }
 0xded   :  { %v13754_v0 = vadd.f32 %v8809_v54, %v8808_v24 }
 0xdf1   :  { %v8811_v32 = vpop.f32.mrb[132].mxu1 }
 0xdf2   :  { %v8812_v13 = vpop.f32.mrb[133].mxu1 }
 0xdf3   :  { %v13756_v60 = vadd.f32 %v8812_v13, %v8811_v32  ;;  %v8814_v43 = vpop.f32.mrb[134].mxu1  ;;  %v6153_v32 = vpop.permute.xlu0 %6152 }
 0xdf4   :  { %v8815_v57 = vpop.f32.mrb[135].mxu1 }
 0xdf5   :  { %v13758_v7 = vadd.f32 %v8815_v57, %v8814_v43 }
 0xdf9   :  { %v8817_v61 = vpop.f32.mrb[136].mxu1 }
 0xdfa   :  { %v8818_v2 = vpop.f32.mrb[137].mxu1 }
 0xdfb   :  { %v13764_v23 = vadd.f32 %v8818_v2, %v8817_v61  ;;  %v8820_v9 = vpop.f32.mrb[138].mxu1 }
 0xdfc   :  { %v8821_v3 = vpop.f32.mrb[139].mxu1 }
 0xdfd   :  { %v13766_v38 = vadd.f32 %v8821_v3, %v8820_v9 }
 0xe01   :  { %v8823_v51 = vpop.f32.mrb[140].mxu1 }
 0xe02   :  { %v8824_v50 = vpop.f32.mrb[141].mxu1 }
 0xe03   :  { %v13768_v52 = vadd.f32 %v8824_v50, %v8823_v51  ;;  %v8826_v15 = vpop.f32.mrb[142].mxu1 }
 0xe04   :  { %v8827_v56 = vpop.f32.mrb[143].mxu1 }
 0xe05   :  { %v13770_v19 = vadd.f32 %v8827_v56, %v8826_v15  ;;  %v6158_v15 = vpop.permute.xlu1 %6157 }
 0xe09   :  { %v8829_v12 = vpop.f32.mrb[144].mxu1 }
 0xe0a   :  { %v8830_v22 = vpop.f32.mrb[145].mxu1 }
 0xe0b   :  { %v13772_v62 = vadd.f32 %v8830_v22, %v8829_v12  ;;  %v8832_v55 = vpop.f32.mrb[146].mxu1 }
 0xe0c   :  { %v8833_v45 = vpop.f32.mrb[147].mxu1 }
 0xe0d   :  { %v8735_v44 = vpop.f32.mrb[116].mxu0  ;;  %v13774_v10 = vadd.f32 %v8833_v45, %v8832_v55  ;;  %v6163_v45 = vpop.permute.xlu0 %6162 }
 0xe0e   :  { %v8736_v27 = vpop.f32.mrb[117].mxu0 }
 0xe0f   :  { %v8737_v49 = vadd.f32 %v8736_v27, %v8735_v44  ;;  %v8738_v47 = vpop.f32.mrb[118].mxu0 }
 0xe10   :  { %v8739_v34 = vpop.f32.mrb[119].mxu0 }
 0xe11   :  { %v6618_v36 = vadd.f32 %v8737_v49, %v6138_v28  ;;  %v8740_v58 = vadd.f32 %v8739_v34, %v8738_v47  ;;  %v8835_v31 = vpop.f32.mrb[148].mxu1 }
 0xe12   :  { %v8836_v26 = vpop.f32.mrb[149].mxu1 }
 0xe13   :  { %v6621_v18 = vadd.f32 %v8740_v58, %v6143_v40  ;;  %v13776_v16 = vadd.f32 %v8836_v26, %v8835_v31  ;;  %v8838_v8 = vpop.f32.mrb[150].mxu1  ;;  %v13778_v6 = vadd.f32 %v8801_v30, %v6618_v36  ;;  %v6168_v26 = vpop.permute.xlu1 %6167 }
 0xe14   :  { %v8839_v14 = vpop.f32.mrb[151].mxu1 }
 0xe15   :  { %v8741_v4 = vpop.f32.mrb[120].mxu0  ;;  %v13780_v46 = vadd.f32 %v8839_v14, %v8838_v8  ;;  %v13782_v33 = vadd.f32 %v8804_v39, %v6621_v18 }
 0xe16   :  { %v8742_v35 = vpop.f32.mrb[121].mxu0 }
 0xe17   :  { %v8743_v42 = vadd.f32 %v8742_v35, %v8741_v4  ;;  %v8744_v41 = vpop.f32.mrb[122].mxu0  ;;  %v6173_v35 = vpop.permute.xlu0 %6172 }
 0xe18   :  { %v8745_v63 = vpop.f32.mrb[123].mxu0 }
 0xe19   :  { %v6626_v11 = vadd.f32 %v8743_v42, %v6148_v29  ;;  %v8746_v24 = vadd.f32 %v8745_v63, %v8744_v41  ;;  %v8841_v54 = vpop.f32.mrb[152].mxu1 }
 0xe1a   :  { %v8842_v13 = vpop.f32.mrb[153].mxu1 }
 0xe1b   :  { %v6629_v43 = vadd.f32 %v8746_v24, %v6153_v32  ;;  %v13784_v57 = vadd.f32 %v8842_v13, %v8841_v54  ;;  %v8844_v30 = vpop.f32.mrb[154].mxu1  ;;  %v13786_v48 = vadd.f32 %v8807_v53, %v6626_v11 }
 0xe1c   :  { %v8845_v61 = vpop.f32.mrb[155].mxu1 }
 0xe1d   :  { %v8747_v2 = vpop.f32.mrb[124].mxu0  ;;  %v13788_v39 = vadd.f32 %v8845_v61, %v8844_v30  ;;  %v13791_v9 = vadd.f32 %v13754_v0, %v6629_v43  ;;  %v6178_v30 = vpop.permute.xlu1 %6177 }
 0xe1e   :  { %v8748_v3 = vpop.f32.mrb[125].mxu0 }
 0xe1f   :  { %v8749_v51 = vadd.f32 %v8748_v3, %v8747_v2  ;;  %v8750_v50 = vpop.f32.mrb[126].mxu0 }
 0xe20   :  { %v8751_v56 = vpop.f32.mrb[127].mxu0 }
 0xe21   :  { %v6634_v12 = vadd.f32 %v8749_v51, %v6158_v15  ;;  %v8752_v22 = vadd.f32 %v8751_v56, %v8750_v50  ;;  %v8927_v55 = vpop.f32.mrb[156].mxu1  ;;  %v6183_v50 = vpop.permute.xlu0 %6182 }
 0xe22   :  { %v8928_v44 = vpop.f32.mrb[157].mxu1 }
 0xe23   :  { %v6637_v27 = vadd.f32 %v8752_v22, %v6163_v45  ;;  %v13793_v53 = vadd.f32 %v8928_v44, %v8927_v55  ;;  %v8930_v49 = vpop.f32.mrb[158].mxu1  ;;  %v13796_v47 = vadd.f32 %v13756_v60, %v6634_v12 }
 0xe24   :  { %v8931_v28 = vpop.f32.mrb[159].mxu1 }
 0xe25   :  { %v8753_v0 = vpop.f32.mrb[128].mxu0  ;;  %v13798_v34 = vadd.f32 %v8931_v28, %v8930_v49  ;;  %v13801_v36 = vadd.f32 %v13758_v7, %v6637_v27 }
 0xe26   :  { %v8754_v58 = vpop.f32.mrb[129].mxu0 }
 0xe27   :  { %v8755_v31 = vadd.f32 %v8754_v58, %v8753_v0  ;;  %v8756_v40 = vpop.f32.mrb[130].mxu0  ;;  %v6188_v0 = vpop.permute.xlu1 %6187 }
 0xe28   :  { %v8757_v18 = vpop.f32.mrb[131].mxu0 }
 0xe29   :  { %v6642_v8 = vadd.f32 %v8755_v31, %v6168_v26  ;;  %v8758_v14 = vadd.f32 %v8757_v18, %v8756_v40  ;;  %v8933_v4 = vpop.f32.mrb[160].mxu1  ;;  %v6193_v18 = vpop.permute.xlu0 %6192 }
 0xe2a   :  { %v8934_v42 = vpop.f32.mrb[161].mxu1 }
 0xe2b   :  { %v6645_v41 = vadd.f32 %v8758_v14, %v6173_v35  ;;  %v13803_v60 = vadd.f32 %v8934_v42, %v8933_v4  ;;  %v8936_v29 = vpop.f32.mrb[162].mxu1  ;;  %v13806_v63 = vadd.f32 %v13764_v23, %v6642_v8 }
 0xe2c   :  { %v8937_v11 = vpop.f32.mrb[163].mxu1 }
 0xe2d   :  { %v8759_v7 = vpop.f32.mrb[132].mxu0  ;;  %v13808_v24 = vadd.f32 %v8937_v11, %v8936_v29  ;;  %v13811_v54 = vadd.f32 %v13766_v38, %v6645_v41 }
 0xe2e   :  { %v8760_v32 = vpop.f32.mrb[133].mxu0 }
 0xe2f   :  { %v8761_v13 = vadd.f32 %v8760_v32, %v8759_v7  ;;  %v8762_v43 = vpop.f32.mrb[134].mxu0 }
 0xe30   :  { %v8763_v61 = vpop.f32.mrb[135].mxu0 }
 0xe31   :  { %v6650_v2 = vadd.f32 %v8761_v13, %v6178_v30  ;;  %v8764_v3 = vadd.f32 %v8763_v61, %v8762_v43  ;;  %v8939_v51 = vpop.f32.mrb[164].mxu1  ;;  %v6198_v13 = vpop.permute.xlu1 %6197 }
 0xe32   :  { %v8940_v15 = vpop.f32.mrb[165].mxu1 }
 0xe33   :  { %v6653_v56 = vadd.f32 %v8764_v3, %v6183_v50  ;;  %v13813_v23 = vadd.f32 %v8940_v15, %v8939_v51  ;;  %v8942_v12 = vpop.f32.mrb[166].mxu1  ;;  %v13816_v22 = vadd.f32 %v13768_v52, %v6650_v2  ;;  %v6203_v3 = vpop.permute.xlu0 %6202 }
 0xe34   :  { %v8943_v55 = vpop.f32.mrb[167].mxu1 }
 0xe35   :  { %v8765_v38 = vpop.f32.mrb[136].mxu0  ;;  %v13818_v45 = vadd.f32 %v8943_v55, %v8942_v12  ;;  %v13821_v44 = vadd.f32 %v13770_v19, %v6653_v56 }
 0xe36   :  { %v8766_v27 = vpop.f32.mrb[137].mxu0 }
 0xe37   :  { %v8767_v49 = vadd.f32 %v8766_v27, %v8765_v38  ;;  %v8768_v28 = vpop.f32.mrb[138].mxu0 }
 0xe38   :  { %v8769_v58 = vpop.f32.mrb[139].mxu0 }
 0xe39   :  { %v6658_v31 = vadd.f32 %v8767_v49, %v6188_v0  ;;  %v8770_v40 = vadd.f32 %v8769_v58, %v8768_v28  ;;  %v8945_v26 = vpop.f32.mrb[168].mxu1  ;;  %v6208_v0 = vpop.permute.xlu1 %6207 }
 0xe3a   :  { %v8946_v8 = vpop.f32.mrb[169].mxu1 }
 0xe3b   :  { %v6661_v14 = vadd.f32 %v8770_v40, %v6193_v18  ;;  %v13823_v52 = vadd.f32 %v8946_v8, %v8945_v26  ;;  %v8948_v4 = vpop.f32.mrb[170].mxu1  ;;  %v13826_v35 = vadd.f32 %v13772_v62, %v6658_v31  ;;  %v6213_v18 = vpop.permute.xlu0 %6212 }
 0xe3c   :  { %v8949_v42 = vpop.f32.mrb[171].mxu1 }
 0xe3d   :  { %v8771_v19 = vpop.f32.mrb[140].mxu0  ;;  %v13828_v41 = vadd.f32 %v8949_v42, %v8948_v4  ;;  %v13831_v29 = vadd.f32 %v13774_v10, %v6661_v14 }
 0xe3e   :  { %v8772_v11 = vpop.f32.mrb[141].mxu0 }
 0xe3f   :  { %v8773_v7 = vadd.f32 %v8772_v11, %v8771_v19  ;;  %v8774_v32 = vpop.f32.mrb[142].mxu0 }
 0xe40   :  { %v8775_v43 = vpop.f32.mrb[143].mxu0 }
 0xe41   :  { %v6666_v30 = vadd.f32 %v8773_v7, %v6198_v13  ;;  %v8776_v61 = vadd.f32 %v8775_v43, %v8774_v32  ;;  %v8951_v2 = vpop.f32.mrb[172].mxu1 }
 0xe42   :  { %v8952_v51 = vpop.f32.mrb[173].mxu1 }
 0xe43   :  { %v6669_v50 = vadd.f32 %v8776_v61, %v6203_v3  ;;  %v13833_v62 = vadd.f32 %v8952_v51, %v8951_v2  ;;  %v8954_v15 = vpop.f32.mrb[174].mxu1  ;;  %v13836_v56 = vadd.f32 %v13776_v16, %v6666_v30 }
 0xe44   :  { %v8955_v12 = vpop.f32.mrb[175].mxu1 }
 0xe45   :  { %v8777_v10 = vpop.f32.mrb[144].mxu0  ;;  %v13838_v55 = vadd.f32 %v8955_v12, %v8954_v15  ;;  %v13841_v38 = vadd.f32 %v13780_v46, %v6669_v50 }
 0xe46   :  { %v8778_v27 = vpop.f32.mrb[145].mxu0 }
 0xe47   :  { %v8779_v49 = vadd.f32 %v8778_v27, %v8777_v10  ;;  %v8780_v28 = vpop.f32.mrb[146].mxu0 }
 0xe48   :  { %v8781_v58 = vpop.f32.mrb[147].mxu0 }
 0xe49   :  { %v6674_v31 = vadd.f32 %v8779_v49, %v6208_v0  ;;  %v8782_v40 = vadd.f32 %v8781_v58, %v8780_v28  ;;  %v8957_v26 = vpop.f32.mrb[176].mxu1 }
 0xe4a   :  { %v8958_v8 = vpop.f32.mrb[177].mxu1 }
 0xe4b   :  { %v6677_v14 = vadd.f32 %v8782_v40, %v6213_v18  ;;  %v13843_v16 = vadd.f32 %v8958_v8, %v8957_v26  ;;  %v8960_v4 = vpop.f32.mrb[178].mxu1  ;;  %v13846_v42 = vadd.f32 %v13784_v57, %v6674_v31 }
 0xe4c   :  { %v8961_v19 = vpop.f32.mrb[179].mxu1 }
 0xe4d   :  { %v8863_v46 = vpop.f32.mrb[148].mxu0  ;;  %v13848_v11 = vadd.f32 %v8961_v19, %v8960_v4  ;;  %v13851_v7 = vadd.f32 %v13788_v39, %v6677_v14 }
 0xe4e   :  { %v8864_v32 = vpop.f32.mrb[149].mxu0 }
 0xe4f   :  { %v8865_v13 = vadd.f32 %v8864_v32, %v8863_v46  ;;  %v8866_v43 = vpop.f32.mrb[150].mxu0 }
 0xe50   :  { %v8867_v30 = vpop.f32.mrb[151].mxu0 }
 0xe51   :  { %v6812_v61 = vadd.f32 %v8865_v13, %v13778_v6  ;;  %v8868_v2 = vadd.f32 %v8867_v30, %v8866_v43  ;;  %v8963_v3 = vpop.f32.mrb[180].mxu1 }
 0xe52   :  { %v8964_v51 = vpop.f32.mrb[181].mxu1 }
 0xe53   :  { %v6815_v50 = vadd.f32 %v8868_v2, %v13782_v33  ;;  %v13855_v57 = vadd.f32 %v8964_v51, %v8963_v3  ;;  %v8966_v15 = vpop.f32.mrb[182].mxu1  ;;  %v13858_v12 = vadd.f32 %v13793_v53, %v6812_v61 }
 0xe54   :  { %v8967_v10 = vpop.f32.mrb[183].mxu1 }
 0xe55   :  { %v8869_v39 = vpop.f32.mrb[152].mxu0  ;;  %v13860_v27 = vadd.f32 %v8967_v10, %v8966_v15  ;;  %v13863_v49 = vadd.f32 %v13798_v34, %v6815_v50 }
 0xe56   :  { %v8870_v28 = vpop.f32.mrb[153].mxu0 }
 0xe57   :  { %v8871_v6 = vadd.f32 %v8870_v28, %v8869_v39  ;;  %v8872_v0 = vpop.f32.mrb[154].mxu0 }
 0xe58   :  { %v8873_v58 = vpop.f32.mrb[155].mxu0 }
 0xe59   :  { %v6820_v31 = vadd.f32 %v8871_v6, %v13786_v48  ;;  %v8874_v33 = vadd.f32 %v8873_v58, %v8872_v0  ;;  %v8969_v40 = vpop.f32.mrb[184].mxu1 }
 0xe5a   :  { %v8970_v26 = vpop.f32.mrb[185].mxu1 }
 0xe5b   :  { %v6823_v18 = vadd.f32 %v8874_v33, %v13791_v9  ;;  %v13867_v53 = vadd.f32 %v8970_v26, %v8969_v40  ;;  %v8972_v8 = vpop.f32.mrb[186].mxu1  ;;  %v13870_v14 = vadd.f32 %v13803_v60, %v6820_v31 }
 0xe5c   :  { %v8973_v4 = vpop.f32.mrb[187].mxu1 }
 0xe5d   :  { %v8875_v34 = vpop.f32.mrb[156].mxu0  ;;  %v13872_v19 = vadd.f32 %v8973_v4, %v8972_v8  ;;  %v13875_v46 = vadd.f32 %v13808_v24, %v6823_v18 }
 0xe5e   :  { %v8876_v32 = vpop.f32.mrb[157].mxu0 }
 0xe5f   :  { %v8877_v48 = vadd.f32 %v8876_v32, %v8875_v34  ;;  %v8878_v13 = vpop.f32.mrb[158].mxu0 }
 0xe60   :  { %v8879_v43 = vpop.f32.mrb[159].mxu0 }
 0xe61   :  { %v6828_v30 = vadd.f32 %v8877_v48, %v13796_v47  ;;  %v8880_v9 = vadd.f32 %v8879_v43, %v8878_v13  ;;  %v9143_v61 = vpop.f32.mrb[188].mxu1 }
 0xe62   :  { %v7178_v2 = vpop.f32.mrb[189].mxu1 }
 0xe63   :  { %v6831_v3 = vadd.f32 %v8880_v9, %v13801_v36  ;;  %v9144_v60 = vpop.f32.mrb[190].mxu1  ;;  %v13880_v51 = vadd.f32 %v13813_v23, %v6828_v30  ;;  %v9831_v30 = vld [vmem:[%s14093_s12 + $0x8] sm:$0xff]  }
 0xe64   :  { %v7210_v50 = vpack.c.bf16 %v9144_v60, %v9143_v61  ;;  %v7181_v15 = vpop.f32.mrb[191].mxu1 }
 0xe65   :  { %v8881_v10 = vpop.f32.mrb[160].mxu0  ;;  %v7209_v24 = vpack.c.bf16 %v7181_v15, %v7178_v2  ;;  %v13883_v39 = vadd.f32 %v13818_v45, %v6831_v3 }
 0xe66   :  { %v8882_v28 = vpop.f32.mrb[161].mxu0 }
 0xe67   :  { %v8883_v6 = vadd.f32 %v8882_v28, %v8881_v10  ;;  %v8884_v0 = vpop.f32.mrb[162].mxu0  ;;  %9149 = vmatprep.subr.bf16.mxu0 %v7209_v24 }
 0xe68   :  { %v8885_v47 = vpop.f32.mrb[163].mxu0  ;;  %9150 = vmatpush3.bf16.msra.mxu0 %v7209_v24 }
 0xe69   :  { %v6836_v58 = vadd.f32 %v8883_v6, %v13806_v63  ;;  %v8886_v36 = vadd.f32 %v8885_v47, %v8884_v0  ;;  %v9147_v31 = vpop.f32.mrb[192].mxu1  ;;  %9151 = vmatprep.subr.bf16.mxu0 %v7210_v50 }
 0xe6a   :  { %v7194_v23 = vpop.f32.mrb[193].mxu1 }
 0xe6b   :  { %v6839_v33 = vadd.f32 %v8886_v36, %v13811_v54  ;;  %v9148_v40 = vpop.f32.mrb[194].mxu1  ;;  %v13888_v26 = vadd.f32 %v13823_v52, %v6836_v58 }
 0xe6c   :  { %v7212_v45 = vpack.c.bf16 %v9148_v40, %v9147_v31  ;;  %v7197_v18 = vpop.f32.mrb[195].mxu1  ;;  %9152 = vmatpush3.bf16.msra.mxu0 %v7210_v50 }
 0xe6d   :  { %v8887_v8 = vpop.f32.mrb[164].mxu0  ;;  %v7211_v4 = vpack.c.bf16 %v7197_v18, %v7194_v23  ;;  %v13891_v34 = vadd.f32 %v13828_v41, %v6839_v33  ;;  %v9832_v41 = vld [vmem:[%s14093_s12 + $0x10] sm:$0xff]  }
 0xe6e   :  { %v8888_v32 = vpop.f32.mrb[165].mxu0 }
 0xe6f   :  { %v8889_v63 = vadd.f32 %v8888_v32, %v8887_v8  ;;  %v8890_v48 = vpop.f32.mrb[166].mxu0  ;;  %9153 = vmatprep.subr.bf16.mxu0 %v7211_v4 }
 0xe70   :  { %v8891_v13 = vpop.f32.mrb[167].mxu0  ;;  %9154 = vmatpush3.bf16.msra.mxu0 %v7211_v4 }
 0xe71   :  { %v6844_v54 = vadd.f32 %v8889_v63, %v13816_v22  ;;  %v8892_v43 = vadd.f32 %v8891_v13, %v8890_v48  ;;  %9155 = vmatprep.subr.bf16.mxu0 %v7212_v45 }
 0xe73   :  { %v6847_v52 = vadd.f32 %v8892_v43, %v13821_v44  ;;  %v13899_v9 = vadd.f32 %v13833_v62, %v6844_v54 }
 0xe74   :  { %9156 = vmatpush3.bf16.msra.mxu0 %v7212_v45 }
 0xe75   :  { %v8893_v61 = vpop.f32.mrb[168].mxu0  ;;  %9173 = vmatprep.subr.bf16.mxu0 %v13524_v5  ;;  %v13906_v22 = vadd.f32 %v13838_v55, %v6847_v52  ;;  %v9833_v55 = vld [vmem:[%s14093_s12 + $0x18] sm:$0xff]  }
 0xe76   :  { %v8894_v2 = vpop.f32.mrb[169].mxu0 }
 0xe77   :  { %v8895_v44 = vadd.f32 %v8894_v2, %v8893_v61  ;;  %v8896_v3 = vpop.f32.mrb[170].mxu0  ;;  %9158 = vmatmul.mubr.msk.bf16.vlgmr.msra.gmra.mrb[196].mxu0 %vm3673_vm9, %v9831_v30 }
 0xe78   :  { %v8897_v60 = vpop.f32.mrb[171].mxu0  ;;  %9174 = vmatpush3.bf16.msra.mxu0 %v13524_v5  ;;  %9161 = vmatprep.mubr.msk.bf16.mxu0 %vm3673_vm9, %v9832_v41  ;;  %v9834_v5 = vld [vmem:[%s14093_s12 + $0x20] sm:$0xff]  }
 0xe79   :  { %v6852_v62 = vadd.f32 %v8895_v44, %v13826_v35  ;;  %v8898_v50 = vadd.f32 %v8897_v60, %v8896_v3  ;;  %9175 = vmatprep.subr.bf16.mxu0 %v13550_v59 }
 0xe7b   :  { %v6855_v15 = vadd.f32 %v8898_v50, %v13831_v29  ;;  %v13918_v10 = vadd.f32 %v13843_v16, %v6852_v62 }
 0xe7c   :  { %9176 = vmatpush3.bf16.msra.mxu0 %v13550_v59 }
 0xe7d   :  { %v8899_v24 = vpop.f32.mrb[172].mxu0  ;;  %9177 = vmatprep.subr.bf16.mxu0 %v13568_v17  ;;  %v13926_v35 = vadd.f32 %v13848_v11, %v6855_v15  ;;  %v9835_v11 = vld [vmem:[%s14093_s12 + $0x28] sm:$0xff]  }
 0xe7e   :  { %v8900_v29 = vpop.f32.mrb[173].mxu0 }
 0xe7f   :  { %v8901_v28 = vadd.f32 %v8900_v29, %v8899_v24  ;;  %v8902_v6 = vpop.f32.mrb[174].mxu0  ;;  %9162 = vmatmul.mubr.msk.bf16.gmra.mrb[200].mxu0 %vm3673_vm9, %v9833_v55  ;;  %v7249_v29 = vpop.permute.xlu1 %7248 }
 0xe80   :  { %v8903_v0 = vpop.f32.mrb[175].mxu0  ;;  %9178 = vmatpush3.bf16.msra.mxu0 %v13568_v17  ;;  %9165 = vmatprep.mubr.msk.bf16.mxu0 %vm3673_vm9, %v9834_v5  ;;  %v9836_v17 = vld [vmem:[%s14093_s12 + $0x30] sm:$0xff]  }
 0xe81   :  { %v6860_v59 = vadd.f32 %v8901_v28, %v13836_v56  ;;  %v8904_v16 = vadd.f32 %v8903_v0, %v8902_v6  ;;  %9179 = vmatprep.subr.bf16.mxu0 %v13575_v1  ;;  %v7254_v28 = vpop.permute.xlu0 %7253 }
 0xe83   :  { %v6863_v47 = vadd.f32 %v8904_v16, %v13841_v38  ;;  %v13938_v58 = vadd.f32 %v13855_v57, %v6860_v59  ;;  %v7259_v6 = vpop.permute.xlu1 %7258 }
 0xe84   :  { %9180 = vmatpush3.bf16.msra.mxu0 %v13575_v1 }
 0xe85   :  { %v8905_v36 = vpop.f32.mrb[176].mxu0  ;;  %9181 = vmatprep.subr.bf16.mxu0 %v13588_v20  ;;  %v13946_v56 = vadd.f32 %v13860_v27, %v6863_v47  ;;  %v9837_v27 = vld [vmem:[%s14093_s12 + $0x38] sm:$0xff]   ;;  %v7264_v0 = vpop.permute.xlu0 %7263 }
 0xe86   :  { %v8906_v38 = vpop.f32.mrb[177].mxu0 }
 0xe87   :  { %v8907_v31 = vadd.f32 %v8906_v38, %v8905_v36  ;;  %v8908_v23 = vpop.f32.mrb[178].mxu0  ;;  %9166 = vmatmul.mubr.msk.bf16.gmra.mrb[204].mxu0 %vm3673_vm9, %v9835_v11  ;;  %v7269_v59 = vpop.permute.xlu1 %7268 }
 0xe88   :  { %v8909_v33 = vpop.f32.mrb[179].mxu0  ;;  %9182 = vmatpush3.bf16.msra.mxu0 %v13588_v20  ;;  %9169 = vmatprep.mubr.msk.bf16.mxu0 %vm3673_vm9, %v9836_v17 }
 0xe89   :  { %v6868_v1 = vadd.f32 %v8907_v31, %v13846_v42  ;;  %v8910_v57 = vadd.f32 %v8909_v33, %v8908_v23  ;;  %9183 = vmatprep.subr.bf16.mxu0 %v13600_v37  ;;  %v7274_v16 = vpop.permute.xlu0 %7273 }
 0xe8b   :  { %v6871_v40 = vadd.f32 %v8910_v57, %v13851_v7  ;;  %v6965_v45 = vadd.f32 %v13867_v53, %v6868_v1  ;;  %v7279_v47 = vpop.permute.xlu1 %7278 }
 0xe8c   :  { %9184 = vmatpush3.bf16.msra.mxu0 %v13600_v37 }
 0xe8d   :  { %v9111_v18 = vpop.f32.mrb[180].mxu0  ;;  %9185 = vmatprep.subr.bf16.mxu0 %v13612_v21  ;;  %v6968_v20 = vadd.f32 %v13872_v19, %v6871_v40  ;;  %v7284_v36 = vpop.permute.xlu0 %7283 }
 0xe8e   :  { %v7014_v42 = vadd.f32 %v9111_v18, %v13870_v14  ;;  %v7005_v8 = vpop.f32.mrb[181].mxu0 }
 0xe8f   :  { %v7006_v4 = vadd.f32 %v7005_v8, %v13858_v12  ;;  %v9112_v32 = vpop.f32.mrb[182].mxu0  ;;  %9170 = vmatmul.mubr.msk.bf16.gmra.mrb[208].mxu0 %vm3673_vm9, %v9837_v27  ;;  %v7289_v40 = vpop.permute.xlu1 %7288 }
 0xe90   :  { %v7017_v7 = vadd.f32 %v9112_v32, %v13875_v46  ;;  %v7008_v63 = vpop.f32.mrb[183].mxu0  ;;  %9186 = vmatpush3.bf16.msra.mxu0 %v13612_v21 }
 0xe91   :  { %v7009_v37 = vadd.f32 %v7008_v63, %v13863_v49  ;;  %9187 = vmatprep.subr.bf16.mxu0 %v13624_v25 }
 0xe92   :  { %v7069_v53 = vpack.c.bf16 %v7017_v7, %v7014_v42 }
 0xe93   :  { %v7068_v48 = vpack.c.bf16 %v7009_v37, %v7006_v4 }
 0xe94   :  { %9188 = vmatpush3.bf16.msra.mxu0 %v13624_v25 }
 0xe95   :  { %v9115_v14 = vpop.f32.mrb[184].mxu0  ;;  %9189 = vmatprep.mubr.bf16.mxu0 %v7068_v48  ;;  %v7299_v48 = vpop.permute.xlu1 %7298 }
 0xe96   :  { %v7030_v12 = vadd.f32 %v9115_v14, %v13888_v26  ;;  %v7021_v19 = vpop.f32.mrb[185].mxu0 }
 0xe97   :  { %v7022_v13 = vadd.f32 %v7021_v19, %v13880_v51  ;;  %v9116_v54 = vpop.f32.mrb[186].mxu0  ;;  %9190 = vmatmul.mubr.bf16.vlgmr.msra.gmra.mrb[196].mxu0 %v7069_v53 }
 0xe98   :  { %v7033_v46 = vadd.f32 %v9116_v54, %v13891_v34  ;;  %v7024_v21 = vpop.f32.mrb[187].mxu0 }
 0xe99   :  { %v7025_v49 = vadd.f32 %v7024_v21, %v13883_v39 }
 0xe9a   :  { %v7071_v43 = vpack.c.bf16 %v7033_v46, %v7030_v12 }
 0xe9b   :  { %v7070_v52 = vpack.c.bf16 %v7025_v49, %v7022_v13 }
 0xe9d   :  { %v9119_v30 = vpop.f32.mrb[188].mxu0  ;;  %9193 = vmatprep.mubr.bf16.mxu0 %v7070_v52 }
 0xe9e   :  { %v7046_v25 = vadd.f32 %v9119_v30, %v13918_v10  ;;  %v7037_v41 = vpop.f32.mrb[189].mxu0 }
 0xe9f   :  { %v7038_v61 = vadd.f32 %v7037_v41, %v13899_v9  ;;  %v9120_v26 = vpop.f32.mrb[190].mxu0  ;;  %9194 = vmatmul.mubr.bf16.gmra.mrb[200].mxu0 %v7071_v43 }
 0xea0   :  { %v7049_v51 = vadd.f32 %v9120_v26, %v13926_v35  ;;  %v7040_v2 = vpop.f32.mrb[191].mxu0  ;;  %v9839_v35 = vld [vmem:[%s14097_s16 + $0x8] sm:$0xff]  }
 0xea1   :  { %v7041_v44 = vadd.f32 %v7040_v2, %v13906_v22  ;;  %v9838_v22 = vld [vmem:[%s14097_s16] sm:$0xff]  }
 0xea2   :  { %v7073_v34 = vpack.c.bf16 %v7049_v51, %v7046_v25  ;;  %9205 = vmatprep.subr.bf16.mxu1 %v9838_v22  ;;  %v7309_v25 = vpop.permute.xlu1 %7308 }
 0xea3   :  { %v7072_v3 = vpack.c.bf16 %v7041_v44, %v7038_v61  ;;  %9206 = vmatpush3.bf16.msra.mxu1 %v9838_v22 }
 0xea4   :  { %9207 = vmatprep.subr.bf16.mxu1 %v9839_v35 }
 0xea5   :  { %v9123_v60 = vpop.f32.mrb[192].mxu0  ;;  %9197 = vmatprep.mubr.bf16.mxu0 %v7072_v3 }
 0xea6   :  { %v7062_v39 = vadd.f32 %v9123_v60, %v6965_v45  ;;  %v7053_v62 = vpop.f32.mrb[193].mxu0 }
 0xea7   :  { %v7054_v50 = vadd.f32 %v7053_v62, %v13938_v58  ;;  %v9124_v15 = vpop.f32.mrb[194].mxu0  ;;  %9198 = vmatmul.mubr.bf16.gmra.mrb[204].mxu0 %v7073_v34  ;;  %9208 = vmatpush3.bf16.msra.mxu1 %v9839_v35 }
 0xea8   :  { %v7065_v55 = vadd.f32 %v9124_v15, %v6968_v20  ;;  %v7056_v10 = vpop.f32.mrb[195].mxu0  ;;  %v7294_v20 = vpop.permute.xlu0 %7293 }
 0xea9   :  { %v7057_v9 = vadd.f32 %v7056_v10, %v13946_v56 }
 0xeaa   :  { %v7075_v5 = vpack.c.bf16 %v7065_v55, %v7062_v39 }
 0xeab   :  { %v7074_v24 = vpack.c.bf16 %v7057_v9, %v7054_v50  ;;  %v7319_v50 = vpop.permute.xlu1 %7318 }
 0xeac   :  { %v7304_v13 = vpop.permute.xlu0 %7303 }
 0xead   :  { %9201 = vmatprep.mubr.bf16.mxu0 %v7074_v24 }
 0xeaf   :  { %9202 = vmatmul.mubr.bf16.gmra.mrb[208].mxu0 %v7075_v5 }
 0xeb0   :  { %v7314_v2 = vpop.permute.xlu0 %7313 }
 0xeb4   :  { %v7324_v5 = vpop.permute.xlu0 %7323 }
 0xf6a   :  { %v9191_v11 = vpop.f32.mrb[196].mxu0 }
 0xf6b   :  { %v9353_v58 = vadd.f32 %v9191_v11, %v7259_v6  ;;  %v7521_v17 = vpop.f32.mrb[197].mxu0 }
 0xf6c   :  { %v9354_v56 = vadd.f32 %v7521_v17, %v7249_v29  ;;  %v9192_v38 = vpop.f32.mrb[198].mxu0 }
 0xf6d   :  { %v9355_v31 = vadd.f32 %v9192_v38, %v7264_v0  ;;  %v7524_v23 = vpop.f32.mrb[199].mxu0  ;;  %v7586_v1 = vmax.f32 %v9353_v58, 0.0  ;;  %v9840_v58 = vld [vmem:[%s14094_s13] sm:$0xff]  }
 0xf6e   :  { %v9356_v33 = vadd.f32 %v7524_v23, %v7254_v28  ;;  %v7584_v27 = vmax.f32 %v9354_v56, 0.0 }
 0xf6f   :  { %v7587_v57 = vmax.f32 %v9355_v31, 0.0 }
 0xf70   :  { %v7585_v45 = vmax.f32 %v9356_v33, 0.0 }
 0xf71   :  { %v7601_v18 = vpack.c.bf16 %v7587_v57, %v7586_v1 }
 0xf72   :  { %v7600_v42 = vpack.c.bf16 %v7585_v45, %v7584_v27  ;;  %v9195_v8 = vpop.f32.mrb[200].mxu0 }
 0xf73   :  { %v9357_v4 = vadd.f32 %v9195_v8, %v7279_v47  ;;  %v7537_v32 = vpop.f32.mrb[201].mxu0 }
 0xf74   :  { %v9358_v7 = vadd.f32 %v7537_v32, %v7269_v59  ;;  %v9196_v63 = vpop.f32.mrb[202].mxu0  ;;  %9209 = vmatprep.mubr.msk.bf16.mxu1 %vm1529_vm8, %v7600_v42 }
 0xf75   :  { %v9359_v37 = vadd.f32 %v9196_v63, %v7284_v36  ;;  %v7540_v53 = vpop.f32.mrb[203].mxu0  ;;  %9210 = vmatmul.mubr.msk.bf16.vlgmr.msra.gmra.mrb[196].mxu1 %vm1529_vm8, %v7601_v18  ;;  %v7590_v12 = vmax.f32 %v9357_v4, 0.0 }
 0xf76   :  { %v9360_v14 = vadd.f32 %v7540_v53, %v7274_v16  ;;  %v7588_v54 = vmax.f32 %v9358_v7, 0.0 }
 0xf77   :  { %v7591_v19 = vmax.f32 %v9359_v37, 0.0 }
 0xf78   :  { %v7589_v46 = vmax.f32 %v9360_v14, 0.0 }
 0xf79   :  { %v7603_v21 = vpack.c.bf16 %v7591_v19, %v7590_v12  ;;  %v9841_v12 = vld [vmem:[%s14094_s13 + $0x8] sm:$0xff]   ;;  %v9842_v19 = vld [vmem:[%s14094_s13 + $0x10] sm:$0xff]  }
 0xf7a   :  { %v7602_v49 = vpack.c.bf16 %v7589_v46, %v7588_v54  ;;  %v9199_v43 = vpop.f32.mrb[204].mxu0  ;;  %v9844_v54 = vld [vmem:[%s14094_s13 + $0x20] sm:$0xff]   ;;  %v9845_v46 = vld [vmem:[%s14094_s13 + $0x28] sm:$0xff]  }
 0xf7b   :  { %v9361_v52 = vadd.f32 %v9199_v43, %v7299_v48  ;;  %v7553_v30 = vpop.f32.mrb[205].mxu0  ;;  %v7789_v43 = vpop.permute.xlu1 %7788 }
 0xf7c   :  { %v9362_v41 = vadd.f32 %v7553_v30, %v7289_v40  ;;  %v9200_v61 = vpop.f32.mrb[206].mxu0  ;;  %9213 = vmatprep.mubr.msk.bf16.mxu1 %vm1529_vm8, %v7602_v49  ;;  %v9847_v49 = vld [vmem:[%s14094_s13 + $0x38] sm:$0xff]  }
 0xf7d   :  { %v9363_v26 = vadd.f32 %v9200_v61, %v7304_v13  ;;  %v7556_v51 = vpop.f32.mrb[207].mxu0  ;;  %9214 = vmatmul.mubr.msk.bf16.gmra.mrb[200].mxu1 %vm1529_vm8, %v7603_v21  ;;  %v7594_v34 = vmax.f32 %v9361_v52, 0.0  ;;  %v9843_v13 = vld [vmem:[%s14094_s13 + $0x18] sm:$0xff]   ;;  %v9846_v21 = vld [vmem:[%s14094_s13 + $0x30] sm:$0xff]   ;;  %v7794_v52 = vpop.permute.xlu0 %7793 }
 0xf7e   :  { %v9364_v44 = vadd.f32 %v7556_v51, %v7294_v20  ;;  %v7592_v60 = vmax.f32 %v9362_v41, 0.0 }
 0xf7f   :  { %v7595_v3 = vmax.f32 %v9363_v26, 0.0  ;;  %v7799_v30 = vpop.permute.xlu1 %7798 }
 0xf80   :  { %v7593_v39 = vmax.f32 %v9364_v44, 0.0 }
 0xf81   :  { %v7605_v62 = vpack.c.bf16 %v7595_v3, %v7594_v34 }
 0xf82   :  { %v7604_v15 = vpack.c.bf16 %v7593_v39, %v7592_v60  ;;  %v9203_v55 = vpop.f32.mrb[208].mxu0 }
 0xf83   :  { %v9365_v10 = vadd.f32 %v9203_v55, %v7319_v50  ;;  %v7569_v9 = vpop.f32.mrb[209].mxu0  ;;  %v7809_v41 = vpop.permute.xlu1 %7808 }
 0xf84   :  { %v9366_v24 = vadd.f32 %v7569_v9, %v7309_v25  ;;  %v9204_v22 = vpop.f32.mrb[210].mxu0  ;;  %9217 = vmatprep.mubr.msk.bf16.mxu1 %vm1529_vm8, %v7604_v15  ;;  %v7804_v25 = vpop.permute.xlu0 %7803 }
 0xf85   :  { %v9367_v35 = vadd.f32 %v9204_v22, %v7324_v5  ;;  %v7572_v29 = vpop.f32.mrb[211].mxu0  ;;  %9218 = vmatmul.mubr.msk.bf16.gmra.mrb[204].mxu1 %vm1529_vm8, %v7605_v62  ;;  %v7598_v6 = vmax.f32 %v9365_v10, 0.0 }
 0xf86   :  { %v9368_v28 = vadd.f32 %v7572_v29, %v7314_v2  ;;  %v7596_v59 = vmax.f32 %v9366_v24, 0.0 }
 0xf87   :  { %v7599_v0 = vmax.f32 %v9367_v35, 0.0  ;;  %v7819_v26 = vpop.permute.xlu1 %7818 }
 0xf88   :  { %v7597_v16 = vmax.f32 %v9368_v28, 0.0  ;;  %v7814_v61 = vpop.permute.xlu0 %7813 }
 0xf89   :  { %v7607_v47 = vpack.c.bf16 %v7599_v0, %v7598_v6 }
 0xf8a   :  { %v7606_v11 = vpack.c.bf16 %v7597_v16, %v7596_v59 }
 0xf8b   :  { %v7829_v15 = vpop.permute.xlu1 %7828 }
 0xf8c   :  { %9221 = vmatprep.mubr.msk.bf16.mxu1 %vm1529_vm8, %v7606_v11  ;;  %v7824_v34 = vpop.permute.xlu0 %7823 }
 0xf8d   :  { %9222 = vmatmul.mubr.msk.bf16.gmra.mrb[208].mxu1 %vm1529_vm8, %v7607_v47 }
 0xf8e   :  { %9241 = vmatprep.mubr.bf16.mxu1 %v9840_v58 }
 0xf8f   :  { %v7839_v28 = vpop.permute.xlu1 %7838 }
 0xf90   :  { %v7834_v55 = vpop.permute.xlu0 %7833 }
 0xf93   :  { %v7849_v11 = vpop.permute.xlu1 %7848 }
 0xf94   :  { %v7844_v0 = vpop.permute.xlu0 %7843 }
0x1048   :  { %v9211_v17 = vpop.f32.mrb[196].mxu1 }
0x1049   :  { %v7682_v36 = vpop.f32.mrb[197].mxu1 }
0x104a   :  { %v9212_v56 = vpop.f32.mrb[198].mxu1 }
0x104b   :  { %v7762_v38 = vpack.c.bf16 %v9212_v56, %v9211_v17  ;;  %v7685_v31 = vpop.f32.mrb[199].mxu1 }
0x104c   :  { %v7761_v23 = vpack.c.bf16 %v7685_v31, %v7682_v36 }
0x104e   :  { %9225 = vmatprep.subr.bf16.mxu1 %v7761_v23 }
0x104f   :  { %9226 = vmatpush3.bf16.msra.mxu1 %v7761_v23  ;;  %v7859_v23 = vpop.permute.xlu1 %7858 }
0x1050   :  { %v9215_v33 = vpop.f32.mrb[200].mxu1  ;;  %9227 = vmatprep.subr.bf16.mxu1 %v7762_v38 }
0x1051   :  { %v7698_v1 = vpop.f32.mrb[201].mxu1 }
0x1052   :  { %v9216_v57 = vpop.f32.mrb[202].mxu1 }
0x1053   :  { %v7764_v40 = vpack.c.bf16 %v9216_v57, %v9215_v33  ;;  %v7701_v27 = vpop.f32.mrb[203].mxu1  ;;  %9228 = vmatpush3.bf16.msra.mxu1 %v7762_v38  ;;  %v7854_v38 = vpop.permute.xlu0 %7853 }
0x1054   :  { %v7763_v45 = vpack.c.bf16 %v7701_v27, %v7698_v1 }
0x1056   :  { %9229 = vmatprep.subr.bf16.mxu1 %v7763_v45 }
0x1057   :  { %9230 = vmatpush3.bf16.msra.mxu1 %v7763_v45 }
0x1058   :  { %v9219_v18 = vpop.f32.mrb[204].mxu1  ;;  %9231 = vmatprep.subr.bf16.mxu1 %v7764_v40 }
0x1059   :  { %v7714_v20 = vpop.f32.mrb[205].mxu1 }
0x105a   :  { %v9220_v42 = vpop.f32.mrb[206].mxu1 }
0x105b   :  { %v7766_v8 = vpack.c.bf16 %v9220_v42, %v9219_v18  ;;  %v7717_v4 = vpop.f32.mrb[207].mxu1  ;;  %9232 = vmatpush3.bf16.msra.mxu1 %v7764_v40  ;;  %v7864_v40 = vpop.permute.xlu0 %7863 }
0x105c   :  { %v7765_v32 = vpack.c.bf16 %v7717_v4, %v7714_v20 }
0x105e   :  { %9233 = vmatprep.subr.bf16.mxu1 %v7765_v32 }
0x105f   :  { %9234 = vmatpush3.bf16.msra.mxu1 %v7765_v32 }
0x1060   :  { %v9223_v7 = vpop.f32.mrb[208].mxu1  ;;  %9235 = vmatprep.subr.bf16.mxu1 %v7766_v8 }
0x1061   :  { %v7730_v63 = vpop.f32.mrb[209].mxu1 }
0x1062   :  { %v9224_v37 = vpop.f32.mrb[210].mxu1 }
0x1063   :  { %v7768_v53 = vpack.c.bf16 %v9224_v37, %v9223_v7  ;;  %v7733_v48 = vpop.f32.mrb[211].mxu1  ;;  %9236 = vmatpush3.bf16.msra.mxu1 %v7766_v8 }
0x1064   :  { %v7767_v14 = vpack.c.bf16 %v7733_v48, %v7730_v63 }
0x1066   :  { %9237 = vmatprep.subr.bf16.mxu1 %v7767_v14 }
0x1067   :  { %9238 = vmatpush3.bf16.msra.mxu1 %v7767_v14 }
0x1068   :  { %9239 = vmatprep.subr.bf16.mxu1 %v7768_v53 }
0x106b   :  { %9240 = vmatpush3.bf16.msra.mxu1 %v7768_v53 }
0x106e   :  { %9242 = vmatmul.mubr.bf16.vlgmr.msra.gmra.mrb[212].mxu1 %v9841_v12 }
0x106f   :  { %9245 = vmatprep.mubr.bf16.mxu1 %v9842_v19 }
0x1076   :  { %9246 = vmatmul.mubr.bf16.gmra.mrb[216].mxu1 %v9843_v13 }
0x1077   :  { %9249 = vmatprep.mubr.bf16.mxu1 %v9844_v54 }
0x107e   :  { %9250 = vmatmul.mubr.bf16.gmra.mrb[220].mxu1 %v9845_v46 }
0x107f   :  { %9253 = vmatprep.mubr.bf16.mxu1 %v9846_v21 }
0x1086   :  { %9254 = vmatmul.mubr.bf16.gmra.mrb[224].mxu1 %v9847_v49 }
0x1141   :  { %v9243_v51 = vpop.f32.mrb[212].mxu1 }
0x1142   :  { %v7957_v2 = vadd.f32 %v9243_v51, %v7799_v30  ;;  %v7948_v44 = vpop.f32.mrb[213].mxu1 }
0x1143   :  { %v7949_v3 = vadd.f32 %v7948_v44, %v7789_v43  ;;  %v9244_v60 = vpop.f32.mrb[214].mxu1 }
0x1144   :  { %8014 = vst.msk [vmem:[%s14099_s18 + $0x10] sm:$0xff] %vm8011_vm10, %v7957_v2  ;;  %v7960_v39 = vadd.f32 %v9244_v60, %v7804_v25  ;;  %v7951_v62 = vpop.f32.mrb[215].mxu1 }
0x1145   :  { %8012 = vst.msk [vmem:[%s14099_s18] sm:$0xff] %vm8011_vm10, %v7949_v3  ;;  %v7952_v50 = vadd.f32 %v7951_v62, %v7794_v52 }
0x1146   :  { %8015 = vst.msk [vmem:[%s14099_s18 + $0x18] sm:$0xff] %vm8011_vm10, %v7960_v39 }
0x1147   :  { %8013 = vst.msk [vmem:[%s14099_s18 + $0x8] sm:$0xff] %vm8011_vm10, %v7952_v50 }
0x1149   :  { %v9247_v10 = vpop.f32.mrb[216].mxu1 }
0x114a   :  { %v7973_v9 = vadd.f32 %v9247_v10, %v7819_v26  ;;  %v7964_v5 = vpop.f32.mrb[217].mxu1 }
0x114b   :  { %v7965_v24 = vadd.f32 %v7964_v5, %v7809_v41  ;;  %v9248_v22 = vpop.f32.mrb[218].mxu1 }
0x114c   :  { %8018 = vst.msk [vmem:[%s14099_s18 + $0x30] sm:$0xff] %vm8011_vm10, %v7973_v9  ;;  %v7976_v35 = vadd.f32 %v9248_v22, %v7824_v34  ;;  %v7967_v29 = vpop.f32.mrb[219].mxu1 }
0x114d   :  { %8016 = vst.msk [vmem:[%s14099_s18 + $0x20] sm:$0xff] %vm8011_vm10, %v7965_v24  ;;  %v7968_v6 = vadd.f32 %v7967_v29, %v7814_v61 }
0x114e   :  { %8019 = vst.msk [vmem:[%s14099_s18 + $0x38] sm:$0xff] %vm8011_vm10, %v7976_v35 }
0x114f   :  { %8017 = vst.msk [vmem:[%s14099_s18 + $0x28] sm:$0xff] %vm8011_vm10, %v7968_v6 }
0x1151   :  { %v9251_v59 = vpop.f32.mrb[220].mxu1 }
0x1152   :  { %v7989_v16 = vadd.f32 %v9251_v59, %v7839_v28  ;;  %v7980_v47 = vpop.f32.mrb[221].mxu1 }
0x1153   :  { %v7981_v58 = vadd.f32 %v7980_v47, %v7829_v15  ;;  %v9252_v17 = vpop.f32.mrb[222].mxu1 }
0x1154   :  { %8022 = vst.msk [vmem:[%s14099_s18 + $0x50] sm:$0xff] %vm8011_vm10, %v7989_v16  ;;  %v7992_v36 = vadd.f32 %v9252_v17, %v7844_v0  ;;  %v7983_v56 = vpop.f32.mrb[223].mxu1 }
0x1155   :  { %8020 = vst.msk [vmem:[%s14099_s18 + $0x40] sm:$0xff] %vm8011_vm10, %v7981_v58  ;;  %v7984_v31 = vadd.f32 %v7983_v56, %v7834_v55 }
0x1156   :  { %8023 = vst.msk [vmem:[%s14099_s18 + $0x58] sm:$0xff] %vm8011_vm10, %v7992_v36 }
0x1157   :  { %8021 = vst.msk [vmem:[%s14099_s18 + $0x48] sm:$0xff] %vm8011_vm10, %v7984_v31 }
0x1159   :  { %v9255_v33 = vpop.f32.mrb[224].mxu1 }
0x115a   :  { %v8005_v1 = vadd.f32 %v9255_v33, %v7859_v23  ;;  %v7996_v57 = vpop.f32.mrb[225].mxu1 }
0x115b   :  { %v7997_v27 = vadd.f32 %v7996_v57, %v7849_v11  ;;  %v9256_v45 = vpop.f32.mrb[226].mxu1 }
0x115c   :  { %8026 = vst.msk [vmem:[%s14099_s18 + $0x70] sm:$0xff] %vm8011_vm10, %v8005_v1  ;;  %v8008_v18 = vadd.f32 %v9256_v45, %v7864_v40  ;;  %v7999_v20 = vpop.f32.mrb[227].mxu1 }
0x115d   :  { %8024 = vst.msk [vmem:[%s14099_s18 + $0x60] sm:$0xff] %vm8011_vm10, %v7997_v27  ;;  %v8000_v42 = vadd.f32 %v7999_v20, %v7854_v38 }
0x115e   :  { %8027 = vst.msk [vmem:[%s14099_s18 + $0x78] sm:$0xff] %vm8011_vm10, %v8008_v18 }
0x115f   :  { %8025 = vst.msk [vmem:[%s14099_s18 + $0x68] sm:$0xff] %vm8011_vm10, %v8000_v42 }
0x1160   :  { %8032 = vsyncpa [#allocation3], 1 }
0x1161   :  { %8033 = vsyncpa [#allocation5], 1 }
0x1162   :  { %8034 = vsyncpa [#allocation8], 1 }

</bundles_post_ra>
